<compile_context>
chip_gen: v7x
topology: tpu7x:2x2x1
jax: 0.10.0
libtpu: 0.0.40
codegen_flags: <defaults>
</compile_context>

<pallas_src>
import functools

import numpy as np
import jax
import jax.numpy as jnp
from jax import lax
from jax.experimental import pallas as pl
from jax.experimental.pallas import tpu as pltpu


# ----------------------------- config ---------------------------------------
class Args:
    window_size = 16        # feature dim of enc_inputs (swap_dim == 1)
    input_size = 8          # encoder sequence length
    output_size = 8         # decoder sequence length (after ProjectionNet)
    embedding_dim = 32
    d_head = 8
    n_head = 4
    d_hidn = 16             # ProjectionNet hidden
    n_layer = 2
    layer_norm_epsilon = 1e-6
    swap_dim = 1
    add_offset = 0
    data_encoding = 1


# ----------------------------- weight packing --------------------------------
def pack_weights(tree):
    """Pack every 2-D leaf into one (rows, 128) f32 buffer.

    Each leaf is placed at a sublane-aligned row offset (padded to a multiple
    of 8 rows, lanes padded to 128).  Returns the packed jnp array and a
    pytree of static (row_offset, rows, cols) descriptors mirroring `tree`.
    """
    blocks = []
    total = [0]

    def rec(node):
        if isinstance(node, dict):
            return {k: rec(v) for k, v in node.items()}
        if isinstance(node, list):
            return [rec(v) for v in node]
        arr = np.asarray(node, np.float32)
        assert arr.ndim == 2, arr.shape
        r, c = int(arr.shape[0]), int(arr.shape[1])
        assert c <= 128, arr.shape
        rp = -(-r // 8) * 8
        blk = np.zeros((rp, 128), np.float32)
        blk[:r, :c] = arr
        off = total[0]
        blocks.append(blk)
        total[0] += rp
        return (off, r, c)

    idx = rec(tree)
    packed = jnp.asarray(np.concatenate(blocks, axis=0))
    return packed, idx


# ----------------------------- fused kernel ---------------------------------
def _disc_kernel(x_ref, w_ref, out_ref, *, idx, bc, n_head, d_head, eps):
    HD = n_head * d_head
    scale = float(1.0 / np.sqrt(d_head))
    c_gelu = float(np.sqrt(2.0 / np.pi))
    f32 = jnp.float32

    def get(spec):                                   # static view into the packed buffer
        off, r, c = spec
        return w_ref[off:off + r, :c]

    def lin(x, p):
        return jnp.dot(x, get(p["w"]), preferred_element_type=f32) + get(p["b"])

    def add_ln(a, b, p):
        z = a + b
        m = jnp.mean(z, axis=-1, keepdims=True)
        cen = z - m
        var = jnp.mean(cen * cen, axis=-1, keepdims=True)   # biased, like nn.LayerNorm
        return cen * lax.rsqrt(var + eps) * get(p["g"]) + get(p["b"])

    def ffn(x, p):
        h = jnp.dot(x, get(p["w1"]), preferred_element_type=f32) + get(p["b1"])
        # tanh-approx GELU -> EUP instead of a VALU erf polynomial
        h = 0.5 * h * (1.0 + jnp.tanh(c_gelu * (h + 0.044715 * h * h * h)))
        return jnp.dot(h, get(p["w2"]), preferred_element_type=f32) + get(p["b2"])

    def mha(xq, xkv, p, bias, cross):
        w = get(p["wqkv"])
        b = get(p["bqkv"])
        if cross:                                    # decoder-encoder cross-attention
            q = jnp.dot(xq, w[:, :HD], preferred_element_type=f32) + b[:, :HD]
            kv = jnp.dot(xkv, w[:, HD:], preferred_element_type=f32) + b[:, HD:]
            k, v = kv[:, :HD], kv[:, HD:]
        else:                                        # self-attention: one fused QKV matmul
            qkv = jnp.dot(xq, w, preferred_element_type=f32) + b
            q, k, v = qkv[:, :HD], qkv[:, HD:2 * HD], qkv[:, 2 * HD:]
        kT = jnp.transpose(k)                        # ONE transpose per attention (XLU)
        wo = get(p["wo"])
        acc = None
        for h in range(n_head):                      # static per-head loop
            sl = slice(h * d_head, (h + 1) * d_head)
            s = jnp.dot(q[:, sl], kT[sl, :], preferred_element_type=f32) * scale
            if bias is not None:                     # block-diagonal batch mask (bc > 1)
                s = s + bias
            s = s - jnp.max(s, axis=-1, keepdims=True)
            e = jnp.exp(s)
            pr = e * pl.reciprocal(jnp.sum(e, axis=-1, keepdims=True), approx=True)
            ctx = jnp.dot(pr, v[:, sl], preferred_element_type=f32)
            part = jnp.dot(ctx, wo[sl, :], preferred_element_type=f32)   # per-head W_o slice
            acc = part if acc is None else acc + part
        return acc + get(p["bo"])

    enc_bias = get(idx["attn_bias_enc"]) if bc > 1 else None
    dec_bias = get(idx["attn_bias_dec"]) if bc > 1 else None

    # ---------------- Encoder (batch stacked along sublanes) ----------------
    x = x_ref[...]                                   # (bc*S, window_size)
    x = lin(x, idx["enc"]["emb"]) + get(idx["pos"])  # sinusoid positions (data_encoding=1)
    x = lin(x, idx["enc"]["fc1"])
    for L in idx["enc"]["layers"]:
        a = mha(x, x, L["attn"], enc_bias, cross=False)
        x = add_ln(x, a, L["ln1"])
        f = ffn(x, L["ffn"])
        x = add_ln(f, x, L["ln2"])
    x = lin(x, idx["enc"]["proj"])                   # (bc*S, E)

    # ---------------- ProjectionNet (swap_dim == 1), transpose-free ---------
    # Pre-transposed block-diagonal weights act from the left, so
    #   enc_out_b = (fc2(fc1(x_b^T)))^T   for every batch element at once.
    t1 = jnp.dot(get(idx["pn_w1t"]), x, preferred_element_type=f32) + get(idx["pn_b1c"])
    enc_out = jnp.dot(get(idx["pn_w2t"]), t1, preferred_element_type=f32) + get(idx["pn_b2c"])

    # ---------------- Decoder ----------------
    enc_dep = lin(enc_out, idx["dec"]["deproj"])     # (bc*S_out, E)
    dec = enc_dep
    for L in idx["dec"]["layers"]:
        a = mha(dec, dec, L["self_attn"], dec_bias, cross=False)
        x1 = add_ln(dec, a, L["ln1"])
        a2 = mha(x1, enc_dep, L["cross_attn"], dec_bias, cross=True)
        x2 = add_ln(x1, a2, L["ln2"])
        f = ffn(x2, L["ffn"])
        dec = add_ln(x2, f, L["ln3"])
    d = lin(dec, idx["dec"]["deemb"])                # (bc*S_out, window_size)

    # ---------------- Discriminator projection + sigmoid --------------------
    y = lin(d, idx["disc"])
    out_ref[...] = 0.5 * (1.0 + jnp.tanh(0.5 * y))   # exact sigmoid via EUP tanh


# ----------------------------- wrapper ---------------------------------------
def discriminator_forward_pallas(params, enc_inputs, pos_enc, args, batch_block=None):
    B, S, W = enc_inputs.shape
    S_out = args.output_size

    if batch_block is None:
        # v7x has 2 TensorCores per chip -> keep one batch element per grid
        # step and let dimension_semantics=("parallel",) shard the grid.
        # Single-TC v5e/v6e -> fold the whole batch into one grid step.
        kind = jax.devices()[0].device_kind.lower()
        batch_block = 1 if ("v7" in kind or "tpu7" in kind) else B
    bc = max(1, min(int(batch_block), B))
    while B % bc:
        bc -= 1

    # ---- host-side one-time packing of every weight into a single buffer ----
    pn = params["proj_net"]
    eye = np.eye(bc, dtype=np.float32)
    w1 = np.asarray(pn["fc1"]["w"], np.float32)
    b1 = np.asarray(pn["fc1"]["b"], np.float32)
    w2 = np.asarray(pn["fc2"]["w"], np.float32)
    b2 = np.asarray(pn["fc2"]["b"], np.float32)
    pack_tree = {
        "enc": params["enc"],
        "dec": params["dec"],
        "disc": params["disc"],
        # ProjectionNet as pre-transposed block-diagonal (per-batch) weights.
        "pn_w1t": np.kron(eye, w1.T),
        "pn_b1c": np.tile(b1.reshape(-1, 1), (bc, 1)),
        "pn_w2t": np.kron(eye, w2.T),
        "pn_b2c": np.tile(b2.reshape(-1, 1), (bc, 1)),
        # Positional encodings pre-tiled for the folded batch.
        "pos": np.tile(np.asarray(pos_enc, np.float32), (bc, 1)),
    }
    if bc > 1:
        def blockdiag_bias(n):
            g = np.arange(bc * n) // n
            return np.where(g[:, None] == g[None, :], 0.0, -1e30).astype(np.float32)
        pack_tree["attn_bias_enc"] = blockdiag_bias(S)
        pack_tree["attn_bias_dec"] = blockdiag_bias(S_out)

    packed, idx = pack_weights(pack_tree)

    kernel = functools.partial(
        _disc_kernel, idx=idx, bc=bc, n_head=args.n_head, d_head=args.d_head,
        eps=float(args.layer_norm_epsilon))

    x2 = enc_inputs.astype(jnp.float32).reshape(B * S, W)   # batch stacked on sublanes

    out = pl.pallas_call(
        kernel,
        out_shape=jax.ShapeDtypeStruct((B * S_out, W), jnp.float32),
        grid=(B // bc,),
        in_specs=[
            pl.BlockSpec((bc * S, W), lambda i: (i, 0)),     # activations
            pl.BlockSpec(packed.shape, lambda i: (0, 0)),    # ONE packed weight block
        ],
        out_specs=pl.BlockSpec((bc * S_out, W), lambda i: (i, 0)),
        compiler_params=pltpu.CompilerParams(
            dimension_semantics=("parallel",)),
        # TODO(synk): emit a lane-dense (bc, S_out*W) output block if the
        # masked 16-lane store ever shows up in profiles (marginal here).
    )(x2, packed)
    return out.reshape(B, S_out * W)


# ----------------------- pure-JAX reference (for checking) ------------------
def _ref_lin(x, p):
    return x @ p["w"] + p["b"][0]


def _ref_ln(z, p, eps):
    m = z.mean(-1, keepdims=True)
    v = ((z - m) ** 2).mean(-1, keepdims=True)
    return (z - m) / jnp.sqrt(v + eps) * p["g"][0] + p["b"][0]


def _ref_ffn(x, p):
    h = jax.nn.gelu(x @ p["w1"] + p["b1"][0], approximate=False)
    return h @ p["w2"] + p["b2"][0]


def _ref_mha(xq, xkv, p, H, D):
    HD = H * D
    w, b = p["wqkv"], p["bqkv"][0]
    q = xq @ w[:, :HD] + b[:HD]
    k = xkv @ w[:, HD:2 * HD] + b[HD:2 * HD]
    v = xkv @ w[:, 2 * HD:] + b[2 * HD:]
    Sq, Sk = q.shape[0], k.shape[0]
    qh = q.reshape(Sq, H, D).transpose(1, 0, 2)
    kh = k.reshape(Sk, H, D).transpose(1, 0, 2)
    vh = v.reshape(Sk, H, D).transpose(1, 0, 2)
    s = jnp.einsum("hqd,hkd->hqk", qh, kh) / np.sqrt(D)
    a = jax.nn.softmax(s, axis=-1)
    ctx = jnp.einsum("hqk,hkd->hqd", a, vh).transpose(1, 0, 2).reshape(Sq, HD)
    return ctx @ p["wo"] + p["bo"][0]


def discriminator_forward_ref(params, enc_inputs, pos_enc, args):
    eps = args.layer_norm_epsilon
    H, D = args.n_head, args.d_head

    def single(x):
        x = _ref_lin(x, params["enc"]["emb"]) + pos_enc
        x = _ref_lin(x, params["enc"]["fc1"])
        for L in params["enc"]["layers"]:
            a = _ref_mha(x, x, L["attn"], H, D)
            x = _ref_ln(x + a, L["ln1"], eps)
            f = _ref_ffn(x, L["ffn"])
            x = _ref_ln(f + x, L["ln2"], eps)
        x = _ref_lin(x, params["enc"]["proj"])
        t = x.T
        t = _ref_lin(t, params["proj_net"]["fc1"])
        t = _ref_lin(t, params["proj_net"]["fc2"])
        enc_out = t.T
        enc_dep = _ref_lin(enc_out, params["dec"]["deproj"])
        dec = enc_dep
        for L in params["dec"]["layers"]:
            a = _ref_mha(dec, dec, L["self_attn"], H, D)
            x1 = _ref_ln(dec + a, L["ln1"], eps)
            a2 = _ref_mha(x1, enc_dep, L["cross_attn"], H, D)
            x2 = _ref_ln(x1 + a2, L["ln2"], eps)
            f = _ref_ffn(x2, L["ffn"])
            dec = _ref_ln(x2 + f, L["ln3"], eps)
        d = _ref_lin(dec, params["dec"]["deemb"])
        return jax.nn.sigmoid(d @ params["disc"]["w"] + params["disc"]["b"][0])

    out = jax.vmap(single)(enc_inputs)
    return out.reshape(enc_inputs.shape[0], -1)


# ----------------------------- init / tables --------------------------------
def get_sinusoid_encoding_table(n_seq, d_hidn):
    pos = np.arange(n_seq)[:, None].astype(np.float64)
    i = np.arange(d_hidn)[None, :]
    table = pos / np.power(10000, 2 * (i // 2) / d_hidn)
    table[:, 0::2] = np.sin(table[:, 0::2])
    table[:, 1::2] = np.cos(table[:, 1::2])
    return table.astype(np.float32)


def _init_linear(key, fan_in, fan_out):
    kw, kb = jax.random.split(key)
    bound = 1.0 / np.sqrt(fan_in)
    return {"w": jax.random.uniform(kw, (fan_in, fan_out), jnp.float32, -bound, bound),
            "b": jax.random.uniform(kb, (1, fan_out), jnp.float32, -bound, bound)}


def init_params(args, key):
    keys = iter(jax.random.split(key, 256))
    E, HD = args.embedding_dim, args.n_head * args.d_head

    def lin(i, o):
        return _init_linear(next(keys), i, o)

    def mha():
        qkv, o = lin(E, 3 * HD), lin(HD, E)
        return {"wqkv": qkv["w"], "bqkv": qkv["b"], "wo": o["w"], "bo": o["b"]}

    def ffn():
        l1, l2 = lin(E, 4 * E), lin(4 * E, E)
        return {"w1": l1["w"], "b1": l1["b"], "w2": l2["w"], "b2": l2["b"]}

    def ln():
        return {"g": jnp.ones((1, E), jnp.float32), "b": jnp.zeros((1, E), jnp.float32)}

    enc_in = args.window_size if args.swap_dim else args.input_size
    dec_out = args.window_size if args.swap_dim else args.output_size

    enc_layers = [{"attn": mha(), "ln1": ln(), "ffn": ffn(), "ln2": ln()}
                  for _ in range(args.n_layer)]
    dec_layers = [{"self_attn": mha(), "ln1": ln(), "cross_attn": mha(), "ln2": ln(),
                   "ffn": ffn(), "ln3": ln()}
                  for _ in range(args.n_layer)]
    return {
        "enc": {"emb": lin(enc_in, E), "fc1": lin(E, E),
                "layers": enc_layers, "proj": lin(E, E)},
        "proj_net": {"fc1": lin(args.input_size, args.d_hidn),
                     "fc2": lin(args.d_hidn, args.output_size)},
        "dec": {"deproj": lin(E, E), "layers": dec_layers, "deemb": lin(E, dec_out)},
        "disc": lin(args.window_size, args.window_size),
    }


# ------------------------------- main ----------------------------------------
if __name__ == "__main__":
    args = Args()
    key = jax.random.PRNGKey(0)
    kp, ke = jax.random.split(key, 2)

    params = init_params(args, kp)
    sinusoid = jnp.asarray(
        get_sinusoid_encoding_table(args.window_size + 1, args.embedding_dim))
    # data_encoding == 1: positions are arange(seq_len) + 1
    pos_enc = sinusoid[1:args.input_size + 1]            # (S, E)

    B = 2
    enc_inputs = jax.random.normal(ke, (B, args.input_size, args.window_size), jnp.float32)
    # dec_inputs / input_character / output_character are unused when
    # add_offset == 0, exactly as in the PyTorch forward for this config.

    out = discriminator_forward_pallas(params, enc_inputs, pos_enc, args)
    out = jax.block_until_ready(out)

    ref = discriminator_forward_ref(params, enc_inputs, pos_enc, args)
    assert out.shape == (B, args.output_size * args.window_size), out.shape
    np.testing.assert_allclose(np.asarray(out), np.asarray(ref), atol=2e-2, rtol=2e-2)
    print("KERNEL_OK")
</pallas_src>

<mosaic_0001>
module attributes {stable_mosaic.version = 11 : i64} {
  func.func @_disc_kernel(%arg0: i32, %arg1: memref<16x16xf32, #tpu.memory_space<vmem>>, %arg2: memref<1696x128xf32, #tpu.memory_space<vmem>>, %arg3: memref<16x16xf32, #tpu.memory_space<vmem>>) attributes {dimension_semantics = [#tpu.dimension_semantics<parallel>], iteration_bounds = array<i64: 1>, scalar_prefetch = 0 : i64, scratch_operands = 0 : i64, tpu.core_type = #tpu.core_type<tc>, window_params = [{transform_indices = @transform_0, window_bounds = array<i64: 16, 16>}, {pipeline_mode = #tpu.pipeline_mode<synchronous>, transform_indices = @transform_1, window_bounds = array<i64: 1696, 128>}, {transform_indices = @transform_2, window_bounds = array<i64: 16, 16>}]} {
    %c1664 = arith.constant 1664 : index
    %c0 = arith.constant 0 : index
    %0 = vector.load %arg2[%c1664, %c0] : memref<1696x128xf32, #tpu.memory_space<vmem>>, vector<16x16xf32>
    %c1680 = arith.constant 1680 : index
    %c0_0 = arith.constant 0 : index
    %1 = vector.load %arg2[%c1680, %c0_0] : memref<1696x128xf32, #tpu.memory_space<vmem>>, vector<16x16xf32>
    %c0_1 = arith.constant 0 : index
    %c0_2 = arith.constant 0 : index
    %2 = vector.load %arg1[%c0_1, %c0_2] : memref<16x16xf32, #tpu.memory_space<vmem>>, vector<16x16xf32>
    %c0_3 = arith.constant 0 : index
    %c0_4 = arith.constant 0 : index
    %3 = vector.load %arg2[%c0_3, %c0_4] : memref<1696x128xf32, #tpu.memory_space<vmem>>, vector<16x32xf32>
    %cst = arith.constant dense<0.000000e+00> : vector<16x32xf32>
    %4 = tpu.matmul %2, %3, %cst {dimension_numbers = #tpu.dot_dimension_numbers<[1], [0], [0], [1], [0, 0, 1, 1], [], []>} : vector<16x16xf32>, vector<16x32xf32>, vector<16x32xf32> -> vector<16x32xf32>
    %c16 = arith.constant 16 : index
    %c0_5 = arith.constant 0 : index
    %5 = vector.load %arg2[%c16, %c0_5] : memref<1696x128xf32, #tpu.memory_space<vmem>>, vector<1x32xf32>
    %6 = vector.broadcast %5 : vector<1x32xf32> to vector<16x32xf32>
    %7 = arith.addf %4, %6 : vector<16x32xf32>
    %c1648 = arith.constant 1648 : index
    %c0_6 = arith.constant 0 : index
    %8 = vector.load %arg2[%c1648, %c0_6] : memref<1696x128xf32, #tpu.memory_space<vmem>>, vector<16x32xf32>
    %9 = arith.addf %7, %8 : vector<16x32xf32>
    %c24 = arith.constant 24 : index
    %c0_7 = arith.constant 0 : index
    %10 = vector.load %arg2[%c24, %c0_7] : memref<1696x128xf32, #tpu.memory_space<vmem>>, vector<32x32xf32>
    %cst_8 = arith.constant dense<0.000000e+00> : vector<16x32xf32>
    %11 = tpu.matmul %9, %10, %cst_8 {dimension_numbers = #tpu.dot_dimension_numbers<[1], [0], [0], [1], [0, 0, 1, 1], [], []>} : vector<16x32xf32>, vector<32x32xf32>, vector<16x32xf32> -> vector<16x32xf32>
    %c56 = arith.constant 56 : index
    %c0_9 = arith.constant 0 : index
    %12 = vector.load %arg2[%c56, %c0_9] : memref<1696x128xf32, #tpu.memory_space<vmem>>, vector<1x32xf32>
    %13 = vector.broadcast %12 : vector<1x32xf32> to vector<16x32xf32>
    %14 = arith.addf %11, %13 : vector<16x32xf32>
    %c64 = arith.constant 64 : index
    %c0_10 = arith.constant 0 : index
    %15 = vector.load %arg2[%c64, %c0_10] : memref<1696x128xf32, #tpu.memory_space<vmem>>, vector<32x96xf32>
    %c96 = arith.constant 96 : index
    %c0_11 = arith.constant 0 : index
    %16 = vector.load %arg2[%c96, %c0_11] : memref<1696x128xf32, #tpu.memory_space<vmem>>, vector<1x96xf32>
    %cst_12 = arith.constant dense<0.000000e+00> : vector<16x96xf32>
    %17 = tpu.matmul %14, %15, %cst_12 {dimension_numbers = #tpu.dot_dimension_numbers<[1], [0], [0], [1], [0, 0, 1, 1], [], []>} : vector<16x32xf32>, vector<32x96xf32>, vector<16x96xf32> -> vector<16x96xf32>
    %18 = vector.broadcast %16 : vector<1x96xf32> to vector<16x96xf32>
    %19 = arith.addf %17, %18 : vector<16x96xf32>
    %20 = vector.extract_strided_slice %19 {offsets = [0, 0], sizes = [16, 32], strides = [1, 1]} : vector<16x96xf32> to vector<16x32xf32>
    %21 = vector.extract_strided_slice %19 {offsets = [0, 32], sizes = [16, 32], strides = [1, 1]} : vector<16x96xf32> to vector<16x32xf32>
    %22 = vector.extract_strided_slice %19 {offsets = [0, 64], sizes = [16, 32], strides = [1, 1]} : vector<16x96xf32> to vector<16x32xf32>
    %23 = tpu.transpose %21, [1, 0] : vector<16x32xf32> -> vector<32x16xf32>
    %c104 = arith.constant 104 : index
    %c0_13 = arith.constant 0 : index
    %24 = vector.load %arg2[%c104, %c0_13] : memref<1696x128xf32, #tpu.memory_space<vmem>>, vector<32x32xf32>
    %25 = vector.extract_strided_slice %20 {offsets = [0, 0], sizes = [16, 8], strides = [1, 1]} : vector<16x32xf32> to vector<16x8xf32>
    %26 = vector.extract_strided_slice %23 {offsets = [0, 0], sizes = [8, 16], strides = [1, 1]} : vector<32x16xf32> to vector<8x16xf32>
    %cst_14 = arith.constant dense<0.000000e+00> : vector<16x16xf32>
    %27 = tpu.matmul %25, %26, %cst_14 {dimension_numbers = #tpu.dot_dimension_numbers<[1], [0], [0], [1], [0, 0, 1, 1], [], []>} : vector<16x8xf32>, vector<8x16xf32>, vector<16x16xf32> -> vector<16x16xf32>
    %cst_15 = arith.constant 0.353553385 : f32
    %28 = vector.broadcast %cst_15 : f32 to vector<16x16xf32>
    %29 = arith.mulf %27, %28 : vector<16x16xf32>
    %30 = arith.addf %29, %0 : vector<16x16xf32>
    %cst_16 = arith.constant dense<0xFF800000> : vector<16xf32>
    %31 = vector.multi_reduction <maximumf>, %30, %cst_16 [1] : vector<16x16xf32> to vector<16xf32>
    %32 = vector.shape_cast %31 : vector<16xf32> to vector<16x1xf32>
    %33 = vector.broadcast %32 : vector<16x1xf32> to vector<16x16xf32>
    %34 = arith.subf %30, %33 : vector<16x16xf32>
    %35 = math.exp %34 : vector<16x16xf32>
    %cst_17 = arith.constant dense<0.000000e+00> : vector<16xf32>
    %36 = vector.multi_reduction <add>, %35, %cst_17 [1] : vector<16x16xf32> to vector<16xf32>
    %37 = vector.shape_cast %36 : vector<16xf32> to vector<16x1xf32>
    %38 = tpu.reciprocal %37 {approx = true} : vector<16x1xf32> -> vector<16x1xf32>
    %39 = vector.broadcast %38 : vector<16x1xf32> to vector<16x16xf32>
    %40 = arith.mulf %35, %39 : vector<16x16xf32>
    %41 = vector.extract_strided_slice %22 {offsets = [0, 0], sizes = [16, 8], strides = [1, 1]} : vector<16x32xf32> to vector<16x8xf32>
    %cst_18 = arith.constant dense<0.000000e+00> : vector<16x8xf32>
    %42 = tpu.matmul %40, %41, %cst_18 {dimension_numbers = #tpu.dot_dimension_numbers<[1], [0], [0], [1], [0, 0, 1, 1], [], []>} : vector<16x16xf32>, vector<16x8xf32>, vector<16x8xf32> -> vector<16x8xf32>
    %43 = vector.extract_strided_slice %24 {offsets = [0, 0], sizes = [8, 32], strides = [1, 1]} : vector<32x32xf32> to vector<8x32xf32>
    %cst_19 = arith.constant dense<0.000000e+00> : vector<16x32xf32>
    %44 = tpu.matmul %42, %43, %cst_19 {dimension_numbers = #tpu.dot_dimension_numbers<[1], [0], [0], [1], [0, 0, 1, 1], [], []>} : vector<16x8xf32>, vector<8x32xf32>, vector<16x32xf32> -> vector<16x32xf32>
    %45 = vector.extract_strided_slice %20 {offsets = [0, 8], sizes = [16, 8], strides = [1, 1]} : vector<16x32xf32> to vector<16x8xf32>
    %46 = vector.extract_strided_slice %23 {offsets = [8, 0], sizes = [8, 16], strides = [1, 1]} : vector<32x16xf32> to vector<8x16xf32>
    %cst_20 = arith.constant dense<0.000000e+00> : vector<16x16xf32>
    %47 = tpu.matmul %45, %46, %cst_20 {dimension_numbers = #tpu.dot_dimension_numbers<[1], [0], [0], [1], [0, 0, 1, 1], [], []>} : vector<16x8xf32>, vector<8x16xf32>, vector<16x16xf32> -> vector<16x16xf32>
    %cst_21 = arith.constant 0.353553385 : f32
    %48 = vector.broadcast %cst_21 : f32 to vector<16x16xf32>
    %49 = arith.mulf %47, %48 : vector<16x16xf32>
    %50 = arith.addf %49, %0 : vector<16x16xf32>
    %cst_22 = arith.constant dense<0xFF800000> : vector<16xf32>
    %51 = vector.multi_reduction <maximumf>, %50, %cst_22 [1] : vector<16x16xf32> to vector<16xf32>
    %52 = vector.shape_cast %51 : vector<16xf32> to vector<16x1xf32>
    %53 = vector.broadcast %52 : vector<16x1xf32> to vector<16x16xf32>
    %54 = arith.subf %50, %53 : vector<16x16xf32>
    %55 = math.exp %54 : vector<16x16xf32>
    %cst_23 = arith.constant dense<0.000000e+00> : vector<16xf32>
    %56 = vector.multi_reduction <add>, %55, %cst_23 [1] : vector<16x16xf32> to vector<16xf32>
    %57 = vector.shape_cast %56 : vector<16xf32> to vector<16x1xf32>
    %58 = tpu.reciprocal %57 {approx = true} : vector<16x1xf32> -> vector<16x1xf32>
    %59 = vector.broadcast %58 : vector<16x1xf32> to vector<16x16xf32>
    %60 = arith.mulf %55, %59 : vector<16x16xf32>
    %61 = vector.extract_strided_slice %22 {offsets = [0, 8], sizes = [16, 8], strides = [1, 1]} : vector<16x32xf32> to vector<16x8xf32>
    %cst_24 = arith.constant dense<0.000000e+00> : vector<16x8xf32>
    %62 = tpu.matmul %60, %61, %cst_24 {dimension_numbers = #tpu.dot_dimension_numbers<[1], [0], [0], [1], [0, 0, 1, 1], [], []>} : vector<16x16xf32>, vector<16x8xf32>, vector<16x8xf32> -> vector<16x8xf32>
    %63 = vector.extract_strided_slice %24 {offsets = [8, 0], sizes = [8, 32], strides = [1, 1]} : vector<32x32xf32> to vector<8x32xf32>
    %cst_25 = arith.constant dense<0.000000e+00> : vector<16x32xf32>
    %64 = tpu.matmul %62, %63, %cst_25 {dimension_numbers = #tpu.dot_dimension_numbers<[1], [0], [0], [1], [0, 0, 1, 1], [], []>} : vector<16x8xf32>, vector<8x32xf32>, vector<16x32xf32> -> vector<16x32xf32>
    %65 = arith.addf %44, %64 : vector<16x32xf32>
    %66 = vector.extract_strided_slice %20 {offsets = [0, 16], sizes = [16, 8], strides = [1, 1]} : vector<16x32xf32> to vector<16x8xf32>
    %67 = vector.extract_strided_slice %23 {offsets = [16, 0], sizes = [8, 16], strides = [1, 1]} : vector<32x16xf32> to vector<8x16xf32>
    %cst_26 = arith.constant dense<0.000000e+00> : vector<16x16xf32>
    %68 = tpu.matmul %66, %67, %cst_26 {dimension_numbers = #tpu.dot_dimension_numbers<[1], [0], [0], [1], [0, 0, 1, 1], [], []>} : vector<16x8xf32>, vector<8x16xf32>, vector<16x16xf32> -> vector<16x16xf32>
    %cst_27 = arith.constant 0.353553385 : f32
    %69 = vector.broadcast %cst_27 : f32 to vector<16x16xf32>
    %70 = arith.mulf %68, %69 : vector<16x16xf32>
    %71 = arith.addf %70, %0 : vector<16x16xf32>
    %cst_28 = arith.constant dense<0xFF800000> : vector<16xf32>
    %72 = vector.multi_reduction <maximumf>, %71, %cst_28 [1] : vector<16x16xf32> to vector<16xf32>
    %73 = vector.shape_cast %72 : vector<16xf32> to vector<16x1xf32>
    %74 = vector.broadcast %73 : vector<16x1xf32> to vector<16x16xf32>
    %75 = arith.subf %71, %74 : vector<16x16xf32>
    %76 = math.exp %75 : vector<16x16xf32>
    %cst_29 = arith.constant dense<0.000000e+00> : vector<16xf32>
    %77 = vector.multi_reduction <add>, %76, %cst_29 [1] : vector<16x16xf32> to vector<16xf32>
    %78 = vector.shape_cast %77 : vector<16xf32> to vector<16x1xf32>
    %79 = tpu.reciprocal %78 {approx = true} : vector<16x1xf32> -> vector<16x1xf32>
    %80 = vector.broadcast %79 : vector<16x1xf32> to vector<16x16xf32>
    %81 = arith.mulf %76, %80 : vector<16x16xf32>
    %82 = vector.extract_strided_slice %22 {offsets = [0, 16], sizes = [16, 8], strides = [1, 1]} : vector<16x32xf32> to vector<16x8xf32>
    %cst_30 = arith.constant dense<0.000000e+00> : vector<16x8xf32>
    %83 = tpu.matmul %81, %82, %cst_30 {dimension_numbers = #tpu.dot_dimension_numbers<[1], [0], [0], [1], [0, 0, 1, 1], [], []>} : vector<16x16xf32>, vector<16x8xf32>, vector<16x8xf32> -> vector<16x8xf32>
    %84 = vector.extract_strided_slice %24 {offsets = [16, 0], sizes = [8, 32], strides = [1, 1]} : vector<32x32xf32> to vector<8x32xf32>
    %cst_31 = arith.constant dense<0.000000e+00> : vector<16x32xf32>
    %85 = tpu.matmul %83, %84, %cst_31 {dimension_numbers = #tpu.dot_dimension_numbers<[1], [0], [0], [1], [0, 0, 1, 1], [], []>} : vector<16x8xf32>, vector<8x32xf32>, vector<16x32xf32> -> vector<16x32xf32>
    %86 = arith.addf %65, %85 : vector<16x32xf32>
    %87 = vector.extract_strided_slice %20 {offsets = [0, 24], sizes = [16, 8], strides = [1, 1]} : vector<16x32xf32> to vector<16x8xf32>
    %88 = vector.extract_strided_slice %23 {offsets = [24, 0], sizes = [8, 16], strides = [1, 1]} : vector<32x16xf32> to vector<8x16xf32>
    %cst_32 = arith.constant dense<0.000000e+00> : vector<16x16xf32>
    %89 = tpu.matmul %87, %88, %cst_32 {dimension_numbers = #tpu.dot_dimension_numbers<[1], [0], [0], [1], [0, 0, 1, 1], [], []>} : vector<16x8xf32>, vector<8x16xf32>, vector<16x16xf32> -> vector<16x16xf32>
    %cst_33 = arith.constant 0.353553385 : f32
    %90 = vector.broadcast %cst_33 : f32 to vector<16x16xf32>
    %91 = arith.mulf %89, %90 : vector<16x16xf32>
    %92 = arith.addf %91, %0 : vector<16x16xf32>
    %cst_34 = arith.constant dense<0xFF800000> : vector<16xf32>
    %93 = vector.multi_reduction <maximumf>, %92, %cst_34 [1] : vector<16x16xf32> to vector<16xf32>
    %94 = vector.shape_cast %93 : vector<16xf32> to vector<16x1xf32>
    %95 = vector.broadcast %94 : vector<16x1xf32> to vector<16x16xf32>
    %96 = arith.subf %92, %95 : vector<16x16xf32>
    %97 = math.exp %96 : vector<16x16xf32>
    %cst_35 = arith.constant dense<0.000000e+00> : vector<16xf32>
    %98 = vector.multi_reduction <add>, %97, %cst_35 [1] : vector<16x16xf32> to vector<16xf32>
    %99 = vector.shape_cast %98 : vector<16xf32> to vector<16x1xf32>
    %100 = tpu.reciprocal %99 {approx = true} : vector<16x1xf32> -> vector<16x1xf32>
    %101 = vector.broadcast %100 : vector<16x1xf32> to vector<16x16xf32>
    %102 = arith.mulf %97, %101 : vector<16x16xf32>
    %103 = vector.extract_strided_slice %22 {offsets = [0, 24], sizes = [16, 8], strides = [1, 1]} : vector<16x32xf32> to vector<16x8xf32>
    %cst_36 = arith.constant dense<0.000000e+00> : vector<16x8xf32>
    %104 = tpu.matmul %102, %103, %cst_36 {dimension_numbers = #tpu.dot_dimension_numbers<[1], [0], [0], [1], [0, 0, 1, 1], [], []>} : vector<16x16xf32>, vector<16x8xf32>, vector<16x8xf32> -> vector<16x8xf32>
    %105 = vector.extract_strided_slice %24 {offsets = [24, 0], sizes = [8, 32], strides = [1, 1]} : vector<32x32xf32> to vector<8x32xf32>
    %cst_37 = arith.constant dense<0.000000e+00> : vector<16x32xf32>
    %106 = tpu.matmul %104, %105, %cst_37 {dimension_numbers = #tpu.dot_dimension_numbers<[1], [0], [0], [1], [0, 0, 1, 1], [], []>} : vector<16x8xf32>, vector<8x32xf32>, vector<16x32xf32> -> vector<16x32xf32>
    %107 = arith.addf %86, %106 : vector<16x32xf32>
    %c136 = arith.constant 136 : index
    %c0_38 = arith.constant 0 : index
    %108 = vector.load %arg2[%c136, %c0_38] : memref<1696x128xf32, #tpu.memory_space<vmem>>, vector<1x32xf32>
    %109 = vector.broadcast %108 : vector<1x32xf32> to vector<16x32xf32>
    %110 = arith.addf %107, %109 : vector<16x32xf32>
    %111 = arith.addf %14, %110 : vector<16x32xf32>
    %cst_39 = arith.constant dense<0.000000e+00> : vector<16xf32>
    %112 = vector.multi_reduction <add>, %111, %cst_39 [1] : vector<16x32xf32> to vector<16xf32>
    %113 = vector.shape_cast %112 : vector<16xf32> to vector<16x1xf32>
    %cst_40 = arith.constant 3.200000e+01 : f32
    %114 = vector.broadcast %cst_40 : f32 to vector<16x1xf32>
    %115 = arith.divf %113, %114 : vector<16x1xf32>
    %116 = vector.broadcast %115 : vector<16x1xf32> to vector<16x32xf32>
    %117 = arith.subf %111, %116 : vector<16x32xf32>
    %118 = arith.mulf %117, %117 : vector<16x32xf32>
    %cst_41 = arith.constant dense<0.000000e+00> : vector<16xf32>
    %119 = vector.multi_reduction <add>, %118, %cst_41 [1] : vector<16x32xf32> to vector<16xf32>
    %120 = vector.shape_cast %119 : vector<16xf32> to vector<16x1xf32>
    %cst_42 = arith.constant 3.200000e+01 : f32
    %121 = vector.broadcast %cst_42 : f32 to vector<16x1xf32>
    %122 = arith.divf %120, %121 : vector<16x1xf32>
    %cst_43 = arith.constant 9.99999997E-7 : f32
    %123 = vector.broadcast %cst_43 : f32 to vector<16x1xf32>
    %124 = arith.addf %122, %123 : vector<16x1xf32>
    %125 = math.rsqrt %124 : vector<16x1xf32>
    %126 = vector.broadcast %125 : vector<16x1xf32> to vector<16x32xf32>
    %127 = arith.mulf %117, %126 : vector<16x32xf32>
    %c144 = arith.constant 144 : index
    %c0_44 = arith.constant 0 : index
    %128 = vector.load %arg2[%c144, %c0_44] : memref<1696x128xf32, #tpu.memory_space<vmem>>, vector<1x32xf32>
    %129 = vector.broadcast %128 : vector<1x32xf32> to vector<16x32xf32>
    %130 = arith.mulf %127, %129 : vector<16x32xf32>
    %c152 = arith.constant 152 : index
    %c0_45 = arith.constant 0 : index
    %131 = vector.load %arg2[%c152, %c0_45] : memref<1696x128xf32, #tpu.memory_space<vmem>>, vector<1x32xf32>
    %132 = vector.broadcast %131 : vector<1x32xf32> to vector<16x32xf32>
    %133 = arith.addf %130, %132 : vector<16x32xf32>
    %c160 = arith.constant 160 : index
    %c0_46 = arith.constant 0 : index
    %134 = vector.load %arg2[%c160, %c0_46] : memref<1696x128xf32, #tpu.memory_space<vmem>>, vector<32x128xf32>
    %cst_47 = arith.constant dense<0.000000e+00> : vector<16x128xf32>
    %135 = tpu.matmul %133, %134, %cst_47 {dimension_numbers = #tpu.dot_dimension_numbers<[1], [0], [0], [1], [0, 0, 1, 1], [], []>} : vector<16x32xf32>, vector<32x128xf32>, vector<16x128xf32> -> vector<16x128xf32>
    %c192 = arith.constant 192 : index
    %c0_48 = arith.constant 0 : index
    %136 = vector.load %arg2[%c192, %c0_48] : memref<1696x128xf32, #tpu.memory_space<vmem>>, vector<1x128xf32>
    %137 = vector.broadcast %136 : vector<1x128xf32> to vector<16x128xf32>
    %138 = arith.addf %135, %137 : vector<16x128xf32>
    %cst_49 = arith.constant 5.000000e-01 : f32
    %139 = vector.broadcast %cst_49 : f32 to vector<16x128xf32>
    %140 = arith.mulf %139, %138 : vector<16x128xf32>
    %cst_50 = arith.constant 4.471500e-02 : f32
    %141 = vector.broadcast %cst_50 : f32 to vector<16x128xf32>
    %142 = arith.mulf %141, %138 : vector<16x128xf32>
    %143 = arith.mulf %142, %138 : vector<16x128xf32>
    %144 = arith.mulf %143, %138 : vector<16x128xf32>
    %145 = arith.addf %138, %144 : vector<16x128xf32>
    %cst_51 = arith.constant 0.797884583 : f32
    %146 = vector.broadcast %cst_51 : f32 to vector<16x128xf32>
    %147 = arith.mulf %146, %145 : vector<16x128xf32>
    %148 = math.tanh %147 : vector<16x128xf32>
    %cst_52 = arith.constant 1.000000e+00 : f32
    %149 = vector.broadcast %cst_52 : f32 to vector<16x128xf32>
    %150 = arith.addf %149, %148 : vector<16x128xf32>
    %151 = arith.mulf %140, %150 : vector<16x128xf32>
    %c200 = arith.constant 200 : index
    %c0_53 = arith.constant 0 : index
    %152 = vector.load %arg2[%c200, %c0_53] : memref<1696x128xf32, #tpu.memory_space<vmem>>, vector<128x32xf32>
    %cst_54 = arith.constant dense<0.000000e+00> : vector<16x32xf32>
    %153 = tpu.matmul %151, %152, %cst_54 {dimension_numbers = #tpu.dot_dimension_numbers<[1], [0], [0], [1], [0, 0, 1, 1], [], []>} : vector<16x128xf32>, vector<128x32xf32>, vector<16x32xf32> -> vector<16x32xf32>
    %c328 = arith.constant 328 : index
    %c0_55 = arith.constant 0 : index
    %154 = vector.load %arg2[%c328, %c0_55] : memref<1696x128xf32, #tpu.memory_space<vmem>>, vector<1x32xf32>
    %155 = vector.broadcast %154 : vector<1x32xf32> to vector<16x32xf32>
    %156 = arith.addf %153, %155 : vector<16x32xf32>
    %157 = arith.addf %156, %133 : vector<16x32xf32>
    %cst_56 = arith.constant dense<0.000000e+00> : vector<16xf32>
    %158 = vector.multi_reduction <add>, %157, %cst_56 [1] : vector<16x32xf32> to vector<16xf32>
    %159 = vector.shape_cast %158 : vector<16xf32> to vector<16x1xf32>
    %cst_57 = arith.constant 3.200000e+01 : f32
    %160 = vector.broadcast %cst_57 : f32 to vector<16x1xf32>
    %161 = arith.divf %159, %160 : vector<16x1xf32>
    %162 = vector.broadcast %161 : vector<16x1xf32> to vector<16x32xf32>
    %163 = arith.subf %157, %162 : vector<16x32xf32>
    %164 = arith.mulf %163, %163 : vector<16x32xf32>
    %cst_58 = arith.constant dense<0.000000e+00> : vector<16xf32>
    %165 = vector.multi_reduction <add>, %164, %cst_58 [1] : vector<16x32xf32> to vector<16xf32>
    %166 = vector.shape_cast %165 : vector<16xf32> to vector<16x1xf32>
    %cst_59 = arith.constant 3.200000e+01 : f32
    %167 = vector.broadcast %cst_59 : f32 to vector<16x1xf32>
    %168 = arith.divf %166, %167 : vector<16x1xf32>
    %cst_60 = arith.constant 9.99999997E-7 : f32
    %169 = vector.broadcast %cst_60 : f32 to vector<16x1xf32>
    %170 = arith.addf %168, %169 : vector<16x1xf32>
    %171 = math.rsqrt %170 : vector<16x1xf32>
    %172 = vector.broadcast %171 : vector<16x1xf32> to vector<16x32xf32>
    %173 = arith.mulf %163, %172 : vector<16x32xf32>
    %c336 = arith.constant 336 : index
    %c0_61 = arith.constant 0 : index
    %174 = vector.load %arg2[%c336, %c0_61] : memref<1696x128xf32, #tpu.memory_space<vmem>>, vector<1x32xf32>
    %175 = vector.broadcast %174 : vector<1x32xf32> to vector<16x32xf32>
    %176 = arith.mulf %173, %175 : vector<16x32xf32>
    %c344 = arith.constant 344 : index
    %c0_62 = arith.constant 0 : index
    %177 = vector.load %arg2[%c344, %c0_62] : memref<1696x128xf32, #tpu.memory_space<vmem>>, vector<1x32xf32>
    %178 = vector.broadcast %177 : vector<1x32xf32> to vector<16x32xf32>
    %179 = arith.addf %176, %178 : vector<16x32xf32>
    %c352 = arith.constant 352 : index
    %c0_63 = arith.constant 0 : index
    %180 = vector.load %arg2[%c352, %c0_63] : memref<1696x128xf32, #tpu.memory_space<vmem>>, vector<32x96xf32>
    %c384 = arith.constant 384 : index
    %c0_64 = arith.constant 0 : index
    %181 = vector.load %arg2[%c384, %c0_64] : memref<1696x128xf32, #tpu.memory_space<vmem>>, vector<1x96xf32>
    %cst_65 = arith.constant dense<0.000000e+00> : vector<16x96xf32>
    %182 = tpu.matmul %179, %180, %cst_65 {dimension_numbers = #tpu.dot_dimension_numbers<[1], [0], [0], [1], [0, 0, 1, 1], [], []>} : vector<16x32xf32>, vector<32x96xf32>, vector<16x96xf32> -> vector<16x96xf32>
    %183 = vector.broadcast %181 : vector<1x96xf32> to vector<16x96xf32>
    %184 = arith.addf %182, %183 : vector<16x96xf32>
    %185 = vector.extract_strided_slice %184 {offsets = [0, 0], sizes = [16, 32], strides = [1, 1]} : vector<16x96xf32> to vector<16x32xf32>
    %186 = vector.extract_strided_slice %184 {offsets = [0, 32], sizes = [16, 32], strides = [1, 1]} : vector<16x96xf32> to vector<16x32xf32>
    %187 = vector.extract_strided_slice %184 {offsets = [0, 64], sizes = [16, 32], strides = [1, 1]} : vector<16x96xf32> to vector<16x32xf32>
    %188 = tpu.transpose %186, [1, 0] : vector<16x32xf32> -> vector<32x16xf32>
    %c392 = arith.constant 392 : index
    %c0_66 = arith.constant 0 : index
    %189 = vector.load %arg2[%c392, %c0_66] : memref<1696x128xf32, #tpu.memory_space<vmem>>, vector<32x32xf32>
    %190 = vector.extract_strided_slice %185 {offsets = [0, 0], sizes = [16, 8], strides = [1, 1]} : vector<16x32xf32> to vector<16x8xf32>
    %191 = vector.extract_strided_slice %188 {offsets = [0, 0], sizes = [8, 16], strides = [1, 1]} : vector<32x16xf32> to vector<8x16xf32>
    %cst_67 = arith.constant dense<0.000000e+00> : vector<16x16xf32>
    %192 = tpu.matmul %190, %191, %cst_67 {dimension_numbers = #tpu.dot_dimension_numbers<[1], [0], [0], [1], [0, 0, 1, 1], [], []>} : vector<16x8xf32>, vector<8x16xf32>, vector<16x16xf32> -> vector<16x16xf32>
    %cst_68 = arith.constant 0.353553385 : f32
    %193 = vector.broadcast %cst_68 : f32 to vector<16x16xf32>
    %194 = arith.mulf %192, %193 : vector<16x16xf32>
    %195 = arith.addf %194, %0 : vector<16x16xf32>
    %cst_69 = arith.constant dense<0xFF800000> : vector<16xf32>
    %196 = vector.multi_reduction <maximumf>, %195, %cst_69 [1] : vector<16x16xf32> to vector<16xf32>
    %197 = vector.shape_cast %196 : vector<16xf32> to vector<16x1xf32>
    %198 = vector.broadcast %197 : vector<16x1xf32> to vector<16x16xf32>
    %199 = arith.subf %195, %198 : vector<16x16xf32>
    %200 = math.exp %199 : vector<16x16xf32>
    %cst_70 = arith.constant dense<0.000000e+00> : vector<16xf32>
    %201 = vector.multi_reduction <add>, %200, %cst_70 [1] : vector<16x16xf32> to vector<16xf32>
    %202 = vector.shape_cast %201 : vector<16xf32> to vector<16x1xf32>
    %203 = tpu.reciprocal %202 {approx = true} : vector<16x1xf32> -> vector<16x1xf32>
    %204 = vector.broadcast %203 : vector<16x1xf32> to vector<16x16xf32>
    %205 = arith.mulf %200, %204 : vector<16x16xf32>
    %206 = vector.extract_strided_slice %187 {offsets = [0, 0], sizes = [16, 8], strides = [1, 1]} : vector<16x32xf32> to vector<16x8xf32>
    %cst_71 = arith.constant dense<0.000000e+00> : vector<16x8xf32>
    %207 = tpu.matmul %205, %206, %cst_71 {dimension_numbers = #tpu.dot_dimension_numbers<[1], [0], [0], [1], [0, 0, 1, 1], [], []>} : vector<16x16xf32>, vector<16x8xf32>, vector<16x8xf32> -> vector<16x8xf32>
    %208 = vector.extract_strided_slice %189 {offsets = [0, 0], sizes = [8, 32], strides = [1, 1]} : vector<32x32xf32> to vector<8x32xf32>
    %cst_72 = arith.constant dense<0.000000e+00> : vector<16x32xf32>
    %209 = tpu.matmul %207, %208, %cst_72 {dimension_numbers = #tpu.dot_dimension_numbers<[1], [0], [0], [1], [0, 0, 1, 1], [], []>} : vector<16x8xf32>, vector<8x32xf32>, vector<16x32xf32> -> vector<16x32xf32>
    %210 = vector.extract_strided_slice %185 {offsets = [0, 8], sizes = [16, 8], strides = [1, 1]} : vector<16x32xf32> to vector<16x8xf32>
    %211 = vector.extract_strided_slice %188 {offsets = [8, 0], sizes = [8, 16], strides = [1, 1]} : vector<32x16xf32> to vector<8x16xf32>
    %cst_73 = arith.constant dense<0.000000e+00> : vector<16x16xf32>
    %212 = tpu.matmul %210, %211, %cst_73 {dimension_numbers = #tpu.dot_dimension_numbers<[1], [0], [0], [1], [0, 0, 1, 1], [], []>} : vector<16x8xf32>, vector<8x16xf32>, vector<16x16xf32> -> vector<16x16xf32>
    %cst_74 = arith.constant 0.353553385 : f32
    %213 = vector.broadcast %cst_74 : f32 to vector<16x16xf32>
    %214 = arith.mulf %212, %213 : vector<16x16xf32>
    %215 = arith.addf %214, %0 : vector<16x16xf32>
    %cst_75 = arith.constant dense<0xFF800000> : vector<16xf32>
    %216 = vector.multi_reduction <maximumf>, %215, %cst_75 [1] : vector<16x16xf32> to vector<16xf32>
    %217 = vector.shape_cast %216 : vector<16xf32> to vector<16x1xf32>
    %218 = vector.broadcast %217 : vector<16x1xf32> to vector<16x16xf32>
    %219 = arith.subf %215, %218 : vector<16x16xf32>
    %220 = math.exp %219 : vector<16x16xf32>
    %cst_76 = arith.constant dense<0.000000e+00> : vector<16xf32>
    %221 = vector.multi_reduction <add>, %220, %cst_76 [1] : vector<16x16xf32> to vector<16xf32>
    %222 = vector.shape_cast %221 : vector<16xf32> to vector<16x1xf32>
    %223 = tpu.reciprocal %222 {approx = true} : vector<16x1xf32> -> vector<16x1xf32>
    %224 = vector.broadcast %223 : vector<16x1xf32> to vector<16x16xf32>
    %225 = arith.mulf %220, %224 : vector<16x16xf32>
    %226 = vector.extract_strided_slice %187 {offsets = [0, 8], sizes = [16, 8], strides = [1, 1]} : vector<16x32xf32> to vector<16x8xf32>
    %cst_77 = arith.constant dense<0.000000e+00> : vector<16x8xf32>
    %227 = tpu.matmul %225, %226, %cst_77 {dimension_numbers = #tpu.dot_dimension_numbers<[1], [0], [0], [1], [0, 0, 1, 1], [], []>} : vector<16x16xf32>, vector<16x8xf32>, vector<16x8xf32> -> vector<16x8xf32>
    %228 = vector.extract_strided_slice %189 {offsets = [8, 0], sizes = [8, 32], strides = [1, 1]} : vector<32x32xf32> to vector<8x32xf32>
    %cst_78 = arith.constant dense<0.000000e+00> : vector<16x32xf32>
    %229 = tpu.matmul %227, %228, %cst_78 {dimension_numbers = #tpu.dot_dimension_numbers<[1], [0], [0], [1], [0, 0, 1, 1], [], []>} : vector<16x8xf32>, vector<8x32xf32>, vector<16x32xf32> -> vector<16x32xf32>
    %230 = arith.addf %209, %229 : vector<16x32xf32>
    %231 = vector.extract_strided_slice %185 {offsets = [0, 16], sizes = [16, 8], strides = [1, 1]} : vector<16x32xf32> to vector<16x8xf32>
    %232 = vector.extract_strided_slice %188 {offsets = [16, 0], sizes = [8, 16], strides = [1, 1]} : vector<32x16xf32> to vector<8x16xf32>
    %cst_79 = arith.constant dense<0.000000e+00> : vector<16x16xf32>
    %233 = tpu.matmul %231, %232, %cst_79 {dimension_numbers = #tpu.dot_dimension_numbers<[1], [0], [0], [1], [0, 0, 1, 1], [], []>} : vector<16x8xf32>, vector<8x16xf32>, vector<16x16xf32> -> vector<16x16xf32>
    %cst_80 = arith.constant 0.353553385 : f32
    %234 = vector.broadcast %cst_80 : f32 to vector<16x16xf32>
    %235 = arith.mulf %233, %234 : vector<16x16xf32>
    %236 = arith.addf %235, %0 : vector<16x16xf32>
    %cst_81 = arith.constant dense<0xFF800000> : vector<16xf32>
    %237 = vector.multi_reduction <maximumf>, %236, %cst_81 [1] : vector<16x16xf32> to vector<16xf32>
    %238 = vector.shape_cast %237 : vector<16xf32> to vector<16x1xf32>
    %239 = vector.broadcast %238 : vector<16x1xf32> to vector<16x16xf32>
    %240 = arith.subf %236, %239 : vector<16x16xf32>
    %241 = math.exp %240 : vector<16x16xf32>
    %cst_82 = arith.constant dense<0.000000e+00> : vector<16xf32>
    %242 = vector.multi_reduction <add>, %241, %cst_82 [1] : vector<16x16xf32> to vector<16xf32>
    %243 = vector.shape_cast %242 : vector<16xf32> to vector<16x1xf32>
    %244 = tpu.reciprocal %243 {approx = true} : vector<16x1xf32> -> vector<16x1xf32>
    %245 = vector.broadcast %244 : vector<16x1xf32> to vector<16x16xf32>
    %246 = arith.mulf %241, %245 : vector<16x16xf32>
    %247 = vector.extract_strided_slice %187 {offsets = [0, 16], sizes = [16, 8], strides = [1, 1]} : vector<16x32xf32> to vector<16x8xf32>
    %cst_83 = arith.constant dense<0.000000e+00> : vector<16x8xf32>
    %248 = tpu.matmul %246, %247, %cst_83 {dimension_numbers = #tpu.dot_dimension_numbers<[1], [0], [0], [1], [0, 0, 1, 1], [], []>} : vector<16x16xf32>, vector<16x8xf32>, vector<16x8xf32> -> vector<16x8xf32>
    %249 = vector.extract_strided_slice %189 {offsets = [16, 0], sizes = [8, 32], strides = [1, 1]} : vector<32x32xf32> to vector<8x32xf32>
    %cst_84 = arith.constant dense<0.000000e+00> : vector<16x32xf32>
    %250 = tpu.matmul %248, %249, %cst_84 {dimension_numbers = #tpu.dot_dimension_numbers<[1], [0], [0], [1], [0, 0, 1, 1], [], []>} : vector<16x8xf32>, vector<8x32xf32>, vector<16x32xf32> -> vector<16x32xf32>
    %251 = arith.addf %230, %250 : vector<16x32xf32>
    %252 = vector.extract_strided_slice %185 {offsets = [0, 24], sizes = [16, 8], strides = [1, 1]} : vector<16x32xf32> to vector<16x8xf32>
    %253 = vector.extract_strided_slice %188 {offsets = [24, 0], sizes = [8, 16], strides = [1, 1]} : vector<32x16xf32> to vector<8x16xf32>
    %cst_85 = arith.constant dense<0.000000e+00> : vector<16x16xf32>
    %254 = tpu.matmul %252, %253, %cst_85 {dimension_numbers = #tpu.dot_dimension_numbers<[1], [0], [0], [1], [0, 0, 1, 1], [], []>} : vector<16x8xf32>, vector<8x16xf32>, vector<16x16xf32> -> vector<16x16xf32>
    %cst_86 = arith.constant 0.353553385 : f32
    %255 = vector.broadcast %cst_86 : f32 to vector<16x16xf32>
    %256 = arith.mulf %254, %255 : vector<16x16xf32>
    %257 = arith.addf %256, %0 : vector<16x16xf32>
    %cst_87 = arith.constant dense<0xFF800000> : vector<16xf32>
    %258 = vector.multi_reduction <maximumf>, %257, %cst_87 [1] : vector<16x16xf32> to vector<16xf32>
    %259 = vector.shape_cast %258 : vector<16xf32> to vector<16x1xf32>
    %260 = vector.broadcast %259 : vector<16x1xf32> to vector<16x16xf32>
    %261 = arith.subf %257, %260 : vector<16x16xf32>
    %262 = math.exp %261 : vector<16x16xf32>
    %cst_88 = arith.constant dense<0.000000e+00> : vector<16xf32>
    %263 = vector.multi_reduction <add>, %262, %cst_88 [1] : vector<16x16xf32> to vector<16xf32>
    %264 = vector.shape_cast %263 : vector<16xf32> to vector<16x1xf32>
    %265 = tpu.reciprocal %264 {approx = true} : vector<16x1xf32> -> vector<16x1xf32>
    %266 = vector.broadcast %265 : vector<16x1xf32> to vector<16x16xf32>
    %267 = arith.mulf %262, %266 : vector<16x16xf32>
    %268 = vector.extract_strided_slice %187 {offsets = [0, 24], sizes = [16, 8], strides = [1, 1]} : vector<16x32xf32> to vector<16x8xf32>
    %cst_89 = arith.constant dense<0.000000e+00> : vector<16x8xf32>
    %269 = tpu.matmul %267, %268, %cst_89 {dimension_numbers = #tpu.dot_dimension_numbers<[1], [0], [0], [1], [0, 0, 1, 1], [], []>} : vector<16x16xf32>, vector<16x8xf32>, vector<16x8xf32> -> vector<16x8xf32>
    %270 = vector.extract_strided_slice %189 {offsets = [24, 0], sizes = [8, 32], strides = [1, 1]} : vector<32x32xf32> to vector<8x32xf32>
    %cst_90 = arith.constant dense<0.000000e+00> : vector<16x32xf32>
    %271 = tpu.matmul %269, %270, %cst_90 {dimension_numbers = #tpu.dot_dimension_numbers<[1], [0], [0], [1], [0, 0, 1, 1], [], []>} : vector<16x8xf32>, vector<8x32xf32>, vector<16x32xf32> -> vector<16x32xf32>
    %272 = arith.addf %251, %271 : vector<16x32xf32>
    %c424 = arith.constant 424 : index
    %c0_91 = arith.constant 0 : index
    %273 = vector.load %arg2[%c424, %c0_91] : memref<1696x128xf32, #tpu.memory_space<vmem>>, vector<1x32xf32>
    %274 = vector.broadcast %273 : vector<1x32xf32> to vector<16x32xf32>
    %275 = arith.addf %272, %274 : vector<16x32xf32>
    %276 = arith.addf %179, %275 : vector<16x32xf32>
    %cst_92 = arith.constant dense<0.000000e+00> : vector<16xf32>
    %277 = vector.multi_reduction <add>, %276, %cst_92 [1] : vector<16x32xf32> to vector<16xf32>
    %278 = vector.shape_cast %277 : vector<16xf32> to vector<16x1xf32>
    %cst_93 = arith.constant 3.200000e+01 : f32
    %279 = vector.broadcast %cst_93 : f32 to vector<16x1xf32>
    %280 = arith.divf %278, %279 : vector<16x1xf32>
    %281 = vector.broadcast %280 : vector<16x1xf32> to vector<16x32xf32>
    %282 = arith.subf %276, %281 : vector<16x32xf32>
    %283 = arith.mulf %282, %282 : vector<16x32xf32>
    %cst_94 = arith.constant dense<0.000000e+00> : vector<16xf32>
    %284 = vector.multi_reduction <add>, %283, %cst_94 [1] : vector<16x32xf32> to vector<16xf32>
    %285 = vector.shape_cast %284 : vector<16xf32> to vector<16x1xf32>
    %cst_95 = arith.constant 3.200000e+01 : f32
    %286 = vector.broadcast %cst_95 : f32 to vector<16x1xf32>
    %287 = arith.divf %285, %286 : vector<16x1xf32>
    %cst_96 = arith.constant 9.99999997E-7 : f32
    %288 = vector.broadcast %cst_96 : f32 to vector<16x1xf32>
    %289 = arith.addf %287, %288 : vector<16x1xf32>
    %290 = math.rsqrt %289 : vector<16x1xf32>
    %291 = vector.broadcast %290 : vector<16x1xf32> to vector<16x32xf32>
    %292 = arith.mulf %282, %291 : vector<16x32xf32>
    %c432 = arith.constant 432 : index
    %c0_97 = arith.constant 0 : index
    %293 = vector.load %arg2[%c432, %c0_97] : memref<1696x128xf32, #tpu.memory_space<vmem>>, vector<1x32xf32>
    %294 = vector.broadcast %293 : vector<1x32xf32> to vector<16x32xf32>
    %295 = arith.mulf %292, %294 : vector<16x32xf32>
    %c440 = arith.constant 440 : index
    %c0_98 = arith.constant 0 : index
    %296 = vector.load %arg2[%c440, %c0_98] : memref<1696x128xf32, #tpu.memory_space<vmem>>, vector<1x32xf32>
    %297 = vector.broadcast %296 : vector<1x32xf32> to vector<16x32xf32>
    %298 = arith.addf %295, %297 : vector<16x32xf32>
    %c448 = arith.constant 448 : index
    %c0_99 = arith.constant 0 : index
    %299 = vector.load %arg2[%c448, %c0_99] : memref<1696x128xf32, #tpu.memory_space<vmem>>, vector<32x128xf32>
    %cst_100 = arith.constant dense<0.000000e+00> : vector<16x128xf32>
    %300 = tpu.matmul %298, %299, %cst_100 {dimension_numbers = #tpu.dot_dimension_numbers<[1], [0], [0], [1], [0, 0, 1, 1], [], []>} : vector<16x32xf32>, vector<32x128xf32>, vector<16x128xf32> -> vector<16x128xf32>
    %c480 = arith.constant 480 : index
    %c0_101 = arith.constant 0 : index
    %301 = vector.load %arg2[%c480, %c0_101] : memref<1696x128xf32, #tpu.memory_space<vmem>>, vector<1x128xf32>
    %302 = vector.broadcast %301 : vector<1x128xf32> to vector<16x128xf32>
    %303 = arith.addf %300, %302 : vector<16x128xf32>
    %cst_102 = arith.constant 5.000000e-01 : f32
    %304 = vector.broadcast %cst_102 : f32 to vector<16x128xf32>
    %305 = arith.mulf %304, %303 : vector<16x128xf32>
    %cst_103 = arith.constant 4.471500e-02 : f32
    %306 = vector.broadcast %cst_103 : f32 to vector<16x128xf32>
    %307 = arith.mulf %306, %303 : vector<16x128xf32>
    %308 = arith.mulf %307, %303 : vector<16x128xf32>
    %309 = arith.mulf %308, %303 : vector<16x128xf32>
    %310 = arith.addf %303, %309 : vector<16x128xf32>
    %cst_104 = arith.constant 0.797884583 : f32
    %311 = vector.broadcast %cst_104 : f32 to vector<16x128xf32>
    %312 = arith.mulf %311, %310 : vector<16x128xf32>
    %313 = math.tanh %312 : vector<16x128xf32>
    %cst_105 = arith.constant 1.000000e+00 : f32
    %314 = vector.broadcast %cst_105 : f32 to vector<16x128xf32>
    %315 = arith.addf %314, %313 : vector<16x128xf32>
    %316 = arith.mulf %305, %315 : vector<16x128xf32>
    %c488 = arith.constant 488 : index
    %c0_106 = arith.constant 0 : index
    %317 = vector.load %arg2[%c488, %c0_106] : memref<1696x128xf32, #tpu.memory_space<vmem>>, vector<128x32xf32>
    %cst_107 = arith.constant dense<0.000000e+00> : vector<16x32xf32>
    %318 = tpu.matmul %316, %317, %cst_107 {dimension_numbers = #tpu.dot_dimension_numbers<[1], [0], [0], [1], [0, 0, 1, 1], [], []>} : vector<16x128xf32>, vector<128x32xf32>, vector<16x32xf32> -> vector<16x32xf32>
    %c616 = arith.constant 616 : index
    %c0_108 = arith.constant 0 : index
    %319 = vector.load %arg2[%c616, %c0_108] : memref<1696x128xf32, #tpu.memory_space<vmem>>, vector<1x32xf32>
    %320 = vector.broadcast %319 : vector<1x32xf32> to vector<16x32xf32>
    %321 = arith.addf %318, %320 : vector<16x32xf32>
    %322 = arith.addf %321, %298 : vector<16x32xf32>
    %cst_109 = arith.constant dense<0.000000e+00> : vector<16xf32>
    %323 = vector.multi_reduction <add>, %322, %cst_109 [1] : vector<16x32xf32> to vector<16xf32>
    %324 = vector.shape_cast %323 : vector<16xf32> to vector<16x1xf32>
    %cst_110 = arith.constant 3.200000e+01 : f32
    %325 = vector.broadcast %cst_110 : f32 to vector<16x1xf32>
    %326 = arith.divf %324, %325 : vector<16x1xf32>
    %327 = vector.broadcast %326 : vector<16x1xf32> to vector<16x32xf32>
    %328 = arith.subf %322, %327 : vector<16x32xf32>
    %329 = arith.mulf %328, %328 : vector<16x32xf32>
    %cst_111 = arith.constant dense<0.000000e+00> : vector<16xf32>
    %330 = vector.multi_reduction <add>, %329, %cst_111 [1] : vector<16x32xf32> to vector<16xf32>
    %331 = vector.shape_cast %330 : vector<16xf32> to vector<16x1xf32>
    %cst_112 = arith.constant 3.200000e+01 : f32
    %332 = vector.broadcast %cst_112 : f32 to vector<16x1xf32>
    %333 = arith.divf %331, %332 : vector<16x1xf32>
    %cst_113 = arith.constant 9.99999997E-7 : f32
    %334 = vector.broadcast %cst_113 : f32 to vector<16x1xf32>
    %335 = arith.addf %333, %334 : vector<16x1xf32>
    %336 = math.rsqrt %335 : vector<16x1xf32>
    %337 = vector.broadcast %336 : vector<16x1xf32> to vector<16x32xf32>
    %338 = arith.mulf %328, %337 : vector<16x32xf32>
    %c624 = arith.constant 624 : index
    %c0_114 = arith.constant 0 : index
    %339 = vector.load %arg2[%c624, %c0_114] : memref<1696x128xf32, #tpu.memory_space<vmem>>, vector<1x32xf32>
    %340 = vector.broadcast %339 : vector<1x32xf32> to vector<16x32xf32>
    %341 = arith.mulf %338, %340 : vector<16x32xf32>
    %c632 = arith.constant 632 : index
    %c0_115 = arith.constant 0 : index
    %342 = vector.load %arg2[%c632, %c0_115] : memref<1696x128xf32, #tpu.memory_space<vmem>>, vector<1x32xf32>
    %343 = vector.broadcast %342 : vector<1x32xf32> to vector<16x32xf32>
    %344 = arith.addf %341, %343 : vector<16x32xf32>
    %c640 = arith.constant 640 : index
    %c0_116 = arith.constant 0 : index
    %345 = vector.load %arg2[%c640, %c0_116] : memref<1696x128xf32, #tpu.memory_space<vmem>>, vector<32x32xf32>
    %cst_117 = arith.constant dense<0.000000e+00> : vector<16x32xf32>
    %346 = tpu.matmul %344, %345, %cst_117 {dimension_numbers = #tpu.dot_dimension_numbers<[1], [0], [0], [1], [0, 0, 1, 1], [], []>} : vector<16x32xf32>, vector<32x32xf32>, vector<16x32xf32> -> vector<16x32xf32>
    %c672 = arith.constant 672 : index
    %c0_118 = arith.constant 0 : index
    %347 = vector.load %arg2[%c672, %c0_118] : memref<1696x128xf32, #tpu.memory_space<vmem>>, vector<1x32xf32>
    %348 = vector.broadcast %347 : vector<1x32xf32> to vector<16x32xf32>
    %349 = arith.addf %346, %348 : vector<16x32xf32>
    %c1552 = arith.constant 1552 : index
    %c0_119 = arith.constant 0 : index
    %350 = vector.load %arg2[%c1552, %c0_119] : memref<1696x128xf32, #tpu.memory_space<vmem>>, vector<32x16xf32>
    %cst_120 = arith.constant dense<0.000000e+00> : vector<32x32xf32>
    %351 = tpu.matmul %350, %349, %cst_120 {dimension_numbers = #tpu.dot_dimension_numbers<[1], [0], [0], [1], [0, 0, 1, 1], [], []>} : vector<32x16xf32>, vector<16x32xf32>, vector<32x32xf32> -> vector<32x32xf32>
    %c1584 = arith.constant 1584 : index
    %c0_121 = arith.constant 0 : index
    %352 = vector.load %arg2[%c1584, %c0_121] : memref<1696x128xf32, #tpu.memory_space<vmem>>, vector<32x1xf32>
    %353 = vector.broadcast %352 : vector<32x1xf32> to vector<32x32xf32>
    %354 = arith.addf %351, %353 : vector<32x32xf32>
    %c1616 = arith.constant 1616 : index
    %c0_122 = arith.constant 0 : index
    %355 = vector.load %arg2[%c1616, %c0_122] : memref<1696x128xf32, #tpu.memory_space<vmem>>, vector<16x32xf32>
    %cst_123 = arith.constant dense<0.000000e+00> : vector<16x32xf32>
    %356 = tpu.matmul %355, %354, %cst_123 {dimension_numbers = #tpu.dot_dimension_numbers<[1], [0], [0], [1], [0, 0, 1, 1], [], []>} : vector<16x32xf32>, vector<32x32xf32>, vector<16x32xf32> -> vector<16x32xf32>
    %c1632 = arith.constant 1632 : index
    %c0_124 = arith.constant 0 : index
    %357 = vector.load %arg2[%c1632, %c0_124] : memref<1696x128xf32, #tpu.memory_space<vmem>>, vector<16x1xf32>
    %358 = vector.broadcast %357 : vector<16x1xf32> to vector<16x32xf32>
    %359 = arith.addf %356, %358 : vector<16x32xf32>
    %c680 = arith.constant 680 : index
    %c0_125 = arith.constant 0 : index
    %360 = vector.load %arg2[%c680, %c0_125] : memref<1696x128xf32, #tpu.memory_space<vmem>>, vector<32x32xf32>
    %cst_126 = arith.constant dense<0.000000e+00> : vector<16x32xf32>
    %361 = tpu.matmul %359, %360, %cst_126 {dimension_numbers = #tpu.dot_dimension_numbers<[1], [0], [0], [1], [0, 0, 1, 1], [], []>} : vector<16x32xf32>, vector<32x32xf32>, vector<16x32xf32> -> vector<16x32xf32>
    %c712 = arith.constant 712 : index
    %c0_127 = arith.constant 0 : index
    %362 = vector.load %arg2[%c712, %c0_127] : memref<1696x128xf32, #tpu.memory_space<vmem>>, vector<1x32xf32>
    %363 = vector.broadcast %362 : vector<1x32xf32> to vector<16x32xf32>
    %364 = arith.addf %361, %363 : vector<16x32xf32>
    %c720 = arith.constant 720 : index
    %c0_128 = arith.constant 0 : index
    %365 = vector.load %arg2[%c720, %c0_128] : memref<1696x128xf32, #tpu.memory_space<vmem>>, vector<32x96xf32>
    %c752 = arith.constant 752 : index
    %c0_129 = arith.constant 0 : index
    %366 = vector.load %arg2[%c752, %c0_129] : memref<1696x128xf32, #tpu.memory_space<vmem>>, vector<1x96xf32>
    %cst_130 = arith.constant dense<0.000000e+00> : vector<16x96xf32>
    %367 = tpu.matmul %364, %365, %cst_130 {dimension_numbers = #tpu.dot_dimension_numbers<[1], [0], [0], [1], [0, 0, 1, 1], [], []>} : vector<16x32xf32>, vector<32x96xf32>, vector<16x96xf32> -> vector<16x96xf32>
    %368 = vector.broadcast %366 : vector<1x96xf32> to vector<16x96xf32>
    %369 = arith.addf %367, %368 : vector<16x96xf32>
    %370 = vector.extract_strided_slice %369 {offsets = [0, 0], sizes = [16, 32], strides = [1, 1]} : vector<16x96xf32> to vector<16x32xf32>
    %371 = vector.extract_strided_slice %369 {offsets = [0, 32], sizes = [16, 32], strides = [1, 1]} : vector<16x96xf32> to vector<16x32xf32>
    %372 = vector.extract_strided_slice %369 {offsets = [0, 64], sizes = [16, 32], strides = [1, 1]} : vector<16x96xf32> to vector<16x32xf32>
    %373 = tpu.transpose %371, [1, 0] : vector<16x32xf32> -> vector<32x16xf32>
    %c760 = arith.constant 760 : index
    %c0_131 = arith.constant 0 : index
    %374 = vector.load %arg2[%c760, %c0_131] : memref<1696x128xf32, #tpu.memory_space<vmem>>, vector<32x32xf32>
    %375 = vector.extract_strided_slice %370 {offsets = [0, 0], sizes = [16, 8], strides = [1, 1]} : vector<16x32xf32> to vector<16x8xf32>
    %376 = vector.extract_strided_slice %373 {offsets = [0, 0], sizes = [8, 16], strides = [1, 1]} : vector<32x16xf32> to vector<8x16xf32>
    %cst_132 = arith.constant dense<0.000000e+00> : vector<16x16xf32>
    %377 = tpu.matmul %375, %376, %cst_132 {dimension_numbers = #tpu.dot_dimension_numbers<[1], [0], [0], [1], [0, 0, 1, 1], [], []>} : vector<16x8xf32>, vector<8x16xf32>, vector<16x16xf32> -> vector<16x16xf32>
    %cst_133 = arith.constant 0.353553385 : f32
    %378 = vector.broadcast %cst_133 : f32 to vector<16x16xf32>
    %379 = arith.mulf %377, %378 : vector<16x16xf32>
    %380 = arith.addf %379, %1 : vector<16x16xf32>
    %cst_134 = arith.constant dense<0xFF800000> : vector<16xf32>
    %381 = vector.multi_reduction <maximumf>, %380, %cst_134 [1] : vector<16x16xf32> to vector<16xf32>
    %382 = vector.shape_cast %381 : vector<16xf32> to vector<16x1xf32>
    %383 = vector.broadcast %382 : vector<16x1xf32> to vector<16x16xf32>
    %384 = arith.subf %380, %383 : vector<16x16xf32>
    %385 = math.exp %384 : vector<16x16xf32>
    %cst_135 = arith.constant dense<0.000000e+00> : vector<16xf32>
    %386 = vector.multi_reduction <add>, %385, %cst_135 [1] : vector<16x16xf32> to vector<16xf32>
    %387 = vector.shape_cast %386 : vector<16xf32> to vector<16x1xf32>
    %388 = tpu.reciprocal %387 {approx = true} : vector<16x1xf32> -> vector<16x1xf32>
    %389 = vector.broadcast %388 : vector<16x1xf32> to vector<16x16xf32>
    %390 = arith.mulf %385, %389 : vector<16x16xf32>
    %391 = vector.extract_strided_slice %372 {offsets = [0, 0], sizes = [16, 8], strides = [1, 1]} : vector<16x32xf32> to vector<16x8xf32>
    %cst_136 = arith.constant dense<0.000000e+00> : vector<16x8xf32>
    %392 = tpu.matmul %390, %391, %cst_136 {dimension_numbers = #tpu.dot_dimension_numbers<[1], [0], [0], [1], [0, 0, 1, 1], [], []>} : vector<16x16xf32>, vector<16x8xf32>, vector<16x8xf32> -> vector<16x8xf32>
    %393 = vector.extract_strided_slice %374 {offsets = [0, 0], sizes = [8, 32], strides = [1, 1]} : vector<32x32xf32> to vector<8x32xf32>
    %cst_137 = arith.constant dense<0.000000e+00> : vector<16x32xf32>
    %394 = tpu.matmul %392, %393, %cst_137 {dimension_numbers = #tpu.dot_dimension_numbers<[1], [0], [0], [1], [0, 0, 1, 1], [], []>} : vector<16x8xf32>, vector<8x32xf32>, vector<16x32xf32> -> vector<16x32xf32>
    %395 = vector.extract_strided_slice %370 {offsets = [0, 8], sizes = [16, 8], strides = [1, 1]} : vector<16x32xf32> to vector<16x8xf32>
    %396 = vector.extract_strided_slice %373 {offsets = [8, 0], sizes = [8, 16], strides = [1, 1]} : vector<32x16xf32> to vector<8x16xf32>
    %cst_138 = arith.constant dense<0.000000e+00> : vector<16x16xf32>
    %397 = tpu.matmul %395, %396, %cst_138 {dimension_numbers = #tpu.dot_dimension_numbers<[1], [0], [0], [1], [0, 0, 1, 1], [], []>} : vector<16x8xf32>, vector<8x16xf32>, vector<16x16xf32> -> vector<16x16xf32>
    %cst_139 = arith.constant 0.353553385 : f32
    %398 = vector.broadcast %cst_139 : f32 to vector<16x16xf32>
    %399 = arith.mulf %397, %398 : vector<16x16xf32>
    %400 = arith.addf %399, %1 : vector<16x16xf32>
    %cst_140 = arith.constant dense<0xFF800000> : vector<16xf32>
    %401 = vector.multi_reduction <maximumf>, %400, %cst_140 [1] : vector<16x16xf32> to vector<16xf32>
    %402 = vector.shape_cast %401 : vector<16xf32> to vector<16x1xf32>
    %403 = vector.broadcast %402 : vector<16x1xf32> to vector<16x16xf32>
    %404 = arith.subf %400, %403 : vector<16x16xf32>
    %405 = math.exp %404 : vector<16x16xf32>
    %cst_141 = arith.constant dense<0.000000e+00> : vector<16xf32>
    %406 = vector.multi_reduction <add>, %405, %cst_141 [1] : vector<16x16xf32> to vector<16xf32>
    %407 = vector.shape_cast %406 : vector<16xf32> to vector<16x1xf32>
    %408 = tpu.reciprocal %407 {approx = true} : vector<16x1xf32> -> vector<16x1xf32>
    %409 = vector.broadcast %408 : vector<16x1xf32> to vector<16x16xf32>
    %410 = arith.mulf %405, %409 : vector<16x16xf32>
    %411 = vector.extract_strided_slice %372 {offsets = [0, 8], sizes = [16, 8], strides = [1, 1]} : vector<16x32xf32> to vector<16x8xf32>
    %cst_142 = arith.constant dense<0.000000e+00> : vector<16x8xf32>
    %412 = tpu.matmul %410, %411, %cst_142 {dimension_numbers = #tpu.dot_dimension_numbers<[1], [0], [0], [1], [0, 0, 1, 1], [], []>} : vector<16x16xf32>, vector<16x8xf32>, vector<16x8xf32> -> vector<16x8xf32>
    %413 = vector.extract_strided_slice %374 {offsets = [8, 0], sizes = [8, 32], strides = [1, 1]} : vector<32x32xf32> to vector<8x32xf32>
    %cst_143 = arith.constant dense<0.000000e+00> : vector<16x32xf32>
    %414 = tpu.matmul %412, %413, %cst_143 {dimension_numbers = #tpu.dot_dimension_numbers<[1], [0], [0], [1], [0, 0, 1, 1], [], []>} : vector<16x8xf32>, vector<8x32xf32>, vector<16x32xf32> -> vector<16x32xf32>
    %415 = arith.addf %394, %414 : vector<16x32xf32>
    %416 = vector.extract_strided_slice %370 {offsets = [0, 16], sizes = [16, 8], strides = [1, 1]} : vector<16x32xf32> to vector<16x8xf32>
    %417 = vector.extract_strided_slice %373 {offsets = [16, 0], sizes = [8, 16], strides = [1, 1]} : vector<32x16xf32> to vector<8x16xf32>
    %cst_144 = arith.constant dense<0.000000e+00> : vector<16x16xf32>
    %418 = tpu.matmul %416, %417, %cst_144 {dimension_numbers = #tpu.dot_dimension_numbers<[1], [0], [0], [1], [0, 0, 1, 1], [], []>} : vector<16x8xf32>, vector<8x16xf32>, vector<16x16xf32> -> vector<16x16xf32>
    %cst_145 = arith.constant 0.353553385 : f32
    %419 = vector.broadcast %cst_145 : f32 to vector<16x16xf32>
    %420 = arith.mulf %418, %419 : vector<16x16xf32>
    %421 = arith.addf %420, %1 : vector<16x16xf32>
    %cst_146 = arith.constant dense<0xFF800000> : vector<16xf32>
    %422 = vector.multi_reduction <maximumf>, %421, %cst_146 [1] : vector<16x16xf32> to vector<16xf32>
    %423 = vector.shape_cast %422 : vector<16xf32> to vector<16x1xf32>
    %424 = vector.broadcast %423 : vector<16x1xf32> to vector<16x16xf32>
    %425 = arith.subf %421, %424 : vector<16x16xf32>
    %426 = math.exp %425 : vector<16x16xf32>
    %cst_147 = arith.constant dense<0.000000e+00> : vector<16xf32>
    %427 = vector.multi_reduction <add>, %426, %cst_147 [1] : vector<16x16xf32> to vector<16xf32>
    %428 = vector.shape_cast %427 : vector<16xf32> to vector<16x1xf32>
    %429 = tpu.reciprocal %428 {approx = true} : vector<16x1xf32> -> vector<16x1xf32>
    %430 = vector.broadcast %429 : vector<16x1xf32> to vector<16x16xf32>
    %431 = arith.mulf %426, %430 : vector<16x16xf32>
    %432 = vector.extract_strided_slice %372 {offsets = [0, 16], sizes = [16, 8], strides = [1, 1]} : vector<16x32xf32> to vector<16x8xf32>
    %cst_148 = arith.constant dense<0.000000e+00> : vector<16x8xf32>
    %433 = tpu.matmul %431, %432, %cst_148 {dimension_numbers = #tpu.dot_dimension_numbers<[1], [0], [0], [1], [0, 0, 1, 1], [], []>} : vector<16x16xf32>, vector<16x8xf32>, vector<16x8xf32> -> vector<16x8xf32>
    %434 = vector.extract_strided_slice %374 {offsets = [16, 0], sizes = [8, 32], strides = [1, 1]} : vector<32x32xf32> to vector<8x32xf32>
    %cst_149 = arith.constant dense<0.000000e+00> : vector<16x32xf32>
    %435 = tpu.matmul %433, %434, %cst_149 {dimension_numbers = #tpu.dot_dimension_numbers<[1], [0], [0], [1], [0, 0, 1, 1], [], []>} : vector<16x8xf32>, vector<8x32xf32>, vector<16x32xf32> -> vector<16x32xf32>
    %436 = arith.addf %415, %435 : vector<16x32xf32>
    %437 = vector.extract_strided_slice %370 {offsets = [0, 24], sizes = [16, 8], strides = [1, 1]} : vector<16x32xf32> to vector<16x8xf32>
    %438 = vector.extract_strided_slice %373 {offsets = [24, 0], sizes = [8, 16], strides = [1, 1]} : vector<32x16xf32> to vector<8x16xf32>
    %cst_150 = arith.constant dense<0.000000e+00> : vector<16x16xf32>
    %439 = tpu.matmul %437, %438, %cst_150 {dimension_numbers = #tpu.dot_dimension_numbers<[1], [0], [0], [1], [0, 0, 1, 1], [], []>} : vector<16x8xf32>, vector<8x16xf32>, vector<16x16xf32> -> vector<16x16xf32>
    %cst_151 = arith.constant 0.353553385 : f32
    %440 = vector.broadcast %cst_151 : f32 to vector<16x16xf32>
    %441 = arith.mulf %439, %440 : vector<16x16xf32>
    %442 = arith.addf %441, %1 : vector<16x16xf32>
    %cst_152 = arith.constant dense<0xFF800000> : vector<16xf32>
    %443 = vector.multi_reduction <maximumf>, %442, %cst_152 [1] : vector<16x16xf32> to vector<16xf32>
    %444 = vector.shape_cast %443 : vector<16xf32> to vector<16x1xf32>
    %445 = vector.broadcast %444 : vector<16x1xf32> to vector<16x16xf32>
    %446 = arith.subf %442, %445 : vector<16x16xf32>
    %447 = math.exp %446 : vector<16x16xf32>
    %cst_153 = arith.constant dense<0.000000e+00> : vector<16xf32>
    %448 = vector.multi_reduction <add>, %447, %cst_153 [1] : vector<16x16xf32> to vector<16xf32>
    %449 = vector.shape_cast %448 : vector<16xf32> to vector<16x1xf32>
    %450 = tpu.reciprocal %449 {approx = true} : vector<16x1xf32> -> vector<16x1xf32>
    %451 = vector.broadcast %450 : vector<16x1xf32> to vector<16x16xf32>
    %452 = arith.mulf %447, %451 : vector<16x16xf32>
    %453 = vector.extract_strided_slice %372 {offsets = [0, 24], sizes = [16, 8], strides = [1, 1]} : vector<16x32xf32> to vector<16x8xf32>
    %cst_154 = arith.constant dense<0.000000e+00> : vector<16x8xf32>
    %454 = tpu.matmul %452, %453, %cst_154 {dimension_numbers = #tpu.dot_dimension_numbers<[1], [0], [0], [1], [0, 0, 1, 1], [], []>} : vector<16x16xf32>, vector<16x8xf32>, vector<16x8xf32> -> vector<16x8xf32>
    %455 = vector.extract_strided_slice %374 {offsets = [24, 0], sizes = [8, 32], strides = [1, 1]} : vector<32x32xf32> to vector<8x32xf32>
    %cst_155 = arith.constant dense<0.000000e+00> : vector<16x32xf32>
    %456 = tpu.matmul %454, %455, %cst_155 {dimension_numbers = #tpu.dot_dimension_numbers<[1], [0], [0], [1], [0, 0, 1, 1], [], []>} : vector<16x8xf32>, vector<8x32xf32>, vector<16x32xf32> -> vector<16x32xf32>
    %457 = arith.addf %436, %456 : vector<16x32xf32>
    %c792 = arith.constant 792 : index
    %c0_156 = arith.constant 0 : index
    %458 = vector.load %arg2[%c792, %c0_156] : memref<1696x128xf32, #tpu.memory_space<vmem>>, vector<1x32xf32>
    %459 = vector.broadcast %458 : vector<1x32xf32> to vector<16x32xf32>
    %460 = arith.addf %457, %459 : vector<16x32xf32>
    %461 = arith.addf %364, %460 : vector<16x32xf32>
    %cst_157 = arith.constant dense<0.000000e+00> : vector<16xf32>
    %462 = vector.multi_reduction <add>, %461, %cst_157 [1] : vector<16x32xf32> to vector<16xf32>
    %463 = vector.shape_cast %462 : vector<16xf32> to vector<16x1xf32>
    %cst_158 = arith.constant 3.200000e+01 : f32
    %464 = vector.broadcast %cst_158 : f32 to vector<16x1xf32>
    %465 = arith.divf %463, %464 : vector<16x1xf32>
    %466 = vector.broadcast %465 : vector<16x1xf32> to vector<16x32xf32>
    %467 = arith.subf %461, %466 : vector<16x32xf32>
    %468 = arith.mulf %467, %467 : vector<16x32xf32>
    %cst_159 = arith.constant dense<0.000000e+00> : vector<16xf32>
    %469 = vector.multi_reduction <add>, %468, %cst_159 [1] : vector<16x32xf32> to vector<16xf32>
    %470 = vector.shape_cast %469 : vector<16xf32> to vector<16x1xf32>
    %cst_160 = arith.constant 3.200000e+01 : f32
    %471 = vector.broadcast %cst_160 : f32 to vector<16x1xf32>
    %472 = arith.divf %470, %471 : vector<16x1xf32>
    %cst_161 = arith.constant 9.99999997E-7 : f32
    %473 = vector.broadcast %cst_161 : f32 to vector<16x1xf32>
    %474 = arith.addf %472, %473 : vector<16x1xf32>
    %475 = math.rsqrt %474 : vector<16x1xf32>
    %476 = vector.broadcast %475 : vector<16x1xf32> to vector<16x32xf32>
    %477 = arith.mulf %467, %476 : vector<16x32xf32>
    %c800 = arith.constant 800 : index
    %c0_162 = arith.constant 0 : index
    %478 = vector.load %arg2[%c800, %c0_162] : memref<1696x128xf32, #tpu.memory_space<vmem>>, vector<1x32xf32>
    %479 = vector.broadcast %478 : vector<1x32xf32> to vector<16x32xf32>
    %480 = arith.mulf %477, %479 : vector<16x32xf32>
    %c808 = arith.constant 808 : index
    %c0_163 = arith.constant 0 : index
    %481 = vector.load %arg2[%c808, %c0_163] : memref<1696x128xf32, #tpu.memory_space<vmem>>, vector<1x32xf32>
    %482 = vector.broadcast %481 : vector<1x32xf32> to vector<16x32xf32>
    %483 = arith.addf %480, %482 : vector<16x32xf32>
    %c816 = arith.constant 816 : index
    %c0_164 = arith.constant 0 : index
    %484 = vector.load %arg2[%c816, %c0_164] : memref<1696x128xf32, #tpu.memory_space<vmem>>, vector<32x96xf32>
    %c848 = arith.constant 848 : index
    %c0_165 = arith.constant 0 : index
    %485 = vector.load %arg2[%c848, %c0_165] : memref<1696x128xf32, #tpu.memory_space<vmem>>, vector<1x96xf32>
    %486 = vector.extract_strided_slice %484 {offsets = [0, 0], sizes = [32, 32], strides = [1, 1]} : vector<32x96xf32> to vector<32x32xf32>
    %cst_166 = arith.constant dense<0.000000e+00> : vector<16x32xf32>
    %487 = tpu.matmul %483, %486, %cst_166 {dimension_numbers = #tpu.dot_dimension_numbers<[1], [0], [0], [1], [0, 0, 1, 1], [], []>} : vector<16x32xf32>, vector<32x32xf32>, vector<16x32xf32> -> vector<16x32xf32>
    %488 = vector.extract_strided_slice %485 {offsets = [0, 0], sizes = [1, 32], strides = [1, 1]} : vector<1x96xf32> to vector<1x32xf32>
    %489 = vector.broadcast %488 : vector<1x32xf32> to vector<16x32xf32>
    %490 = arith.addf %487, %489 : vector<16x32xf32>
    %491 = vector.extract_strided_slice %484 {offsets = [0, 32], sizes = [32, 64], strides = [1, 1]} : vector<32x96xf32> to vector<32x64xf32>
    %cst_167 = arith.constant dense<0.000000e+00> : vector<16x64xf32>
    %492 = tpu.matmul %364, %491, %cst_167 {dimension_numbers = #tpu.dot_dimension_numbers<[1], [0], [0], [1], [0, 0, 1, 1], [], []>} : vector<16x32xf32>, vector<32x64xf32>, vector<16x64xf32> -> vector<16x64xf32>
    %493 = vector.extract_strided_slice %485 {offsets = [0, 32], sizes = [1, 64], strides = [1, 1]} : vector<1x96xf32> to vector<1x64xf32>
    %494 = vector.broadcast %493 : vector<1x64xf32> to vector<16x64xf32>
    %495 = arith.addf %492, %494 : vector<16x64xf32>
    %496 = vector.extract_strided_slice %495 {offsets = [0, 0], sizes = [16, 32], strides = [1, 1]} : vector<16x64xf32> to vector<16x32xf32>
    %497 = vector.extract_strided_slice %495 {offsets = [0, 32], sizes = [16, 32], strides = [1, 1]} : vector<16x64xf32> to vector<16x32xf32>
    %498 = tpu.transpose %496, [1, 0] : vector<16x32xf32> -> vector<32x16xf32>
    %c856 = arith.constant 856 : index
    %c0_168 = arith.constant 0 : index
    %499 = vector.load %arg2[%c856, %c0_168] : memref<1696x128xf32, #tpu.memory_space<vmem>>, vector<32x32xf32>
    %500 = vector.extract_strided_slice %490 {offsets = [0, 0], sizes = [16, 8], strides = [1, 1]} : vector<16x32xf32> to vector<16x8xf32>
    %501 = vector.extract_strided_slice %498 {offsets = [0, 0], sizes = [8, 16], strides = [1, 1]} : vector<32x16xf32> to vector<8x16xf32>
    %cst_169 = arith.constant dense<0.000000e+00> : vector<16x16xf32>
    %502 = tpu.matmul %500, %501, %cst_169 {dimension_numbers = #tpu.dot_dimension_numbers<[1], [0], [0], [1], [0, 0, 1, 1], [], []>} : vector<16x8xf32>, vector<8x16xf32>, vector<16x16xf32> -> vector<16x16xf32>
    %cst_170 = arith.constant 0.353553385 : f32
    %503 = vector.broadcast %cst_170 : f32 to vector<16x16xf32>
    %504 = arith.mulf %502, %503 : vector<16x16xf32>
    %505 = arith.addf %504, %1 : vector<16x16xf32>
    %cst_171 = arith.constant dense<0xFF800000> : vector<16xf32>
    %506 = vector.multi_reduction <maximumf>, %505, %cst_171 [1] : vector<16x16xf32> to vector<16xf32>
    %507 = vector.shape_cast %506 : vector<16xf32> to vector<16x1xf32>
    %508 = vector.broadcast %507 : vector<16x1xf32> to vector<16x16xf32>
    %509 = arith.subf %505, %508 : vector<16x16xf32>
    %510 = math.exp %509 : vector<16x16xf32>
    %cst_172 = arith.constant dense<0.000000e+00> : vector<16xf32>
    %511 = vector.multi_reduction <add>, %510, %cst_172 [1] : vector<16x16xf32> to vector<16xf32>
    %512 = vector.shape_cast %511 : vector<16xf32> to vector<16x1xf32>
    %513 = tpu.reciprocal %512 {approx = true} : vector<16x1xf32> -> vector<16x1xf32>
    %514 = vector.broadcast %513 : vector<16x1xf32> to vector<16x16xf32>
    %515 = arith.mulf %510, %514 : vector<16x16xf32>
    %516 = vector.extract_strided_slice %497 {offsets = [0, 0], sizes = [16, 8], strides = [1, 1]} : vector<16x32xf32> to vector<16x8xf32>
    %cst_173 = arith.constant dense<0.000000e+00> : vector<16x8xf32>
    %517 = tpu.matmul %515, %516, %cst_173 {dimension_numbers = #tpu.dot_dimension_numbers<[1], [0], [0], [1], [0, 0, 1, 1], [], []>} : vector<16x16xf32>, vector<16x8xf32>, vector<16x8xf32> -> vector<16x8xf32>
    %518 = vector.extract_strided_slice %499 {offsets = [0, 0], sizes = [8, 32], strides = [1, 1]} : vector<32x32xf32> to vector<8x32xf32>
    %cst_174 = arith.constant dense<0.000000e+00> : vector<16x32xf32>
    %519 = tpu.matmul %517, %518, %cst_174 {dimension_numbers = #tpu.dot_dimension_numbers<[1], [0], [0], [1], [0, 0, 1, 1], [], []>} : vector<16x8xf32>, vector<8x32xf32>, vector<16x32xf32> -> vector<16x32xf32>
    %520 = vector.extract_strided_slice %490 {offsets = [0, 8], sizes = [16, 8], strides = [1, 1]} : vector<16x32xf32> to vector<16x8xf32>
    %521 = vector.extract_strided_slice %498 {offsets = [8, 0], sizes = [8, 16], strides = [1, 1]} : vector<32x16xf32> to vector<8x16xf32>
    %cst_175 = arith.constant dense<0.000000e+00> : vector<16x16xf32>
    %522 = tpu.matmul %520, %521, %cst_175 {dimension_numbers = #tpu.dot_dimension_numbers<[1], [0], [0], [1], [0, 0, 1, 1], [], []>} : vector<16x8xf32>, vector<8x16xf32>, vector<16x16xf32> -> vector<16x16xf32>
    %cst_176 = arith.constant 0.353553385 : f32
    %523 = vector.broadcast %cst_176 : f32 to vector<16x16xf32>
    %524 = arith.mulf %522, %523 : vector<16x16xf32>
    %525 = arith.addf %524, %1 : vector<16x16xf32>
    %cst_177 = arith.constant dense<0xFF800000> : vector<16xf32>
    %526 = vector.multi_reduction <maximumf>, %525, %cst_177 [1] : vector<16x16xf32> to vector<16xf32>
    %527 = vector.shape_cast %526 : vector<16xf32> to vector<16x1xf32>
    %528 = vector.broadcast %527 : vector<16x1xf32> to vector<16x16xf32>
    %529 = arith.subf %525, %528 : vector<16x16xf32>
    %530 = math.exp %529 : vector<16x16xf32>
    %cst_178 = arith.constant dense<0.000000e+00> : vector<16xf32>
    %531 = vector.multi_reduction <add>, %530, %cst_178 [1] : vector<16x16xf32> to vector<16xf32>
    %532 = vector.shape_cast %531 : vector<16xf32> to vector<16x1xf32>
    %533 = tpu.reciprocal %532 {approx = true} : vector<16x1xf32> -> vector<16x1xf32>
    %534 = vector.broadcast %533 : vector<16x1xf32> to vector<16x16xf32>
    %535 = arith.mulf %530, %534 : vector<16x16xf32>
    %536 = vector.extract_strided_slice %497 {offsets = [0, 8], sizes = [16, 8], strides = [1, 1]} : vector<16x32xf32> to vector<16x8xf32>
    %cst_179 = arith.constant dense<0.000000e+00> : vector<16x8xf32>
    %537 = tpu.matmul %535, %536, %cst_179 {dimension_numbers = #tpu.dot_dimension_numbers<[1], [0], [0], [1], [0, 0, 1, 1], [], []>} : vector<16x16xf32>, vector<16x8xf32>, vector<16x8xf32> -> vector<16x8xf32>
    %538 = vector.extract_strided_slice %499 {offsets = [8, 0], sizes = [8, 32], strides = [1, 1]} : vector<32x32xf32> to vector<8x32xf32>
    %cst_180 = arith.constant dense<0.000000e+00> : vector<16x32xf32>
    %539 = tpu.matmul %537, %538, %cst_180 {dimension_numbers = #tpu.dot_dimension_numbers<[1], [0], [0], [1], [0, 0, 1, 1], [], []>} : vector<16x8xf32>, vector<8x32xf32>, vector<16x32xf32> -> vector<16x32xf32>
    %540 = arith.addf %519, %539 : vector<16x32xf32>
    %541 = vector.extract_strided_slice %490 {offsets = [0, 16], sizes = [16, 8], strides = [1, 1]} : vector<16x32xf32> to vector<16x8xf32>
    %542 = vector.extract_strided_slice %498 {offsets = [16, 0], sizes = [8, 16], strides = [1, 1]} : vector<32x16xf32> to vector<8x16xf32>
    %cst_181 = arith.constant dense<0.000000e+00> : vector<16x16xf32>
    %543 = tpu.matmul %541, %542, %cst_181 {dimension_numbers = #tpu.dot_dimension_numbers<[1], [0], [0], [1], [0, 0, 1, 1], [], []>} : vector<16x8xf32>, vector<8x16xf32>, vector<16x16xf32> -> vector<16x16xf32>
    %cst_182 = arith.constant 0.353553385 : f32
    %544 = vector.broadcast %cst_182 : f32 to vector<16x16xf32>
    %545 = arith.mulf %543, %544 : vector<16x16xf32>
    %546 = arith.addf %545, %1 : vector<16x16xf32>
    %cst_183 = arith.constant dense<0xFF800000> : vector<16xf32>
    %547 = vector.multi_reduction <maximumf>, %546, %cst_183 [1] : vector<16x16xf32> to vector<16xf32>
    %548 = vector.shape_cast %547 : vector<16xf32> to vector<16x1xf32>
    %549 = vector.broadcast %548 : vector<16x1xf32> to vector<16x16xf32>
    %550 = arith.subf %546, %549 : vector<16x16xf32>
    %551 = math.exp %550 : vector<16x16xf32>
    %cst_184 = arith.constant dense<0.000000e+00> : vector<16xf32>
    %552 = vector.multi_reduction <add>, %551, %cst_184 [1] : vector<16x16xf32> to vector<16xf32>
    %553 = vector.shape_cast %552 : vector<16xf32> to vector<16x1xf32>
    %554 = tpu.reciprocal %553 {approx = true} : vector<16x1xf32> -> vector<16x1xf32>
    %555 = vector.broadcast %554 : vector<16x1xf32> to vector<16x16xf32>
    %556 = arith.mulf %551, %555 : vector<16x16xf32>
    %557 = vector.extract_strided_slice %497 {offsets = [0, 16], sizes = [16, 8], strides = [1, 1]} : vector<16x32xf32> to vector<16x8xf32>
    %cst_185 = arith.constant dense<0.000000e+00> : vector<16x8xf32>
    %558 = tpu.matmul %556, %557, %cst_185 {dimension_numbers = #tpu.dot_dimension_numbers<[1], [0], [0], [1], [0, 0, 1, 1], [], []>} : vector<16x16xf32>, vector<16x8xf32>, vector<16x8xf32> -> vector<16x8xf32>
    %559 = vector.extract_strided_slice %499 {offsets = [16, 0], sizes = [8, 32], strides = [1, 1]} : vector<32x32xf32> to vector<8x32xf32>
    %cst_186 = arith.constant dense<0.000000e+00> : vector<16x32xf32>
    %560 = tpu.matmul %558, %559, %cst_186 {dimension_numbers = #tpu.dot_dimension_numbers<[1], [0], [0], [1], [0, 0, 1, 1], [], []>} : vector<16x8xf32>, vector<8x32xf32>, vector<16x32xf32> -> vector<16x32xf32>
    %561 = arith.addf %540, %560 : vector<16x32xf32>
    %562 = vector.extract_strided_slice %490 {offsets = [0, 24], sizes = [16, 8], strides = [1, 1]} : vector<16x32xf32> to vector<16x8xf32>
    %563 = vector.extract_strided_slice %498 {offsets = [24, 0], sizes = [8, 16], strides = [1, 1]} : vector<32x16xf32> to vector<8x16xf32>
    %cst_187 = arith.constant dense<0.000000e+00> : vector<16x16xf32>
    %564 = tpu.matmul %562, %563, %cst_187 {dimension_numbers = #tpu.dot_dimension_numbers<[1], [0], [0], [1], [0, 0, 1, 1], [], []>} : vector<16x8xf32>, vector<8x16xf32>, vector<16x16xf32> -> vector<16x16xf32>
    %cst_188 = arith.constant 0.353553385 : f32
    %565 = vector.broadcast %cst_188 : f32 to vector<16x16xf32>
    %566 = arith.mulf %564, %565 : vector<16x16xf32>
    %567 = arith.addf %566, %1 : vector<16x16xf32>
    %cst_189 = arith.constant dense<0xFF800000> : vector<16xf32>
    %568 = vector.multi_reduction <maximumf>, %567, %cst_189 [1] : vector<16x16xf32> to vector<16xf32>
    %569 = vector.shape_cast %568 : vector<16xf32> to vector<16x1xf32>
    %570 = vector.broadcast %569 : vector<16x1xf32> to vector<16x16xf32>
    %571 = arith.subf %567, %570 : vector<16x16xf32>
    %572 = math.exp %571 : vector<16x16xf32>
    %cst_190 = arith.constant dense<0.000000e+00> : vector<16xf32>
    %573 = vector.multi_reduction <add>, %572, %cst_190 [1] : vector<16x16xf32> to vector<16xf32>
    %574 = vector.shape_cast %573 : vector<16xf32> to vector<16x1xf32>
    %575 = tpu.reciprocal %574 {approx = true} : vector<16x1xf32> -> vector<16x1xf32>
    %576 = vector.broadcast %575 : vector<16x1xf32> to vector<16x16xf32>
    %577 = arith.mulf %572, %576 : vector<16x16xf32>
    %578 = vector.extract_strided_slice %497 {offsets = [0, 24], sizes = [16, 8], strides = [1, 1]} : vector<16x32xf32> to vector<16x8xf32>
    %cst_191 = arith.constant dense<0.000000e+00> : vector<16x8xf32>
    %579 = tpu.matmul %577, %578, %cst_191 {dimension_numbers = #tpu.dot_dimension_numbers<[1], [0], [0], [1], [0, 0, 1, 1], [], []>} : vector<16x16xf32>, vector<16x8xf32>, vector<16x8xf32> -> vector<16x8xf32>
    %580 = vector.extract_strided_slice %499 {offsets = [24, 0], sizes = [8, 32], strides = [1, 1]} : vector<32x32xf32> to vector<8x32xf32>
    %cst_192 = arith.constant dense<0.000000e+00> : vector<16x32xf32>
    %581 = tpu.matmul %579, %580, %cst_192 {dimension_numbers = #tpu.dot_dimension_numbers<[1], [0], [0], [1], [0, 0, 1, 1], [], []>} : vector<16x8xf32>, vector<8x32xf32>, vector<16x32xf32> -> vector<16x32xf32>
    %582 = arith.addf %561, %581 : vector<16x32xf32>
    %c888 = arith.constant 888 : index
    %c0_193 = arith.constant 0 : index
    %583 = vector.load %arg2[%c888, %c0_193] : memref<1696x128xf32, #tpu.memory_space<vmem>>, vector<1x32xf32>
    %584 = vector.broadcast %583 : vector<1x32xf32> to vector<16x32xf32>
    %585 = arith.addf %582, %584 : vector<16x32xf32>
    %586 = arith.addf %483, %585 : vector<16x32xf32>
    %cst_194 = arith.constant dense<0.000000e+00> : vector<16xf32>
    %587 = vector.multi_reduction <add>, %586, %cst_194 [1] : vector<16x32xf32> to vector<16xf32>
    %588 = vector.shape_cast %587 : vector<16xf32> to vector<16x1xf32>
    %cst_195 = arith.constant 3.200000e+01 : f32
    %589 = vector.broadcast %cst_195 : f32 to vector<16x1xf32>
    %590 = arith.divf %588, %589 : vector<16x1xf32>
    %591 = vector.broadcast %590 : vector<16x1xf32> to vector<16x32xf32>
    %592 = arith.subf %586, %591 : vector<16x32xf32>
    %593 = arith.mulf %592, %592 : vector<16x32xf32>
    %cst_196 = arith.constant dense<0.000000e+00> : vector<16xf32>
    %594 = vector.multi_reduction <add>, %593, %cst_196 [1] : vector<16x32xf32> to vector<16xf32>
    %595 = vector.shape_cast %594 : vector<16xf32> to vector<16x1xf32>
    %cst_197 = arith.constant 3.200000e+01 : f32
    %596 = vector.broadcast %cst_197 : f32 to vector<16x1xf32>
    %597 = arith.divf %595, %596 : vector<16x1xf32>
    %cst_198 = arith.constant 9.99999997E-7 : f32
    %598 = vector.broadcast %cst_198 : f32 to vector<16x1xf32>
    %599 = arith.addf %597, %598 : vector<16x1xf32>
    %600 = math.rsqrt %599 : vector<16x1xf32>
    %601 = vector.broadcast %600 : vector<16x1xf32> to vector<16x32xf32>
    %602 = arith.mulf %592, %601 : vector<16x32xf32>
    %c896 = arith.constant 896 : index
    %c0_199 = arith.constant 0 : index
    %603 = vector.load %arg2[%c896, %c0_199] : memref<1696x128xf32, #tpu.memory_space<vmem>>, vector<1x32xf32>
    %604 = vector.broadcast %603 : vector<1x32xf32> to vector<16x32xf32>
    %605 = arith.mulf %602, %604 : vector<16x32xf32>
    %c904 = arith.constant 904 : index
    %c0_200 = arith.constant 0 : index
    %606 = vector.load %arg2[%c904, %c0_200] : memref<1696x128xf32, #tpu.memory_space<vmem>>, vector<1x32xf32>
    %607 = vector.broadcast %606 : vector<1x32xf32> to vector<16x32xf32>
    %608 = arith.addf %605, %607 : vector<16x32xf32>
    %c912 = arith.constant 912 : index
    %c0_201 = arith.constant 0 : index
    %609 = vector.load %arg2[%c912, %c0_201] : memref<1696x128xf32, #tpu.memory_space<vmem>>, vector<32x128xf32>
    %cst_202 = arith.constant dense<0.000000e+00> : vector<16x128xf32>
    %610 = tpu.matmul %608, %609, %cst_202 {dimension_numbers = #tpu.dot_dimension_numbers<[1], [0], [0], [1], [0, 0, 1, 1], [], []>} : vector<16x32xf32>, vector<32x128xf32>, vector<16x128xf32> -> vector<16x128xf32>
    %c944 = arith.constant 944 : index
    %c0_203 = arith.constant 0 : index
    %611 = vector.load %arg2[%c944, %c0_203] : memref<1696x128xf32, #tpu.memory_space<vmem>>, vector<1x128xf32>
    %612 = vector.broadcast %611 : vector<1x128xf32> to vector<16x128xf32>
    %613 = arith.addf %610, %612 : vector<16x128xf32>
    %cst_204 = arith.constant 5.000000e-01 : f32
    %614 = vector.broadcast %cst_204 : f32 to vector<16x128xf32>
    %615 = arith.mulf %614, %613 : vector<16x128xf32>
    %cst_205 = arith.constant 4.471500e-02 : f32
    %616 = vector.broadcast %cst_205 : f32 to vector<16x128xf32>
    %617 = arith.mulf %616, %613 : vector<16x128xf32>
    %618 = arith.mulf %617, %613 : vector<16x128xf32>
    %619 = arith.mulf %618, %613 : vector<16x128xf32>
    %620 = arith.addf %613, %619 : vector<16x128xf32>
    %cst_206 = arith.constant 0.797884583 : f32
    %621 = vector.broadcast %cst_206 : f32 to vector<16x128xf32>
    %622 = arith.mulf %621, %620 : vector<16x128xf32>
    %623 = math.tanh %622 : vector<16x128xf32>
    %cst_207 = arith.constant 1.000000e+00 : f32
    %624 = vector.broadcast %cst_207 : f32 to vector<16x128xf32>
    %625 = arith.addf %624, %623 : vector<16x128xf32>
    %626 = arith.mulf %615, %625 : vector<16x128xf32>
    %c952 = arith.constant 952 : index
    %c0_208 = arith.constant 0 : index
    %627 = vector.load %arg2[%c952, %c0_208] : memref<1696x128xf32, #tpu.memory_space<vmem>>, vector<128x32xf32>
    %cst_209 = arith.constant dense<0.000000e+00> : vector<16x32xf32>
    %628 = tpu.matmul %626, %627, %cst_209 {dimension_numbers = #tpu.dot_dimension_numbers<[1], [0], [0], [1], [0, 0, 1, 1], [], []>} : vector<16x128xf32>, vector<128x32xf32>, vector<16x32xf32> -> vector<16x32xf32>
    %c1080 = arith.constant 1080 : index
    %c0_210 = arith.constant 0 : index
    %629 = vector.load %arg2[%c1080, %c0_210] : memref<1696x128xf32, #tpu.memory_space<vmem>>, vector<1x32xf32>
    %630 = vector.broadcast %629 : vector<1x32xf32> to vector<16x32xf32>
    %631 = arith.addf %628, %630 : vector<16x32xf32>
    %632 = arith.addf %608, %631 : vector<16x32xf32>
    %cst_211 = arith.constant dense<0.000000e+00> : vector<16xf32>
    %633 = vector.multi_reduction <add>, %632, %cst_211 [1] : vector<16x32xf32> to vector<16xf32>
    %634 = vector.shape_cast %633 : vector<16xf32> to vector<16x1xf32>
    %cst_212 = arith.constant 3.200000e+01 : f32
    %635 = vector.broadcast %cst_212 : f32 to vector<16x1xf32>
    %636 = arith.divf %634, %635 : vector<16x1xf32>
    %637 = vector.broadcast %636 : vector<16x1xf32> to vector<16x32xf32>
    %638 = arith.subf %632, %637 : vector<16x32xf32>
    %639 = arith.mulf %638, %638 : vector<16x32xf32>
    %cst_213 = arith.constant dense<0.000000e+00> : vector<16xf32>
    %640 = vector.multi_reduction <add>, %639, %cst_213 [1] : vector<16x32xf32> to vector<16xf32>
    %641 = vector.shape_cast %640 : vector<16xf32> to vector<16x1xf32>
    %cst_214 = arith.constant 3.200000e+01 : f32
    %642 = vector.broadcast %cst_214 : f32 to vector<16x1xf32>
    %643 = arith.divf %641, %642 : vector<16x1xf32>
    %cst_215 = arith.constant 9.99999997E-7 : f32
    %644 = vector.broadcast %cst_215 : f32 to vector<16x1xf32>
    %645 = arith.addf %643, %644 : vector<16x1xf32>
    %646 = math.rsqrt %645 : vector<16x1xf32>
    %647 = vector.broadcast %646 : vector<16x1xf32> to vector<16x32xf32>
    %648 = arith.mulf %638, %647 : vector<16x32xf32>
    %c1088 = arith.constant 1088 : index
    %c0_216 = arith.constant 0 : index
    %649 = vector.load %arg2[%c1088, %c0_216] : memref<1696x128xf32, #tpu.memory_space<vmem>>, vector<1x32xf32>
    %650 = vector.broadcast %649 : vector<1x32xf32> to vector<16x32xf32>
    %651 = arith.mulf %648, %650 : vector<16x32xf32>
    %c1096 = arith.constant 1096 : index
    %c0_217 = arith.constant 0 : index
    %652 = vector.load %arg2[%c1096, %c0_217] : memref<1696x128xf32, #tpu.memory_space<vmem>>, vector<1x32xf32>
    %653 = vector.broadcast %652 : vector<1x32xf32> to vector<16x32xf32>
    %654 = arith.addf %651, %653 : vector<16x32xf32>
    %c1104 = arith.constant 1104 : index
    %c0_218 = arith.constant 0 : index
    %655 = vector.load %arg2[%c1104, %c0_218] : memref<1696x128xf32, #tpu.memory_space<vmem>>, vector<32x96xf32>
    %c1136 = arith.constant 1136 : index
    %c0_219 = arith.constant 0 : index
    %656 = vector.load %arg2[%c1136, %c0_219] : memref<1696x128xf32, #tpu.memory_space<vmem>>, vector<1x96xf32>
    %cst_220 = arith.constant dense<0.000000e+00> : vector<16x96xf32>
    %657 = tpu.matmul %654, %655, %cst_220 {dimension_numbers = #tpu.dot_dimension_numbers<[1], [0], [0], [1], [0, 0, 1, 1], [], []>} : vector<16x32xf32>, vector<32x96xf32>, vector<16x96xf32> -> vector<16x96xf32>
    %658 = vector.broadcast %656 : vector<1x96xf32> to vector<16x96xf32>
    %659 = arith.addf %657, %658 : vector<16x96xf32>
    %660 = vector.extract_strided_slice %659 {offsets = [0, 0], sizes = [16, 32], strides = [1, 1]} : vector<16x96xf32> to vector<16x32xf32>
    %661 = vector.extract_strided_slice %659 {offsets = [0, 32], sizes = [16, 32], strides = [1, 1]} : vector<16x96xf32> to vector<16x32xf32>
    %662 = vector.extract_strided_slice %659 {offsets = [0, 64], sizes = [16, 32], strides = [1, 1]} : vector<16x96xf32> to vector<16x32xf32>
    %663 = tpu.transpose %661, [1, 0] : vector<16x32xf32> -> vector<32x16xf32>
    %c1144 = arith.constant 1144 : index
    %c0_221 = arith.constant 0 : index
    %664 = vector.load %arg2[%c1144, %c0_221] : memref<1696x128xf32, #tpu.memory_space<vmem>>, vector<32x32xf32>
    %665 = vector.extract_strided_slice %660 {offsets = [0, 0], sizes = [16, 8], strides = [1, 1]} : vector<16x32xf32> to vector<16x8xf32>
    %666 = vector.extract_strided_slice %663 {offsets = [0, 0], sizes = [8, 16], strides = [1, 1]} : vector<32x16xf32> to vector<8x16xf32>
    %cst_222 = arith.constant dense<0.000000e+00> : vector<16x16xf32>
    %667 = tpu.matmul %665, %666, %cst_222 {dimension_numbers = #tpu.dot_dimension_numbers<[1], [0], [0], [1], [0, 0, 1, 1], [], []>} : vector<16x8xf32>, vector<8x16xf32>, vector<16x16xf32> -> vector<16x16xf32>
    %cst_223 = arith.constant 0.353553385 : f32
    %668 = vector.broadcast %cst_223 : f32 to vector<16x16xf32>
    %669 = arith.mulf %667, %668 : vector<16x16xf32>
    %670 = arith.addf %669, %1 : vector<16x16xf32>
    %cst_224 = arith.constant dense<0xFF800000> : vector<16xf32>
    %671 = vector.multi_reduction <maximumf>, %670, %cst_224 [1] : vector<16x16xf32> to vector<16xf32>
    %672 = vector.shape_cast %671 : vector<16xf32> to vector<16x1xf32>
    %673 = vector.broadcast %672 : vector<16x1xf32> to vector<16x16xf32>
    %674 = arith.subf %670, %673 : vector<16x16xf32>
    %675 = math.exp %674 : vector<16x16xf32>
    %cst_225 = arith.constant dense<0.000000e+00> : vector<16xf32>
    %676 = vector.multi_reduction <add>, %675, %cst_225 [1] : vector<16x16xf32> to vector<16xf32>
    %677 = vector.shape_cast %676 : vector<16xf32> to vector<16x1xf32>
    %678 = tpu.reciprocal %677 {approx = true} : vector<16x1xf32> -> vector<16x1xf32>
    %679 = vector.broadcast %678 : vector<16x1xf32> to vector<16x16xf32>
    %680 = arith.mulf %675, %679 : vector<16x16xf32>
    %681 = vector.extract_strided_slice %662 {offsets = [0, 0], sizes = [16, 8], strides = [1, 1]} : vector<16x32xf32> to vector<16x8xf32>
    %cst_226 = arith.constant dense<0.000000e+00> : vector<16x8xf32>
    %682 = tpu.matmul %680, %681, %cst_226 {dimension_numbers = #tpu.dot_dimension_numbers<[1], [0], [0], [1], [0, 0, 1, 1], [], []>} : vector<16x16xf32>, vector<16x8xf32>, vector<16x8xf32> -> vector<16x8xf32>
    %683 = vector.extract_strided_slice %664 {offsets = [0, 0], sizes = [8, 32], strides = [1, 1]} : vector<32x32xf32> to vector<8x32xf32>
    %cst_227 = arith.constant dense<0.000000e+00> : vector<16x32xf32>
    %684 = tpu.matmul %682, %683, %cst_227 {dimension_numbers = #tpu.dot_dimension_numbers<[1], [0], [0], [1], [0, 0, 1, 1], [], []>} : vector<16x8xf32>, vector<8x32xf32>, vector<16x32xf32> -> vector<16x32xf32>
    %685 = vector.extract_strided_slice %660 {offsets = [0, 8], sizes = [16, 8], strides = [1, 1]} : vector<16x32xf32> to vector<16x8xf32>
    %686 = vector.extract_strided_slice %663 {offsets = [8, 0], sizes = [8, 16], strides = [1, 1]} : vector<32x16xf32> to vector<8x16xf32>
    %cst_228 = arith.constant dense<0.000000e+00> : vector<16x16xf32>
    %687 = tpu.matmul %685, %686, %cst_228 {dimension_numbers = #tpu.dot_dimension_numbers<[1], [0], [0], [1], [0, 0, 1, 1], [], []>} : vector<16x8xf32>, vector<8x16xf32>, vector<16x16xf32> -> vector<16x16xf32>
    %cst_229 = arith.constant 0.353553385 : f32
    %688 = vector.broadcast %cst_229 : f32 to vector<16x16xf32>
    %689 = arith.mulf %687, %688 : vector<16x16xf32>
    %690 = arith.addf %689, %1 : vector<16x16xf32>
    %cst_230 = arith.constant dense<0xFF800000> : vector<16xf32>
    %691 = vector.multi_reduction <maximumf>, %690, %cst_230 [1] : vector<16x16xf32> to vector<16xf32>
    %692 = vector.shape_cast %691 : vector<16xf32> to vector<16x1xf32>
    %693 = vector.broadcast %692 : vector<16x1xf32> to vector<16x16xf32>
    %694 = arith.subf %690, %693 : vector<16x16xf32>
    %695 = math.exp %694 : vector<16x16xf32>
    %cst_231 = arith.constant dense<0.000000e+00> : vector<16xf32>
    %696 = vector.multi_reduction <add>, %695, %cst_231 [1] : vector<16x16xf32> to vector<16xf32>
    %697 = vector.shape_cast %696 : vector<16xf32> to vector<16x1xf32>
    %698 = tpu.reciprocal %697 {approx = true} : vector<16x1xf32> -> vector<16x1xf32>
    %699 = vector.broadcast %698 : vector<16x1xf32> to vector<16x16xf32>
    %700 = arith.mulf %695, %699 : vector<16x16xf32>
    %701 = vector.extract_strided_slice %662 {offsets = [0, 8], sizes = [16, 8], strides = [1, 1]} : vector<16x32xf32> to vector<16x8xf32>
    %cst_232 = arith.constant dense<0.000000e+00> : vector<16x8xf32>
    %702 = tpu.matmul %700, %701, %cst_232 {dimension_numbers = #tpu.dot_dimension_numbers<[1], [0], [0], [1], [0, 0, 1, 1], [], []>} : vector<16x16xf32>, vector<16x8xf32>, vector<16x8xf32> -> vector<16x8xf32>
    %703 = vector.extract_strided_slice %664 {offsets = [8, 0], sizes = [8, 32], strides = [1, 1]} : vector<32x32xf32> to vector<8x32xf32>
    %cst_233 = arith.constant dense<0.000000e+00> : vector<16x32xf32>
    %704 = tpu.matmul %702, %703, %cst_233 {dimension_numbers = #tpu.dot_dimension_numbers<[1], [0], [0], [1], [0, 0, 1, 1], [], []>} : vector<16x8xf32>, vector<8x32xf32>, vector<16x32xf32> -> vector<16x32xf32>
    %705 = arith.addf %684, %704 : vector<16x32xf32>
    %706 = vector.extract_strided_slice %660 {offsets = [0, 16], sizes = [16, 8], strides = [1, 1]} : vector<16x32xf32> to vector<16x8xf32>
    %707 = vector.extract_strided_slice %663 {offsets = [16, 0], sizes = [8, 16], strides = [1, 1]} : vector<32x16xf32> to vector<8x16xf32>
    %cst_234 = arith.constant dense<0.000000e+00> : vector<16x16xf32>
    %708 = tpu.matmul %706, %707, %cst_234 {dimension_numbers = #tpu.dot_dimension_numbers<[1], [0], [0], [1], [0, 0, 1, 1], [], []>} : vector<16x8xf32>, vector<8x16xf32>, vector<16x16xf32> -> vector<16x16xf32>
    %cst_235 = arith.constant 0.353553385 : f32
    %709 = vector.broadcast %cst_235 : f32 to vector<16x16xf32>
    %710 = arith.mulf %708, %709 : vector<16x16xf32>
    %711 = arith.addf %710, %1 : vector<16x16xf32>
    %cst_236 = arith.constant dense<0xFF800000> : vector<16xf32>
    %712 = vector.multi_reduction <maximumf>, %711, %cst_236 [1] : vector<16x16xf32> to vector<16xf32>
    %713 = vector.shape_cast %712 : vector<16xf32> to vector<16x1xf32>
    %714 = vector.broadcast %713 : vector<16x1xf32> to vector<16x16xf32>
    %715 = arith.subf %711, %714 : vector<16x16xf32>
    %716 = math.exp %715 : vector<16x16xf32>
    %cst_237 = arith.constant dense<0.000000e+00> : vector<16xf32>
    %717 = vector.multi_reduction <add>, %716, %cst_237 [1] : vector<16x16xf32> to vector<16xf32>
    %718 = vector.shape_cast %717 : vector<16xf32> to vector<16x1xf32>
    %719 = tpu.reciprocal %718 {approx = true} : vector<16x1xf32> -> vector<16x1xf32>
    %720 = vector.broadcast %719 : vector<16x1xf32> to vector<16x16xf32>
    %721 = arith.mulf %716, %720 : vector<16x16xf32>
    %722 = vector.extract_strided_slice %662 {offsets = [0, 16], sizes = [16, 8], strides = [1, 1]} : vector<16x32xf32> to vector<16x8xf32>
    %cst_238 = arith.constant dense<0.000000e+00> : vector<16x8xf32>
    %723 = tpu.matmul %721, %722, %cst_238 {dimension_numbers = #tpu.dot_dimension_numbers<[1], [0], [0], [1], [0, 0, 1, 1], [], []>} : vector<16x16xf32>, vector<16x8xf32>, vector<16x8xf32> -> vector<16x8xf32>
    %724 = vector.extract_strided_slice %664 {offsets = [16, 0], sizes = [8, 32], strides = [1, 1]} : vector<32x32xf32> to vector<8x32xf32>
    %cst_239 = arith.constant dense<0.000000e+00> : vector<16x32xf32>
    %725 = tpu.matmul %723, %724, %cst_239 {dimension_numbers = #tpu.dot_dimension_numbers<[1], [0], [0], [1], [0, 0, 1, 1], [], []>} : vector<16x8xf32>, vector<8x32xf32>, vector<16x32xf32> -> vector<16x32xf32>
    %726 = arith.addf %705, %725 : vector<16x32xf32>
    %727 = vector.extract_strided_slice %660 {offsets = [0, 24], sizes = [16, 8], strides = [1, 1]} : vector<16x32xf32> to vector<16x8xf32>
    %728 = vector.extract_strided_slice %663 {offsets = [24, 0], sizes = [8, 16], strides = [1, 1]} : vector<32x16xf32> to vector<8x16xf32>
    %cst_240 = arith.constant dense<0.000000e+00> : vector<16x16xf32>
    %729 = tpu.matmul %727, %728, %cst_240 {dimension_numbers = #tpu.dot_dimension_numbers<[1], [0], [0], [1], [0, 0, 1, 1], [], []>} : vector<16x8xf32>, vector<8x16xf32>, vector<16x16xf32> -> vector<16x16xf32>
    %cst_241 = arith.constant 0.353553385 : f32
    %730 = vector.broadcast %cst_241 : f32 to vector<16x16xf32>
    %731 = arith.mulf %729, %730 : vector<16x16xf32>
    %732 = arith.addf %731, %1 : vector<16x16xf32>
    %cst_242 = arith.constant dense<0xFF800000> : vector<16xf32>
    %733 = vector.multi_reduction <maximumf>, %732, %cst_242 [1] : vector<16x16xf32> to vector<16xf32>
    %734 = vector.shape_cast %733 : vector<16xf32> to vector<16x1xf32>
    %735 = vector.broadcast %734 : vector<16x1xf32> to vector<16x16xf32>
    %736 = arith.subf %732, %735 : vector<16x16xf32>
    %737 = math.exp %736 : vector<16x16xf32>
    %cst_243 = arith.constant dense<0.000000e+00> : vector<16xf32>
    %738 = vector.multi_reduction <add>, %737, %cst_243 [1] : vector<16x16xf32> to vector<16xf32>
    %739 = vector.shape_cast %738 : vector<16xf32> to vector<16x1xf32>
    %740 = tpu.reciprocal %739 {approx = true} : vector<16x1xf32> -> vector<16x1xf32>
    %741 = vector.broadcast %740 : vector<16x1xf32> to vector<16x16xf32>
    %742 = arith.mulf %737, %741 : vector<16x16xf32>
    %743 = vector.extract_strided_slice %662 {offsets = [0, 24], sizes = [16, 8], strides = [1, 1]} : vector<16x32xf32> to vector<16x8xf32>
    %cst_244 = arith.constant dense<0.000000e+00> : vector<16x8xf32>
    %744 = tpu.matmul %742, %743, %cst_244 {dimension_numbers = #tpu.dot_dimension_numbers<[1], [0], [0], [1], [0, 0, 1, 1], [], []>} : vector<16x16xf32>, vector<16x8xf32>, vector<16x8xf32> -> vector<16x8xf32>
    %745 = vector.extract_strided_slice %664 {offsets = [24, 0], sizes = [8, 32], strides = [1, 1]} : vector<32x32xf32> to vector<8x32xf32>
    %cst_245 = arith.constant dense<0.000000e+00> : vector<16x32xf32>
    %746 = tpu.matmul %744, %745, %cst_245 {dimension_numbers = #tpu.dot_dimension_numbers<[1], [0], [0], [1], [0, 0, 1, 1], [], []>} : vector<16x8xf32>, vector<8x32xf32>, vector<16x32xf32> -> vector<16x32xf32>
    %747 = arith.addf %726, %746 : vector<16x32xf32>
    %c1176 = arith.constant 1176 : index
    %c0_246 = arith.constant 0 : index
    %748 = vector.load %arg2[%c1176, %c0_246] : memref<1696x128xf32, #tpu.memory_space<vmem>>, vector<1x32xf32>
    %749 = vector.broadcast %748 : vector<1x32xf32> to vector<16x32xf32>
    %750 = arith.addf %747, %749 : vector<16x32xf32>
    %751 = arith.addf %654, %750 : vector<16x32xf32>
    %cst_247 = arith.constant dense<0.000000e+00> : vector<16xf32>
    %752 = vector.multi_reduction <add>, %751, %cst_247 [1] : vector<16x32xf32> to vector<16xf32>
    %753 = vector.shape_cast %752 : vector<16xf32> to vector<16x1xf32>
    %cst_248 = arith.constant 3.200000e+01 : f32
    %754 = vector.broadcast %cst_248 : f32 to vector<16x1xf32>
    %755 = arith.divf %753, %754 : vector<16x1xf32>
    %756 = vector.broadcast %755 : vector<16x1xf32> to vector<16x32xf32>
    %757 = arith.subf %751, %756 : vector<16x32xf32>
    %758 = arith.mulf %757, %757 : vector<16x32xf32>
    %cst_249 = arith.constant dense<0.000000e+00> : vector<16xf32>
    %759 = vector.multi_reduction <add>, %758, %cst_249 [1] : vector<16x32xf32> to vector<16xf32>
    %760 = vector.shape_cast %759 : vector<16xf32> to vector<16x1xf32>
    %cst_250 = arith.constant 3.200000e+01 : f32
    %761 = vector.broadcast %cst_250 : f32 to vector<16x1xf32>
    %762 = arith.divf %760, %761 : vector<16x1xf32>
    %cst_251 = arith.constant 9.99999997E-7 : f32
    %763 = vector.broadcast %cst_251 : f32 to vector<16x1xf32>
    %764 = arith.addf %762, %763 : vector<16x1xf32>
    %765 = math.rsqrt %764 : vector<16x1xf32>
    %766 = vector.broadcast %765 : vector<16x1xf32> to vector<16x32xf32>
    %767 = arith.mulf %757, %766 : vector<16x32xf32>
    %c1184 = arith.constant 1184 : index
    %c0_252 = arith.constant 0 : index
    %768 = vector.load %arg2[%c1184, %c0_252] : memref<1696x128xf32, #tpu.memory_space<vmem>>, vector<1x32xf32>
    %769 = vector.broadcast %768 : vector<1x32xf32> to vector<16x32xf32>
    %770 = arith.mulf %767, %769 : vector<16x32xf32>
    %c1192 = arith.constant 1192 : index
    %c0_253 = arith.constant 0 : index
    %771 = vector.load %arg2[%c1192, %c0_253] : memref<1696x128xf32, #tpu.memory_space<vmem>>, vector<1x32xf32>
    %772 = vector.broadcast %771 : vector<1x32xf32> to vector<16x32xf32>
    %773 = arith.addf %770, %772 : vector<16x32xf32>
    %c1200 = arith.constant 1200 : index
    %c0_254 = arith.constant 0 : index
    %774 = vector.load %arg2[%c1200, %c0_254] : memref<1696x128xf32, #tpu.memory_space<vmem>>, vector<32x96xf32>
    %c1232 = arith.constant 1232 : index
    %c0_255 = arith.constant 0 : index
    %775 = vector.load %arg2[%c1232, %c0_255] : memref<1696x128xf32, #tpu.memory_space<vmem>>, vector<1x96xf32>
    %776 = vector.extract_strided_slice %774 {offsets = [0, 0], sizes = [32, 32], strides = [1, 1]} : vector<32x96xf32> to vector<32x32xf32>
    %cst_256 = arith.constant dense<0.000000e+00> : vector<16x32xf32>
    %777 = tpu.matmul %773, %776, %cst_256 {dimension_numbers = #tpu.dot_dimension_numbers<[1], [0], [0], [1], [0, 0, 1, 1], [], []>} : vector<16x32xf32>, vector<32x32xf32>, vector<16x32xf32> -> vector<16x32xf32>
    %778 = vector.extract_strided_slice %775 {offsets = [0, 0], sizes = [1, 32], strides = [1, 1]} : vector<1x96xf32> to vector<1x32xf32>
    %779 = vector.broadcast %778 : vector<1x32xf32> to vector<16x32xf32>
    %780 = arith.addf %777, %779 : vector<16x32xf32>
    %781 = vector.extract_strided_slice %774 {offsets = [0, 32], sizes = [32, 64], strides = [1, 1]} : vector<32x96xf32> to vector<32x64xf32>
    %cst_257 = arith.constant dense<0.000000e+00> : vector<16x64xf32>
    %782 = tpu.matmul %364, %781, %cst_257 {dimension_numbers = #tpu.dot_dimension_numbers<[1], [0], [0], [1], [0, 0, 1, 1], [], []>} : vector<16x32xf32>, vector<32x64xf32>, vector<16x64xf32> -> vector<16x64xf32>
    %783 = vector.extract_strided_slice %775 {offsets = [0, 32], sizes = [1, 64], strides = [1, 1]} : vector<1x96xf32> to vector<1x64xf32>
    %784 = vector.broadcast %783 : vector<1x64xf32> to vector<16x64xf32>
    %785 = arith.addf %782, %784 : vector<16x64xf32>
    %786 = vector.extract_strided_slice %785 {offsets = [0, 0], sizes = [16, 32], strides = [1, 1]} : vector<16x64xf32> to vector<16x32xf32>
    %787 = vector.extract_strided_slice %785 {offsets = [0, 32], sizes = [16, 32], strides = [1, 1]} : vector<16x64xf32> to vector<16x32xf32>
    %788 = tpu.transpose %786, [1, 0] : vector<16x32xf32> -> vector<32x16xf32>
    %c1240 = arith.constant 1240 : index
    %c0_258 = arith.constant 0 : index
    %789 = vector.load %arg2[%c1240, %c0_258] : memref<1696x128xf32, #tpu.memory_space<vmem>>, vector<32x32xf32>
    %790 = vector.extract_strided_slice %780 {offsets = [0, 0], sizes = [16, 8], strides = [1, 1]} : vector<16x32xf32> to vector<16x8xf32>
    %791 = vector.extract_strided_slice %788 {offsets = [0, 0], sizes = [8, 16], strides = [1, 1]} : vector<32x16xf32> to vector<8x16xf32>
    %cst_259 = arith.constant dense<0.000000e+00> : vector<16x16xf32>
    %792 = tpu.matmul %790, %791, %cst_259 {dimension_numbers = #tpu.dot_dimension_numbers<[1], [0], [0], [1], [0, 0, 1, 1], [], []>} : vector<16x8xf32>, vector<8x16xf32>, vector<16x16xf32> -> vector<16x16xf32>
    %cst_260 = arith.constant 0.353553385 : f32
    %793 = vector.broadcast %cst_260 : f32 to vector<16x16xf32>
    %794 = arith.mulf %792, %793 : vector<16x16xf32>
    %795 = arith.addf %794, %1 : vector<16x16xf32>
    %cst_261 = arith.constant dense<0xFF800000> : vector<16xf32>
    %796 = vector.multi_reduction <maximumf>, %795, %cst_261 [1] : vector<16x16xf32> to vector<16xf32>
    %797 = vector.shape_cast %796 : vector<16xf32> to vector<16x1xf32>
    %798 = vector.broadcast %797 : vector<16x1xf32> to vector<16x16xf32>
    %799 = arith.subf %795, %798 : vector<16x16xf32>
    %800 = math.exp %799 : vector<16x16xf32>
    %cst_262 = arith.constant dense<0.000000e+00> : vector<16xf32>
    %801 = vector.multi_reduction <add>, %800, %cst_262 [1] : vector<16x16xf32> to vector<16xf32>
    %802 = vector.shape_cast %801 : vector<16xf32> to vector<16x1xf32>
    %803 = tpu.reciprocal %802 {approx = true} : vector<16x1xf32> -> vector<16x1xf32>
    %804 = vector.broadcast %803 : vector<16x1xf32> to vector<16x16xf32>
    %805 = arith.mulf %800, %804 : vector<16x16xf32>
    %806 = vector.extract_strided_slice %787 {offsets = [0, 0], sizes = [16, 8], strides = [1, 1]} : vector<16x32xf32> to vector<16x8xf32>
    %cst_263 = arith.constant dense<0.000000e+00> : vector<16x8xf32>
    %807 = tpu.matmul %805, %806, %cst_263 {dimension_numbers = #tpu.dot_dimension_numbers<[1], [0], [0], [1], [0, 0, 1, 1], [], []>} : vector<16x16xf32>, vector<16x8xf32>, vector<16x8xf32> -> vector<16x8xf32>
    %808 = vector.extract_strided_slice %789 {offsets = [0, 0], sizes = [8, 32], strides = [1, 1]} : vector<32x32xf32> to vector<8x32xf32>
    %cst_264 = arith.constant dense<0.000000e+00> : vector<16x32xf32>
    %809 = tpu.matmul %807, %808, %cst_264 {dimension_numbers = #tpu.dot_dimension_numbers<[1], [0], [0], [1], [0, 0, 1, 1], [], []>} : vector<16x8xf32>, vector<8x32xf32>, vector<16x32xf32> -> vector<16x32xf32>
    %810 = vector.extract_strided_slice %780 {offsets = [0, 8], sizes = [16, 8], strides = [1, 1]} : vector<16x32xf32> to vector<16x8xf32>
    %811 = vector.extract_strided_slice %788 {offsets = [8, 0], sizes = [8, 16], strides = [1, 1]} : vector<32x16xf32> to vector<8x16xf32>
    %cst_265 = arith.constant dense<0.000000e+00> : vector<16x16xf32>
    %812 = tpu.matmul %810, %811, %cst_265 {dimension_numbers = #tpu.dot_dimension_numbers<[1], [0], [0], [1], [0, 0, 1, 1], [], []>} : vector<16x8xf32>, vector<8x16xf32>, vector<16x16xf32> -> vector<16x16xf32>
    %cst_266 = arith.constant 0.353553385 : f32
    %813 = vector.broadcast %cst_266 : f32 to vector<16x16xf32>
    %814 = arith.mulf %812, %813 : vector<16x16xf32>
    %815 = arith.addf %814, %1 : vector<16x16xf32>
    %cst_267 = arith.constant dense<0xFF800000> : vector<16xf32>
    %816 = vector.multi_reduction <maximumf>, %815, %cst_267 [1] : vector<16x16xf32> to vector<16xf32>
    %817 = vector.shape_cast %816 : vector<16xf32> to vector<16x1xf32>
    %818 = vector.broadcast %817 : vector<16x1xf32> to vector<16x16xf32>
    %819 = arith.subf %815, %818 : vector<16x16xf32>
    %820 = math.exp %819 : vector<16x16xf32>
    %cst_268 = arith.constant dense<0.000000e+00> : vector<16xf32>
    %821 = vector.multi_reduction <add>, %820, %cst_268 [1] : vector<16x16xf32> to vector<16xf32>
    %822 = vector.shape_cast %821 : vector<16xf32> to vector<16x1xf32>
    %823 = tpu.reciprocal %822 {approx = true} : vector<16x1xf32> -> vector<16x1xf32>
    %824 = vector.broadcast %823 : vector<16x1xf32> to vector<16x16xf32>
    %825 = arith.mulf %820, %824 : vector<16x16xf32>
    %826 = vector.extract_strided_slice %787 {offsets = [0, 8], sizes = [16, 8], strides = [1, 1]} : vector<16x32xf32> to vector<16x8xf32>
    %cst_269 = arith.constant dense<0.000000e+00> : vector<16x8xf32>
    %827 = tpu.matmul %825, %826, %cst_269 {dimension_numbers = #tpu.dot_dimension_numbers<[1], [0], [0], [1], [0, 0, 1, 1], [], []>} : vector<16x16xf32>, vector<16x8xf32>, vector<16x8xf32> -> vector<16x8xf32>
    %828 = vector.extract_strided_slice %789 {offsets = [8, 0], sizes = [8, 32], strides = [1, 1]} : vector<32x32xf32> to vector<8x32xf32>
    %cst_270 = arith.constant dense<0.000000e+00> : vector<16x32xf32>
    %829 = tpu.matmul %827, %828, %cst_270 {dimension_numbers = #tpu.dot_dimension_numbers<[1], [0], [0], [1], [0, 0, 1, 1], [], []>} : vector<16x8xf32>, vector<8x32xf32>, vector<16x32xf32> -> vector<16x32xf32>
    %830 = arith.addf %809, %829 : vector<16x32xf32>
    %831 = vector.extract_strided_slice %780 {offsets = [0, 16], sizes = [16, 8], strides = [1, 1]} : vector<16x32xf32> to vector<16x8xf32>
    %832 = vector.extract_strided_slice %788 {offsets = [16, 0], sizes = [8, 16], strides = [1, 1]} : vector<32x16xf32> to vector<8x16xf32>
    %cst_271 = arith.constant dense<0.000000e+00> : vector<16x16xf32>
    %833 = tpu.matmul %831, %832, %cst_271 {dimension_numbers = #tpu.dot_dimension_numbers<[1], [0], [0], [1], [0, 0, 1, 1], [], []>} : vector<16x8xf32>, vector<8x16xf32>, vector<16x16xf32> -> vector<16x16xf32>
    %cst_272 = arith.constant 0.353553385 : f32
    %834 = vector.broadcast %cst_272 : f32 to vector<16x16xf32>
    %835 = arith.mulf %833, %834 : vector<16x16xf32>
    %836 = arith.addf %835, %1 : vector<16x16xf32>
    %cst_273 = arith.constant dense<0xFF800000> : vector<16xf32>
    %837 = vector.multi_reduction <maximumf>, %836, %cst_273 [1] : vector<16x16xf32> to vector<16xf32>
    %838 = vector.shape_cast %837 : vector<16xf32> to vector<16x1xf32>
    %839 = vector.broadcast %838 : vector<16x1xf32> to vector<16x16xf32>
    %840 = arith.subf %836, %839 : vector<16x16xf32>
    %841 = math.exp %840 : vector<16x16xf32>
    %cst_274 = arith.constant dense<0.000000e+00> : vector<16xf32>
    %842 = vector.multi_reduction <add>, %841, %cst_274 [1] : vector<16x16xf32> to vector<16xf32>
    %843 = vector.shape_cast %842 : vector<16xf32> to vector<16x1xf32>
    %844 = tpu.reciprocal %843 {approx = true} : vector<16x1xf32> -> vector<16x1xf32>
    %845 = vector.broadcast %844 : vector<16x1xf32> to vector<16x16xf32>
    %846 = arith.mulf %841, %845 : vector<16x16xf32>
    %847 = vector.extract_strided_slice %787 {offsets = [0, 16], sizes = [16, 8], strides = [1, 1]} : vector<16x32xf32> to vector<16x8xf32>
    %cst_275 = arith.constant dense<0.000000e+00> : vector<16x8xf32>
    %848 = tpu.matmul %846, %847, %cst_275 {dimension_numbers = #tpu.dot_dimension_numbers<[1], [0], [0], [1], [0, 0, 1, 1], [], []>} : vector<16x16xf32>, vector<16x8xf32>, vector<16x8xf32> -> vector<16x8xf32>
    %849 = vector.extract_strided_slice %789 {offsets = [16, 0], sizes = [8, 32], strides = [1, 1]} : vector<32x32xf32> to vector<8x32xf32>
    %cst_276 = arith.constant dense<0.000000e+00> : vector<16x32xf32>
    %850 = tpu.matmul %848, %849, %cst_276 {dimension_numbers = #tpu.dot_dimension_numbers<[1], [0], [0], [1], [0, 0, 1, 1], [], []>} : vector<16x8xf32>, vector<8x32xf32>, vector<16x32xf32> -> vector<16x32xf32>
    %851 = arith.addf %830, %850 : vector<16x32xf32>
    %852 = vector.extract_strided_slice %780 {offsets = [0, 24], sizes = [16, 8], strides = [1, 1]} : vector<16x32xf32> to vector<16x8xf32>
    %853 = vector.extract_strided_slice %788 {offsets = [24, 0], sizes = [8, 16], strides = [1, 1]} : vector<32x16xf32> to vector<8x16xf32>
    %cst_277 = arith.constant dense<0.000000e+00> : vector<16x16xf32>
    %854 = tpu.matmul %852, %853, %cst_277 {dimension_numbers = #tpu.dot_dimension_numbers<[1], [0], [0], [1], [0, 0, 1, 1], [], []>} : vector<16x8xf32>, vector<8x16xf32>, vector<16x16xf32> -> vector<16x16xf32>
    %cst_278 = arith.constant 0.353553385 : f32
    %855 = vector.broadcast %cst_278 : f32 to vector<16x16xf32>
    %856 = arith.mulf %854, %855 : vector<16x16xf32>
    %857 = arith.addf %856, %1 : vector<16x16xf32>
    %cst_279 = arith.constant dense<0xFF800000> : vector<16xf32>
    %858 = vector.multi_reduction <maximumf>, %857, %cst_279 [1] : vector<16x16xf32> to vector<16xf32>
    %859 = vector.shape_cast %858 : vector<16xf32> to vector<16x1xf32>
    %860 = vector.broadcast %859 : vector<16x1xf32> to vector<16x16xf32>
    %861 = arith.subf %857, %860 : vector<16x16xf32>
    %862 = math.exp %861 : vector<16x16xf32>
    %cst_280 = arith.constant dense<0.000000e+00> : vector<16xf32>
    %863 = vector.multi_reduction <add>, %862, %cst_280 [1] : vector<16x16xf32> to vector<16xf32>
    %864 = vector.shape_cast %863 : vector<16xf32> to vector<16x1xf32>
    %865 = tpu.reciprocal %864 {approx = true} : vector<16x1xf32> -> vector<16x1xf32>
    %866 = vector.broadcast %865 : vector<16x1xf32> to vector<16x16xf32>
    %867 = arith.mulf %862, %866 : vector<16x16xf32>
    %868 = vector.extract_strided_slice %787 {offsets = [0, 24], sizes = [16, 8], strides = [1, 1]} : vector<16x32xf32> to vector<16x8xf32>
    %cst_281 = arith.constant dense<0.000000e+00> : vector<16x8xf32>
    %869 = tpu.matmul %867, %868, %cst_281 {dimension_numbers = #tpu.dot_dimension_numbers<[1], [0], [0], [1], [0, 0, 1, 1], [], []>} : vector<16x16xf32>, vector<16x8xf32>, vector<16x8xf32> -> vector<16x8xf32>
    %870 = vector.extract_strided_slice %789 {offsets = [24, 0], sizes = [8, 32], strides = [1, 1]} : vector<32x32xf32> to vector<8x32xf32>
    %cst_282 = arith.constant dense<0.000000e+00> : vector<16x32xf32>
    %871 = tpu.matmul %869, %870, %cst_282 {dimension_numbers = #tpu.dot_dimension_numbers<[1], [0], [0], [1], [0, 0, 1, 1], [], []>} : vector<16x8xf32>, vector<8x32xf32>, vector<16x32xf32> -> vector<16x32xf32>
    %872 = arith.addf %851, %871 : vector<16x32xf32>
    %c1272 = arith.constant 1272 : index
    %c0_283 = arith.constant 0 : index
    %873 = vector.load %arg2[%c1272, %c0_283] : memref<1696x128xf32, #tpu.memory_space<vmem>>, vector<1x32xf32>
    %874 = vector.broadcast %873 : vector<1x32xf32> to vector<16x32xf32>
    %875 = arith.addf %872, %874 : vector<16x32xf32>
    %876 = arith.addf %773, %875 : vector<16x32xf32>
    %cst_284 = arith.constant dense<0.000000e+00> : vector<16xf32>
    %877 = vector.multi_reduction <add>, %876, %cst_284 [1] : vector<16x32xf32> to vector<16xf32>
    %878 = vector.shape_cast %877 : vector<16xf32> to vector<16x1xf32>
    %cst_285 = arith.constant 3.200000e+01 : f32
    %879 = vector.broadcast %cst_285 : f32 to vector<16x1xf32>
    %880 = arith.divf %878, %879 : vector<16x1xf32>
    %881 = vector.broadcast %880 : vector<16x1xf32> to vector<16x32xf32>
    %882 = arith.subf %876, %881 : vector<16x32xf32>
    %883 = arith.mulf %882, %882 : vector<16x32xf32>
    %cst_286 = arith.constant dense<0.000000e+00> : vector<16xf32>
    %884 = vector.multi_reduction <add>, %883, %cst_286 [1] : vector<16x32xf32> to vector<16xf32>
    %885 = vector.shape_cast %884 : vector<16xf32> to vector<16x1xf32>
    %cst_287 = arith.constant 3.200000e+01 : f32
    %886 = vector.broadcast %cst_287 : f32 to vector<16x1xf32>
    %887 = arith.divf %885, %886 : vector<16x1xf32>
    %cst_288 = arith.constant 9.99999997E-7 : f32
    %888 = vector.broadcast %cst_288 : f32 to vector<16x1xf32>
    %889 = arith.addf %887, %888 : vector<16x1xf32>
    %890 = math.rsqrt %889 : vector<16x1xf32>
    %891 = vector.broadcast %890 : vector<16x1xf32> to vector<16x32xf32>
    %892 = arith.mulf %882, %891 : vector<16x32xf32>
    %c1280 = arith.constant 1280 : index
    %c0_289 = arith.constant 0 : index
    %893 = vector.load %arg2[%c1280, %c0_289] : memref<1696x128xf32, #tpu.memory_space<vmem>>, vector<1x32xf32>
    %894 = vector.broadcast %893 : vector<1x32xf32> to vector<16x32xf32>
    %895 = arith.mulf %892, %894 : vector<16x32xf32>
    %c1288 = arith.constant 1288 : index
    %c0_290 = arith.constant 0 : index
    %896 = vector.load %arg2[%c1288, %c0_290] : memref<1696x128xf32, #tpu.memory_space<vmem>>, vector<1x32xf32>
    %897 = vector.broadcast %896 : vector<1x32xf32> to vector<16x32xf32>
    %898 = arith.addf %895, %897 : vector<16x32xf32>
    %c1296 = arith.constant 1296 : index
    %c0_291 = arith.constant 0 : index
    %899 = vector.load %arg2[%c1296, %c0_291] : memref<1696x128xf32, #tpu.memory_space<vmem>>, vector<32x128xf32>
    %cst_292 = arith.constant dense<0.000000e+00> : vector<16x128xf32>
    %900 = tpu.matmul %898, %899, %cst_292 {dimension_numbers = #tpu.dot_dimension_numbers<[1], [0], [0], [1], [0, 0, 1, 1], [], []>} : vector<16x32xf32>, vector<32x128xf32>, vector<16x128xf32> -> vector<16x128xf32>
    %c1328 = arith.constant 1328 : index
    %c0_293 = arith.constant 0 : index
    %901 = vector.load %arg2[%c1328, %c0_293] : memref<1696x128xf32, #tpu.memory_space<vmem>>, vector<1x128xf32>
    %902 = vector.broadcast %901 : vector<1x128xf32> to vector<16x128xf32>
    %903 = arith.addf %900, %902 : vector<16x128xf32>
    %cst_294 = arith.constant 5.000000e-01 : f32
    %904 = vector.broadcast %cst_294 : f32 to vector<16x128xf32>
    %905 = arith.mulf %904, %903 : vector<16x128xf32>
    %cst_295 = arith.constant 4.471500e-02 : f32
    %906 = vector.broadcast %cst_295 : f32 to vector<16x128xf32>
    %907 = arith.mulf %906, %903 : vector<16x128xf32>
    %908 = arith.mulf %907, %903 : vector<16x128xf32>
    %909 = arith.mulf %908, %903 : vector<16x128xf32>
    %910 = arith.addf %903, %909 : vector<16x128xf32>
    %cst_296 = arith.constant 0.797884583 : f32
    %911 = vector.broadcast %cst_296 : f32 to vector<16x128xf32>
    %912 = arith.mulf %911, %910 : vector<16x128xf32>
    %913 = math.tanh %912 : vector<16x128xf32>
    %cst_297 = arith.constant 1.000000e+00 : f32
    %914 = vector.broadcast %cst_297 : f32 to vector<16x128xf32>
    %915 = arith.addf %914, %913 : vector<16x128xf32>
    %916 = arith.mulf %905, %915 : vector<16x128xf32>
    %c1336 = arith.constant 1336 : index
    %c0_298 = arith.constant 0 : index
    %917 = vector.load %arg2[%c1336, %c0_298] : memref<1696x128xf32, #tpu.memory_space<vmem>>, vector<128x32xf32>
    %cst_299 = arith.constant dense<0.000000e+00> : vector<16x32xf32>
    %918 = tpu.matmul %916, %917, %cst_299 {dimension_numbers = #tpu.dot_dimension_numbers<[1], [0], [0], [1], [0, 0, 1, 1], [], []>} : vector<16x128xf32>, vector<128x32xf32>, vector<16x32xf32> -> vector<16x32xf32>
    %c1464 = arith.constant 1464 : index
    %c0_300 = arith.constant 0 : index
    %919 = vector.load %arg2[%c1464, %c0_300] : memref<1696x128xf32, #tpu.memory_space<vmem>>, vector<1x32xf32>
    %920 = vector.broadcast %919 : vector<1x32xf32> to vector<16x32xf32>
    %921 = arith.addf %918, %920 : vector<16x32xf32>
    %922 = arith.addf %898, %921 : vector<16x32xf32>
    %cst_301 = arith.constant dense<0.000000e+00> : vector<16xf32>
    %923 = vector.multi_reduction <add>, %922, %cst_301 [1] : vector<16x32xf32> to vector<16xf32>
    %924 = vector.shape_cast %923 : vector<16xf32> to vector<16x1xf32>
    %cst_302 = arith.constant 3.200000e+01 : f32
    %925 = vector.broadcast %cst_302 : f32 to vector<16x1xf32>
    %926 = arith.divf %924, %925 : vector<16x1xf32>
    %927 = vector.broadcast %926 : vector<16x1xf32> to vector<16x32xf32>
    %928 = arith.subf %922, %927 : vector<16x32xf32>
    %929 = arith.mulf %928, %928 : vector<16x32xf32>
    %cst_303 = arith.constant dense<0.000000e+00> : vector<16xf32>
    %930 = vector.multi_reduction <add>, %929, %cst_303 [1] : vector<16x32xf32> to vector<16xf32>
    %931 = vector.shape_cast %930 : vector<16xf32> to vector<16x1xf32>
    %cst_304 = arith.constant 3.200000e+01 : f32
    %932 = vector.broadcast %cst_304 : f32 to vector<16x1xf32>
    %933 = arith.divf %931, %932 : vector<16x1xf32>
    %cst_305 = arith.constant 9.99999997E-7 : f32
    %934 = vector.broadcast %cst_305 : f32 to vector<16x1xf32>
    %935 = arith.addf %933, %934 : vector<16x1xf32>
    %936 = math.rsqrt %935 : vector<16x1xf32>
    %937 = vector.broadcast %936 : vector<16x1xf32> to vector<16x32xf32>
    %938 = arith.mulf %928, %937 : vector<16x32xf32>
    %c1472 = arith.constant 1472 : index
    %c0_306 = arith.constant 0 : index
    %939 = vector.load %arg2[%c1472, %c0_306] : memref<1696x128xf32, #tpu.memory_space<vmem>>, vector<1x32xf32>
    %940 = vector.broadcast %939 : vector<1x32xf32> to vector<16x32xf32>
    %941 = arith.mulf %938, %940 : vector<16x32xf32>
    %c1480 = arith.constant 1480 : index
    %c0_307 = arith.constant 0 : index
    %942 = vector.load %arg2[%c1480, %c0_307] : memref<1696x128xf32, #tpu.memory_space<vmem>>, vector<1x32xf32>
    %943 = vector.broadcast %942 : vector<1x32xf32> to vector<16x32xf32>
    %944 = arith.addf %941, %943 : vector<16x32xf32>
    %c1488 = arith.constant 1488 : index
    %c0_308 = arith.constant 0 : index
    %945 = vector.load %arg2[%c1488, %c0_308] : memref<1696x128xf32, #tpu.memory_space<vmem>>, vector<32x16xf32>
    %cst_309 = arith.constant dense<0.000000e+00> : vector<16x16xf32>
    %946 = tpu.matmul %944, %945, %cst_309 {dimension_numbers = #tpu.dot_dimension_numbers<[1], [0], [0], [1], [0, 0, 1, 1], [], []>} : vector<16x32xf32>, vector<32x16xf32>, vector<16x16xf32> -> vector<16x16xf32>
    %c1520 = arith.constant 1520 : index
    %c0_310 = arith.constant 0 : index
    %947 = vector.load %arg2[%c1520, %c0_310] : memref<1696x128xf32, #tpu.memory_space<vmem>>, vector<1x16xf32>
    %948 = vector.broadcast %947 : vector<1x16xf32> to vector<16x16xf32>
    %949 = arith.addf %946, %948 : vector<16x16xf32>
    %c1528 = arith.constant 1528 : index
    %c0_311 = arith.constant 0 : index
    %950 = vector.load %arg2[%c1528, %c0_311] : memref<1696x128xf32, #tpu.memory_space<vmem>>, vector<16x16xf32>
    %cst_312 = arith.constant dense<0.000000e+00> : vector<16x16xf32>
    %951 = tpu.matmul %949, %950, %cst_312 {dimension_numbers = #tpu.dot_dimension_numbers<[1], [0], [0], [1], [0, 0, 1, 1], [], []>} : vector<16x16xf32>, vector<16x16xf32>, vector<16x16xf32> -> vector<16x16xf32>
    %c1544 = arith.constant 1544 : index
    %c0_313 = arith.constant 0 : index
    %952 = vector.load %arg2[%c1544, %c0_313] : memref<1696x128xf32, #tpu.memory_space<vmem>>, vector<1x16xf32>
    %953 = vector.broadcast %952 : vector<1x16xf32> to vector<16x16xf32>
    %954 = arith.addf %951, %953 : vector<16x16xf32>
    %cst_314 = arith.constant 5.000000e-01 : f32
    %955 = vector.broadcast %cst_314 : f32 to vector<16x16xf32>
    %956 = arith.mulf %955, %954 : vector<16x16xf32>
    %957 = math.tanh %956 : vector<16x16xf32>
    %cst_315 = arith.constant 1.000000e+00 : f32
    %958 = vector.broadcast %cst_315 : f32 to vector<16x16xf32>
    %959 = arith.addf %958, %957 : vector<16x16xf32>
    %cst_316 = arith.constant 5.000000e-01 : f32
    %960 = vector.broadcast %cst_316 : f32 to vector<16x16xf32>
    %961 = arith.mulf %960, %959 : vector<16x16xf32>
    %c0_317 = arith.constant 0 : index
    %c0_318 = arith.constant 0 : index
    %962 = vector.load %arg3[%c0_317, %c0_318] : memref<16x16xf32, #tpu.memory_space<vmem>>, vector<16x16xf32>
    tpu.vector_store %arg3[%c0_317, %c0_318], %961 {strides = array<i32>} : memref<16x16xf32, #tpu.memory_space<vmem>>, vector<16x16xf32>,
    return
  }
  func.func @transform_0(%arg0: i32) -> (i32, i32) {
    %c0_i32 = arith.constant 0 : i32
    %c0_i32_0 = arith.constant 0 : i32
    return %arg0, %c0_i32 : i32, i32
  }
  func.func @transform_1(%arg0: i32) -> (i32, i32) {
    %c0_i32 = arith.constant 0 : i32
    %c0_i32_0 = arith.constant 0 : i32
    %c0_i32_1 = arith.constant 0 : i32
    return %c0_i32, %c0_i32_0 : i32, i32
  }
  func.func @transform_2(%arg0: i32) -> (i32, i32) {
    %c0_i32 = arith.constant 0 : i32
    %c0_i32_0 = arith.constant 0 : i32
    return %arg0, %c0_i32 : i32, i32
  }
}

</mosaic_0001>

<bundles_post_ra>
// kernel: tpu_custom_call.1
= control target key start
LH: loop header
LB: loop body
LE: loop exit
PB: predicated region body
PF: predicated region fallthrough
CT: control target
= control target key end

     0   :  { %7 = vsyncpa [#allocation3], 0  ;;  %s13293_s0 = inlined_call_operand.hbm [shape: f32[16,16], index: 0, kind: input, shape index: {}]   ;;  %s13294_s1 = inlined_call_operand.hbm [shape: f32[1696,128], index: 1, kind: input, shape index: {}]   ;;  %s13295_s2 = inlined_call_operand.hbm [shape: f32[16,16], index: 2, kind: output, shape index: {}]  }
   0x1   :  { %8 = vsyncpa [#allocation6], 0 }
   0x2   :  { %9 = vsyncpa [#allocation4], 0  ;;  %s12406_s9 = smov [#allocation2]   ;;  %s12334_s13 = scalar_lea.hbm %s13293_s0, 256 }
   0x3   :  { %s15_s10 = sshll.u32 %s12406_s9, 4  ;;  %p12335_p0 = scmp.ne.s32.totalorder %s13293_s0, %s12334_s13  ;;  %s16_s10 = int_to_ptr.vmem [resolvable:$true] %s15_s10 }
   0x4   :  { %p12338_p1 = scmp.lt.u32.totalorder %s12334_s13, %s13293_s0 }
   0x6   :  { %p12340_p2 = pnand %p12338_p1, %p12335_p0 }
   0x8   :  { %12343 = shalt.err (!%p12340_p2)
}
   0x9   :  { %s12344_s18 = scalar_lea.vmem %s16_s10, 256  ;;  %p12349_p4 = scmp.lt.s32.totalorder %s16_s10, %s16_s10 }
   0xa   :  { %p12345_p3 = scmp.ne.s32.totalorder %s16_s10, %s12344_s18  ;;  %p12350_p5 = scmp.lt.s32.totalorder %s12344_s18, %s12344_s18 }
   0xc   :  { %p12351_p6 = por %p12350_p5, %p12349_p4 }
   0xe   :  { %p12352_p7 = pnand %p12351_p6, %p12345_p3 }
  0x10   :  { %12355 = shalt.err (!%p12352_p7)
}
  0x11   :  { %s12407_s19 = smov 128   ;;  %s12408_s20 = smov 8  }
  0x12   :  { %21 = dma.hbm_to_vmem [thread:$0]  %s13293_s0, 256, %s16_s10, [#allocation3], %s12407_s19, %s12407_s19, %s12408_s20  }
  0x13   :  { %s12409_s23 = smov [#allocation5]   ;;  %s12356_s27 = scalar_lea.hbm %s13294_s1, 27136 }
  0x14   :  { %s27_s24 = sshll.u32 %s12409_s23, 4  ;;  %p12357_p8 = scmp.ne.s32.totalorder %s13294_s1, %s12356_s27  ;;  %s28_s24 = int_to_ptr.vmem [resolvable:$true] %s27_s24 }
  0x15   :  { %p12360_p9 = scmp.lt.u32.totalorder %s12356_s27, %s13294_s1 }
  0x17   :  { %p12362_p10 = pnand %p12360_p9, %p12357_p8 }
  0x19   :  { %12365 = shalt.err (!%p12362_p10)
}
  0x1a   :  { %s12366_s4 = scalar_lea.vmem %s28_s24, 27136  ;;  %p12371_p12 = scmp.lt.s32.totalorder %s28_s24, %s28_s24 }
  0x1b   :  { %p12367_p11 = scmp.ne.s32.totalorder %s28_s24, %s12366_s4  ;;  %p12372_p13 = scmp.lt.s32.totalorder %s12366_s4, %s12366_s4 }
  0x1d   :  { %p12373_p0 = por %p12372_p13, %p12371_p12 }
  0x1f   :  { %p12374_p1 = pnand %p12373_p0, %p12367_p11 }
  0x21   :  { %12377 = shalt.err (!%p12374_p1)
}
  0x22   :  { %33 = dma.hbm_to_vmem [thread:$0]  %s13294_s1, 27136, %s28_s24, [#allocation6], %s12407_s19, %s12407_s19, %s12408_s20  }
  0x23   :  { %12400 = dma.done.wait [#allocation3], 256  }
  0x24   :  { %12401 = vsyncadd [#allocation3], 4294967040 }
  0x25   :  { %12402 = dma.done.wait [#allocation6], 27136  }
  0x26   :  { %12403 = vsyncadd [#allocation6], 4294940160  ;;  %vm53_vm0 = vcmask 130048   ;;  %v46_v0 = vld [vmem:[#allocation5] sm:$0xff]  ;;  %v47_v1 = vld [vmem:[#allocation5 + $0x8] sm:$0xff]  ;;  %vm148_vm1 = vcmask 261120  }
  0x27   :  { %v44_v2 = vld [vmem:[#allocation2] sm:$0xff]  ;;  %v11257_v3 = vpack.c.bf16 %v47_v1, %v46_v0  ;;  %v139_v4 = vld [vmem:[#allocation5 + $0x18] sm:$0xff]  ;;  %v140_v5 = vld [vmem:[#allocation5 + $0x20] sm:$0xff]  ;;  %vm330_vm2 = vcmask 64512   ;;  %s12410_s1 = smov 96   ;;  %s12411_s6 = smov 64  }
  0x28   :  { %10454 = vmatprep.mubr.msk.f32.mxu0 %vm53_vm0, %v44_v2  ;;  %v11261_v6 = vpack.c.bf16 %v140_v5, %v139_v4  ;;  %v45_v7 = vld [vmem:[#allocation2 + $0x8] sm:$0xff]  ;;  %v141_v8 = vld [vmem:[#allocation5 + $0x28] sm:$0xff]  ;;  %v142_v9 = vld [vmem:[#allocation5 + $0x30] sm:$0xff]  ;;  %s12412_s7 = smov 88   ;;  %s12413_s8 = smov 120  }
  0x29   :  { %11258 = vmatprep.subr.bf16.mxu0 %v11257_v3  ;;  %v11265_v10 = vpack.c.bf16 %v142_v9, %v141_v8  ;;  %v230_v11 = vld [vmem:[#allocation5 + $0x40] sm:$0xff]  ;;  %v231_v12 = vld [vmem:[#allocation5 + $0x48] sm:$0xff]  ;;  %v9718_v14 = vld [vmem:[#allocation5 + $0x10] ss:$0 sm:$0xff]  ;;  %s12414_s9 = smov 80   ;;  %s12415_s10 = smov 112  }
  0x2a   :  { %11260 = vmatpush3.bf16.msra.mxu0 %v11257_v3  ;;  %11262 = vmatprep.subr.bf16.mxu1 %v11261_v6  ;;  %v11269_v13 = vpack.c.bf16 %v231_v12, %v230_v11  ;;  %v135_v18 = vld [vmem:[#allocation5 + $0x670] sm:$0xff]  ;;  %v136_v19 = vld [vmem:[#allocation5 + $0x678] sm:$0xff]  ;;  %v9724_v31 = vld [vmem:[#allocation5 + $0x60] ss:$0 sm:$0xff]  ;;  %s12416_s11 = smov 56   ;;  %s12417_s12 = smov 72  }
  0x2b   :  { %11264 = vmatpush3.bf16.msra.mxu1 %v11261_v6  ;;  %v232_v23 = vld [vmem:[#allocation5 + $0x50] sm:$0xff]  ;;  %v233_v24 = vld [vmem:[#allocation5 + $0x58] sm:$0xff]  ;;  %vm12494_vm3 = vmpackc.low %vm330_vm2, %vm330_vm2  ;;  %s12418_s13 = smov 104   ;;  %s12419_s14 = smov 48  }
  0x2c   :  { %11266 = vmatprep.subr.bf16.mxu1 %v11265_v10  ;;  %v11273_v25 = vpack.c.bf16 %v233_v24, %v232_v23  ;;  %v9721_v26 = vld [vmem:[#allocation5 + $0x38] ss:$0 sm:$0xff]  ;;  %v12504_v43 = vld [vmem:[#allocation5 + $0x688] sm:$0xff]  ;;  %v12506_v46 = vld [vmem:[#allocation5 + $0x680] sm:$0xff]  ;;  %s12420_s15 = smov 40   ;;  %s12422_s16 = smov [#allocation7]  }
  0x2d   :  { %10455 = vmatmul.mubr.msk.f32.vlgmr.msra.gmra.mrb[0].mxu0 %vm53_vm0, %v45_v7  ;;  %s9705_s17 = sshll.u32 %s12422_s16, 4  ;;  %s9706_s17 = int_to_ptr.vmem [resolvable:$true] %s9705_s17 }
  0x2e   :  { %s12378_s18 = scalar_lea.vmem %s9706_s17, 256  ;;  %p12383_p3 = scmp.lt.s32.totalorder %s9706_s17, %s9706_s17 }
  0x2f   :  { %11268 = vmatpush3.bf16.msra.mxu1 %v11265_v10  ;;  %p12379_p2 = scmp.ne.s32.totalorder %s9706_s17, %s12378_s18  ;;  %p12384_p4 = scmp.lt.s32.totalorder %s12378_s18, %s12378_s18 }
  0x30   :  { %11270 = vmatprep.subr.bf16.mxu1 %v11269_v13 }
  0x31   :  { %p12385_p5 = por %p12384_p4, %p12383_p3 }
  0x33   :  { %p12386_p6 = pnand %p12385_p5, %p12379_p2 }
 0x100   :  { %v10456_v15 = vpop.f32.mrb[0].mxu0 }
 0x101   :  { %v132_v16 = vadd.f32 %v10456_v15, %v9718_v14  ;;  %v126_v17 = vpop.f32.mrb[1].mxu0 }
 0x102   :  { %v127_v20 = vadd.f32 %v9718_v14, %v126_v17 }
 0x103   :  { %v138_v22 = vadd.f32 %v136_v19, %v132_v16 }
 0x104   :  { %v137_v21 = vadd.f32 %v135_v18, %v127_v20 }
 0x106   :  { %10465 = vmatprep.mubr.msk.f32.mxu1 %vm148_vm1, %v137_v21 }
 0x107   :  { %10466 = vmatmul.mubr.msk.f32.vlgmr.msra.gmra.mrb[0].mxu1 %vm148_vm1, %v138_v22 }
 0x108   :  { %11272 = vmatpush3.bf16.msra.mxu1 %v11269_v13 }
 0x109   :  { %11274 = vmatprep.subr.bf16.mxu1 %v11273_v25 }
 0x10c   :  { %11276 = vmatpush3.bf16.msra.mxu1 %v11273_v25 }
 0x1da   :  { %v10467_v27 = vpop.f32.mrb[0].mxu1 }
 0x1db   :  { %v221_v28 = vpop.f32.mrb[1].mxu1  ;;  %v12474_v30 = vadd.f32 %v10467_v27, %v9721_v26 }
 0x1dc   :  { %v12472_v29 = vadd.f32 %v9721_v26, %v221_v28 }
 0x1de   :  { %10476 = vmatprep.mubr.msk.f32.mxu1 %vm148_vm1, %v12472_v29 }
 0x1df   :  { %10477 = vmatmul.mubr.msk.f32.vlgmr.msra.gmra.mrb[2].mxu1 %vm148_vm1, %v12474_v30 }
 0x2b2   :  { %v10478_v32 = vpop.f32.mrb[2].mxu1 }
 0x2b3   :  { %v12480_v33 = vadd.f32 %v10478_v32, %v9724_v31  ;;  %v311_v34 = vpop.f32.mrb[3].mxu1 }
 0x2b4   :  { %v12482_v35 = vadd.f32 %v9724_v31, %v311_v34 }
 0x2b6   :  { %10483 = vmatprep.mubr.msk.f32.mxu1 %vm330_vm2, %v12482_v35  ;;  %v12488_v36 = vpack.i.bf16 %v12480_v33, %v12482_v35 }
 0x2b8   :  { %11827 = vrot.lane.b32.xlu0 %v12488_v36, %s12410_s1 }
 0x32a   :  { %v11828_v37 = vpop.permute.xlu0 %11827 }
 0x32b   :  { %v11830_v38 = vunpack.i.h.bf16 %v11828_v37  ;;  %v11829_v39 = vunpack.i.l.bf16 %v11828_v37 }
 0x32d   :  { %v11277_v41 = vpack.c.bf16 %v11830_v38, %v11829_v39 }
 0x32f   :  { %11279 = vmatprep.subr.msk.bf16.mxu1 %vm12494_vm3, %v11277_v41 }
 0x330   :  { %11282 = vmatpush3.bf16.xpose.msk.msra.mxu1 %vm12494_vm3, %v11277_v41 }
 0x337   :  { %10484 = vmatmul.mubr.msk.f32.vlgmr.msra.gmra.mrb[4].mxu1 %vm330_vm2, %v12480_v33 }
 0x40a   :  { %v10485_v42 = vpop.f32.mrb[4].mxu1 }
 0x40b   :  { %v415_v44 = vmul.f32 0.35355338, %v10485_v42  ;;  %v405_v45 = vpop.f32.mrb[5].mxu1 }
 0x40c   :  { %v414_v47 = vmul.f32 0.35355338, %v405_v45 }
 0x40d   :  { %v417_v48 = vadd.f32 %v415_v44, %v12504_v43 }
 0x40e   :  { %v416_v49 = vadd.f32 %v414_v47, %v12506_v46 }
 0x40f   :  { %v421_v50 = vsel %vm53_vm0, %v417_v48, -inf }
 0x410   :  { %422 = vmax.xlane.f32.xlu1 %v421_v50  ;;  %v418_v51 = vsel %vm53_vm0, %v416_v49, -inf }
 0x411   :  { %419 = vmax.xlane.f32.xlu0 %v418_v51 }
 0x421   :  { %11832 = vrot.lane.b32.xlu1 %v12488_v36, %s12411_s6 }
 0x425   :  { %11837 = vrot.lane.b32.xlu1 %v12488_v36, %s12412_s7 }
 0x427   :  { %529 = vrot.lane.b32.xlu0 %v12480_v33, %s12413_s8 }
 0x49d   :  { %v423_v52 = vpop.xlane.xlu1 %422 }
 0x49e   :  { %v425_v53 = vsub.f32 %v417_v48, %v423_v52  ;;  %v420_v54 = vpop.xlane.xlu0 %419 }
 0x49f   :  { %v424_v55 = vsub.f32 %v416_v49, %v420_v54 }
 0x4a0   :  { %v428_v56 = vmul.f32 1.442695, %v425_v53 }
 0x4a1   :  { %v426_v57 = vmul.f32 1.442695, %v424_v55  ;;  %v11833_v58 = vpop.permute.xlu1 %11832 }
 0x4a2   :  { %12078 = vpow2.f32 %v428_v56  ;;  %v11835_v59 = vunpack.i.h.bf16 %v11833_v58  ;;  %v11834_v60 = vunpack.i.l.bf16 %v11833_v58  ;;  %v530_v17 = vpop.permute.xlu0 %529 }
 0x4a3   :  { %12080 = vpow2.f32 %v426_v57 }
 0x4a4   :  { %v11283_v61 = vpack.c.bf16 %v11835_v59, %v11834_v60 }
 0x4a5   :  { %v11838_v62 = vpop.permute.xlu1 %11837 }
 0x4a6   :  { %v11840_v63 = vunpack.i.h.bf16 %v11838_v62  ;;  %v11839_v0 = vunpack.i.l.bf16 %v11838_v62  ;;  %11284 = vmatprep.subr.bf16.mxu0 %v11283_v61 }
 0x4a7   :  { %11286 = vmatpush3.bf16.msra.mxu0 %v11283_v61 }
 0x4a8   :  { %v11287_v1 = vpack.c.bf16 %v11840_v63, %v11839_v0 }
 0x4aa   :  { %11289 = vmatprep.subr.msk.bf16.mxu0 %vm12494_vm3, %v11287_v1 }
 0x4ac   :  { %v12079_v2 = vpop.eup %12078 }
 0x4ad   :  { %v433_v3 = vsel %vm53_vm0, %v12079_v2, 0.0  ;;  %v12081_v4 = vpop.eup %12080 }
 0x4ae   :  { %434 = vadd.xlane.f32.xlu1 %v433_v3  ;;  %v430_v5 = vsel %vm53_vm0, %v12081_v4, 0.0 }
 0x4b2   :  { %431 = vadd.xlane.f32.xlu1 %v430_v5 }
 0x4c3   :  { %527 = vrot.lane.b32.xlu1 %v12482_v35, %s12413_s8 }
 0x4c7   :  { %11842 = vrot.lane.b32.xlu1 %v12488_v36, %s12414_s9 }
 0x4cb   :  { %893 = vrot.lane.b32.xlu1 %v12482_v35, %s12415_s10 }
 0x4cf   :  { %895 = vrot.lane.b32.xlu1 %v12480_v33, %s12415_s10 }
 0x53b   :  { %v435_v6 = vpop.xlane.xlu1 %434 }
 0x53c   :  { %12082 = vrcp.f32 %v435_v6 }
 0x53f   :  { %v432_v7 = vpop.xlane.xlu1 %431 }
 0x540   :  { %12084 = vrcp.f32 %v432_v7 }
 0x543   :  { %v528_v8 = vpop.permute.xlu1 %527 }
 0x546   :  { %v12083_v10 = vpop.eup %12082 }
 0x547   :  { %v11843_v9 = vpop.permute.xlu1 %11842  ;;  %v439_v15 = vmul.f32 %v12083_v10, %v12079_v2 }
 0x548   :  { %v11845_v12 = vunpack.i.h.bf16 %v11843_v9  ;;  %v11844_v13 = vunpack.i.l.bf16 %v11843_v9 }
 0x54a   :  { %v12085_v11 = vpop.eup %12084  ;;  %v11297_v16 = vpack.c.bf16 %v11845_v12, %v11844_v13 }
 0x54b   :  { %v438_v14 = vmul.f32 %v12085_v11, %v12081_v4  ;;  %v894_v18 = vpop.permute.xlu1 %893 }
 0x54d   :  { %10490 = vmatprep.mubr.msk.f32.mxu0 %vm53_vm0, %v438_v14 }
 0x54e   :  { %10491 = vmatmul.mubr.msk.f32.vlgmr.msra.gmra.mrb[2].mxu0 %vm53_vm0, %v439_v15  ;;  %v321_v15 = vld [vmem:[#allocation5 + $0x70] sm:$0xff] }
 0x54f   :  { %11292 = vmatpush3.bf16.xpose.msk.msra.mxu0 %vm12494_vm3, %v11287_v1  ;;  %10497 = vmatprep.mubr.msk.f32.mxu0 %vm330_vm2, %v528_v8  ;;  %v896_v19 = vpop.permute.xlu1 %895 }
 0x550   :  { %11299 = vmatprep.subr.msk.bf16.mxu0 %vm12494_vm3, %v11297_v16 }
 0x556   :  { %10498 = vmatmul.mubr.msk.f32.vlgmr.msra.gmra.mrb[4].mxu0 %vm330_vm2, %v530_v17 }
 0x557   :  { %11302 = vmatpush3.bf16.xpose.msk.msra.mxu0 %vm12494_vm3, %v11297_v16  ;;  %10521 = vmatprep.mubr.msk.f32.mxu0 %vm330_vm2, %v894_v18  ;;  %v320_v16 = vld [vmem:[#allocation5 + $0x68] sm:$0xff] }
 0x55e   :  { %10522 = vmatmul.mubr.msk.f32.vlgmr.msra.gmra.mrb[6].mxu0 %vm330_vm2, %v896_v19 }
 0x621   :  { %v12542_v20 = vpop.f32.mrb[2].mxu0 }
 0x622   :  { %v12544_v21 = vpop.f32.mrb[3].mxu0 }
 0x629   :  { %v10499_v22 = vpop.f32.mrb[4].mxu0 }
 0x62a   :  { %v619_v23 = vmul.f32 0.35355338, %v10499_v22  ;;  %v609_v24 = vpop.f32.mrb[5].mxu0 }
 0x62b   :  { %v618_v25 = vmul.f32 0.35355338, %v609_v24 }
 0x62c   :  { %v621_v26 = vadd.f32 %v619_v23, %v12504_v43 }
 0x62d   :  { %v620_v27 = vadd.f32 %v618_v25, %v12506_v46 }
 0x62e   :  { %v625_v28 = vsel %vm53_vm0, %v621_v26, -inf }
 0x62f   :  { %626 = vmax.xlane.f32.xlu0 %v625_v28  ;;  %v622_v31 = vsel %vm53_vm0, %v620_v27, -inf }
 0x630   :  { %623 = vmax.xlane.f32.xlu1 %v622_v31 }
 0x631   :  { %v10523_v32 = vpop.f32.mrb[6].mxu0 }
 0x632   :  { %v975_v34 = vpop.f32.mrb[7].mxu0  ;;  %v985_v53 = vmul.f32 0.35355338, %v10523_v32 }
 0x633   :  { %v984_v50 = vmul.f32 0.35355338, %v975_v34 }
 0x634   :  { %v987_v54 = vadd.f32 %v985_v53, %v12504_v43 }
 0x635   :  { %v986_v51 = vadd.f32 %v984_v50, %v12506_v46 }
 0x636   :  { %v991_v55 = vsel %vm53_vm0, %v987_v54, -inf }
 0x637   :  { %v988_v52 = vsel %vm53_vm0, %v986_v51, -inf }
 0x6bc   :  { %v627_v37 = vpop.xlane.xlu0 %626 }
 0x6bd   :  { %v629_v38 = vsub.f32 %v621_v26, %v627_v37  ;;  %v624_v39 = vpop.xlane.xlu1 %623 }
 0x6be   :  { %v628_v41 = vsub.f32 %v620_v27, %v624_v39 }
 0x6bf   :  { %v632_v42 = vmul.f32 1.442695, %v629_v38 }
 0x6c0   :  { %v630_v44 = vmul.f32 1.442695, %v628_v41 }
 0x6c1   :  { %12086 = vpow2.f32 %v632_v42 }
 0x6c2   :  { %12088 = vpow2.f32 %v630_v44  ;;  %v322_v44 = vld [vmem:[#allocation5 + $0x78] sm:$0xff] }
 0x6cb   :  { %v12087_v45 = vpop.eup %12086 }
 0x6cc   :  { %v12089_v47 = vpop.eup %12088  ;;  %v637_v48 = vsel %vm53_vm0, %v12087_v45, 0.0 }
 0x6cd   :  { %638 = vadd.xlane.f32.xlu0 %v637_v48  ;;  %v634_v49 = vsel %vm53_vm0, %v12089_v47, 0.0 }
 0x6ce   :  { %635 = vadd.xlane.f32.xlu1 %v634_v49 }
 0x6df   :  { %11847 = vrot.lane.b32.xlu1 %v12488_v36, %s12416_s11 }
 0x6e3   :  { %11852 = vrot.lane.b32.xlu0 %v12488_v36, %s12417_s12  ;;  %1180 = vrot.lane.b32.xlu1 %v12482_v35, %s12418_s13 }
 0x6e7   :  { %1182 = vrot.lane.b32.xlu1 %v12480_v33, %s12418_s13 }
 0x702   :  { %989 = vmax.xlane.f32.xlu0 %v988_v52 }
 0x70b   :  { %992 = vmax.xlane.f32.xlu1 %v991_v55 }
 0x71c   :  { %11857 = vrot.lane.b32.xlu1 %v12488_v36, %s12419_s14 }
 0x720   :  { %11862 = vrot.lane.b32.xlu1 %v12488_v36, %s12420_s15 }
 0x75a   :  { %v639_v33 = vpop.xlane.xlu0 %638 }
 0x75b   :  { %12090 = vrcp.f32 %v639_v33  ;;  %v636_v35 = vpop.xlane.xlu1 %635 }
 0x75c   :  { %12092 = vrcp.f32 %v636_v35 }
 0x75e   :  { %v11853_v56 = vpop.permute.xlu0 %11852 }
 0x75f   :  { %v11855_v57 = vunpack.i.h.bf16 %v11853_v56  ;;  %v11854_v58 = vunpack.i.l.bf16 %v11853_v56  ;;  %v11848_v59 = vpop.permute.xlu1 %11847 }
 0x760   :  { %v11850_v60 = vunpack.i.h.bf16 %v11848_v59  ;;  %v11849_v61 = vunpack.i.l.bf16 %v11848_v59 }
 0x761   :  { %v11307_v62 = vpack.c.bf16 %v11855_v57, %v11854_v58 }
 0x762   :  { %v11293_v63 = vpack.c.bf16 %v11850_v60, %v11849_v61  ;;  %v323_v60 = vld [vmem:[#allocation5 + $0x80] sm:$0xff] }
 0x763   :  { %11309 = vmatprep.subr.msk.bf16.mxu0 %vm12494_vm3, %v11307_v62  ;;  %v1181_v0 = vpop.permute.xlu1 %1180 }
 0x764   :  { %11294 = vmatprep.subr.bf16.mxu1 %v11293_v63  ;;  %11312 = vmatpush3.bf16.xpose.msk.msra.mxu0 %vm12494_vm3, %v11307_v62 }
 0x765   :  { %v12091_v36 = vpop.eup %12090  ;;  %10540 = vmatprep.mubr.msk.f32.mxu0 %vm330_vm2, %v1181_v0  ;;  %11296 = vmatpush3.bf16.msra.mxu1 %v11293_v63 }
 0x766   :  { %v12093_v1 = vpop.eup %12092  ;;  %v643_v3 = vmul.f32 %v12091_v36, %v12087_v45  ;;  %10507 = vmatprep.subr.mxu1 %v321_v15 }
 0x767   :  { %v642_v2 = vmul.f32 %v12093_v1, %v12089_v47  ;;  %v1183_v4 = vpop.permute.xlu1 %1182 }
 0x769   :  { %10504 = vmatprep.mubr.msk.f32.mxu1 %vm53_vm0, %v642_v2 }
 0x76a   :  { %10505 = vmatmul.mubr.msk.f32.vlgmr.msra.gmra.mrb[6].mxu1 %vm53_vm0, %v643_v3 }
 0x76b   :  { %10541 = vmatmul.mubr.msk.f32.vlgmr.msra.gmra.mrb[8].mxu0 %vm330_vm2, %v1183_v4  ;;  %10508 = vmatpush3.msra.mxu1 %v321_v15  ;;  %v9759_v4 = vld [vmem:[#allocation5 + $0x88] ss:$0 sm:$0xff] }
 0x76c   :  { %10512 = vmatprep.subr.mxu1 %v320_v16 }
 0x78f   :  { %v990_v5 = vpop.xlane.xlu0 %989 }
 0x790   :  { %v994_v6 = vsub.f32 %v986_v51, %v990_v5 }
 0x792   :  { %v996_v7 = vmul.f32 1.442695, %v994_v6 }
 0x794   :  { %12094 = vpow2.f32 %v996_v7 }
 0x798   :  { %v993_v8 = vpop.xlane.xlu1 %992 }
 0x799   :  { %v995_v9 = vsub.f32 %v987_v54, %v993_v8 }
 0x79b   :  { %v998_v10 = vmul.f32 1.442695, %v995_v9 }
 0x79c   :  { %v11858_v18 = vpop.permute.xlu1 %11857 }
 0x79d   :  { %12096 = vpow2.f32 %v998_v10  ;;  %v11860_v22 = vunpack.i.h.bf16 %v11858_v18  ;;  %v11859_v23 = vunpack.i.l.bf16 %v11858_v18 }
 0x79e   :  { %v12095_v11 = vpop.eup %12094 }
 0x79f   :  { %v1000_v12 = vsel %vm53_vm0, %v12095_v11, 0.0  ;;  %v11303_v32 = vpack.c.bf16 %v11860_v22, %v11859_v23 }
 0x7a0   :  { %1001 = vadd.xlane.f32.xlu0 %v1000_v12  ;;  %v11863_v41 = vpop.permute.xlu1 %11862 }
 0x7a1   :  { %v11865_v45 = vunpack.i.h.bf16 %v11863_v41  ;;  %v11864_v47 = vunpack.i.l.bf16 %v11863_v41 }
 0x7a3   :  { %v11313_v50 = vpack.c.bf16 %v11865_v45, %v11864_v47  ;;  %v9760_v47 = vld [vmem:[#allocation5 + $0x90] ss:$0 sm:$0xff] }
 0x7a7   :  { %v12097_v13 = vpop.eup %12096 }
 0x7a8   :  { %v1003_v14 = vsel %vm53_vm0, %v12097_v13, 0.0 }
 0x7a9   :  { %1004 = vadd.xlane.f32.xlu0 %v1003_v14 }
 0x82d   :  { %v1002_v17 = vpop.xlane.xlu0 %1001 }
 0x82e   :  { %12098 = vrcp.f32 %v1002_v17 }
 0x836   :  { %v1005_v19 = vpop.xlane.xlu0 %1004 }
 0x837   :  { %12100 = vrcp.f32 %v1005_v19 }
 0x838   :  { %v12099_v39 = vpop.eup %12098 }
 0x83d   :  { %v10506_v24 = vpop.f32.mrb[6].mxu1 }
 0x83e   :  { %v722_v25 = vpop.f32.mrb[7].mxu1  ;;  %v10542_v26 = vpop.f32.mrb[8].mxu0 }
 0x83f   :  { %10509 = vmatprep.mubr.msk.f32.mxu1 %vm330_vm2, %v722_v25  ;;  %v1262_v27 = vpop.f32.mrb[9].mxu0  ;;  %v1272_v28 = vmul.f32 0.35355338, %v10542_v26  ;;  %v1519_v25 = vld [vmem:[#allocation5 + $0xb0] sm:$0xff] }
 0x840   :  { %v1271_v31 = vmul.f32 0.35355338, %v1262_v27  ;;  %10510 = vmatmul.mubr.msk.f32.vlgmr.msra.gmra.mrb[8].mxu1 %vm330_vm2, %v10506_v24  ;;  %v1518_v24 = vld [vmem:[#allocation5 + $0xa8] sm:$0xff]  ;;  %v1520_v27 = vld [vmem:[#allocation5 + $0xb8] sm:$0xff] }
 0x841   :  { %10513 = vmatpush3.msra.mxu1 %v320_v16  ;;  %10514 = vmatprep.mubr.msk.f32.mxu1 %vm330_vm2, %v12544_v21  ;;  %v1274_v38 = vadd.f32 %v1272_v28, %v12504_v43  ;;  %v12101_v42 = vpop.eup %12100  ;;  %v1008_v21 = vmul.f32 %v12099_v39, %v12095_v11  ;;  %v11321_v28 = vpack.c.bf16 %v1520_v27, %v1519_v25 }
 0x842   :  { %11304 = vmatprep.subr.bf16.mxu1 %v11303_v32  ;;  %v1273_v34 = vadd.f32 %v1271_v31, %v12506_v46  ;;  %v1009_v49 = vmul.f32 %v12101_v42, %v12097_v13  ;;  %v1625_v31 = vld [vmem:[#allocation5 + $0xc8] sm:$0xff] }
 0x843   :  { %v1278_v48 = vsel %vm53_vm0, %v1274_v38, -inf }
 0x844   :  { %v1275_v37 = vsel %vm53_vm0, %v1273_v34, -inf }
 0x845   :  { %1276 = vmax.xlane.f32.xlu0 %v1275_v37 }
 0x848   :  { %10515 = vmatmul.mubr.msk.f32.vlgmr.msra.gmra.mrb[8].mxu1 %vm330_vm2, %v12542_v20 }
 0x849   :  { %11306 = vmatpush3.bf16.msra.mxu1 %v11303_v32  ;;  %1279 = vmax.xlane.f32.xlu0 %v1278_v48  ;;  %v1626_v32 = vld [vmem:[#allocation5 + $0xd0] sm:$0xff] }
 0x84a   :  { %10528 = vmatprep.mubr.msk.f32.mxu1 %vm53_vm0, %v1008_v21  ;;  %10531 = vmatprep.subr.mxu1 %v322_v44  ;;  %v9761_v21 = vld [vmem:[#allocation5 + $0x98] ss:$0 sm:$0xff] }
 0x84c   :  { %10529 = vmatmul.mubr.msk.f32.vlgmr.msra.gmra.mrb[10].mxu1 %vm53_vm0, %v1009_v49 }
 0x84d   :  { %10532 = vmatpush3.msra.mxu1 %v322_v44 }
 0x84e   :  { %11314 = vmatprep.subr.bf16.mxu1 %v11313_v50 }
 0x8d2   :  { %v1277_v51 = vpop.xlane.xlu0 %1276 }
 0x8d3   :  { %v1281_v52 = vsub.f32 %v1273_v34, %v1277_v51  ;;  %v11325_v34 = vpack.c.bf16 %v1626_v32, %v1625_v31 }
 0x8d5   :  { %v1283_v53 = vmul.f32 1.442695, %v1281_v52 }
 0x8d6   :  { %v1280_v54 = vpop.xlane.xlu0 %1279 }
 0x8d7   :  { %12102 = vpow2.f32 %v1283_v53  ;;  %v1282_v20 = vsub.f32 %v1274_v38, %v1280_v54 }
 0x8d9   :  { %v1285_v55 = vmul.f32 1.442695, %v1282_v20  ;;  %v1627_v20 = vld [vmem:[#allocation5 + $0xd8] sm:$0xff] }
 0x8db   :  { %12104 = vpow2.f32 %v1285_v55  ;;  %v1628_v55 = vld [vmem:[#allocation5 + $0xe0] sm:$0xff] }
 0x8e1   :  { %v12103_v33 = vpop.eup %12102 }
 0x8e2   :  { %v1287_v35 = vsel %vm53_vm0, %v12103_v33, 0.0 }
 0x8e3   :  { %1288 = vadd.xlane.f32.xlu0 %v1287_v35  ;;  %v1629_v35 = vld [vmem:[#allocation5 + $0xe8] sm:$0xff] }
 0x8e5   :  { %v12105_v56 = vpop.eup %12104 }
 0x8e6   :  { %v1290_v57 = vsel %vm53_vm0, %v12105_v56, 0.0 }
 0x8e7   :  { %1291 = vadd.xlane.f32.xlu0 %v1290_v57 }
 0x91f   :  { %v10530_v58 = vpop.f32.mrb[10].mxu1 }
 0x920   :  { %v1088_v59 = vpop.f32.mrb[11].mxu1 }
 0x921   :  { %10533 = vmatprep.mubr.msk.f32.mxu1 %vm330_vm2, %v1088_v59  ;;  %v1632_v59 = vld [vmem:[#allocation5 + $0x100] sm:$0xff] }
 0x922   :  { %10534 = vmatmul.mubr.msk.f32.vlgmr.msra.gmra.mrb[8].mxu1 %vm330_vm2, %v10530_v58  ;;  %v1631_v58 = vld [vmem:[#allocation5 + $0xf8] sm:$0xff] }
 0x923   :  { %11316 = vmatpush3.bf16.msra.mxu1 %v11313_v50 }
 0x924   :  { %10550 = vmatprep.subr.mxu1 %v323_v60 }
 0x970   :  { %v1289_v61 = vpop.xlane.xlu0 %1288 }
 0x971   :  { %12106 = vrcp.f32 %v1289_v61  ;;  %v1633_v61 = vld [vmem:[#allocation5 + $0x108] sm:$0xff] }
 0x974   :  { %v1292_v62 = vpop.xlane.xlu0 %1291 }
 0x975   :  { %12108 = vrcp.f32 %v1292_v62  ;;  %v1634_v62 = vld [vmem:[#allocation5 + $0x110] sm:$0xff] }
 0x97b   :  { %v12107_v63 = vpop.eup %12106 }
 0x97c   :  { %v1295_v0 = vmul.f32 %v12107_v63, %v12103_v33  ;;  %v11329_v33 = vpack.c.bf16 %v1628_v55, %v1627_v20  ;;  %v11341_v63 = vpack.c.bf16 %v1634_v62, %v1633_v61 }
 0x97e   :  { %10547 = vmatprep.mubr.msk.f32.mxu1 %vm53_vm0, %v1295_v0  ;;  %v1635_v0 = vld [vmem:[#allocation5 + $0x118] sm:$0xff] }
 0x97f   :  { %v12109_v36 = vpop.eup %12108 }
 0x980   :  { %v1296_v1 = vmul.f32 %v12109_v36, %v12105_v56  ;;  %v1630_v56 = vld [vmem:[#allocation5 + $0xf0] sm:$0xff]  ;;  %v1636_v36 = vld [vmem:[#allocation5 + $0x120] sm:$0xff] }
 0x981   :  { %v11333_v57 = vpack.c.bf16 %v1630_v56, %v1629_v35  ;;  %v1763_v35 = vld [vmem:[#allocation5 + $0x160] sm:$0xff]  ;;  %v1765_v56 = vld [vmem:[#allocation5 + $0x170] sm:$0xff] }
 0x982   :  { %10548 = vmatmul.mubr.msk.f32.vlgmr.msra.gmra.mrb[12].mxu1 %vm53_vm0, %v1296_v1  ;;  %v11345_v1 = vpack.c.bf16 %v1636_v36, %v1635_v0 }
 0x983   :  { %10551 = vmatpush3.msra.mxu1 %v323_v60  ;;  %v11337_v60 = vpack.c.bf16 %v1632_v59, %v1631_v58  ;;  %v1766_v58 = vld [vmem:[#allocation5 + $0x178] sm:$0xff] }
 0x984   :  { %11326 = vmatprep.subr.bf16.mxu1 %v11325_v34  ;;  %v11361_v59 = vpack.c.bf16 %v1766_v58, %v1765_v56 }
 0xa55   :  { %v10549_v2 = vpop.f32.mrb[12].mxu1 }
 0xa56   :  { %v1375_v3 = vpop.f32.mrb[13].mxu1 }
 0xa57   :  { %10552 = vmatprep.mubr.msk.f32.mxu1 %vm330_vm2, %v1375_v3  ;;  %v1638_v3 = vld [vmem:[#allocation5 + $0x130] sm:$0xff] }
 0xa58   :  { %10553 = vmatmul.mubr.msk.f32.vlgmr.msra.gmra.mrb[8].mxu1 %vm330_vm2, %v10549_v2  ;;  %v1637_v2 = vld [vmem:[#allocation5 + $0x128] sm:$0xff] }
 0xa59   :  { %11328 = vmatpush3.bf16.msra.mxu1 %v11325_v34  ;;  %v9765_v34 = vld [vmem:[#allocation5 + $0x148] ss:$0 sm:$0xff] }
 0xa5a   :  { %11330 = vmatprep.subr.bf16.mxu1 %v11329_v33 }
 0xa5d   :  { %11332 = vmatpush3.bf16.msra.mxu1 %v11329_v33 }
 0xa5e   :  { %11334 = vmatprep.subr.bf16.mxu1 %v11333_v57 }
 0xa61   :  { %11336 = vmatpush3.bf16.msra.mxu1 %v11333_v57 }
 0xa62   :  { %11338 = vmatprep.subr.bf16.mxu1 %v11337_v60 }
 0xa65   :  { %11340 = vmatpush3.bf16.msra.mxu1 %v11337_v60 }
 0xa66   :  { %11342 = vmatprep.subr.bf16.mxu1 %v11341_v63 }
 0xa69   :  { %11344 = vmatpush3.bf16.msra.mxu1 %v11341_v63 }
 0xa6a   :  { %11346 = vmatprep.subr.bf16.mxu1 %v11345_v1 }
 0xa6d   :  { %11348 = vmatpush3.bf16.msra.mxu1 %v11345_v1 }
 0xb2b   :  { %v10554_v5 = vpop.f32.mrb[8].mxu1 }
 0xb2c   :  { %v1473_v6 = vadd.f32 %v10554_v5, %v9759_v4  ;;  %v1456_v7 = vpop.f32.mrb[9].mxu1  ;;  %v1639_v5 = vld [vmem:[#allocation5 + $0x138] sm:$0xff] }
 0xb2d   :  { %v1472_v8 = vadd.f32 %v9759_v4, %v1456_v7  ;;  %v11349_v4 = vpack.c.bf16 %v1638_v3, %v1637_v2  ;;  %v9766_v2 = vld [vmem:[#allocation5 + $0x150] ss:$0 sm:$0xff] }
 0xb2e   :  { %v1475_v9 = vadd.f32 %v1473_v6, %v12474_v30  ;;  %v1640_v6 = vld [vmem:[#allocation5 + $0x140] sm:$0xff] }
 0xb2f   :  { %v1474_v10 = vadd.f32 %v1472_v8, %v12472_v29  ;;  %v1517_v29 = vld [vmem:[#allocation5 + $0xa0] sm:$0xff]  ;;  %11350 = vmatprep.subr.bf16.mxu1 %v11349_v4  ;;  %v11353_v7 = vpack.c.bf16 %v1640_v6, %v1639_v5 }
 0xb30   :  { %v1479_v11 = vsel %vm148_vm1, %v1475_v9, 0.0  ;;  %v11317_v26 = vpack.c.bf16 %v1518_v24, %v1517_v29  ;;  %11352 = vmatpush3.bf16.msra.mxu1 %v11349_v4  ;;  %v9762_v8 = vld [vmem:[#allocation5 + $0xc0] ss:$0 sm:$0xff]  ;;  %v9767_v4 = vld [vmem:[#allocation5 + $0x158] ss:$0 sm:$0xff] }
 0xb31   :  { %1480 = vadd.xlane.f32.xlu1 %v1479_v11  ;;  %v1476_v12 = vsel %vm148_vm1, %v1474_v10, 0.0  ;;  %11354 = vmatprep.subr.bf16.mxu1 %v11353_v7 }
 0xb32   :  { %1477 = vadd.xlane.f32.xlu0 %v1476_v12  ;;  %11318 = vmatprep.subr.bf16.mxu0 %v11317_v26 }
 0xb33   :  { %11320 = vmatpush3.bf16.msra.mxu0 %v11317_v26 }
 0xb34   :  { %11322 = vmatprep.subr.bf16.mxu0 %v11321_v28  ;;  %11356 = vmatpush3.bf16.msra.mxu1 %v11353_v7 }
 0xb37   :  { %11324 = vmatpush3.bf16.msra.mxu0 %v11321_v28 }
 0xbbe   :  { %v1481_v13 = vpop.xlane.xlu1 %1480 }
 0xbbf   :  { %v1484_v14 = vmul.f32 0.03125, %v1481_v13  ;;  %v1478_v15 = vpop.xlane.xlu0 %1477 }
 0xbc0   :  { %v1483_v16 = vmul.f32 0.03125, %v1478_v15 }
 0xbc1   :  { %v1486_v17 = vsub.f32 %v1475_v9, %v1484_v14 }
 0xbc2   :  { %v1485_v18 = vsub.f32 %v1474_v10, %v1483_v16 }
 0xbc3   :  { %v1488_v23 = vmul.f32 %v1486_v17, %v1486_v17 }
 0xbc4   :  { %v1487_v19 = vmul.f32 %v1485_v18, %v1485_v18 }
 0xbc5   :  { %v1492_v30 = vsel %vm148_vm1, %v1488_v23, 0.0 }
 0xbc6   :  { %v1489_v22 = vsel %vm148_vm1, %v1487_v19, 0.0 }
 0xbc7   :  { %1490 = vadd.xlane.f32.xlu0 %v1489_v22 }
 0xbcb   :  { %1493 = vadd.xlane.f32.xlu0 %v1492_v30 }
 0xc54   :  { %v1491_v37 = vpop.xlane.xlu0 %1490 }
 0xc55   :  { %v1495_v38 = vmul.f32 0.03125, %v1491_v37 }
 0xc57   :  { %v1497_v39 = vadd.f32 1e-06, %v1495_v38 }
 0xc58   :  { %v1494_v41 = vpop.xlane.xlu0 %1493 }
 0xc59   :  { %12110 = vrsqrt.f32 %v1497_v39  ;;  %v1496_v42 = vmul.f32 0.03125, %v1494_v41 }
 0xc5b   :  { %v1498_v44 = vadd.f32 1e-06, %v1496_v42 }
 0xc5d   :  { %12112 = vrsqrt.f32 %v1498_v44 }
 0xc63   :  { %v12111_v45 = vpop.eup %12110 }
 0xc64   :  { %v1501_v48 = vmul.f32 %v12111_v45, %v1485_v18 }
 0xc66   :  { %v1508_v49 = vmul.f32 %v9760_v47, %v1501_v48 }
 0xc67   :  { %v12113_v50 = vpop.eup %12112 }
 0xc68   :  { %v1502_v51 = vmul.f32 %v12113_v50, %v1486_v17  ;;  %v12604_v52 = vadd.f32 %v9761_v21, %v1508_v49 }
 0xc6a   :  { %v1509_v53 = vmul.f32 %v9760_v47, %v1502_v51  ;;  %10563 = vmatprep.mubr.msk.f32.mxu0 %vm148_vm1, %v12604_v52 }
 0xc6c   :  { %v12608_v54 = vadd.f32 %v9761_v21, %v1509_v53 }
 0xc6e   :  { %10564 = vmatmul.mubr.msk.f32.vlgmr.msra.gmra.mrb[10].mxu0 %vm148_vm1, %v12608_v54 }
 0xd41   :  { %v10565_v9 = vpop.f32.mrb[10].mxu0 }
 0xd42   :  { %v1604_v10 = vadd.f32 %v10565_v9, %v9762_v8  ;;  %v1598_v11 = vpop.f32.mrb[11].mxu0 }
 0xd43   :  { %v1599_v12 = vadd.f32 %v9762_v8, %v1598_v11  ;;  %v9768_v11 = vld [vmem:[#allocation5 + $0x180] ss:$0 sm:$0xff] }
 0xd44   :  { %v1610_v13 = vmul.f32 0.044715, %v1604_v10  ;;  %v1608_v28 = vmul.f32 0.5, %v1604_v10 }
 0xd45   :  { %v1609_v14 = vmul.f32 0.044715, %v1599_v12  ;;  %v1607_v26 = vmul.f32 0.5, %v1599_v12 }
 0xd46   :  { %v1612_v15 = vmul.f32 %v1610_v13, %v1604_v10 }
 0xd47   :  { %v1611_v16 = vmul.f32 %v1609_v14, %v1599_v12 }
 0xd48   :  { %v1614_v17 = vmul.f32 %v1612_v15, %v1604_v10 }
 0xd49   :  { %v1613_v18 = vmul.f32 %v1611_v16, %v1599_v12 }
 0xd4a   :  { %v1616_v19 = vadd.f32 %v1614_v17, %v1604_v10 }
 0xd4b   :  { %v1615_v22 = vadd.f32 %v1613_v18, %v1599_v12 }
 0xd4c   :  { %v1618_v23 = vmul.f32 0.7978846, %v1616_v19 }
 0xd4d   :  { %v1617_v30 = vmul.f32 0.7978846, %v1615_v22 }
 0xd4e   :  { %12114 = vtanh.f32 %v1618_v23 }
 0xd4f   :  { %12116 = vtanh.f32 %v1617_v30 }
 0xd58   :  { %v12115_v29 = vpop.eup %12114 }
 0xd59   :  { %v12117_v24 = vpop.eup %12116  ;;  %v1622_v25 = vadd.f32 1.0, %v12115_v29 }
 0xd5a   :  { %v1621_v27 = vadd.f32 1.0, %v12117_v24 }
 0xd5b   :  { %v1624_v32 = vmul.f32 %v1622_v25, %v1608_v28 }
 0xd5c   :  { %v1623_v31 = vmul.f32 %v1621_v27, %v1607_v26 }
 0xd5e   :  { %10598 = vmatprep.mubr.f32.mxu1 %v1623_v31 }
 0xd5f   :  { %10599 = vmatmul.mubr.f32.vlgmr.msra.gmra.mrb[14].mxu1 %v1624_v32 }
 0xe32   :  { %v10600_v37 = vpop.f32.mrb[14].mxu1 }
 0xe33   :  { %v1712_v38 = vpop.f32.mrb[15].mxu1  ;;  %v1718_v39 = vadd.f32 %v10600_v37, %v9765_v34 }
 0xe34   :  { %v1713_v41 = vadd.f32 %v9765_v34, %v1712_v38 }
 0xe35   :  { %v1722_v45 = vadd.f32 %v1718_v39, %v12608_v54  ;;  %v1764_v54 = vld [vmem:[#allocation5 + $0x168] sm:$0xff] }
 0xe36   :  { %v1721_v42 = vadd.f32 %v1713_v41, %v12604_v52  ;;  %v11357_v57 = vpack.c.bf16 %v1764_v54, %v1763_v35 }
 0xe37   :  { %v1726_v47 = vsel %vm148_vm1, %v1722_v45, 0.0 }
 0xe38   :  { %v1723_v44 = vsel %vm148_vm1, %v1721_v42, 0.0  ;;  %11358 = vmatprep.subr.bf16.mxu0 %v11357_v57 }
 0xe39   :  { %1724 = vadd.xlane.f32.xlu0 %v1723_v44  ;;  %11360 = vmatpush3.bf16.msra.mxu0 %v11357_v57 }
 0xe3a   :  { %11362 = vmatprep.subr.bf16.mxu0 %v11361_v59 }
 0xe3d   :  { %1727 = vadd.xlane.f32.xlu0 %v1726_v47  ;;  %11364 = vmatpush3.bf16.msra.mxu0 %v11361_v59 }
 0xec6   :  { %v1725_v48 = vpop.xlane.xlu0 %1724 }
 0xec7   :  { %v1729_v21 = vmul.f32 0.03125, %v1725_v48 }
 0xec9   :  { %v1731_v49 = vsub.f32 %v1721_v42, %v1729_v21 }
 0xeca   :  { %v1728_v50 = vpop.xlane.xlu0 %1727 }
 0xecb   :  { %v1730_v51 = vmul.f32 0.03125, %v1728_v50  ;;  %v1733_v53 = vmul.f32 %v1731_v49, %v1731_v49 }
 0xecd   :  { %v1732_v20 = vsub.f32 %v1722_v45, %v1730_v51  ;;  %v1735_v55 = vsel %vm148_vm1, %v1733_v53, 0.0 }
 0xece   :  { %1736 = vadd.xlane.f32.xlu0 %v1735_v55 }
 0xecf   :  { %v1734_v33 = vmul.f32 %v1732_v20, %v1732_v20 }
 0xed1   :  { %v1738_v52 = vsel %vm148_vm1, %v1734_v33, 0.0 }
 0xed2   :  { %1739 = vadd.xlane.f32.xlu0 %v1738_v52 }
 0xf5b   :  { %v1737_v60 = vpop.xlane.xlu0 %1736 }
 0xf5c   :  { %v1741_v61 = vmul.f32 0.03125, %v1737_v60 }
 0xf5e   :  { %v1743_v62 = vadd.f32 1e-06, %v1741_v61 }
 0xf5f   :  { %v1740_v63 = vpop.xlane.xlu0 %1739 }
 0xf60   :  { %12118 = vrsqrt.f32 %v1743_v62  ;;  %v1742_v0 = vmul.f32 0.03125, %v1740_v63 }
 0xf62   :  { %v1744_v36 = vadd.f32 1e-06, %v1742_v0 }
 0xf64   :  { %12120 = vrsqrt.f32 %v1744_v36 }
 0xf6a   :  { %v12119_v1 = vpop.eup %12118 }
 0xf6b   :  { %v1747_v3 = vmul.f32 %v12119_v1, %v1731_v49 }
 0xf6d   :  { %v1754_v5 = vmul.f32 %v9766_v2, %v1747_v3 }
 0xf6e   :  { %v12121_v6 = vpop.eup %12120 }
 0xf6f   :  { %v1748_v7 = vmul.f32 %v12121_v6, %v1732_v20  ;;  %v12618_v8 = vadd.f32 %v9767_v4, %v1754_v5 }
 0xf71   :  { %v1755_v9 = vmul.f32 %v9766_v2, %v1748_v7  ;;  %10609 = vmatprep.mubr.msk.f32.mxu0 %vm148_vm1, %v12618_v8 }
 0xf73   :  { %v12622_v10 = vadd.f32 %v9767_v4, %v1755_v9 }
 0xf75   :  { %10610 = vmatmul.mubr.msk.f32.vlgmr.msra.gmra.mrb[12].mxu0 %vm148_vm1, %v12622_v10 }
0x1048   :  { %v10611_v12 = vpop.f32.mrb[12].mxu0 }
0x1049   :  { %v12626_v13 = vadd.f32 %v10611_v12, %v9768_v11  ;;  %v1844_v14 = vpop.f32.mrb[13].mxu0 }
0x104a   :  { %v12628_v15 = vadd.f32 %v9768_v11, %v1844_v14 }
0x104c   :  { %10616 = vmatprep.mubr.msk.f32.mxu0 %vm330_vm2, %v12628_v15  ;;  %v12634_v16 = vpack.i.bf16 %v12626_v13, %v12628_v15 }
0x104e   :  { %11867 = vrot.lane.b32.xlu0 %v12634_v16, %s12410_s1 }
0x10c0   :  { %v11868_v17 = vpop.permute.xlu0 %11867 }
0x10c1   :  { %v11870_v18 = vunpack.i.h.bf16 %v11868_v17  ;;  %v11869_v19 = vunpack.i.l.bf16 %v11868_v17 }
0x10c3   :  { %v11365_v22 = vpack.c.bf16 %v11870_v18, %v11869_v19 }
0x10c5   :  { %11367 = vmatprep.subr.msk.bf16.mxu0 %vm12494_vm3, %v11365_v22 }
0x10c6   :  { %11370 = vmatpush3.bf16.xpose.msk.msra.mxu0 %vm12494_vm3, %v11365_v22 }
0x10cd   :  { %10617 = vmatmul.mubr.msk.f32.vlgmr.msra.gmra.mrb[14].mxu0 %vm330_vm2, %v12626_v13 }
0x11a0   :  { %v10618_v23 = vpop.f32.mrb[14].mxu0 }
0x11a1   :  { %v1937_v30 = vpop.f32.mrb[15].mxu0  ;;  %v1947_v29 = vmul.f32 0.35355338, %v10618_v23 }
0x11a2   :  { %v1946_v24 = vmul.f32 0.35355338, %v1937_v30 }
0x11a3   :  { %v1949_v27 = vadd.f32 %v1947_v29, %v12504_v43 }
0x11a4   :  { %v1948_v25 = vadd.f32 %v1946_v24, %v12506_v46 }
0x11a5   :  { %v1953_v28 = vsel %vm53_vm0, %v1949_v27, -inf }
0x11a6   :  { %v1950_v26 = vsel %vm53_vm0, %v1948_v25, -inf }
0x11a7   :  { %1951 = vmax.xlane.f32.xlu1 %v1950_v26 }
0x11ab   :  { %1954 = vmax.xlane.f32.xlu1 %v1953_v28 }
0x11bc   :  { %11872 = vrot.lane.b32.xlu1 %v12634_v16, %s12411_s6 }
0x11c0   :  { %11877 = vrot.lane.b32.xlu1 %v12634_v16, %s12412_s7 }
0x11c4   :  { %2059 = vrot.lane.b32.xlu1 %v12628_v15, %s12413_s8 }
0x1234   :  { %v1952_v31 = vpop.xlane.xlu1 %1951 }
0x1235   :  { %v1956_v32 = vsub.f32 %v1948_v25, %v1952_v31 }
0x1237   :  { %v1958_v34 = vmul.f32 1.442695, %v1956_v32 }
0x1238   :  { %v1955_v37 = vpop.xlane.xlu1 %1954 }
0x1239   :  { %12122 = vpow2.f32 %v1958_v34  ;;  %v1957_v38 = vsub.f32 %v1949_v27, %v1955_v37 }
0x123b   :  { %v1960_v39 = vmul.f32 1.442695, %v1957_v38 }
0x123c   :  { %v11873_v41 = vpop.permute.xlu1 %11872 }
0x123d   :  { %12124 = vpow2.f32 %v1960_v39  ;;  %v11875_v42 = vunpack.i.h.bf16 %v11873_v41  ;;  %v11874_v44 = vunpack.i.l.bf16 %v11873_v41 }
0x123f   :  { %v11371_v45 = vpack.c.bf16 %v11875_v42, %v11874_v44  ;;  %v1854_v44 = vld [vmem:[#allocation5 + $0x190] sm:$0xff] }
0x1240   :  { %v11878_v47 = vpop.permute.xlu1 %11877  ;;  %10640 = vmatprep.subr.mxu1 %v1854_v44 }
0x1241   :  { %v11880_v48 = vunpack.i.h.bf16 %v11878_v47  ;;  %v11879_v21 = vunpack.i.l.bf16 %v11878_v47  ;;  %11372 = vmatprep.subr.bf16.mxu0 %v11371_v45  ;;  %10641 = vmatpush3.msra.mxu1 %v1854_v44 }
0x1242   :  { %11374 = vmatpush3.bf16.msra.mxu0 %v11371_v45  ;;  %v1853_v45 = vld [vmem:[#allocation5 + $0x188] sm:$0xff] }
0x1243   :  { %v12123_v49 = vpop.eup %12122  ;;  %v11375_v50 = vpack.c.bf16 %v11880_v48, %v11879_v21  ;;  %10645 = vmatprep.subr.mxu1 %v1853_v45 }
0x1244   :  { %v1962_v51 = vsel %vm53_vm0, %v12123_v49, 0.0  ;;  %v2060_v55 = vpop.permute.xlu1 %2059 }
0x1245   :  { %1963 = vadd.xlane.f32.xlu1 %v1962_v51  ;;  %11377 = vmatprep.subr.msk.bf16.mxu0 %vm12494_vm3, %v11375_v50 }
0x1247   :  { %v12125_v53 = vpop.eup %12124 }
0x1248   :  { %v1965_v20 = vsel %vm53_vm0, %v12125_v53, 0.0 }
0x1249   :  { %1966 = vadd.xlane.f32.xlu0 %v1965_v20 }
0x1256   :  { %2061 = vrot.lane.b32.xlu1 %v12626_v13, %s12413_s8 }
0x12d2   :  { %v1964_v33 = vpop.xlane.xlu1 %1963 }
0x12d3   :  { %12126 = vrcp.f32 %v1964_v33 }
0x12d6   :  { %v1967_v52 = vpop.xlane.xlu0 %1966  ;;  %v2062_v58 = vpop.permute.xlu1 %2061 }
0x12d7   :  { %12128 = vrcp.f32 %v1967_v52 }
0x12dd   :  { %v12127_v35 = vpop.eup %12126 }
0x12de   :  { %v1970_v54 = vmul.f32 %v12127_v35, %v12123_v49 }
0x12e0   :  { %10623 = vmatprep.mubr.msk.f32.mxu0 %vm53_vm0, %v1970_v54 }
0x12e1   :  { %v12129_v56 = vpop.eup %12128 }
0x12e2   :  { %v1971_v57 = vmul.f32 %v12129_v56, %v12125_v53  ;;  %v12330_v53 = vld [vmem:[#allocation5 + $0x688] sm:$0xff] }
0x12e4   :  { %10624 = vmatmul.mubr.msk.f32.vlgmr.msra.gmra.mrb[16].mxu0 %vm53_vm0, %v1971_v57 }
0x12e5   :  { %11380 = vmatpush3.bf16.xpose.msk.msra.mxu0 %vm12494_vm3, %v11375_v50  ;;  %10630 = vmatprep.mubr.msk.f32.mxu0 %vm330_vm2, %v2060_v55  ;;  %v12331_v55 = vld [vmem:[#allocation5 + $0x680] sm:$0xff] }
0x12ec   :  { %10631 = vmatmul.mubr.msk.f32.vlgmr.msra.gmra.mrb[18].mxu0 %vm330_vm2, %v2062_v58 }
0x13b7   :  { %v12666_v59 = vpop.f32.mrb[16].mxu0 }
0x13b8   :  { %v12668_v60 = vpop.f32.mrb[17].mxu0 }
0x13bf   :  { %v10632_v61 = vpop.f32.mrb[18].mxu0 }
0x13c0   :  { %v2151_v62 = vmul.f32 0.35355338, %v10632_v61  ;;  %v2141_v63 = vpop.f32.mrb[19].mxu0 }
0x13c1   :  { %v2150_v0 = vmul.f32 0.35355338, %v2141_v63 }
0x13c2   :  { %v2153_v36 = vadd.f32 %v2151_v62, %v12504_v43 }
0x13c3   :  { %v2152_v1 = vadd.f32 %v2150_v0, %v12506_v46 }
0x13c4   :  { %v2157_v2 = vsel %vm53_vm0, %v2153_v36, -inf }
0x13c5   :  { %2158 = vmax.xlane.f32.xlu0 %v2157_v2  ;;  %v2154_v3 = vsel %vm53_vm0, %v2152_v1, -inf }
0x13c6   :  { %2155 = vmax.xlane.f32.xlu1 %v2154_v3 }
0x13d7   :  { %2425 = vrot.lane.b32.xlu1 %v12628_v15, %s12415_s10 }
0x13db   :  { %11882 = vrot.lane.b32.xlu0 %v12634_v16, %s12416_s11 }
0x1452   :  { %v2159_v4 = vpop.xlane.xlu0 %2158 }
0x1453   :  { %v2161_v5 = vsub.f32 %v2153_v36, %v2159_v4  ;;  %v2156_v6 = vpop.xlane.xlu1 %2155 }
0x1454   :  { %v2160_v7 = vsub.f32 %v2152_v1, %v2156_v6 }
0x1455   :  { %v2164_v9 = vmul.f32 1.442695, %v2161_v5 }
0x1456   :  { %v2162_v43 = vmul.f32 1.442695, %v2160_v7  ;;  %v11883_v11 = vpop.permute.xlu0 %11882 }
0x1457   :  { %12130 = vpow2.f32 %v2164_v9  ;;  %v11885_v46 = vunpack.i.h.bf16 %v11883_v11  ;;  %v11884_v12 = vunpack.i.l.bf16 %v11883_v11 }
0x1458   :  { %12132 = vpow2.f32 %v2162_v43 }
0x1459   :  { %v11381_v14 = vpack.c.bf16 %v11885_v46, %v11884_v12 }
0x145b   :  { %11382 = vmatprep.subr.bf16.mxu0 %v11381_v14 }
0x145c   :  { %11384 = vmatpush3.bf16.msra.mxu0 %v11381_v14 }
0x1461   :  { %v12131_v17 = vpop.eup %12130 }
0x1462   :  { %v2169_v18 = vsel %vm53_vm0, %v12131_v17, 0.0  ;;  %v12133_v19 = vpop.eup %12132 }
0x1463   :  { %2170 = vadd.xlane.f32.xlu0 %v2169_v18  ;;  %v2166_v22 = vsel %vm53_vm0, %v12133_v19, 0.0 }
0x1467   :  { %2167 = vadd.xlane.f32.xlu0 %v2166_v22 }
0x147d   :  { %11887 = vrot.lane.b32.xlu0 %v12634_v16, %s12414_s9 }
0x1481   :  { %2427 = vrot.lane.b32.xlu0 %v12626_v13, %s12415_s10 }
0x1485   :  { %11892 = vrot.lane.b32.xlu0 %v12634_v16, %s12417_s12 }
0x1489   :  { %2712 = vrot.lane.b32.xlu0 %v12628_v15, %s12418_s13 }
0x148d   :  { %2714 = vrot.lane.b32.xlu0 %v12626_v13, %s12418_s13  ;;  %v2426_v13 = vpop.permute.xlu1 %2425 }
0x14f0   :  { %v2171_v23 = vpop.xlane.xlu0 %2170 }
0x14f1   :  { %12134 = vrcp.f32 %v2171_v23 }
0x14f4   :  { %v2168_v30 = vpop.xlane.xlu0 %2167 }
0x14f5   :  { %12136 = vrcp.f32 %v2168_v30 }
0x14f8   :  { %v11888_v29 = vpop.permute.xlu0 %11887 }
0x14f9   :  { %v11890_v24 = vunpack.i.h.bf16 %v11888_v29  ;;  %v11889_v25 = vunpack.i.l.bf16 %v11888_v29 }
0x14fb   :  { %v11385_v26 = vpack.c.bf16 %v11890_v24, %v11889_v25  ;;  %v12135_v28 = vpop.eup %12134 }
0x14fc   :  { %v2428_v27 = vpop.permute.xlu0 %2427  ;;  %v2175_v38 = vmul.f32 %v12135_v28, %v12131_v17 }
0x14fd   :  { %11387 = vmatprep.subr.msk.bf16.mxu0 %vm12494_vm3, %v11385_v26 }
0x14ff   :  { %v12137_v31 = vpop.eup %12136 }
0x1500   :  { %v11893_v32 = vpop.permute.xlu0 %11892  ;;  %v2174_v34 = vmul.f32 %v12137_v31, %v12133_v19 }
0x1501   :  { %v11895_v15 = vunpack.i.h.bf16 %v11893_v32  ;;  %v11894_v37 = vunpack.i.l.bf16 %v11893_v32 }
0x1502   :  { %10637 = vmatprep.mubr.msk.f32.mxu0 %vm53_vm0, %v2174_v34  ;;  %v1855_v34 = vld [vmem:[#allocation5 + $0x198] sm:$0xff] }
0x1503   :  { %v11395_v39 = vpack.c.bf16 %v11895_v15, %v11894_v37  ;;  %10638 = vmatmul.mubr.msk.f32.vlgmr.msra.gmra.mrb[20].mxu0 %vm53_vm0, %v2175_v38 }
0x1504   :  { %11390 = vmatpush3.bf16.xpose.msk.msra.mxu0 %vm12494_vm3, %v11385_v26  ;;  %10654 = vmatprep.mubr.msk.f32.mxu0 %vm330_vm2, %v2426_v13  ;;  %v2713_v41 = vpop.permute.xlu0 %2712 }
0x1505   :  { %11397 = vmatprep.subr.msk.bf16.mxu0 %vm12494_vm3, %v11395_v39 }
0x1508   :  { %v2715_v42 = vpop.permute.xlu0 %2714 }
0x150b   :  { %10655 = vmatmul.mubr.msk.f32.vlgmr.msra.gmra.mrb[22].mxu0 %vm330_vm2, %v2428_v27 }
0x150c   :  { %11400 = vmatpush3.bf16.xpose.msk.msra.mxu0 %vm12494_vm3, %v11395_v39  ;;  %10673 = vmatprep.mubr.msk.f32.mxu0 %vm330_vm2, %v2713_v41 }
0x1513   :  { %10674 = vmatmul.mubr.msk.f32.vlgmr.msra.gmra.mrb[24].mxu0 %vm330_vm2, %v2715_v42 }
0x15d6   :  { %v10639_v47 = vpop.f32.mrb[20].mxu0 }
0x15d7   :  { %v2254_v48 = vpop.f32.mrb[21].mxu0 }
0x15d8   :  { %10642 = vmatprep.mubr.msk.f32.mxu1 %vm330_vm2, %v2254_v48 }
0x15d9   :  { %10643 = vmatmul.mubr.msk.f32.vlgmr.msra.gmra.mrb[16].mxu1 %vm330_vm2, %v10639_v47 }
0x15da   :  { %10647 = vmatprep.mubr.msk.f32.mxu1 %vm330_vm2, %v12668_v60  ;;  %10646 = vmatpush3.msra.mxu1 %v1853_v45 }
0x15de   :  { %v10656_v21 = vpop.f32.mrb[22].mxu0 }
0x15df   :  { %v2517_v49 = vmul.f32 0.35355338, %v10656_v21  ;;  %v2507_v50 = vpop.f32.mrb[23].mxu0 }
0x15e0   :  { %v2516_v51 = vmul.f32 0.35355338, %v2507_v50 }
0x15e1   :  { %10648 = vmatmul.mubr.msk.f32.vlgmr.msra.gmra.mrb[16].mxu1 %vm330_vm2, %v12666_v59  ;;  %v2519_v20 = vadd.f32 %v12330_v53, %v2517_v49 }
0x15e2   :  { %v2518_v33 = vadd.f32 %v12331_v55, %v2516_v51  ;;  %v9803_v51 = vld [vmem:[#allocation5 + $0x1a8] ss:$0 sm:$0xff] }
0x15e3   :  { %v2523_v52 = vsel %vm53_vm0, %v2519_v20, -inf }
0x15e4   :  { %2524 = vmax.xlane.f32.xlu0 %v2523_v52  ;;  %v2520_v35 = vsel %vm53_vm0, %v2518_v33, -inf }
0x15e5   :  { %2521 = vmax.xlane.f32.xlu1 %v2520_v35 }
0x15e6   :  { %v10675_v54 = vpop.f32.mrb[24].mxu0 }
0x15e7   :  { %v2794_v56 = vpop.f32.mrb[25].mxu0  ;;  %v2804_v1 = vmul.f32 0.35355338, %v10675_v54 }
0x15e8   :  { %v2803_v59 = vmul.f32 0.35355338, %v2794_v56 }
0x15e9   :  { %v2806_v6 = vadd.f32 %v12330_v53, %v2804_v1  ;;  %v3049_v1 = vld [vmem:[#allocation5 + $0x1c8] sm:$0xff] }
0x15ea   :  { %v2805_v3 = vadd.f32 %v12331_v55, %v2803_v59 }
0x15eb   :  { %v2810_v7 = vsel %vm53_vm0, %v2806_v6, -inf }
0x15ec   :  { %v2807_v5 = vsel %vm53_vm0, %v2805_v3, -inf }
0x1671   :  { %v2525_v57 = vpop.xlane.xlu0 %2524 }
0x1672   :  { %v2527_v58 = vsub.f32 %v2519_v20, %v2525_v57  ;;  %v2522_v60 = vpop.xlane.xlu1 %2521 }
0x1673   :  { %v2526_v61 = vsub.f32 %v2518_v33, %v2522_v60 }
0x1674   :  { %v2530_v62 = vmul.f32 1.442695, %v2527_v58 }
0x1675   :  { %v2528_v63 = vmul.f32 1.442695, %v2526_v61 }
0x1676   :  { %12138 = vpow2.f32 %v2530_v62 }
0x1677   :  { %12140 = vpow2.f32 %v2528_v63 }
0x1680   :  { %v12139_v0 = vpop.eup %12138 }
0x1681   :  { %v12141_v36 = vpop.eup %12140  ;;  %v2535_v2 = vsel %vm53_vm0, %v12139_v0, 0.0 }
0x1682   :  { %2536 = vadd.xlane.f32.xlu1 %v2535_v2  ;;  %v2532_v4 = vsel %vm53_vm0, %v12141_v36, 0.0  ;;  %v3050_v2 = vld [vmem:[#allocation5 + $0x1d0] sm:$0xff] }
0x1683   :  { %2533 = vadd.xlane.f32.xlu0 %v2532_v4  ;;  %v3051_v4 = vld [vmem:[#allocation5 + $0x1d8] sm:$0xff] }
0x1686   :  { %2808 = vmax.xlane.f32.xlu1 %v2807_v5  ;;  %v11409_v5 = vpack.c.bf16 %v3051_v4, %v3050_v2 }
0x168a   :  { %2811 = vmax.xlane.f32.xlu1 %v2810_v7  ;;  %v3157_v7 = vld [vmem:[#allocation5 + $0x1f0] sm:$0xff] }
0x1699   :  { %11897 = vrot.lane.b32.xlu0 %v12634_v16, %s12419_s14 }
0x170f   :  { %v2537_v9 = vpop.xlane.xlu1 %2536 }
0x1710   :  { %12142 = vrcp.f32 %v2537_v9  ;;  %v2534_v43 = vpop.xlane.xlu0 %2533 }
0x1711   :  { %12144 = vrcp.f32 %v2534_v43 }
0x1713   :  { %v2809_v11 = vpop.xlane.xlu1 %2808 }
0x1714   :  { %v11898_v46 = vpop.permute.xlu0 %11897  ;;  %v2813_v17 = vsub.f32 %v2805_v3, %v2809_v11 }
0x1715   :  { %v11900_v12 = vunpack.i.h.bf16 %v11898_v46  ;;  %v11899_v14 = vunpack.i.l.bf16 %v11898_v46 }
0x1716   :  { %v2815_v30 = vmul.f32 1.442695, %v2813_v17 }
0x1717   :  { %v2812_v18 = vpop.xlane.xlu1 %2811  ;;  %v11391_v19 = vpack.c.bf16 %v11900_v12, %v11899_v14 }
0x1718   :  { %v2814_v22 = vsub.f32 %v2806_v6, %v2812_v18  ;;  %v3156_v6 = vld [vmem:[#allocation5 + $0x1e8] sm:$0xff] }
0x1719   :  { %11392 = vmatprep.subr.bf16.mxu1 %v11391_v19  ;;  %v11413_v9 = vpack.c.bf16 %v3157_v7, %v3156_v6  ;;  %v9809_v6 = vld [vmem:[#allocation5 + $0x268] ss:$0 sm:$0xff] }
0x171a   :  { %v12143_v23 = vpop.eup %12142  ;;  %v2817_v29 = vmul.f32 1.442695, %v2814_v22  ;;  %11394 = vmatpush3.bf16.msra.mxu1 %v11391_v19  ;;  %v9804_v19 = vld [vmem:[#allocation5 + $0x1b0] ss:$0 sm:$0xff] }
0x171b   :  { %v12145_v24 = vpop.eup %12144  ;;  %v2541_v26 = vmul.f32 %v12143_v23, %v12139_v0  ;;  %10664 = vmatprep.subr.mxu1 %v1855_v34  ;;  %v9805_v23 = vld [vmem:[#allocation5 + $0x1b8] ss:$0 sm:$0xff] }
0x171c   :  { %12146 = vpow2.f32 %v2817_v29  ;;  %v2540_v25 = vmul.f32 %v12145_v24, %v12141_v36 }
0x171d   :  { %12148 = vpow2.f32 %v2815_v30 }
0x171e   :  { %10661 = vmatprep.mubr.msk.f32.mxu1 %vm53_vm0, %v2540_v25 }
0x171f   :  { %10662 = vmatmul.mubr.msk.f32.vlgmr.msra.gmra.mrb[18].mxu1 %vm53_vm0, %v2541_v26 }
0x1720   :  { %10665 = vmatpush3.msra.mxu1 %v1855_v34  ;;  %v3160_v34 = vld [vmem:[#allocation5 + $0x208] sm:$0xff] }
0x1726   :  { %v12147_v27 = vpop.eup %12146 }
0x1727   :  { %v2822_v28 = vsel %vm53_vm0, %v12147_v27, 0.0  ;;  %v12149_v31 = vpop.eup %12148 }
0x1728   :  { %2823 = vadd.xlane.f32.xlu1 %v2822_v28  ;;  %v2819_v32 = vsel %vm53_vm0, %v12149_v31, 0.0  ;;  %v3158_v28 = vld [vmem:[#allocation5 + $0x1f8] sm:$0xff] }
0x172c   :  { %2820 = vadd.xlane.f32.xlu1 %v2819_v32 }
0x173d   :  { %11902 = vrot.lane.b32.xlu1 %v12634_v16, %s12420_s15  ;;  %v1856_v16 = vld [vmem:[#allocation5 + $0x1a0] sm:$0xff] }
0x17b5   :  { %v2824_v15 = vpop.xlane.xlu1 %2823 }
0x17b9   :  { %v2821_v37 = vpop.xlane.xlu1 %2820 }
0x17ba   :  { %12150 = vrcp.f32 %v2821_v37 }
0x17bb   :  { %12152 = vrcp.f32 %v2824_v15  ;;  %v3161_v15 = vld [vmem:[#allocation5 + $0x210] sm:$0xff] }
0x17bc   :  { %v11421_v37 = vpack.c.bf16 %v3161_v15, %v3160_v34  ;;  %v3297_v15 = vld [vmem:[#allocation5 + $0x298] sm:$0xff] }
0x17bd   :  { %v11903_v38 = vpop.permute.xlu1 %11902 }
0x17be   :  { %v11905_v13 = vunpack.i.h.bf16 %v11903_v38  ;;  %v11904_v39 = vunpack.i.l.bf16 %v11903_v38  ;;  %v3162_v38 = vld [vmem:[#allocation5 + $0x218] sm:$0xff] }
0x17c0   :  { %v11401_v41 = vpack.c.bf16 %v11905_v13, %v11904_v39  ;;  %v3163_v13 = vld [vmem:[#allocation5 + $0x220] sm:$0xff] }
0x17c1   :  { %v11425_v39 = vpack.c.bf16 %v3163_v13, %v3162_v38 }
0x17c2   :  { %11402 = vmatprep.subr.bf16.mxu1 %v11401_v41 }
0x17c4   :  { %v12151_v42 = vpop.eup %12150 }
0x17c5   :  { %v12153_v47 = vpop.eup %12152  ;;  %v2827_v48 = vmul.f32 %v12151_v42, %v12149_v31  ;;  %v3159_v31 = vld [vmem:[#allocation5 + $0x200] sm:$0xff]  ;;  %v3165_v42 = vld [vmem:[#allocation5 + $0x230] sm:$0xff] }
0x17c6   :  { %v2828_v21 = vmul.f32 %v12153_v47, %v12147_v27  ;;  %v11417_v32 = vpack.c.bf16 %v3159_v31, %v3158_v28  ;;  %v3167_v47 = vld [vmem:[#allocation5 + $0x240] sm:$0xff] }
0x17c7   :  { %v3294_v31 = vld [vmem:[#allocation5 + $0x280] sm:$0xff] }
0x17f2   :  { %v10663_v44 = vpop.f32.mrb[18].mxu1 }
0x17f3   :  { %v2620_v45 = vpop.f32.mrb[19].mxu1 }
0x17f4   :  { %10666 = vmatprep.mubr.msk.f32.mxu1 %vm330_vm2, %v2620_v45  ;;  %v3166_v45 = vld [vmem:[#allocation5 + $0x238] sm:$0xff] }
0x17f5   :  { %10667 = vmatmul.mubr.msk.f32.vlgmr.msra.gmra.mrb[16].mxu1 %vm330_vm2, %v10663_v44 }
0x17f6   :  { %11404 = vmatpush3.bf16.msra.mxu1 %v11401_v41  ;;  %10680 = vmatprep.mubr.msk.f32.mxu1 %vm53_vm0, %v2827_v48  ;;  %v3164_v41 = vld [vmem:[#allocation5 + $0x228] sm:$0xff]  ;;  %v11433_v48 = vpack.c.bf16 %v3167_v47, %v3166_v45  ;;  %v9810_v47 = vld [vmem:[#allocation5 + $0x270] ss:$0 sm:$0xff] }
0x17f7   :  { %10683 = vmatprep.subr.mxu1 %v1856_v16  ;;  %v11429_v44 = vpack.c.bf16 %v3165_v42, %v3164_v41 }
0x17f9   :  { %10681 = vmatmul.mubr.msk.f32.vlgmr.msra.gmra.mrb[20].mxu1 %vm53_vm0, %v2828_v21  ;;  %v3169_v21 = vld [vmem:[#allocation5 + $0x250] sm:$0xff] }
0x17fa   :  { %10684 = vmatpush3.msra.mxu1 %v1856_v16  ;;  %v3168_v16 = vld [vmem:[#allocation5 + $0x248] sm:$0xff] }
0x17fb   :  { %11414 = vmatprep.subr.bf16.mxu1 %v11413_v9 }
0x18cc   :  { %v10682_v49 = vpop.f32.mrb[20].mxu1 }
0x18cd   :  { %v2907_v50 = vpop.f32.mrb[21].mxu1 }
0x18ce   :  { %10685 = vmatprep.mubr.msk.f32.mxu1 %vm330_vm2, %v2907_v50  ;;  %v3170_v50 = vld [vmem:[#allocation5 + $0x258] sm:$0xff] }
0x18cf   :  { %10686 = vmatmul.mubr.msk.f32.vlgmr.msra.gmra.mrb[16].mxu1 %vm330_vm2, %v10682_v49  ;;  %v11437_v49 = vpack.c.bf16 %v3169_v21, %v3168_v16  ;;  %v9811_v16 = vld [vmem:[#allocation5 + $0x278] ss:$0 sm:$0xff] }
0x18d0   :  { %11416 = vmatpush3.bf16.msra.mxu1 %v11413_v9 }
0x18d1   :  { %11418 = vmatprep.subr.bf16.mxu1 %v11417_v32 }
0x18d4   :  { %11420 = vmatpush3.bf16.msra.mxu1 %v11417_v32  ;;  %v3296_v32 = vld [vmem:[#allocation5 + $0x290] sm:$0xff] }
0x18d5   :  { %11422 = vmatprep.subr.bf16.mxu1 %v11421_v37 }
0x18d8   :  { %11424 = vmatpush3.bf16.msra.mxu1 %v11421_v37  ;;  %v11449_v37 = vpack.c.bf16 %v3297_v15, %v3296_v32 }
0x18d9   :  { %11426 = vmatprep.subr.bf16.mxu1 %v11425_v39 }
0x18dc   :  { %11428 = vmatpush3.bf16.msra.mxu1 %v11425_v39 }
0x18dd   :  { %11430 = vmatprep.subr.bf16.mxu1 %v11429_v44 }
0x18e0   :  { %11432 = vmatpush3.bf16.msra.mxu1 %v11429_v44 }
0x18e1   :  { %11434 = vmatprep.subr.bf16.mxu1 %v11433_v48 }
0x18e4   :  { %11436 = vmatpush3.bf16.msra.mxu1 %v11433_v48 }
0x18e5   :  { %11438 = vmatprep.subr.bf16.mxu1 %v11437_v49 }
0x18e8   :  { %11440 = vmatpush3.bf16.msra.mxu1 %v11437_v49 }
0x19a2   :  { %v10687_v53 = vpop.f32.mrb[16].mxu1 }
0x19a3   :  { %v3005_v20 = vadd.f32 %v10687_v53, %v9803_v51  ;;  %v2988_v55 = vpop.f32.mrb[17].mxu1 }
0x19a4   :  { %v3004_v33 = vadd.f32 %v9803_v51, %v2988_v55  ;;  %v3171_v51 = vld [vmem:[#allocation5 + $0x260] sm:$0xff] }
0x19a5   :  { %v3007_v52 = vadd.f32 %v3005_v20, %v12622_v10  ;;  %v11441_v53 = vpack.c.bf16 %v3171_v51, %v3170_v50  ;;  %v9806_v20 = vld [vmem:[#allocation5 + $0x1e0] ss:$0 sm:$0xff] }
0x19a6   :  { %v3006_v35 = vadd.f32 %v3004_v33, %v12618_v8  ;;  %v3048_v8 = vld [vmem:[#allocation5 + $0x1c0] sm:$0xff] }
0x19a7   :  { %v3011_v54 = vsel %vm148_vm1, %v3007_v52, 0.0  ;;  %v11405_v3 = vpack.c.bf16 %v3049_v1, %v3048_v8  ;;  %11442 = vmatprep.subr.bf16.mxu1 %v11441_v53 }
0x19a8   :  { %3012 = vadd.xlane.f32.xlu1 %v3011_v54  ;;  %v3008_v56 = vsel %vm148_vm1, %v3006_v35, 0.0  ;;  %11444 = vmatpush3.bf16.msra.mxu1 %v11441_v53 }
0x19a9   :  { %3009 = vadd.xlane.f32.xlu0 %v3008_v56  ;;  %11406 = vmatprep.subr.bf16.mxu0 %v11405_v3 }
0x19aa   :  { %11408 = vmatpush3.bf16.msra.mxu0 %v11405_v3 }
0x19ab   :  { %11410 = vmatprep.subr.bf16.mxu0 %v11409_v5 }
0x19ae   :  { %11412 = vmatpush3.bf16.msra.mxu0 %v11409_v5 }
0x1a35   :  { %v3013_v57 = vpop.xlane.xlu1 %3012 }
0x1a36   :  { %v3015_v58 = vmul.f32 0.03125, %v3013_v57  ;;  %v3010_v60 = vpop.xlane.xlu0 %3009 }
0x1a37   :  { %v3014_v61 = vmul.f32 0.03125, %v3010_v60 }
0x1a38   :  { %v3017_v62 = vsub.f32 %v3007_v52, %v3015_v58 }
0x1a39   :  { %v3016_v63 = vsub.f32 %v3006_v35, %v3014_v61 }
0x1a3a   :  { %v3019_v36 = vmul.f32 %v3017_v62, %v3017_v62 }
0x1a3b   :  { %v3018_v59 = vmul.f32 %v3016_v63, %v3016_v63 }
0x1a3c   :  { %v3023_v10 = vsel %vm148_vm1, %v3019_v36, 0.0 }
0x1a3d   :  { %v3020_v0 = vsel %vm148_vm1, %v3018_v59, 0.0 }
0x1a3e   :  { %3021 = vadd.xlane.f32.xlu0 %v3020_v0 }
0x1a42   :  { %3024 = vadd.xlane.f32.xlu0 %v3023_v10 }
0x1acb   :  { %v3022_v43 = vpop.xlane.xlu0 %3021 }
0x1acc   :  { %v3026_v11 = vmul.f32 0.03125, %v3022_v43 }
0x1ace   :  { %v3028_v46 = vadd.f32 1e-06, %v3026_v11 }
0x1acf   :  { %v3025_v12 = vpop.xlane.xlu0 %3024 }
0x1ad0   :  { %12154 = vrsqrt.f32 %v3028_v46  ;;  %v3027_v14 = vmul.f32 0.03125, %v3025_v12 }
0x1ad2   :  { %v3029_v17 = vadd.f32 1e-06, %v3027_v14 }
0x1ad4   :  { %12156 = vrsqrt.f32 %v3029_v17 }
0x1ada   :  { %v12155_v18 = vpop.eup %12154 }
0x1adb   :  { %v3032_v22 = vmul.f32 %v12155_v18, %v3016_v63 }
0x1add   :  { %v3039_v30 = vmul.f32 %v9804_v19, %v3032_v22 }
0x1ade   :  { %v12157_v29 = vpop.eup %12156 }
0x1adf   :  { %v3033_v24 = vmul.f32 %v12157_v29, %v3017_v62  ;;  %v12736_v25 = vadd.f32 %v9805_v23, %v3039_v30 }
0x1ae1   :  { %v3040_v26 = vmul.f32 %v9804_v19, %v3033_v24  ;;  %10696 = vmatprep.mubr.msk.f32.mxu0 %vm148_vm1, %v12736_v25 }
0x1ae3   :  { %v12740_v27 = vadd.f32 %v9805_v23, %v3040_v26 }
0x1ae5   :  { %10697 = vmatmul.mubr.msk.f32.vlgmr.msra.gmra.mrb[26].mxu0 %vm148_vm1, %v12740_v27 }
0x1bb8   :  { %v10698_v55 = vpop.f32.mrb[26].mxu0 }
0x1bb9   :  { %v3135_v33 = vadd.f32 %v10698_v55, %v9806_v20  ;;  %v3129_v52 = vpop.f32.mrb[27].mxu0  ;;  %v3384_v55 = vld [vmem:[#allocation5 + $0x610] sm:$0xff] }
0x1bba   :  { %v3130_v35 = vadd.f32 %v9806_v20, %v3129_v52  ;;  %v12421_v52 = vmov 0  }
0x1bbb   :  { %v3141_v54 = vmul.f32 0.044715, %v3135_v33  ;;  %v3139_v3 = vmul.f32 0.5, %v3135_v33  ;;  %11907 = vset.pattern.permute.xlu1 %v12421_v52  ;;  %11906 = vset.pattern.permute.xlu0 %v12421_v52 }
0x1bbc   :  { %v3140_v56 = vmul.f32 0.044715, %v3130_v35  ;;  %v3138_v1 = vmul.f32 0.5, %v3130_v35 }
0x1bbd   :  { %v3143_v57 = vmul.f32 %v3141_v54, %v3135_v33  ;;  %v3390_v54 = vld [vmem:[#allocation5 + $0x640] sm:$0xff] }
0x1bbe   :  { %v3142_v58 = vmul.f32 %v3140_v56, %v3130_v35  ;;  %v3391_v56 = vld [vmem:[#allocation5 + $0x648] sm:$0xff] }
0x1bbf   :  { %v3145_v60 = vmul.f32 %v3143_v57, %v3135_v33  ;;  %v3511_v57 = vld [vmem:[#allocation5 + $0x660] sm:$0xff] }
0x1bc0   :  { %v3144_v61 = vmul.f32 %v3142_v58, %v3130_v35  ;;  %v3512_v58 = vld [vmem:[#allocation5 + $0x668] sm:$0xff] }
0x1bc1   :  { %v3147_v62 = vadd.f32 %v3145_v60, %v3135_v33  ;;  %v3389_v33 = vld [vmem:[#allocation5 + $0x638] sm:$0xff]  ;;  %v9812_v60 = vld [vmem:[#allocation5 + $0x2a0] ss:$0 sm:$0xff] }
0x1bc2   :  { %v3146_v63 = vadd.f32 %v3144_v61, %v3130_v35  ;;  %v3388_v35 = vld [vmem:[#allocation5 + $0x630] sm:$0xff] }
0x1bc3   :  { %v3149_v59 = vmul.f32 0.7978846, %v3147_v62 }
0x1bc4   :  { %v3148_v0 = vmul.f32 0.7978846, %v3146_v63 }
0x1bc5   :  { %12158 = vtanh.f32 %v3149_v59 }
0x1bc6   :  { %12160 = vtanh.f32 %v3148_v0 }
0x1bcf   :  { %v12159_v36 = vpop.eup %12158 }
0x1bd0   :  { %v12161_v10 = vpop.eup %12160  ;;  %v3153_v8 = vadd.f32 1.0, %v12159_v36  ;;  %v3385_v36 = vld [vmem:[#allocation5 + $0x618] sm:$0xff] }
0x1bd1   :  { %v3152_v2 = vadd.f32 1.0, %v12161_v10  ;;  %v3386_v10 = vld [vmem:[#allocation5 + $0x620] sm:$0xff] }
0x1bd2   :  { %v3155_v5 = vmul.f32 %v3153_v8, %v3139_v3  ;;  %v3387_v8 = vld [vmem:[#allocation5 + $0x628] sm:$0xff] }
0x1bd3   :  { %v3154_v4 = vmul.f32 %v3152_v2, %v3138_v1  ;;  %v3509_v1 = vld [vmem:[#allocation5 + $0x650] sm:$0xff] }
0x1bd5   :  { %10731 = vmatprep.mubr.f32.mxu1 %v3154_v4 }
0x1bd6   :  { %10732 = vmatmul.mubr.f32.vlgmr.msra.gmra.mrb[22].mxu1 %v3155_v5 }
0x1ca9   :  { %v10733_v7 = vpop.f32.mrb[22].mxu1 }
0x1caa   :  { %v3243_v9 = vpop.f32.mrb[23].mxu1  ;;  %v3249_v43 = vadd.f32 %v10733_v7, %v9809_v6 }
0x1cab   :  { %v3244_v11 = vadd.f32 %v9809_v6, %v3243_v9 }
0x1cac   :  { %v3253_v14 = vadd.f32 %v3249_v43, %v12740_v27  ;;  %v3295_v27 = vld [vmem:[#allocation5 + $0x288] sm:$0xff] }
0x1cad   :  { %v3252_v46 = vadd.f32 %v3244_v11, %v12736_v25  ;;  %v11445_v34 = vpack.c.bf16 %v3295_v27, %v3294_v31 }
0x1cae   :  { %v3257_v17 = vsel %vm148_vm1, %v3253_v14, 0.0 }
0x1caf   :  { %v3254_v12 = vsel %vm148_vm1, %v3252_v46, 0.0  ;;  %11446 = vmatprep.subr.bf16.mxu0 %v11445_v34 }
0x1cb0   :  { %3255 = vadd.xlane.f32.xlu0 %v3254_v12  ;;  %11448 = vmatpush3.bf16.msra.mxu0 %v11445_v34 }
0x1cb1   :  { %11450 = vmatprep.subr.bf16.mxu0 %v11449_v37 }
0x1cb4   :  { %3258 = vadd.xlane.f32.xlu0 %v3257_v17  ;;  %11452 = vmatpush3.bf16.msra.mxu0 %v11449_v37  ;;  %v3604_v17 = vld [vmem:[#allocation5 + $0x2a8] sm:$0xff] }
0x1d3d   :  { %v3256_v18 = vpop.xlane.xlu0 %3255 }
0x1d3e   :  { %v3260_v19 = vmul.f32 0.03125, %v3256_v18  ;;  %v3605_v18 = vld [vmem:[#allocation5 + $0x2b0] sm:$0xff] }
0x1d40   :  { %v3262_v22 = vsub.f32 %v3252_v46, %v3260_v19 }
0x1d41   :  { %v3259_v23 = vpop.xlane.xlu0 %3258 }
0x1d42   :  { %v3261_v30 = vmul.f32 0.03125, %v3259_v23  ;;  %v3264_v29 = vmul.f32 %v3262_v22, %v3262_v22  ;;  %v11465_v23 = vpack.c.bf16 %v3605_v18, %v3604_v17 }
0x1d44   :  { %v3263_v24 = vsub.f32 %v3253_v14, %v3261_v30  ;;  %v3266_v26 = vsel %vm148_vm1, %v3264_v29, 0.0  ;;  %v3510_v30 = vld [vmem:[#allocation5 + $0x658] sm:$0xff] }
0x1d45   :  { %3267 = vadd.xlane.f32.xlu0 %v3266_v26  ;;  %v3606_v29 = vld [vmem:[#allocation5 + $0x2b8] sm:$0xff] }
0x1d46   :  { %v3265_v28 = vmul.f32 %v3263_v24, %v3263_v24 }
0x1d48   :  { %v3269_v25 = vsel %vm148_vm1, %v3265_v28, 0.0  ;;  %v3694_v28 = vld [vmem:[#allocation5 + $0x2d0] sm:$0xff] }
0x1d49   :  { %3270 = vadd.xlane.f32.xlu1 %v3269_v25  ;;  %v3695_v25 = vld [vmem:[#allocation5 + $0x2d8] sm:$0xff] }
0x1d4a   :  { %v11473_v31 = vpack.c.bf16 %v3695_v25, %v3694_v28 }
0x1d5a   :  { %3399 = vperm.xlu1 %11907, %v3389_v33  }
0x1d5b   :  { %3394 = vperm.xlu0 %11906, %v3388_v35  }
0x1d5e   :  { %3404 = vperm.xlu1 %11907, %v3390_v54  }
0x1d62   :  { %3409 = vperm.xlu1 %11907, %v3391_v56  }
0x1d66   :  { %3515 = vperm.xlu1 %11907, %v3511_v57  }
0x1d6a   :  { %3520 = vperm.xlu1 %11907, %v3512_v58  }
0x1dd2   :  { %v3268_v38 = vpop.xlane.xlu0 %3267 }
0x1dd3   :  { %v3272_v13 = vmul.f32 0.03125, %v3268_v38 }
0x1dd5   :  { %v3274_v39 = vadd.f32 1e-06, %v3272_v13  ;;  %v3696_v13 = vld [vmem:[#allocation5 + $0x2e0] sm:$0xff] }
0x1dd6   :  { %v3271_v41 = vpop.xlane.xlu1 %3270 }
0x1dd7   :  { %12162 = vrsqrt.f32 %v3274_v39  ;;  %v3273_v42 = vmul.f32 0.03125, %v3271_v41  ;;  %v3697_v39 = vld [vmem:[#allocation5 + $0x2e8] sm:$0xff] }
0x1dd8   :  { %v11477_v41 = vpack.c.bf16 %v3697_v39, %v3696_v13 }
0x1dd9   :  { %v3275_v44 = vadd.f32 1e-06, %v3273_v42  ;;  %v9821_v42 = vld [vmem:[#allocation5 + $0x2c8] ss:$0 sm:$0xff] }
0x1dda   :  { %v3400_v2 = vpop.permute.xlu1 %3399  ;;  %v3395_v4 = vpop.permute.xlu0 %3394 }
0x1ddb   :  { %12164 = vrsqrt.f32 %v3275_v44 }
0x1dde   :  { %v3405_v3 = vpop.permute.xlu1 %3404 }
0x1de1   :  { %v12163_v45 = vpop.eup %12162 }
0x1de2   :  { %v3278_v48 = vmul.f32 %v12163_v45, %v3262_v22  ;;  %v3410_v43 = vpop.permute.xlu1 %3409 }
0x1de4   :  { %v3285_v21 = vmul.f32 %v9810_v47, %v3278_v48 }
0x1de5   :  { %v12165_v49 = vpop.eup %12164 }
0x1de6   :  { %v3279_v50 = vmul.f32 %v12165_v49, %v3263_v24  ;;  %v3292_v51 = vadd.f32 %v9811_v16, %v3285_v21  ;;  %v3607_v24 = vld [vmem:[#allocation5 + $0x2c0] sm:$0xff]  ;;  %v3516_v27 = vpop.permute.xlu1 %3515 }
0x1de7   :  { %v11469_v26 = vpack.c.bf16 %v3607_v24, %v3606_v29 }
0x1de8   :  { %v3286_v53 = vmul.f32 %v9810_v47, %v3279_v50  ;;  %10742 = vmatprep.mubr.msk.f32.mxu0 %vm148_vm1, %v3292_v51 }
0x1dea   :  { %v3293_v20 = vadd.f32 %v9811_v16, %v3286_v53  ;;  %v3521_v15 = vpop.permute.xlu1 %3520  ;;  %v9824_v16 = vld [vmem:[#allocation5 + $0x2f0] ss:$0 sm:$0xff] }
0x1dec   :  { %10743 = vmatmul.mubr.msk.f32.vlgmr.msra.gmra.mrb[28].mxu0 %vm148_vm1, %v3293_v20 }
0x1ded   :  { %10749 = vmatprep.mubr.msk.f32.mxu0 %vm53_vm0, %v3384_v55 }
0x1ebf   :  { %v10744_v61 = vpop.f32.mrb[28].mxu0 }
0x1ec0   :  { %v3381_v62 = vadd.f32 %v10744_v61, %v9812_v60  ;;  %v3375_v63 = vpop.f32.mrb[29].mxu0 }
0x1ec1   :  { %v3376_v59 = vadd.f32 %v9812_v60, %v3375_v63 }
0x1ec3   :  { %v11453_v0 = vpack.c.bf16 %v3381_v62, %v3376_v59 }
0x1ec5   :  { %11454 = vmatprep.subr.bf16.mxu0 %v11453_v0 }
0x1ec6   :  { %11456 = vmatpush3.bf16.msra.mxu0 %v11453_v0 }
0x1ec9   :  { %10750 = vmatmul.mubr.msk.f32.vlgmr.msra.gmra.mrb[30].mxu0 %vm53_vm0, %v3385_v36 }
0x1eca   :  { %10752 = vmatprep.mubr.msk.f32.mxu0 %vm53_vm0, %v3386_v10 }
0x1ecd   :  { %10753 = vmatmul.mubr.msk.f32.gmra.mrb[32].mxu0 %vm53_vm0, %v3387_v8  ;;  %v12810_v8 = vld [vmem:[#allocation5 + $0x698] sm:$0xff] }
0x1ece   :  { %10763 = vmatprep.mubr.msk.f32.mxu0 %vm148_vm1, %v3509_v1 }
0x1f9c   :  { %v10751_v5 = vpop.f32.mrb[30].mxu0 }
0x1f9d   :  { %v3496_v6 = vadd.f32 %v10751_v5, %v3400_v2  ;;  %v3490_v7 = vpop.f32.mrb[31].mxu0 }
0x1f9e   :  { %v3491_v9 = vadd.f32 %v3490_v7, %v3395_v4 }
0x1fa0   :  { %v11457_v11 = vpack.c.bf16 %v3496_v6, %v3491_v9  ;;  %v10754_v46 = vpop.f32.mrb[32].mxu0 }
0x1fa1   :  { %v3506_v12 = vadd.f32 %v10754_v46, %v3410_v43  ;;  %v3500_v14 = vpop.f32.mrb[33].mxu0 }
0x1fa2   :  { %v3501_v19 = vadd.f32 %v3500_v14, %v3405_v3  ;;  %11458 = vmatprep.subr.bf16.mxu0 %v11457_v11  ;;  %v12812_v3 = vld [vmem:[#allocation5 + $0x690] sm:$0xff] }
0x1fa3   :  { %11460 = vmatpush3.bf16.msra.mxu0 %v11457_v11 }
0x1fa4   :  { %v11461_v22 = vpack.c.bf16 %v3506_v12, %v3501_v19 }
0x1fa6   :  { %11462 = vmatprep.subr.bf16.mxu0 %v11461_v22 }
0x1fa7   :  { %11464 = vmatpush3.bf16.msra.mxu0 %v11461_v22 }
0x1fa8   :  { %11466 = vmatprep.subr.bf16.mxu0 %v11465_v23 }
0x1faa   :  { %10764 = vmatmul.mubr.msk.f32.vlgmr.msra.gmra.mrb[34].mxu0 %vm148_vm1, %v3510_v30 }
0x1fab   :  { %11468 = vmatpush3.bf16.msra.mxu0 %v11465_v23 }
0x1fac   :  { %11470 = vmatprep.subr.bf16.mxu0 %v11469_v26 }
0x1faf   :  { %11472 = vmatpush3.bf16.msra.mxu0 %v11469_v26 }
0x1fb0   :  { %11474 = vmatprep.subr.bf16.mxu0 %v11473_v31 }
0x207d   :  { %v10765_v32 = vpop.f32.mrb[34].mxu0 }
0x207e   :  { %v3595_v34 = vpop.f32.mrb[35].mxu0  ;;  %v3601_v38 = vadd.f32 %v10765_v32, %v3521_v15 }
0x207f   :  { %v3596_v37 = vadd.f32 %v3595_v34, %v3516_v27 }
0x2081   :  { %10774 = vmatprep.mubr.msk.f32.mxu0 %vm148_vm1, %v3596_v37 }
0x2082   :  { %10775 = vmatmul.mubr.msk.f32.vlgmr.msra.gmra.mrb[36].mxu0 %vm148_vm1, %v3601_v38 }
0x2083   :  { %11476 = vmatpush3.bf16.msra.mxu0 %v11473_v31 }
0x2084   :  { %11478 = vmatprep.subr.bf16.mxu0 %v11477_v41 }
0x2087   :  { %11480 = vmatpush3.bf16.msra.mxu0 %v11477_v41 }
0x2155   :  { %v10776_v44 = vpop.f32.mrb[36].mxu0 }
0x2156   :  { %v3685_v45 = vpop.f32.mrb[37].mxu0  ;;  %v12762_v48 = vadd.f32 %v10776_v44, %v9821_v42 }
0x2157   :  { %v12760_v47 = vadd.f32 %v9821_v42, %v3685_v45 }
0x2159   :  { %10785 = vmatprep.mubr.msk.f32.mxu0 %vm148_vm1, %v12760_v47 }
0x215a   :  { %10786 = vmatmul.mubr.msk.f32.vlgmr.msra.gmra.mrb[38].mxu0 %vm148_vm1, %v12762_v48 }
0x222d   :  { %v10787_v21 = vpop.f32.mrb[38].mxu0 }
0x222e   :  { %v12768_v49 = vadd.f32 %v10787_v21, %v9824_v16  ;;  %v3775_v50 = vpop.f32.mrb[39].mxu0 }
0x222f   :  { %v12770_v51 = vadd.f32 %v9824_v16, %v3775_v50 }
0x2230   :  { %3992 = vrot.lane.b32.xlu0 %v12768_v49, %s12413_s8 }
0x2231   :  { %10792 = vmatprep.mubr.msk.f32.mxu1 %vm330_vm2, %v12770_v51  ;;  %v12778_v53 = vpack.i.bf16 %v12768_v49, %v12770_v51 }
0x2233   :  { %11909 = vrot.lane.b32.xlu1 %v12778_v53, %s12410_s1 }
0x2234   :  { %4356 = vrot.lane.b32.xlu0 %v12770_v51, %s12415_s10 }
0x2237   :  { %11914 = vrot.lane.b32.xlu1 %v12778_v53, %s12412_s7 }
0x223b   :  { %3990 = vrot.lane.b32.xlu1 %v12770_v51, %s12413_s8 }
0x223f   :  { %11919 = vrot.lane.b32.xlu1 %v12778_v53, %s12414_s9 }
0x2243   :  { %4358 = vrot.lane.b32.xlu1 %v12768_v49, %s12415_s10 }
0x22a2   :  { %v3993_v63 = vpop.permute.xlu0 %3992 }
0x22a5   :  { %v11910_v20 = vpop.permute.xlu1 %11909 }
0x22a6   :  { %v11912_v55 = vunpack.i.h.bf16 %v11910_v20  ;;  %v11911_v33 = vunpack.i.l.bf16 %v11910_v20  ;;  %v4357_v0 = vpop.permute.xlu0 %4356 }
0x22a8   :  { %v11481_v52 = vpack.c.bf16 %v11912_v55, %v11911_v33 }
0x22a9   :  { %v11915_v35 = vpop.permute.xlu1 %11914 }
0x22aa   :  { %v11917_v54 = vunpack.i.h.bf16 %v11915_v35  ;;  %v11916_v56 = vunpack.i.l.bf16 %v11915_v35  ;;  %11483 = vmatprep.subr.msk.bf16.mxu1 %vm12494_vm3, %v11481_v52 }
0x22ab   :  { %11486 = vmatpush3.bf16.xpose.msk.msra.mxu1 %vm12494_vm3, %v11481_v52 }
0x22ac   :  { %v11491_v57 = vpack.c.bf16 %v11917_v54, %v11916_v56 }
0x22ad   :  { %v3991_v58 = vpop.permute.xlu1 %3990 }
0x22ae   :  { %11493 = vmatprep.subr.msk.bf16.mxu1 %vm12494_vm3, %v11491_v57 }
0x22b1   :  { %v11920_v60 = vpop.permute.xlu1 %11919 }
0x22b2   :  { %v11922_v61 = vunpack.i.h.bf16 %v11920_v60  ;;  %v11921_v62 = vunpack.i.l.bf16 %v11920_v60  ;;  %10793 = vmatmul.mubr.msk.f32.vlgmr.msra.gmra.mrb[24].mxu1 %vm330_vm2, %v12768_v49 }
0x22b3   :  { %11496 = vmatpush3.bf16.xpose.msk.msra.mxu1 %vm12494_vm3, %v11491_v57  ;;  %10806 = vmatprep.mubr.msk.f32.mxu1 %vm330_vm2, %v3991_v58 }
0x22b4   :  { %v11501_v59 = vpack.c.bf16 %v11922_v61, %v11921_v62 }
0x22b5   :  { %v4359_v36 = vpop.permute.xlu1 %4358 }
0x22b6   :  { %11503 = vmatprep.subr.msk.bf16.mxu1 %vm12494_vm3, %v11501_v59 }
0x22ba   :  { %10807 = vmatmul.mubr.msk.f32.vlgmr.msra.gmra.mrb[26].mxu1 %vm330_vm2, %v3993_v63 }
0x22bb   :  { %11506 = vmatpush3.bf16.xpose.msk.msra.mxu1 %vm12494_vm3, %v11501_v59  ;;  %10830 = vmatprep.mubr.msk.f32.mxu1 %vm330_vm2, %v4357_v0 }
0x22c2   :  { %10831 = vmatmul.mubr.msk.f32.vlgmr.msra.gmra.mrb[28].mxu1 %vm330_vm2, %v4359_v36 }
0x2385   :  { %v10794_v10 = vpop.f32.mrb[24].mxu1 }
0x2386   :  { %v3878_v1 = vmul.f32 0.35355338, %v10794_v10  ;;  %v3868_v2 = vpop.f32.mrb[25].mxu1 }
0x2387   :  { %v3877_v4 = vmul.f32 0.35355338, %v3868_v2 }
0x2388   :  { %v3880_v5 = vadd.f32 %v3878_v1, %v12810_v8 }
0x2389   :  { %v3879_v6 = vadd.f32 %v3877_v4, %v12812_v3 }
0x238a   :  { %v3884_v7 = vsel %vm53_vm0, %v3880_v5, -inf }
0x238b   :  { %3885 = vmax.xlane.f32.xlu1 %v3884_v7  ;;  %v3881_v9 = vsel %vm53_vm0, %v3879_v6, -inf }
0x238c   :  { %3882 = vmax.xlane.f32.xlu0 %v3881_v9 }
0x238d   :  { %v10808_v43 = vpop.f32.mrb[26].mxu1 }
0x238e   :  { %v4072_v11 = vpop.f32.mrb[27].mxu1  ;;  %v4082_v46 = vmul.f32 0.35355338, %v10808_v43 }
0x238f   :  { %v4081_v12 = vmul.f32 0.35355338, %v4072_v11 }
0x2390   :  { %v4084_v18 = vadd.f32 %v4082_v46, %v12810_v8 }
0x2391   :  { %v4083_v14 = vadd.f32 %v4081_v12, %v12812_v3 }
0x2392   :  { %v4088_v23 = vsel %vm53_vm0, %v4084_v18, -inf }
0x2393   :  { %v4085_v17 = vsel %vm53_vm0, %v4083_v14, -inf }
0x2394   :  { %4086 = vmax.xlane.f32.xlu0 %v4085_v17 }
0x2395   :  { %v10832_v19 = vpop.f32.mrb[28].mxu1 }
0x2396   :  { %v4438_v22 = vpop.f32.mrb[29].mxu1  ;;  %v4448_v21 = vmul.f32 0.35355338, %v10832_v19 }
0x2397   :  { %v4447_v20 = vmul.f32 0.35355338, %v4438_v22 }
0x2398   :  { %4089 = vmax.xlane.f32.xlu0 %v4088_v23  ;;  %v4450_v50 = vadd.f32 %v4448_v21, %v12810_v8 }
0x2399   :  { %v4449_v33 = vadd.f32 %v4447_v20, %v12812_v3 }
0x239a   :  { %v4454_v55 = vsel %vm53_vm0, %v4450_v50, -inf }
0x239b   :  { %v4451_v52 = vsel %vm53_vm0, %v4449_v33, -inf }
0x2418   :  { %v3886_v30 = vpop.xlane.xlu1 %3885 }
0x2419   :  { %v3888_v29 = vsub.f32 %v3880_v5, %v3886_v30  ;;  %v3883_v24 = vpop.xlane.xlu0 %3882 }
0x241a   :  { %v3887_v26 = vsub.f32 %v3879_v6, %v3883_v24 }
0x241b   :  { %v3891_v28 = vmul.f32 1.442695, %v3888_v29 }
0x241c   :  { %v3889_v25 = vmul.f32 1.442695, %v3887_v26  ;;  %v3785_v26 = vld [vmem:[#allocation5 + $0x300] sm:$0xff] }
0x241d   :  { %12166 = vpow2.f32 %v3891_v28  ;;  %v3784_v28 = vld [vmem:[#allocation5 + $0x2f8] sm:$0xff] }
0x241e   :  { %12168 = vpow2.f32 %v3889_v25 }
0x2421   :  { %v4087_v31 = vpop.xlane.xlu0 %4086 }
0x2422   :  { %v4091_v27 = vsub.f32 %v4083_v14, %v4087_v31 }
0x2424   :  { %v4093_v32 = vmul.f32 1.442695, %v4091_v27 }
0x2425   :  { %v4090_v34 = vpop.xlane.xlu0 %4089 }
0x2426   :  { %12170 = vpow2.f32 %v4093_v32  ;;  %v4092_v15 = vsub.f32 %v4084_v18, %v4090_v34 }
0x2427   :  { %v12167_v37 = vpop.eup %12166 }
0x2428   :  { %v12169_v38 = vpop.eup %12168  ;;  %v4095_v13 = vmul.f32 1.442695, %v4092_v15  ;;  %v3896_v39 = vsel %vm53_vm0, %v12167_v37, 0.0 }
0x2429   :  { %3897 = vadd.xlane.f32.xlu1 %v3896_v39  ;;  %v3893_v41 = vsel %vm53_vm0, %v12169_v38, 0.0 }
0x242a   :  { %12172 = vpow2.f32 %v4095_v13  ;;  %3894 = vadd.xlane.f32.xlu0 %v3893_v41 }
0x2430   :  { %v12171_v42 = vpop.eup %12170 }
0x2431   :  { %v4097_v44 = vsel %vm53_vm0, %v12171_v42, 0.0 }
0x2432   :  { %4098 = vadd.xlane.f32.xlu0 %v4097_v44 }
0x2434   :  { %v12173_v45 = vpop.eup %12172 }
0x2435   :  { %v4100_v16 = vsel %vm53_vm0, %v12173_v45, 0.0 }
0x2436   :  { %4101 = vadd.xlane.f32.xlu1 %v4100_v16 }
0x2447   :  { %11929 = vrot.lane.b32.xlu1 %v12778_v53, %s12416_s11 }
0x2448   :  { %11924 = vrot.lane.b32.xlu0 %v12778_v53, %s12411_s6 }
0x244b   :  { %11934 = vrot.lane.b32.xlu1 %v12778_v53, %s12417_s12 }
0x244c   :  { %4645 = vrot.lane.b32.xlu0 %v12768_v49, %s12418_s13 }
0x244f   :  { %4643 = vrot.lane.b32.xlu1 %v12770_v51, %s12418_s13 }
0x246b   :  { %4455 = vmax.xlane.f32.xlu0 %v4454_v55  ;;  %v3786_v55 = vld [vmem:[#allocation5 + $0x308] sm:$0xff] }
0x2473   :  { %4452 = vmax.xlane.f32.xlu1 %v4451_v52 }
0x2484   :  { %11939 = vrot.lane.b32.xlu1 %v12778_v53, %s12419_s14 }
0x2488   :  { %11944 = vrot.lane.b32.xlu1 %v12778_v53, %s12420_s15 }
0x24b6   :  { %v3898_v51 = vpop.xlane.xlu1 %3897 }
0x24b7   :  { %v3895_v49 = vpop.xlane.xlu0 %3894 }
0x24b8   :  { %12174 = vrcp.f32 %v3895_v49 }
0x24b9   :  { %12176 = vrcp.f32 %v3898_v51 }
0x24bf   :  { %v4099_v35 = vpop.xlane.xlu0 %4098 }
0x24c0   :  { %12178 = vrcp.f32 %v4099_v35 }
0x24c2   :  { %v12175_v54 = vpop.eup %12174 }
0x24c3   :  { %v4102_v56 = vpop.xlane.xlu1 %4101  ;;  %v11925_v57 = vpop.permute.xlu0 %11924  ;;  %v3901_v58 = vmul.f32 %v12175_v54, %v12169_v38 }
0x24c4   :  { %12180 = vrcp.f32 %v4102_v56  ;;  %v11927_v60 = vunpack.i.h.bf16 %v11925_v57  ;;  %v11926_v61 = vunpack.i.l.bf16 %v11925_v57  ;;  %v12177_v63 = vpop.eup %12176 }
0x24c5   :  { %10799 = vmatprep.mubr.msk.f32.mxu0 %vm53_vm0, %v3901_v58  ;;  %v3902_v10 = vmul.f32 %v12177_v63, %v12167_v37 }
0x24c6   :  { %v11487_v62 = vpack.c.bf16 %v11927_v60, %v11926_v61 }
0x24c7   :  { %v11930_v59 = vpop.permute.xlu1 %11929  ;;  %v4646_v46 = vpop.permute.xlu0 %4645 }
0x24c8   :  { %v11932_v0 = vunpack.i.h.bf16 %v11930_v59  ;;  %v11931_v53 = vunpack.i.l.bf16 %v11930_v59  ;;  %11488 = vmatprep.subr.bf16.mxu0 %v11487_v62 }
0x24c9   :  { %11490 = vmatpush3.bf16.msra.mxu0 %v11487_v62 }
0x24ca   :  { %v12179_v36 = vpop.eup %12178  ;;  %v11497_v1 = vpack.c.bf16 %v11932_v0, %v11931_v53 }
0x24cb   :  { %v11935_v2 = vpop.permute.xlu1 %11934  ;;  %v4105_v4 = vmul.f32 %v12179_v36, %v12171_v42 }
0x24cc   :  { %v11937_v5 = vunpack.i.h.bf16 %v11935_v2  ;;  %v11936_v6 = vunpack.i.l.bf16 %v11935_v2  ;;  %10800 = vmatmul.mubr.msk.f32.vlgmr.msra.gmra.mrb[40].mxu0 %vm53_vm0, %v3902_v10  ;;  %11498 = vmatprep.subr.bf16.mxu0 %v11497_v1 }
0x24cd   :  { %11500 = vmatpush3.bf16.msra.mxu0 %v11497_v1  ;;  %10813 = vmatprep.mubr.msk.f32.mxu0 %vm53_vm0, %v4105_v4  ;;  %v3787_v4 = vld [vmem:[#allocation5 + $0x310] sm:$0xff] }
0x24ce   :  { %v12181_v7 = vpop.eup %12180  ;;  %v11511_v9 = vpack.c.bf16 %v11937_v5, %v11936_v6  ;;  %10816 = vmatprep.subr.mxu0 %v3785_v26 }
0x24cf   :  { %v4644_v43 = vpop.permute.xlu1 %4643  ;;  %v4106_v11 = vmul.f32 %v12181_v7, %v12173_v45 }
0x24d0   :  { %11513 = vmatprep.subr.msk.bf16.mxu1 %vm12494_vm3, %v11511_v9  ;;  %10849 = vmatprep.mubr.msk.f32.mxu1 %vm330_vm2, %v4644_v43 }
0x24d1   :  { %10814 = vmatmul.mubr.msk.f32.vlgmr.msra.gmra.mrb[42].mxu0 %vm53_vm0, %v4106_v11  ;;  %11516 = vmatpush3.bf16.xpose.msk.msra.mxu1 %vm12494_vm3, %v11511_v9 }
0x24d2   :  { %10817 = vmatpush3.msra.mxu0 %v3785_v26  ;;  %v4979_v26 = vld [vmem:[#allocation5 + $0x330] sm:$0xff] }
0x24d3   :  { %10821 = vmatprep.subr.mxu0 %v3784_v28 }
0x24d8   :  { %10850 = vmatmul.mubr.msk.f32.vlgmr.msra.gmra.mrb[30].mxu1 %vm330_vm2, %v4646_v46 }
0x24f8   :  { %v4456_v12 = vpop.xlane.xlu0 %4455 }
0x24f9   :  { %v4458_v14 = vsub.f32 %v4450_v50, %v4456_v12 }
0x24fb   :  { %v4461_v19 = vmul.f32 1.442695, %v4458_v14  ;;  %v9859_v14 = vld [vmem:[#allocation5 + $0x318] ss:$0 sm:$0xff] }
0x2500   :  { %v4453_v17 = vpop.xlane.xlu1 %4452 }
0x2501   :  { %v4457_v18 = vsub.f32 %v4449_v33, %v4453_v17 }
0x2503   :  { %v4459_v22 = vmul.f32 1.442695, %v4457_v18 }
0x2504   :  { %v11940_v27 = vpop.permute.xlu1 %11939 }
0x2505   :  { %12182 = vpow2.f32 %v4459_v22  ;;  %v11942_v15 = vunpack.i.h.bf16 %v11940_v27  ;;  %v11941_v37 = vunpack.i.l.bf16 %v11940_v27 }
0x2506   :  { %12184 = vpow2.f32 %v4461_v19 }
0x2507   :  { %v11507_v39 = vpack.c.bf16 %v11942_v15, %v11941_v37 }
0x2508   :  { %v11945_v44 = vpop.permute.xlu1 %11944 }
0x2509   :  { %v11947_v33 = vunpack.i.h.bf16 %v11945_v44  ;;  %v11946_v52 = vunpack.i.l.bf16 %v11945_v44 }
0x250b   :  { %v11517_v56 = vpack.c.bf16 %v11947_v33, %v11946_v52  ;;  %v9862_v52 = vld [vmem:[#allocation5 + $0x350] ss:$0 sm:$0xff] }
0x250f   :  { %v12183_v23 = vpop.eup %12182 }
0x2510   :  { %v4463_v30 = vsel %vm53_vm0, %v12183_v23, 0.0  ;;  %v12185_v29 = vpop.eup %12184 }
0x2511   :  { %4464 = vadd.xlane.f32.xlu0 %v4463_v30  ;;  %v4466_v24 = vsel %vm53_vm0, %v12185_v29, 0.0 }
0x2515   :  { %4467 = vadd.xlane.f32.xlu0 %v4466_v24 }
0x259e   :  { %v4465_v25 = vpop.xlane.xlu0 %4464 }
0x259f   :  { %v10801_v31 = vpop.f32.mrb[40].mxu0  ;;  %12186 = vrcp.f32 %v4465_v25 }
0x25a0   :  { %v3981_v32 = vpop.f32.mrb[41].mxu0 }
0x25a2   :  { %v4468_v34 = vpop.xlane.xlu0 %4467 }
0x25a3   :  { %12188 = vrcp.f32 %v4468_v34 }
0x25a4   :  { %v10815_v38 = vpop.f32.mrb[42].mxu0 }
0x25a5   :  { %v4185_v13 = vpop.f32.mrb[43].mxu0 }
0x25a6   :  { %10818 = vmatprep.mubr.msk.f32.mxu0 %vm330_vm2, %v4185_v13 }
0x25a7   :  { %10819 = vmatmul.mubr.msk.f32.vlgmr.msra.gmra.mrb[44].mxu0 %vm330_vm2, %v10815_v38 }
0x25a8   :  { %10822 = vmatpush3.msra.mxu0 %v3784_v28  ;;  %10823 = vmatprep.mubr.msk.f32.mxu0 %vm330_vm2, %v3981_v32  ;;  %v4980_v28 = vld [vmem:[#allocation5 + $0x338] sm:$0xff] }
0x25a9   :  { %11508 = vmatprep.subr.bf16.mxu0 %v11507_v39  ;;  %v12187_v41 = vpop.eup %12186  ;;  %v11948_v25 = vpack.i.bf16 %v4980_v28, %v4979_v26 }
0x25aa   :  { %v4471_v20 = vmul.f32 %v12187_v41, %v12183_v23 }
0x25ab   :  { %v10851_v42 = vpop.f32.mrb[30].mxu1 }
0x25ac   :  { %v4725_v45 = vpop.f32.mrb[31].mxu1  ;;  %v4735_v16 = vmul.f32 0.35355338, %v10851_v42 }
0x25ad   :  { %v4734_v21 = vmul.f32 0.35355338, %v4725_v45  ;;  %v12189_v50 = vpop.eup %12188 }
0x25ae   :  { %v4737_v51 = vadd.f32 %v4735_v16, %v12810_v8  ;;  %v4472_v54 = vmul.f32 %v12189_v50, %v12185_v29  ;;  %v4982_v50 = vld [vmem:[#allocation5 + $0x348] sm:$0xff] }
0x25af   :  { %v4736_v49 = vadd.f32 %v4734_v21, %v12812_v3  ;;  %10824 = vmatmul.mubr.msk.f32.vlgmr.msra.gmra.mrb[44].mxu0 %vm330_vm2, %v10801_v31  ;;  %v4981_v21 = vld [vmem:[#allocation5 + $0x340] sm:$0xff] }
0x25b0   :  { %11510 = vmatpush3.bf16.msra.mxu0 %v11507_v39  ;;  %10837 = vmatprep.mubr.msk.f32.mxu0 %vm53_vm0, %v4471_v20  ;;  %v4741_v57 = vsel %vm53_vm0, %v4737_v51, -inf  ;;  %v11953_v20 = vpack.i.bf16 %v4982_v50, %v4981_v21  ;;  %v11525_v33 = vpack.c.bf16 %v4982_v50, %v4981_v21 }
0x25b1   :  { %v4738_v35 = vsel %vm53_vm0, %v4736_v49, -inf  ;;  %10840 = vmatprep.subr.mxu0 %v3786_v55 }
0x25b2   :  { %4739 = vmax.xlane.f32.xlu0 %v4738_v35 }
0x25b3   :  { %10838 = vmatmul.mubr.msk.f32.vlgmr.msra.gmra.mrb[46].mxu0 %vm53_vm0, %v4472_v54 }
0x25b4   :  { %10841 = vmatpush3.msra.mxu0 %v3786_v55  ;;  %v11521_v55 = vpack.c.bf16 %v4980_v28, %v4979_v26 }
0x25b5   :  { %11518 = vmatprep.subr.bf16.mxu0 %v11517_v56 }
0x25b6   :  { %4742 = vmax.xlane.f32.xlu0 %v4741_v57  ;;  %11522 = vmatprep.subr.bf16.mxu1 %v11521_v55 }
0x25b7   :  { %11524 = vmatpush3.bf16.msra.mxu1 %v11521_v55 }
0x25b8   :  { %11526 = vmatprep.subr.bf16.mxu1 %v11525_v33 }
0x25bb   :  { %11528 = vmatpush3.bf16.msra.mxu1 %v11525_v33 }
0x263f   :  { %v4740_v58 = vpop.xlane.xlu0 %4739 }
0x2640   :  { %v4744_v60 = vsub.f32 %v4736_v49, %v4740_v58 }
0x2642   :  { %v4746_v61 = vmul.f32 1.442695, %v4744_v60 }
0x2643   :  { %v4743_v62 = vpop.xlane.xlu0 %4742 }
0x2644   :  { %12190 = vpow2.f32 %v4746_v61  ;;  %v4745_v63 = vsub.f32 %v4737_v51, %v4743_v62 }
0x2646   :  { %v4748_v59 = vmul.f32 1.442695, %v4745_v63 }
0x2648   :  { %12192 = vpow2.f32 %v4748_v59 }
0x264e   :  { %v12191_v0 = vpop.eup %12190 }
0x264f   :  { %v4750_v53 = vsel %vm53_vm0, %v12191_v0, 0.0 }
0x2650   :  { %4751 = vadd.xlane.f32.xlu0 %v4750_v53 }
0x2652   :  { %v12193_v36 = vpop.eup %12192 }
0x2653   :  { %v4753_v10 = vsel %vm53_vm0, %v12193_v36, 0.0 }
0x2654   :  { %4754 = vadd.xlane.f32.xlu0 %v4753_v10 }
0x2686   :  { %v10839_v1 = vpop.f32.mrb[46].mxu0 }
0x2687   :  { %v4551_v2 = vpop.f32.mrb[47].mxu0 }
0x2688   :  { %10842 = vmatprep.mubr.msk.f32.mxu0 %vm330_vm2, %v4551_v2  ;;  %v9861_v2 = vld [vmem:[#allocation5 + $0x328] ss:$0 sm:$0xff] }
0x2689   :  { %10843 = vmatmul.mubr.msk.f32.vlgmr.msra.gmra.mrb[44].mxu0 %vm330_vm2, %v10839_v1 }
0x268a   :  { %11520 = vmatpush3.bf16.msra.mxu0 %v11517_v56 }
0x268b   :  { %10859 = vmatprep.subr.mxu0 %v3787_v4 }
0x26dd   :  { %v4752_v5 = vpop.xlane.xlu0 %4751 }
0x26de   :  { %12194 = vrcp.f32 %v4752_v5 }
0x26e1   :  { %v4755_v6 = vpop.xlane.xlu0 %4754 }
0x26e2   :  { %12196 = vrcp.f32 %v4755_v6 }
0x26e8   :  { %v12195_v7 = vpop.eup %12194 }
0x26e9   :  { %v4758_v9 = vmul.f32 %v12195_v7, %v12191_v0  ;;  %v9860_v0 = vld [vmem:[#allocation5 + $0x320] ss:$0 sm:$0xff] }
0x26eb   :  { %10856 = vmatprep.mubr.msk.f32.mxu0 %vm53_vm0, %v4758_v9 }
0x26ec   :  { %v12197_v43 = vpop.eup %12196 }
0x26ed   :  { %v4759_v11 = vmul.f32 %v12197_v43, %v12193_v36 }
0x26ef   :  { %10857 = vmatmul.mubr.msk.f32.vlgmr.msra.gmra.mrb[48].mxu0 %vm53_vm0, %v4759_v11 }
0x26f0   :  { %10860 = vmatpush3.msra.mxu0 %v3787_v4 }
0x27c2   :  { %v10858_v46 = vpop.f32.mrb[48].mxu0 }
0x27c3   :  { %v4838_v12 = vpop.f32.mrb[49].mxu0 }
0x27c4   :  { %10861 = vmatprep.mubr.msk.f32.mxu0 %vm330_vm2, %v4838_v12 }
0x27c5   :  { %10862 = vmatmul.mubr.msk.f32.vlgmr.msra.gmra.mrb[44].mxu0 %vm330_vm2, %v10858_v46 }
0x27c6   :  { %10883 = vmatprep.mubr.msk.f32.mxu0 %vm148_vm1, %v12760_v47 }
0x2898   :  { %v10863_v17 = vpop.f32.mrb[44].mxu0 }
0x2899   :  { %v4936_v18 = vadd.f32 %v10863_v17, %v9859_v14  ;;  %v4919_v19 = vpop.f32.mrb[45].mxu0 }
0x289a   :  { %v4935_v22 = vadd.f32 %v9859_v14, %v4919_v19 }
0x289b   :  { %v4938_v23 = vadd.f32 %v4936_v18, %v12762_v48 }
0x289c   :  { %v4937_v30 = vadd.f32 %v4935_v22, %v12760_v47 }
0x289d   :  { %v4942_v29 = vsel %vm148_vm1, %v4938_v23, 0.0 }
0x289e   :  { %4943 = vadd.xlane.f32.xlu1 %v4942_v29  ;;  %v4939_v24 = vsel %vm148_vm1, %v4937_v30, 0.0 }
0x289f   :  { %4940 = vadd.xlane.f32.xlu0 %v4939_v24 }
0x28af   :  { %5086 = vrot.lane.b32.xlu1 %v9862_v52, %s12410_s1 }
0x28b5   :  { %11949 = vrot.lane.b32.xlu0 %v11948_v25, %s12410_s1 }
0x292b   :  { %v4944_v31 = vpop.xlane.xlu1 %4943 }
0x292c   :  { %v4946_v27 = vmul.f32 0.03125, %v4944_v31  ;;  %v4941_v32 = vpop.xlane.xlu0 %4940 }
0x292d   :  { %v4945_v34 = vmul.f32 0.03125, %v4941_v32 }
0x292e   :  { %v4948_v15 = vsub.f32 %v4938_v23, %v4946_v27 }
0x292f   :  { %v4947_v37 = vsub.f32 %v4937_v30, %v4945_v34  ;;  %v5087_v6 = vpop.permute.xlu1 %5086 }
0x2930   :  { %v4950_v38 = vmul.f32 %v4948_v15, %v4948_v15  ;;  %v11950_v13 = vpop.permute.xlu0 %11949 }
0x2931   :  { %v11952_v39 = vunpack.i.h.bf16 %v11950_v13  ;;  %v11951_v41 = vunpack.i.l.bf16 %v11950_v13  ;;  %v4949_v44 = vmul.f32 %v4947_v37, %v4947_v37 }
0x2932   :  { %v4954_v42 = vsel %vm148_vm1, %v4950_v38, 0.0 }
0x2933   :  { %4955 = vadd.xlane.f32.xlu0 %v4954_v42  ;;  %v11529_v45 = vpack.c.bf16 %v11952_v39, %v11951_v41  ;;  %v4951_v16 = vsel %vm148_vm1, %v4949_v44, 0.0 }
0x2935   :  { %11530 = vmatprep.subr.bf16.mxu0 %v11529_v45 }
0x2936   :  { %11532 = vmatpush3.bf16.msra.mxu0 %v11529_v45 }
0x2937   :  { %4952 = vadd.xlane.f32.xlu0 %v4951_v16 }
0x294d   :  { %11954 = vrot.lane.b32.xlu0 %v11953_v20, %s12410_s1 }
0x29c0   :  { %v4956_v49 = vpop.xlane.xlu0 %4955 }
0x29c1   :  { %v4958_v51 = vmul.f32 0.03125, %v4956_v49 }
0x29c3   :  { %v4960_v35 = vadd.f32 1e-06, %v4958_v51 }
0x29c4   :  { %v4953_v54 = vpop.xlane.xlu0 %4952 }
0x29c5   :  { %12198 = vrsqrt.f32 %v4960_v35  ;;  %v4957_v56 = vmul.f32 0.03125, %v4953_v54 }
0x29c7   :  { %v4959_v57 = vadd.f32 1e-06, %v4957_v56 }
0x29c8   :  { %v11955_v58 = vpop.permute.xlu0 %11954 }
0x29c9   :  { %12200 = vrsqrt.f32 %v4959_v57  ;;  %v11957_v60 = vunpack.i.h.bf16 %v11955_v58  ;;  %v11956_v61 = vunpack.i.l.bf16 %v11955_v58 }
0x29cb   :  { %v11533_v62 = vpack.c.bf16 %v11957_v60, %v11956_v61 }
0x29cd   :  { %11534 = vmatprep.subr.bf16.mxu0 %v11533_v62 }
0x29ce   :  { %11536 = vmatpush3.bf16.msra.mxu0 %v11533_v62 }
0x29cf   :  { %v12199_v63 = vpop.eup %12198 }
0x29d0   :  { %v4964_v59 = vmul.f32 %v12199_v63, %v4948_v15 }
0x29d1   :  { %10884 = vmatmul.mubr.msk.f32.vlgmr.msra.gmra.mrb[50].mxu0 %vm148_vm1, %v12762_v48 }
0x29d2   :  { %v4971_v10 = vmul.f32 %v9860_v0, %v4964_v59 }
0x29d3   :  { %v12201_v53 = vpop.eup %12200 }
0x29d4   :  { %v4963_v36 = vmul.f32 %v12201_v53, %v4947_v37  ;;  %v12889_v5 = vadd.f32 %v9861_v2, %v4971_v10 }
0x29d6   :  { %v4970_v1 = vmul.f32 %v9860_v0, %v4963_v36 }
0x29d8   :  { %v12887_v4 = vadd.f32 %v9861_v2, %v4970_v1 }
0x29da   :  { %10872 = vmatprep.mubr.msk.f32.mxu1 %vm148_vm1, %v12887_v4 }
0x29db   :  { %10873 = vmatmul.mubr.msk.f32.vlgmr.msra.gmra.mrb[32].mxu1 %vm148_vm1, %v12889_v5 }
0x2aa4   :  { %v10885_v7 = vpop.f32.mrb[50].mxu0 }
0x2aa5   :  { %v5161_v9 = vadd.f32 %v10885_v7, %v5087_v6  ;;  %v5155_v43 = vpop.f32.mrb[51].mxu0 }
0x2aa6   :  { %v5156_v11 = vadd.f32 %v5155_v43, %v5087_v6 }
0x2aa8   :  { %v12895_v46 = vpack.i.bf16 %v5161_v9, %v5156_v11  ;;  %v11537_v12 = vpack.c.bf16 %v5161_v9, %v5156_v11 }
0x2aaa   :  { %11959 = vrot.lane.b32.xlu0 %v12895_v46, %s12413_s8  ;;  %11539 = vmatprep.subr.msk.bf16.mxu1 %vm12494_vm3, %v11537_v12 }
0x2aab   :  { %11542 = vmatpush3.bf16.xpose.msk.msra.mxu1 %vm12494_vm3, %v11537_v12 }
0x2aae   :  { %v10874_v14 = vpop.f32.mrb[32].mxu1 }
0x2aaf   :  { %v12903_v17 = vadd.f32 %v10874_v14, %v9862_v52  ;;  %v5060_v18 = vpop.f32.mrb[33].mxu1 }
0x2ab0   :  { %v12905_v19 = vadd.f32 %v9862_v52, %v5060_v18 }
0x2ab1   :  { %5736 = vrot.lane.b32.xlu1 %v12903_v17, %s12415_s10 }
0x2ab2   :  { %10890 = vmatprep.mubr.msk.f32.mxu1 %vm330_vm2, %v12905_v19  ;;  %5368 = vrot.lane.b32.xlu0 %v12905_v19, %s12413_s8 }
0x2ab3   :  { %10891 = vmatmul.mubr.msk.f32.vlgmr.msra.gmra.mrb[34].mxu1 %vm330_vm2, %v12903_v17 }
0x2ab6   :  { %5370 = vrot.lane.b32.xlu0 %v12903_v17, %s12413_s8 }
0x2aba   :  { %11964 = vrot.lane.b32.xlu0 %v12895_v46, %s12415_s10 }
0x2abe   :  { %5734 = vrot.lane.b32.xlu0 %v12905_v19, %s12415_s10 }
0x2b1c   :  { %v11960_v22 = vpop.permute.xlu0 %11959 }
0x2b1d   :  { %v11962_v23 = vunpack.i.h.bf16 %v11960_v22  ;;  %v11961_v30 = vunpack.i.l.bf16 %v11960_v22 }
0x2b1f   :  { %v11547_v29 = vpack.c.bf16 %v11962_v23, %v11961_v30 }
0x2b21   :  { %11549 = vmatprep.subr.msk.bf16.mxu1 %vm12494_vm3, %v11547_v29 }
0x2b22   :  { %11552 = vmatpush3.bf16.xpose.msk.msra.mxu1 %vm12494_vm3, %v11547_v29 }
0x2b23   :  { %v5737_v34 = vpop.permute.xlu1 %5736 }
0x2b24   :  { %v5369_v24 = vpop.permute.xlu0 %5368 }
0x2b25   :  { %10904 = vmatprep.mubr.msk.f32.mxu1 %vm330_vm2, %v5369_v24 }
0x2b28   :  { %v5371_v26 = vpop.permute.xlu0 %5370 }
0x2b29   :  { %10905 = vmatmul.mubr.msk.f32.vlgmr.msra.gmra.mrb[36].mxu1 %vm330_vm2, %v5371_v26 }
0x2b2c   :  { %v11965_v28 = vpop.permute.xlu0 %11964 }
0x2b2d   :  { %v11967_v25 = vunpack.i.h.bf16 %v11965_v28  ;;  %v11966_v31 = vunpack.i.l.bf16 %v11965_v28 }
0x2b2f   :  { %v11557_v27 = vpack.c.bf16 %v11967_v25, %v11966_v31 }
0x2b30   :  { %v5735_v32 = vpop.permute.xlu0 %5734 }
0x2b31   :  { %11559 = vmatprep.subr.msk.bf16.mxu1 %vm12494_vm3, %v11557_v27  ;;  %10928 = vmatprep.mubr.msk.f32.mxu1 %vm330_vm2, %v5735_v32 }
0x2b32   :  { %11562 = vmatpush3.bf16.xpose.msk.msra.mxu1 %vm12494_vm3, %v11557_v27 }
0x2b39   :  { %10929 = vmatmul.mubr.msk.f32.vlgmr.msra.gmra.mrb[38].mxu1 %vm330_vm2, %v5737_v34 }
0x2b86   :  { %v10892_v15 = vpop.f32.mrb[34].mxu1 }
0x2b87   :  { %v5256_v37 = vmul.f32 0.35355338, %v10892_v15  ;;  %v5246_v38 = vpop.f32.mrb[35].mxu1 }
0x2b88   :  { %v5255_v13 = vmul.f32 0.35355338, %v5246_v38 }
0x2b89   :  { %v5258_v39 = vadd.f32 %v5256_v37, %v12810_v8 }
0x2b8a   :  { %v5257_v41 = vadd.f32 %v5255_v13, %v12812_v3 }
0x2b8b   :  { %v5262_v42 = vsel %vm53_vm0, %v5258_v39, -inf }
0x2b8c   :  { %5263 = vmax.xlane.f32.xlu1 %v5262_v42  ;;  %v5259_v44 = vsel %vm53_vm0, %v5257_v41, -inf }
0x2b8d   :  { %5260 = vmax.xlane.f32.xlu0 %v5259_v44 }
0x2bfc   :  { %v10906_v45 = vpop.f32.mrb[36].mxu1 }
0x2bfd   :  { %v5450_v16 = vpop.f32.mrb[37].mxu1  ;;  %v5460_v21 = vmul.f32 0.35355338, %v10906_v45 }
0x2bfe   :  { %v5459_v50 = vmul.f32 0.35355338, %v5450_v16 }
0x2bff   :  { %v5462_v55 = vadd.f32 %v5460_v21, %v12810_v8 }
0x2c00   :  { %v5461_v20 = vadd.f32 %v5459_v50, %v12812_v3 }
0x2c01   :  { %v5466_v52 = vsel %vm53_vm0, %v5462_v55, -inf }
0x2c02   :  { %v5463_v33 = vsel %vm53_vm0, %v5461_v20, -inf }
0x2c03   :  { %5464 = vmax.xlane.f32.xlu0 %v5463_v33 }
0x2c07   :  { %5467 = vmax.xlane.f32.xlu0 %v5466_v52 }
0x2c0c   :  { %v10930_v49 = vpop.f32.mrb[38].mxu1 }
0x2c0d   :  { %v5816_v51 = vpop.f32.mrb[39].mxu1  ;;  %v5826_v18 = vmul.f32 0.35355338, %v10930_v49 }
0x2c0e   :  { %v5825_v22 = vmul.f32 0.35355338, %v5816_v51 }
0x2c0f   :  { %v5828_v23 = vadd.f32 %v5826_v18, %v12810_v8 }
0x2c10   :  { %v5827_v30 = vadd.f32 %v5825_v22, %v12812_v3 }
0x2c12   :  { %v5829_v29 = vsel %vm53_vm0, %v5827_v30, -inf }
0x2c19   :  { %v5264_v35 = vpop.xlane.xlu1 %5263 }
0x2c1a   :  { %v5266_v54 = vsub.f32 %v5258_v39, %v5264_v35  ;;  %v5261_v56 = vpop.xlane.xlu0 %5260 }
0x2c1b   :  { %v5265_v57 = vsub.f32 %v5257_v41, %v5261_v56 }
0x2c1c   :  { %v5269_v58 = vmul.f32 1.442695, %v5266_v54 }
0x2c1d   :  { %v5267_v60 = vmul.f32 1.442695, %v5265_v57 }
0x2c1e   :  { %12202 = vpow2.f32 %v5269_v58 }
0x2c1f   :  { %12204 = vpow2.f32 %v5267_v60 }
0x2c28   :  { %v12203_v61 = vpop.eup %12202 }
0x2c29   :  { %v12205_v62 = vpop.eup %12204  ;;  %v5274_v63 = vsel %vm53_vm0, %v12203_v61, 0.0 }
0x2c2a   :  { %5275 = vadd.xlane.f32.xlu0 %v5274_v63  ;;  %v5271_v59 = vsel %vm53_vm0, %v12205_v62, 0.0 }
0x2c2b   :  { %5272 = vadd.xlane.f32.xlu1 %v5271_v59 }
0x2c90   :  { %v5465_v0 = vpop.xlane.xlu0 %5464 }
0x2c91   :  { %v5469_v53 = vsub.f32 %v5461_v20, %v5465_v0 }
0x2c93   :  { %v5471_v36 = vmul.f32 1.442695, %v5469_v53 }
0x2c94   :  { %v5468_v10 = vpop.xlane.xlu0 %5467 }
0x2c95   :  { %12206 = vpow2.f32 %v5471_v36  ;;  %v5470_v1 = vsub.f32 %v5462_v55, %v5468_v10 }
0x2c97   :  { %v5473_v2 = vmul.f32 1.442695, %v5470_v1 }
0x2c99   :  { %12208 = vpow2.f32 %v5473_v2 }
0x2c9f   :  { %v12207_v6 = vpop.eup %12206 }
0x2ca0   :  { %v5475_v7 = vsel %vm53_vm0, %v12207_v6, 0.0 }
0x2ca1   :  { %5476 = vadd.xlane.f32.xlu1 %v5475_v7 }
0x2ca3   :  { %v12209_v9 = vpop.eup %12208 }
0x2ca4   :  { %v5478_v43 = vsel %vm53_vm0, %v12209_v9, 0.0 }
0x2ca5   :  { %5479 = vadd.xlane.f32.xlu0 %v5478_v43 }
0x2cb2   :  { %11969 = vrot.lane.b32.xlu1 %v12895_v46, %s12410_s1 }
0x2cb6   :  { %11979 = vrot.lane.b32.xlu1 %v12895_v46, %s12418_s13 }
0x2cb7   :  { %v5276_v24 = vpop.xlane.xlu0 %5275 }
0x2cb8   :  { %v5273_v11 = vpop.xlane.xlu1 %5272 }
0x2cb9   :  { %12210 = vrcp.f32 %v5273_v11 }
0x2cba   :  { %6021 = vrot.lane.b32.xlu1 %v12905_v19, %s12418_s13  ;;  %v5832_v19 = vsel %vm53_vm0, %v5828_v23, -inf  ;;  %12212 = vrcp.f32 %v5276_v24 }
0x2cbb   :  { %11974 = vrot.lane.b32.xlu0 %v12895_v46, %s12412_s7 }
0x2cbf   :  { %6023 = vrot.lane.b32.xlu0 %v12903_v17, %s12418_s13 }
0x2cc3   :  { %v12211_v12 = vpop.eup %12210 }
0x2cc4   :  { %v5279_v14 = vmul.f32 %v12211_v12, %v12205_v62  ;;  %v12213_v32 = vpop.eup %12212  ;;  %v5164_v62 = vld [vmem:[#allocation5 + $0x358] sm:$0xff] }
0x2cc5   :  { %v5280_v45 = vmul.f32 %v12213_v32, %v12203_v61  ;;  %v5165_v61 = vld [vmem:[#allocation5 + $0x360] sm:$0xff] }
0x2cc6   :  { %10897 = vmatprep.mubr.msk.f32.mxu0 %vm53_vm0, %v5279_v14 }
0x2cde   :  { %5830 = vmax.xlane.f32.xlu1 %v5829_v29  ;;  %5833 = vmax.xlane.f32.xlu0 %v5832_v19 }
0x2d2e   :  { %v5477_v26 = vpop.xlane.xlu1 %5476 }
0x2d2f   :  { %12214 = vrcp.f32 %v5477_v26  ;;  %v5166_v26 = vld [vmem:[#allocation5 + $0x368] sm:$0xff] }
0x2d32   :  { %v11970_v17 = vpop.permute.xlu1 %11969  ;;  %v5480_v28 = vpop.xlane.xlu0 %5479 }
0x2d33   :  { %v11972_v25 = vunpack.i.h.bf16 %v11970_v17  ;;  %v11971_v31 = vunpack.i.l.bf16 %v11970_v17  ;;  %12216 = vrcp.f32 %v5480_v28 }
0x2d35   :  { %v11543_v27 = vpack.c.bf16 %v11972_v25, %v11971_v31 }
0x2d36   :  { %v11980_v34 = vpop.permute.xlu1 %11979  ;;  %v11975_v15 = vpop.permute.xlu0 %11974 }
0x2d37   :  { %v11982_v37 = vunpack.i.h.bf16 %v11980_v34  ;;  %v11981_v38 = vunpack.i.l.bf16 %v11980_v34  ;;  %v11977_v13 = vunpack.i.h.bf16 %v11975_v15  ;;  %v11976_v39 = vunpack.i.l.bf16 %v11975_v15  ;;  %11544 = vmatprep.subr.bf16.mxu0 %v11543_v27 }
0x2d38   :  { %11546 = vmatpush3.bf16.msra.mxu0 %v11543_v27 }
0x2d39   :  { %v12215_v41 = vpop.eup %12214  ;;  %v11567_v42 = vpack.c.bf16 %v11982_v37, %v11981_v38  ;;  %v11553_v44 = vpack.c.bf16 %v11977_v13, %v11976_v39 }
0x2d3a   :  { %v6022_v16 = vpop.permute.xlu1 %6021  ;;  %v5483_v21 = vmul.f32 %v12215_v41, %v12207_v6  ;;  %v6024_v55 = vpop.permute.xlu0 %6023 }
0x2d3b   :  { %10898 = vmatmul.mubr.msk.f32.vlgmr.msra.gmra.mrb[52].mxu0 %vm53_vm0, %v5280_v45  ;;  %11554 = vmatprep.subr.bf16.mxu0 %v11553_v44 }
0x2d3c   :  { %11569 = vmatprep.subr.msk.bf16.mxu1 %vm12494_vm3, %v11567_v42  ;;  %10947 = vmatprep.mubr.msk.f32.mxu1 %vm330_vm2, %v6022_v16  ;;  %v5167_v16 = vld [vmem:[#allocation5 + $0x370] sm:$0xff] }
0x2d3d   :  { %v12217_v50 = vpop.eup %12216  ;;  %11556 = vmatpush3.bf16.msra.mxu0 %v11553_v44  ;;  %10911 = vmatprep.mubr.msk.f32.mxu0 %vm53_vm0, %v5483_v21 }
0x2d3e   :  { %v5484_v20 = vmul.f32 %v12217_v50, %v12209_v9  ;;  %11572 = vmatpush3.bf16.xpose.msk.msra.mxu1 %vm12494_vm3, %v11567_v42  ;;  %10914 = vmatprep.subr.mxu0 %v5165_v61 }
0x2d40   :  { %10912 = vmatmul.mubr.msk.f32.vlgmr.msra.gmra.mrb[54].mxu0 %vm53_vm0, %v5484_v20 }
0x2d41   :  { %10915 = vmatpush3.msra.mxu0 %v5165_v61 }
0x2d42   :  { %10919 = vmatprep.subr.mxu0 %v5164_v62 }
0x2d45   :  { %10948 = vmatmul.mubr.msk.f32.vlgmr.msra.gmra.mrb[40].mxu1 %vm330_vm2, %v6024_v55 }
0x2d6b   :  { %v5831_v33 = vpop.xlane.xlu1 %5830  ;;  %v5834_v52 = vpop.xlane.xlu0 %5833 }
0x2d6c   :  { %v5835_v49 = vsub.f32 %v5827_v30, %v5831_v33  ;;  %v5836_v51 = vsub.f32 %v5828_v23, %v5834_v52  ;;  %v9899_v52 = vld [vmem:[#allocation5 + $0x378] ss:$0 sm:$0xff] }
0x2d6e   :  { %v5837_v35 = vmul.f32 1.442695, %v5835_v49  ;;  %v5839_v54 = vmul.f32 1.442695, %v5836_v51 }
0x2d70   :  { %12218 = vpow2.f32 %v5837_v35 }
0x2d71   :  { %12220 = vpow2.f32 %v5839_v54 }
0x2d7a   :  { %v12219_v56 = vpop.eup %12218 }
0x2d7b   :  { %v12221_v57 = vpop.eup %12220  ;;  %v5841_v58 = vsel %vm53_vm0, %v12219_v56, 0.0 }
0x2d7c   :  { %5842 = vadd.xlane.f32.xlu0 %v5841_v58  ;;  %v5844_v60 = vsel %vm53_vm0, %v12221_v57, 0.0 }
0x2d7d   :  { %5845 = vadd.xlane.f32.xlu1 %v5844_v60 }
0x2d92   :  { %11984 = vrot.lane.b32.xlu0 %v12895_v46, %s12414_s9 }
0x2e09   :  { %v5843_v63 = vpop.xlane.xlu0 %5842 }
0x2e0a   :  { %v5846_v36 = vpop.xlane.xlu1 %5845  ;;  %12222 = vrcp.f32 %v5843_v63 }
0x2e0b   :  { %12224 = vrcp.f32 %v5846_v36 }
0x2e0d   :  { %v11985_v0 = vpop.permute.xlu0 %11984 }
0x2e0e   :  { %v10899_v59 = vpop.f32.mrb[52].mxu0  ;;  %v11987_v10 = vunpack.i.h.bf16 %v11985_v0  ;;  %v11986_v1 = vunpack.i.l.bf16 %v11985_v0 }
0x2e0f   :  { %v5359_v53 = vpop.f32.mrb[53].mxu0 }
0x2e10   :  { %v11563_v7 = vpack.c.bf16 %v11987_v10, %v11986_v1 }
0x2e13   :  { %v10913_v2 = vpop.f32.mrb[54].mxu0 }
0x2e14   :  { %v5563_v6 = vpop.f32.mrb[55].mxu0  ;;  %v12223_v14 = vpop.eup %12222 }
0x2e15   :  { %10916 = vmatprep.mubr.msk.f32.mxu0 %vm330_vm2, %v5563_v6  ;;  %v12225_v22 = vpop.eup %12224  ;;  %v5849_v29 = vmul.f32 %v12223_v14, %v12219_v56 }
0x2e16   :  { %10917 = vmatmul.mubr.msk.f32.vlgmr.msra.gmra.mrb[56].mxu0 %vm330_vm2, %v10913_v2  ;;  %v5850_v19 = vmul.f32 %v12225_v22, %v12221_v57  ;;  %v6358_v2 = vld [vmem:[#allocation5 + $0x398] sm:$0xff] }
0x2e17   :  { %10920 = vmatpush3.msra.mxu0 %v5164_v62  ;;  %10921 = vmatprep.mubr.msk.f32.mxu0 %vm330_vm2, %v5359_v53 }
0x2e18   :  { %v10949_v9 = vpop.f32.mrb[40].mxu1  ;;  %11564 = vmatprep.subr.bf16.mxu0 %v11563_v7 }
0x2e19   :  { %v6103_v43 = vpop.f32.mrb[41].mxu1  ;;  %v6113_v11 = vmul.f32 0.35355338, %v10949_v9  ;;  %v6360_v9 = vld [vmem:[#allocation5 + $0x3a8] sm:$0xff] }
0x2e1a   :  { %v6112_v12 = vmul.f32 0.35355338, %v6103_v43 }
0x2e1b   :  { %v6115_v23 = vadd.f32 %v6113_v11, %v12810_v8  ;;  %v6465_v11 = vld [vmem:[#allocation5 + $0x3b8] sm:$0xff] }
0x2e1c   :  { %v6114_v18 = vadd.f32 %v6112_v12, %v12812_v3  ;;  %v6466_v12 = vld [vmem:[#allocation5 + $0x3c0] sm:$0xff] }
0x2e1d   :  { %v6119_v24 = vsel %vm53_vm0, %v6115_v23, -inf  ;;  %v11585_v14 = vpack.c.bf16 %v6466_v12, %v6465_v11 }
0x2e1e   :  { %v6116_v30 = vsel %vm53_vm0, %v6114_v18, -inf  ;;  %10922 = vmatmul.mubr.msk.f32.vlgmr.msra.gmra.mrb[56].mxu0 %vm330_vm2, %v10899_v59 }
0x2e1f   :  { %6117 = vmax.xlane.f32.xlu1 %v6116_v30  ;;  %11566 = vmatpush3.bf16.msra.mxu0 %v11563_v7  ;;  %v6359_v7 = vld [vmem:[#allocation5 + $0x3a0] sm:$0xff] }
0x2e20   :  { %10935 = vmatprep.mubr.msk.f32.mxu0 %vm53_vm0, %v5849_v29  ;;  %10938 = vmatprep.subr.mxu0 %v5166_v26  ;;  %v11581_v43 = vpack.c.bf16 %v6360_v9, %v6359_v7 }
0x2e22   :  { %10936 = vmatmul.mubr.msk.f32.vlgmr.msra.gmra.mrb[58].mxu0 %vm53_vm0, %v5850_v19 }
0x2e23   :  { %6120 = vmax.xlane.f32.xlu1 %v6119_v24  ;;  %10939 = vmatpush3.msra.mxu0 %v5166_v26  ;;  %v9900_v26 = vld [vmem:[#allocation5 + $0x380] ss:$0 sm:$0xff] }
0x2eac   :  { %v6118_v3 = vpop.xlane.xlu1 %6117 }
0x2ead   :  { %v6122_v8 = vsub.f32 %v6114_v18, %v6118_v3 }
0x2eaf   :  { %v6124_v25 = vmul.f32 1.442695, %v6122_v8  ;;  %v9901_v8 = vld [vmem:[#allocation5 + $0x388] ss:$0 sm:$0xff] }
0x2eb0   :  { %v6121_v17 = vpop.xlane.xlu1 %6120 }
0x2eb1   :  { %v6123_v28 = vsub.f32 %v6115_v23, %v6121_v17 }
0x2eb3   :  { %v6126_v31 = vmul.f32 1.442695, %v6123_v28 }
0x2eb5   :  { %12226 = vpow2.f32 %v6126_v31 }
0x2eb6   :  { %12228 = vpow2.f32 %v6124_v25 }
0x2ebf   :  { %v12227_v27 = vpop.eup %12226 }
0x2ec0   :  { %v6131_v32 = vsel %vm53_vm0, %v12227_v27, 0.0  ;;  %v12229_v34 = vpop.eup %12228 }
0x2ec1   :  { %6132 = vadd.xlane.f32.xlu1 %v6131_v32  ;;  %v6128_v15 = vsel %vm53_vm0, %v12229_v34, 0.0 }
0x2ec5   :  { %6129 = vadd.xlane.f32.xlu1 %v6128_v15  ;;  %v6468_v15 = vld [vmem:[#allocation5 + $0x3d0] sm:$0xff] }
0x2ed6   :  { %11989 = vrot.lane.b32.xlu1 %v12895_v46, %s12417_s12 }
0x2ef5   :  { %v10937_v37 = vpop.f32.mrb[58].mxu0 }
0x2ef6   :  { %v5929_v38 = vpop.f32.mrb[59].mxu0 }
0x2ef7   :  { %10940 = vmatprep.mubr.msk.f32.mxu0 %vm330_vm2, %v5929_v38  ;;  %v6469_v38 = vld [vmem:[#allocation5 + $0x3d8] sm:$0xff] }
0x2ef8   :  { %10941 = vmatmul.mubr.msk.f32.vlgmr.msra.gmra.mrb[56].mxu0 %vm330_vm2, %v10937_v37 }
0x2f4e   :  { %v6133_v13 = vpop.xlane.xlu1 %6132 }
0x2f4f   :  { %12230 = vrcp.f32 %v6133_v13  ;;  %v6470_v13 = vld [vmem:[#allocation5 + $0x3e0] sm:$0xff] }
0x2f52   :  { %v6130_v39 = vpop.xlane.xlu1 %6129 }
0x2f53   :  { %12232 = vrcp.f32 %v6130_v39  ;;  %v11593_v39 = vpack.c.bf16 %v6470_v13, %v6469_v38  ;;  %v6604_v38 = vld [vmem:[#allocation5 + $0x458] sm:$0xff] }
0x2f56   :  { %v11990_v41 = vpop.permute.xlu1 %11989 }
0x2f57   :  { %v11992_v42 = vunpack.i.h.bf16 %v11990_v41  ;;  %v11991_v44 = vunpack.i.l.bf16 %v11990_v41  ;;  %v6471_v41 = vld [vmem:[#allocation5 + $0x3e8] sm:$0xff] }
0x2f59   :  { %v11573_v45 = vpack.c.bf16 %v11992_v42, %v11991_v44  ;;  %v12231_v21 = vpop.eup %12230  ;;  %v6472_v42 = vld [vmem:[#allocation5 + $0x3f0] sm:$0xff] }
0x2f5a   :  { %v6137_v20 = vmul.f32 %v12231_v21, %v12227_v27  ;;  %v11597_v44 = vpack.c.bf16 %v6472_v42, %v6471_v41  ;;  %v6475_v21 = vld [vmem:[#allocation5 + $0x408] sm:$0xff] }
0x2f5b   :  { %11574 = vmatprep.subr.bf16.mxu0 %v11573_v45  ;;  %v6606_v41 = vld [vmem:[#allocation5 + $0x468] sm:$0xff] }
0x2f5c   :  { %11576 = vmatpush3.bf16.msra.mxu0 %v11573_v45  ;;  %v6473_v45 = vld [vmem:[#allocation5 + $0x3f8] sm:$0xff] }
0x2f5d   :  { %v12233_v50 = vpop.eup %12232  ;;  %10957 = vmatprep.subr.mxu0 %v5167_v16 }
0x2f5e   :  { %v6136_v46 = vmul.f32 %v12233_v50, %v12229_v34  ;;  %v6467_v34 = vld [vmem:[#allocation5 + $0x3c8] sm:$0xff] }
0x2f5f   :  { %v11589_v37 = vpack.c.bf16 %v6468_v15, %v6467_v34 }
0x2f60   :  { %10954 = vmatprep.mubr.msk.f32.mxu0 %vm53_vm0, %v6136_v46  ;;  %v6476_v46 = vld [vmem:[#allocation5 + $0x410] sm:$0xff] }
0x2f61   :  { %10955 = vmatmul.mubr.msk.f32.vlgmr.msra.gmra.mrb[60].mxu0 %vm53_vm0, %v6137_v20  ;;  %v11605_v20 = vpack.c.bf16 %v6476_v46, %v6475_v21 }
0x2f62   :  { %10958 = vmatpush3.msra.mxu0 %v5167_v16  ;;  %v6474_v16 = vld [vmem:[#allocation5 + $0x400] sm:$0xff] }
0x2f63   :  { %11586 = vmatprep.subr.bf16.mxu0 %v11585_v14  ;;  %v11601_v50 = vpack.c.bf16 %v6474_v16, %v6473_v45 }
0x3034   :  { %v10956_v55 = vpop.f32.mrb[60].mxu0 }
0x3035   :  { %v6216_v33 = vpop.f32.mrb[61].mxu0 }
0x3036   :  { %10959 = vmatprep.mubr.msk.f32.mxu0 %vm330_vm2, %v6216_v33  ;;  %v6478_v33 = vld [vmem:[#allocation5 + $0x420] sm:$0xff] }
0x3037   :  { %10960 = vmatmul.mubr.msk.f32.vlgmr.msra.gmra.mrb[56].mxu0 %vm330_vm2, %v10956_v55  ;;  %v6477_v55 = vld [vmem:[#allocation5 + $0x418] sm:$0xff] }
0x3038   :  { %11588 = vmatpush3.bf16.msra.mxu0 %v11585_v14  ;;  %v9905_v14 = vld [vmem:[#allocation5 + $0x438] ss:$0 sm:$0xff] }
0x3039   :  { %11590 = vmatprep.subr.bf16.mxu0 %v11589_v37 }
0x303c   :  { %11592 = vmatpush3.bf16.msra.mxu0 %v11589_v37 }
0x303d   :  { %11594 = vmatprep.subr.bf16.mxu0 %v11593_v39 }
0x3040   :  { %11596 = vmatpush3.bf16.msra.mxu0 %v11593_v39  ;;  %v6605_v39 = vld [vmem:[#allocation5 + $0x460] sm:$0xff] }
0x3041   :  { %11598 = vmatprep.subr.bf16.mxu0 %v11597_v44  ;;  %v11621_v42 = vpack.c.bf16 %v6606_v41, %v6605_v39 }
0x3044   :  { %11600 = vmatpush3.bf16.msra.mxu0 %v11597_v44 }
0x3045   :  { %11602 = vmatprep.subr.bf16.mxu0 %v11601_v50 }
0x3048   :  { %11604 = vmatpush3.bf16.msra.mxu0 %v11601_v50 }
0x3049   :  { %11606 = vmatprep.subr.bf16.mxu0 %v11605_v20 }
0x304c   :  { %11608 = vmatpush3.bf16.msra.mxu0 %v11605_v20 }
0x310a   :  { %v10961_v49 = vpop.f32.mrb[56].mxu0 }
0x310b   :  { %v6314_v51 = vadd.f32 %v10961_v49, %v9899_v52  ;;  %v6297_v35 = vpop.f32.mrb[57].mxu0  ;;  %v6479_v49 = vld [vmem:[#allocation5 + $0x428] sm:$0xff] }
0x310c   :  { %v6313_v54 = vadd.f32 %v9899_v52, %v6297_v35  ;;  %v11609_v52 = vpack.c.bf16 %v6478_v33, %v6477_v55  ;;  %v9906_v55 = vld [vmem:[#allocation5 + $0x440] ss:$0 sm:$0xff] }
0x310d   :  { %v6316_v56 = vadd.f32 %v6314_v51, %v12889_v5  ;;  %v6480_v51 = vld [vmem:[#allocation5 + $0x430] sm:$0xff] }
0x310e   :  { %v6315_v57 = vadd.f32 %v6313_v54, %v12887_v4  ;;  %v6357_v4 = vld [vmem:[#allocation5 + $0x390] sm:$0xff]  ;;  %11610 = vmatprep.subr.bf16.mxu0 %v11609_v52  ;;  %v11613_v35 = vpack.c.bf16 %v6480_v51, %v6479_v49 }
0x310f   :  { %v6320_v58 = vsel %vm148_vm1, %v6316_v56, 0.0  ;;  %v11577_v6 = vpack.c.bf16 %v6358_v2, %v6357_v4  ;;  %11612 = vmatpush3.bf16.msra.mxu0 %v11609_v52  ;;  %v9902_v54 = vld [vmem:[#allocation5 + $0x3b0] ss:$0 sm:$0xff]  ;;  %v9907_v52 = vld [vmem:[#allocation5 + $0x448] ss:$0 sm:$0xff] }
0x3110   :  { %6321 = vadd.xlane.f32.xlu1 %v6320_v58  ;;  %v6317_v60 = vsel %vm148_vm1, %v6315_v57, 0.0  ;;  %11614 = vmatprep.subr.bf16.mxu0 %v11613_v35 }
0x3111   :  { %6318 = vadd.xlane.f32.xlu0 %v6317_v60  ;;  %11578 = vmatprep.subr.bf16.mxu1 %v11577_v6 }
0x3112   :  { %11580 = vmatpush3.bf16.msra.mxu1 %v11577_v6 }
0x3113   :  { %11582 = vmatprep.subr.bf16.mxu1 %v11581_v43  ;;  %11616 = vmatpush3.bf16.msra.mxu0 %v11613_v35 }
0x3116   :  { %11584 = vmatpush3.bf16.msra.mxu1 %v11581_v43 }
0x319d   :  { %v6322_v61 = vpop.xlane.xlu1 %6321 }
0x319e   :  { %v6324_v62 = vmul.f32 0.03125, %v6322_v61  ;;  %v6319_v63 = vpop.xlane.xlu0 %6318 }
0x319f   :  { %v6323_v59 = vmul.f32 0.03125, %v6319_v63 }
0x31a0   :  { %v6326_v0 = vsub.f32 %v6316_v56, %v6324_v62 }
0x31a1   :  { %v6325_v53 = vsub.f32 %v6315_v57, %v6323_v59 }
0x31a2   :  { %v6328_v1 = vmul.f32 %v6326_v0, %v6326_v0 }
0x31a3   :  { %v6327_v36 = vmul.f32 %v6325_v53, %v6325_v53 }
0x31a4   :  { %v6332_v5 = vsel %vm148_vm1, %v6328_v1, 0.0 }
0x31a5   :  { %v6329_v10 = vsel %vm148_vm1, %v6327_v36, 0.0 }
0x31a6   :  { %6330 = vadd.xlane.f32.xlu0 %v6329_v10 }
0x31aa   :  { %6333 = vadd.xlane.f32.xlu0 %v6332_v5 }
0x3233   :  { %v6331_v18 = vpop.xlane.xlu0 %6330 }
0x3234   :  { %v6335_v22 = vmul.f32 0.03125, %v6331_v18 }
0x3236   :  { %v6337_v23 = vadd.f32 1e-06, %v6335_v22 }
0x3237   :  { %v6334_v30 = vpop.xlane.xlu0 %6333 }
0x3238   :  { %12234 = vrsqrt.f32 %v6337_v23  ;;  %v6336_v29 = vmul.f32 0.03125, %v6334_v30 }
0x323a   :  { %v6338_v19 = vadd.f32 1e-06, %v6336_v29 }
0x323c   :  { %12236 = vrsqrt.f32 %v6338_v19 }
0x3242   :  { %v12235_v24 = vpop.eup %12234 }
0x3243   :  { %v6341_v3 = vmul.f32 %v12235_v24, %v6325_v53 }
0x3245   :  { %v6348_v17 = vmul.f32 %v9900_v26, %v6341_v3 }
0x3246   :  { %v12237_v28 = vpop.eup %12236 }
0x3247   :  { %v6342_v25 = vmul.f32 %v12237_v28, %v6326_v0  ;;  %v12999_v31 = vadd.f32 %v9901_v8, %v6348_v17 }
0x3249   :  { %v6349_v27 = vmul.f32 %v9900_v26, %v6342_v25  ;;  %10970 = vmatprep.mubr.msk.f32.mxu1 %vm148_vm1, %v12999_v31 }
0x324b   :  { %v13003_v32 = vadd.f32 %v9901_v8, %v6349_v27 }
0x324d   :  { %10971 = vmatmul.mubr.msk.f32.vlgmr.msra.gmra.mrb[42].mxu1 %vm148_vm1, %v13003_v32 }
0x3320   :  { %v10972_v56 = vpop.f32.mrb[42].mxu1 }
0x3321   :  { %v6444_v57 = vadd.f32 %v10972_v56, %v9902_v54  ;;  %v6438_v58 = vpop.f32.mrb[43].mxu1 }
0x3322   :  { %v6439_v60 = vadd.f32 %v9902_v54, %v6438_v58  ;;  %v9908_v58 = vld [vmem:[#allocation5 + $0x470] ss:$0 sm:$0xff] }
0x3323   :  { %v6450_v61 = vmul.f32 0.044715, %v6444_v57  ;;  %v6448_v43 = vmul.f32 0.5, %v6444_v57 }
0x3324   :  { %v6449_v62 = vmul.f32 0.044715, %v6439_v60  ;;  %v6447_v7 = vmul.f32 0.5, %v6439_v60 }
0x3325   :  { %v6452_v63 = vmul.f32 %v6450_v61, %v6444_v57 }
0x3326   :  { %v6451_v59 = vmul.f32 %v6449_v62, %v6439_v60 }
0x3327   :  { %v6454_v0 = vmul.f32 %v6452_v63, %v6444_v57 }
0x3328   :  { %v6453_v53 = vmul.f32 %v6451_v59, %v6439_v60 }
0x3329   :  { %v6456_v36 = vadd.f32 %v6454_v0, %v6444_v57 }
0x332a   :  { %v6455_v10 = vadd.f32 %v6453_v53, %v6439_v60 }
0x332b   :  { %v6458_v1 = vmul.f32 0.7978846, %v6456_v36 }
0x332c   :  { %v6457_v5 = vmul.f32 0.7978846, %v6455_v10 }
0x332d   :  { %12238 = vtanh.f32 %v6458_v1 }
0x332e   :  { %12240 = vtanh.f32 %v6457_v5 }
0x3337   :  { %v12239_v4 = vpop.eup %12238 }
0x3338   :  { %v12241_v2 = vpop.eup %12240  ;;  %v6462_v6 = vadd.f32 1.0, %v12239_v4 }
0x3339   :  { %v6461_v9 = vadd.f32 1.0, %v12241_v2 }
0x333a   :  { %v6464_v12 = vmul.f32 %v6462_v6, %v6448_v43  ;;  %v13045_v6 = vld [vmem:[#allocation5 + $0x690] sm:$0xff] }
0x333b   :  { %v6463_v11 = vmul.f32 %v6461_v9, %v6447_v7  ;;  %v13048_v9 = vld [vmem:[#allocation5 + $0x698] sm:$0xff] }
0x333d   :  { %11005 = vmatprep.mubr.f32.mxu0 %v6463_v11 }
0x333e   :  { %11006 = vmatmul.mubr.f32.vlgmr.msra.gmra.mrb[62].mxu0 %v6464_v12 }
0x3411   :  { %v11007_v18 = vpop.f32.mrb[62].mxu0 }
0x3412   :  { %v6552_v22 = vpop.f32.mrb[63].mxu0  ;;  %v6558_v23 = vadd.f32 %v11007_v18, %v9905_v14 }
0x3413   :  { %v6553_v30 = vadd.f32 %v9905_v14, %v6552_v22 }
0x3414   :  { %v6562_v19 = vadd.f32 %v6558_v23, %v13003_v32  ;;  %v6603_v32 = vld [vmem:[#allocation5 + $0x450] sm:$0xff] }
0x3415   :  { %v6561_v29 = vadd.f32 %v6553_v30, %v12999_v31  ;;  %v11617_v13 = vpack.c.bf16 %v6604_v38, %v6603_v32 }
0x3416   :  { %v6566_v26 = vsel %vm148_vm1, %v6562_v19, 0.0 }
0x3417   :  { %v6563_v24 = vsel %vm148_vm1, %v6561_v29, 0.0  ;;  %11618 = vmatprep.subr.bf16.mxu1 %v11617_v13 }
0x3418   :  { %6564 = vadd.xlane.f32.xlu0 %v6563_v24  ;;  %11620 = vmatpush3.bf16.msra.mxu1 %v11617_v13 }
0x3419   :  { %11622 = vmatprep.subr.bf16.mxu1 %v11621_v42 }
0x341c   :  { %6567 = vadd.xlane.f32.xlu0 %v6566_v26  ;;  %11624 = vmatpush3.bf16.msra.mxu1 %v11621_v42 }
0x34a5   :  { %v6565_v3 = vpop.xlane.xlu0 %6564 }
0x34a6   :  { %v6569_v8 = vmul.f32 0.03125, %v6565_v3 }
0x34a8   :  { %v6571_v17 = vsub.f32 %v6561_v29, %v6569_v8 }
0x34a9   :  { %v6568_v28 = vpop.xlane.xlu0 %6567 }
0x34aa   :  { %v6570_v25 = vmul.f32 0.03125, %v6568_v28  ;;  %v6573_v27 = vmul.f32 %v6571_v17, %v6571_v17 }
0x34ac   :  { %v6572_v34 = vsub.f32 %v6562_v19, %v6570_v25  ;;  %v6575_v15 = vsel %vm148_vm1, %v6573_v27, 0.0 }
0x34ad   :  { %6576 = vadd.xlane.f32.xlu0 %v6575_v15 }
0x34ae   :  { %v6574_v37 = vmul.f32 %v6572_v34, %v6572_v34 }
0x34b0   :  { %v6578_v31 = vsel %vm148_vm1, %v6574_v37, 0.0 }
0x34b1   :  { %6579 = vadd.xlane.f32.xlu1 %v6578_v31 }
0x353a   :  { %v6577_v44 = vpop.xlane.xlu0 %6576 }
0x353b   :  { %v6581_v45 = vmul.f32 0.03125, %v6577_v44 }
0x353d   :  { %v6583_v16 = vadd.f32 1e-06, %v6581_v45 }
0x353e   :  { %v6580_v21 = vpop.xlane.xlu1 %6579 }
0x353f   :  { %12242 = vrsqrt.f32 %v6583_v16  ;;  %v6582_v50 = vmul.f32 0.03125, %v6580_v21 }
0x3541   :  { %v6584_v46 = vadd.f32 1e-06, %v6582_v50 }
0x3543   :  { %12244 = vrsqrt.f32 %v6584_v46 }
0x3549   :  { %v12243_v20 = vpop.eup %12242 }
0x354a   :  { %v6587_v33 = vmul.f32 %v12243_v20, %v6571_v17 }
0x354c   :  { %v6594_v49 = vmul.f32 %v9906_v55, %v6587_v33 }
0x354d   :  { %v12245_v51 = vpop.eup %12244 }
0x354e   :  { %v6588_v35 = vmul.f32 %v12245_v51, %v6572_v34  ;;  %v13013_v54 = vadd.f32 %v9907_v52, %v6594_v49 }
0x3550   :  { %v6595_v56 = vmul.f32 %v9906_v55, %v6588_v35  ;;  %11016 = vmatprep.mubr.msk.f32.mxu1 %vm148_vm1, %v13013_v54 }
0x3552   :  { %v13017_v57 = vadd.f32 %v9907_v52, %v6595_v56 }
0x3554   :  { %11017 = vmatmul.mubr.msk.f32.vlgmr.msra.gmra.mrb[44].mxu1 %vm148_vm1, %v13017_v57 }
0x3627   :  { %v11018_v60 = vpop.f32.mrb[44].mxu1 }
0x3628   :  { %v13021_v61 = vadd.f32 %v11018_v60, %v9908_v58  ;;  %v6684_v62 = vpop.f32.mrb[45].mxu1 }
0x3629   :  { %v13023_v63 = vadd.f32 %v9908_v58, %v6684_v62 }
0x362b   :  { %11023 = vmatprep.mubr.msk.f32.mxu1 %vm330_vm2, %v13023_v63  ;;  %v13029_v59 = vpack.i.bf16 %v13021_v61, %v13023_v63 }
0x362d   :  { %11994 = vrot.lane.b32.xlu0 %v13029_v59, %s12410_s1 }
0x3631   :  { %12004 = vrot.lane.b32.xlu0 %v13029_v59, %s12412_s7 }
0x3635   :  { %6899 = vrot.lane.b32.xlu0 %v13023_v63, %s12413_s8 }
0x3639   :  { %6901 = vrot.lane.b32.xlu0 %v13021_v61, %s12413_s8 }
0x369f   :  { %v11995_v0 = vpop.permute.xlu0 %11994 }
0x36a0   :  { %v11997_v53 = vunpack.i.h.bf16 %v11995_v0  ;;  %v11996_v36 = vunpack.i.l.bf16 %v11995_v0 }
0x36a2   :  { %v11625_v10 = vpack.c.bf16 %v11997_v53, %v11996_v36 }
0x36a3   :  { %v12005_v28 = vpop.permute.xlu0 %12004 }
0x36a4   :  { %11627 = vmatprep.subr.msk.bf16.mxu1 %vm12494_vm3, %v11625_v10  ;;  %v12007_v27 = vunpack.i.h.bf16 %v12005_v28  ;;  %v12006_v34 = vunpack.i.l.bf16 %v12005_v28  ;;  %v6694_v28 = vld [vmem:[#allocation5 + $0x480] sm:$0xff] }
0x36a5   :  { %11630 = vmatpush3.bf16.xpose.msk.msra.mxu1 %vm12494_vm3, %v11625_v10  ;;  %11047 = vmatprep.subr.mxu0 %v6694_v28 }
0x36a6   :  { %v11635_v32 = vpack.c.bf16 %v12007_v27, %v12006_v34  ;;  %11048 = vmatpush3.msra.mxu0 %v6694_v28 }
0x36a7   :  { %v6900_v42 = vpop.permute.xlu0 %6899 }
0x36ab   :  { %v6902_v44 = vpop.permute.xlu0 %6901 }
0x36ac   :  { %11024 = vmatmul.mubr.msk.f32.vlgmr.msra.gmra.mrb[46].mxu1 %vm330_vm2, %v13021_v61 }
0x377f   :  { %v11025_v1 = vpop.f32.mrb[46].mxu1 }
0x3780   :  { %v6777_v5 = vpop.f32.mrb[47].mxu1  ;;  %v6787_v4 = vmul.f32 0.35355338, %v11025_v1 }
0x3781   :  { %v6786_v2 = vmul.f32 0.35355338, %v6777_v5 }
0x3782   :  { %v6789_v43 = vadd.f32 %v13048_v9, %v6787_v4 }
0x3783   :  { %v6788_v7 = vadd.f32 %v13045_v6, %v6786_v2 }
0x3784   :  { %v6793_v12 = vsel %vm53_vm0, %v6789_v43, -inf }
0x3785   :  { %v6790_v11 = vsel %vm53_vm0, %v6788_v7, -inf }
0x3786   :  { %6791 = vmax.xlane.f32.xlu1 %v6790_v11 }
0x378a   :  { %6794 = vmax.xlane.f32.xlu1 %v6793_v12 }
0x3813   :  { %v6792_v14 = vpop.xlane.xlu1 %6791 }
0x3814   :  { %v6796_v18 = vsub.f32 %v6788_v7, %v6792_v14 }
0x3816   :  { %v6798_v30 = vmul.f32 1.442695, %v6796_v18 }
0x3817   :  { %v6795_v22 = vpop.xlane.xlu1 %6794 }
0x3818   :  { %v6797_v23 = vsub.f32 %v6789_v43, %v6795_v22 }
0x381a   :  { %v6800_v29 = vmul.f32 1.442695, %v6797_v23 }
0x381c   :  { %12246 = vpow2.f32 %v6800_v29 }
0x381d   :  { %12248 = vpow2.f32 %v6798_v30 }
0x3826   :  { %v12247_v19 = vpop.eup %12246 }
0x3827   :  { %v6805_v24 = vsel %vm53_vm0, %v12247_v19, 0.0  ;;  %v12249_v26 = vpop.eup %12248 }
0x3828   :  { %6806 = vadd.xlane.f32.xlu1 %v6805_v24  ;;  %v6802_v3 = vsel %vm53_vm0, %v12249_v26, 0.0 }
0x382c   :  { %6803 = vadd.xlane.f32.xlu1 %v6802_v3 }
0x383d   :  { %11999 = vrot.lane.b32.xlu1 %v13029_v59, %s12411_s6 }
0x38b5   :  { %v6807_v8 = vpop.xlane.xlu1 %6806 }
0x38b6   :  { %12250 = vrcp.f32 %v6807_v8 }
0x38b9   :  { %v6804_v17 = vpop.xlane.xlu1 %6803 }
0x38ba   :  { %12252 = vrcp.f32 %v6804_v17 }
0x38bd   :  { %v12000_v25 = vpop.permute.xlu1 %11999 }
0x38be   :  { %v12002_v15 = vunpack.i.h.bf16 %v12000_v25  ;;  %v12001_v37 = vunpack.i.l.bf16 %v12000_v25  ;;  %v6693_v25 = vld [vmem:[#allocation5 + $0x478] sm:$0xff] }
0x38bf   :  { %11052 = vmatprep.subr.mxu0 %v6693_v25 }
0x38c0   :  { %v11631_v31 = vpack.c.bf16 %v12002_v15, %v12001_v37  ;;  %v12251_v38 = vpop.eup %12250 }
0x38c1   :  { %v6811_v41 = vmul.f32 %v12251_v38, %v12247_v19 }
0x38c2   :  { %11632 = vmatprep.subr.bf16.mxu1 %v11631_v31 }
0x38c3   :  { %11634 = vmatpush3.bf16.msra.mxu1 %v11631_v31 }
0x38c4   :  { %v12253_v13 = vpop.eup %12252  ;;  %11637 = vmatprep.subr.msk.bf16.mxu1 %vm12494_vm3, %v11635_v32 }
0x38c5   :  { %v6810_v39 = vmul.f32 %v12253_v13, %v12249_v26 }
0x38c7   :  { %11030 = vmatprep.mubr.msk.f32.mxu1 %vm53_vm0, %v6810_v39 }
0x38c8   :  { %11031 = vmatmul.mubr.msk.f32.vlgmr.msra.gmra.mrb[48].mxu1 %vm53_vm0, %v6811_v41 }
0x38c9   :  { %11037 = vmatprep.mubr.msk.f32.mxu1 %vm330_vm2, %v6900_v42 }
0x38cc   :  { %11640 = vmatpush3.bf16.xpose.msk.msra.mxu1 %vm12494_vm3, %v11635_v32 }
0x38d3   :  { %11038 = vmatmul.mubr.msk.f32.vlgmr.msra.gmra.mrb[50].mxu1 %vm330_vm2, %v6902_v44 }
0x399b   :  { %v13065_v45 = vpop.f32.mrb[48].mxu1 }
0x399c   :  { %v13067_v16 = vpop.f32.mrb[49].mxu1 }
0x39a6   :  { %v11039_v21 = vpop.f32.mrb[50].mxu1 }
0x39a7   :  { %v6991_v50 = vmul.f32 0.35355338, %v11039_v21  ;;  %v6981_v46 = vpop.f32.mrb[51].mxu1 }
0x39a8   :  { %v6990_v20 = vmul.f32 0.35355338, %v6981_v46 }
0x39a9   :  { %v6993_v55 = vadd.f32 %v13048_v9, %v6991_v50 }
0x39aa   :  { %v6992_v33 = vadd.f32 %v13045_v6, %v6990_v20 }
0x39ab   :  { %v6997_v52 = vsel %vm53_vm0, %v6993_v55, -inf }
0x39ac   :  { %6998 = vmax.xlane.f32.xlu1 %v6997_v52  ;;  %v6994_v49 = vsel %vm53_vm0, %v6992_v33, -inf }
0x39ad   :  { %6995 = vmax.xlane.f32.xlu0 %v6994_v49 }
0x39bd   :  { %12009 = vrot.lane.b32.xlu1 %v13029_v59, %s12416_s11 }
0x39c1   :  { %7265 = vrot.lane.b32.xlu1 %v13023_v63, %s12415_s10 }
0x39c5   :  { %7267 = vrot.lane.b32.xlu1 %v13021_v61, %s12415_s10 }
0x39c9   :  { %7552 = vrot.lane.b32.xlu1 %v13023_v63, %s12418_s13 }
0x3a39   :  { %v6999_v51 = vpop.xlane.xlu1 %6998 }
0x3a3a   :  { %v7001_v35 = vsub.f32 %v6993_v55, %v6999_v51  ;;  %v6996_v56 = vpop.xlane.xlu0 %6995 }
0x3a3b   :  { %v7000_v58 = vsub.f32 %v6992_v33, %v6996_v56 }
0x3a3c   :  { %v7004_v60 = vmul.f32 1.442695, %v7001_v35 }
0x3a3d   :  { %v7002_v62 = vmul.f32 1.442695, %v7000_v58  ;;  %v12010_v0 = vpop.permute.xlu1 %12009 }
0x3a3e   :  { %12254 = vpow2.f32 %v7004_v60  ;;  %v12012_v53 = vunpack.i.h.bf16 %v12010_v0  ;;  %v12011_v36 = vunpack.i.l.bf16 %v12010_v0 }
0x3a3f   :  { %12256 = vpow2.f32 %v7002_v62 }
0x3a40   :  { %v11641_v10 = vpack.c.bf16 %v12012_v53, %v12011_v36 }
0x3a41   :  { %v7266_v30 = vpop.permute.xlu1 %7265 }
0x3a42   :  { %11642 = vmatprep.subr.bf16.mxu1 %v11641_v10 }
0x3a43   :  { %11644 = vmatpush3.bf16.msra.mxu1 %v11641_v10 }
0x3a45   :  { %v7268_v3 = vpop.permute.xlu1 %7267 }
0x3a48   :  { %v12255_v1 = vpop.eup %12254 }
0x3a49   :  { %v7009_v5 = vsel %vm53_vm0, %v12255_v1, 0.0  ;;  %v12257_v4 = vpop.eup %12256  ;;  %v7553_v8 = vpop.permute.xlu1 %7552 }
0x3a4a   :  { %7010 = vadd.xlane.f32.xlu0 %v7009_v5  ;;  %v7006_v63 = vsel %vm53_vm0, %v12257_v4, 0.0 }
0x3a4e   :  { %7007 = vadd.xlane.f32.xlu0 %v7006_v63 }
0x3a64   :  { %12014 = vrot.lane.b32.xlu0 %v13029_v59, %s12414_s9 }
0x3a68   :  { %12019 = vrot.lane.b32.xlu0 %v13029_v59, %s12417_s12 }
0x3a6c   :  { %7554 = vrot.lane.b32.xlu0 %v13021_v61, %s12418_s13 }
0x3ad7   :  { %v7011_v2 = vpop.xlane.xlu0 %7010 }
0x3ad8   :  { %12258 = vrcp.f32 %v7011_v2 }
0x3adb   :  { %v7008_v7 = vpop.xlane.xlu0 %7007 }
0x3adc   :  { %12260 = vrcp.f32 %v7008_v7 }
0x3adf   :  { %v12015_v43 = vpop.permute.xlu0 %12014 }
0x3ae0   :  { %v12017_v11 = vunpack.i.h.bf16 %v12015_v43  ;;  %v12016_v12 = vunpack.i.l.bf16 %v12015_v43 }
0x3ae2   :  { %v11645_v14 = vpack.c.bf16 %v12017_v11, %v12016_v12  ;;  %v12259_v22 = vpop.eup %12258 }
0x3ae3   :  { %v12020_v18 = vpop.permute.xlu0 %12019  ;;  %v7015_v26 = vmul.f32 %v12259_v22, %v12255_v1 }
0x3ae4   :  { %11647 = vmatprep.subr.msk.bf16.mxu1 %vm12494_vm3, %v11645_v14  ;;  %v12022_v29 = vunpack.i.h.bf16 %v12020_v18  ;;  %v12021_v19 = vunpack.i.l.bf16 %v12020_v18 }
0x3ae6   :  { %v12261_v23 = vpop.eup %12260  ;;  %v11655_v61 = vpack.c.bf16 %v12022_v29, %v12021_v19 }
0x3ae7   :  { %v7014_v24 = vmul.f32 %v12261_v23, %v12257_v4  ;;  %v7555_v17 = vpop.permute.xlu0 %7554 }
0x3ae9   :  { %11044 = vmatprep.mubr.msk.f32.mxu1 %vm53_vm0, %v7014_v24  ;;  %v6695_v24 = vld [vmem:[#allocation5 + $0x488] sm:$0xff] }
0x3aea   :  { %11045 = vmatmul.mubr.msk.f32.vlgmr.msra.gmra.mrb[52].mxu1 %vm53_vm0, %v7015_v26 }
0x3aeb   :  { %11650 = vmatpush3.bf16.xpose.msk.msra.mxu1 %vm12494_vm3, %v11645_v14  ;;  %11061 = vmatprep.mubr.msk.f32.mxu1 %vm330_vm2, %v7266_v30 }
0x3aec   :  { %11657 = vmatprep.subr.msk.bf16.mxu1 %vm12494_vm3, %v11655_v61 }
0x3af2   :  { %11062 = vmatmul.mubr.msk.f32.vlgmr.msra.gmra.mrb[54].mxu1 %vm330_vm2, %v7268_v3 }
0x3af3   :  { %11660 = vmatpush3.bf16.xpose.msk.msra.mxu1 %vm12494_vm3, %v11655_v61  ;;  %11080 = vmatprep.mubr.msk.f32.mxu1 %vm330_vm2, %v7553_v8 }
0x3afa   :  { %11081 = vmatmul.mubr.msk.f32.vlgmr.msra.gmra.mrb[56].mxu1 %vm330_vm2, %v7555_v17 }
0x3bbd   :  { %v11046_v27 = vpop.f32.mrb[52].mxu1 }
0x3bbe   :  { %v7094_v34 = vpop.f32.mrb[53].mxu1 }
0x3bbf   :  { %11049 = vmatprep.mubr.msk.f32.mxu0 %vm330_vm2, %v7094_v34 }
0x3bc0   :  { %11050 = vmatmul.mubr.msk.f32.vlgmr.msra.gmra.mrb[64].mxu0 %vm330_vm2, %v11046_v27 }
0x3bc1   :  { %11054 = vmatprep.mubr.msk.f32.mxu0 %vm330_vm2, %v13067_v16  ;;  %11053 = vmatpush3.msra.mxu0 %v6693_v25 }
0x3bc5   :  { %v11063_v15 = vpop.f32.mrb[54].mxu1 }
0x3bc6   :  { %v7357_v37 = vmul.f32 0.35355338, %v11063_v15  ;;  %v7347_v31 = vpop.f32.mrb[55].mxu1 }
0x3bc7   :  { %v7356_v32 = vmul.f32 0.35355338, %v7347_v31 }
0x3bc8   :  { %v7359_v38 = vadd.f32 %v13048_v9, %v7357_v37  ;;  %11055 = vmatmul.mubr.msk.f32.vlgmr.msra.gmra.mrb[64].mxu0 %vm330_vm2, %v13065_v45 }
0x3bc9   :  { %v7358_v13 = vadd.f32 %v13045_v6, %v7356_v32 }
0x3bca   :  { %v7363_v39 = vsel %vm53_vm0, %v7359_v38, -inf }
0x3bcb   :  { %7364 = vmax.xlane.f32.xlu0 %v7363_v39  ;;  %v7360_v41 = vsel %vm53_vm0, %v7358_v13, -inf }
0x3bcc   :  { %7361 = vmax.xlane.f32.xlu1 %v7360_v41 }
0x3bcd   :  { %v11082_v42 = vpop.f32.mrb[56].mxu1 }
0x3bce   :  { %v7634_v44 = vpop.f32.mrb[57].mxu1  ;;  %v7644_v49 = vmul.f32 0.35355338, %v11082_v42 }
0x3bcf   :  { %v7643_v33 = vmul.f32 0.35355338, %v7634_v44 }
0x3bd0   :  { %v7646_v58 = vadd.f32 %v13048_v9, %v7644_v49 }
0x3bd1   :  { %v7645_v51 = vadd.f32 %v13045_v6, %v7643_v33 }
0x3bd2   :  { %v7650_v62 = vsel %vm53_vm0, %v7646_v58, -inf }
0x3bd3   :  { %v7647_v60 = vsel %vm53_vm0, %v7645_v51, -inf }
0x3c58   :  { %v7365_v16 = vpop.xlane.xlu0 %7364 }
0x3c59   :  { %v7367_v21 = vsub.f32 %v7359_v38, %v7365_v16  ;;  %v7362_v50 = vpop.xlane.xlu1 %7361 }
0x3c5a   :  { %v7366_v46 = vsub.f32 %v7358_v13, %v7362_v50  ;;  %v9943_v13 = vld [vmem:[#allocation5 + $0x498] ss:$0 sm:$0xff] }
0x3c5b   :  { %v7370_v20 = vmul.f32 1.442695, %v7367_v21 }
0x3c5c   :  { %v7368_v55 = vmul.f32 1.442695, %v7366_v46 }
0x3c5d   :  { %12262 = vpow2.f32 %v7370_v20  ;;  %v7890_v20 = vld [vmem:[#allocation5 + $0x4c0] sm:$0xff] }
0x3c5e   :  { %12264 = vpow2.f32 %v7368_v55  ;;  %v7891_v55 = vld [vmem:[#allocation5 + $0x4c8] sm:$0xff] }
0x3c5f   :  { %v12038_v33 = vpack.i.bf16 %v7891_v55, %v7890_v20 }
0x3c67   :  { %v12263_v45 = vpop.eup %12262 }
0x3c68   :  { %v12265_v52 = vpop.eup %12264  ;;  %v7375_v35 = vsel %vm53_vm0, %v12263_v45, 0.0 }
0x3c69   :  { %7376 = vadd.xlane.f32.xlu1 %v7375_v35  ;;  %v7372_v56 = vsel %vm53_vm0, %v12265_v52, 0.0 }
0x3c6a   :  { %7373 = vadd.xlane.f32.xlu0 %v7372_v56 }
0x3c6d   :  { %7648 = vmax.xlane.f32.xlu1 %v7647_v60  ;;  %v7888_v60 = vld [vmem:[#allocation5 + $0x4b0] sm:$0xff] }
0x3c71   :  { %7651 = vmax.xlane.f32.xlu1 %v7650_v62  ;;  %v7889_v62 = vld [vmem:[#allocation5 + $0x4b8] sm:$0xff] }
0x3c80   :  { %12024 = vrot.lane.b32.xlu0 %v13029_v59, %s12419_s14 }
0x3cf6   :  { %v7377_v0 = vpop.xlane.xlu1 %7376 }
0x3cf7   :  { %12266 = vrcp.f32 %v7377_v0  ;;  %v7374_v53 = vpop.xlane.xlu0 %7373  ;;  %v12033_v0 = vpack.i.bf16 %v7889_v62, %v7888_v60 }
0x3cf8   :  { %12268 = vrcp.f32 %v7374_v53  ;;  %v11665_v53 = vpack.c.bf16 %v7889_v62, %v7888_v60 }
0x3cfa   :  { %v7649_v36 = vpop.xlane.xlu1 %7648  ;;  %11666 = vmatprep.subr.bf16.mxu1 %v11665_v53 }
0x3cfb   :  { %v12025_v10 = vpop.permute.xlu0 %12024  ;;  %v7653_v4 = vsub.f32 %v7645_v51, %v7649_v36  ;;  %11668 = vmatpush3.bf16.msra.mxu1 %v11665_v53  ;;  %v11669_v36 = vpack.c.bf16 %v7891_v55, %v7890_v20 }
0x3cfc   :  { %v12027_v1 = vunpack.i.h.bf16 %v12025_v10  ;;  %v12026_v5 = vunpack.i.l.bf16 %v12025_v10  ;;  %v9946_v10 = vld [vmem:[#allocation5 + $0x4d0] ss:$0 sm:$0xff] }
0x3cfd   :  { %v7655_v11 = vmul.f32 1.442695, %v7653_v4  ;;  %11670 = vmatprep.subr.bf16.mxu1 %v11669_v36 }
0x3cfe   :  { %v11651_v63 = vpack.c.bf16 %v12027_v1, %v12026_v5  ;;  %v7652_v2 = vpop.xlane.xlu1 %7651 }
0x3cff   :  { %v7654_v7 = vsub.f32 %v7646_v58, %v7652_v2  ;;  %11672 = vmatpush3.bf16.msra.mxu1 %v11669_v36 }
0x3d00   :  { %11652 = vmatprep.subr.bf16.mxu0 %v11651_v63 }
0x3d01   :  { %v12267_v43 = vpop.eup %12266  ;;  %v7657_v12 = vmul.f32 1.442695, %v7654_v7  ;;  %11654 = vmatpush3.bf16.msra.mxu0 %v11651_v63 }
0x3d02   :  { %v12269_v14 = vpop.eup %12268  ;;  %v7381_v22 = vmul.f32 %v12267_v43, %v12263_v45  ;;  %11071 = vmatprep.subr.mxu0 %v6695_v24 }
0x3d03   :  { %12270 = vpow2.f32 %v7657_v12  ;;  %v7380_v18 = vmul.f32 %v12269_v14, %v12265_v52 }
0x3d04   :  { %12272 = vpow2.f32 %v7655_v11 }
0x3d05   :  { %11068 = vmatprep.mubr.msk.f32.mxu0 %vm53_vm0, %v7380_v18 }
0x3d06   :  { %11069 = vmatmul.mubr.msk.f32.vlgmr.msra.gmra.mrb[66].mxu0 %vm53_vm0, %v7381_v22 }
0x3d07   :  { %11072 = vmatpush3.msra.mxu0 %v6695_v24  ;;  %v9944_v24 = vld [vmem:[#allocation5 + $0x4a0] ss:$0 sm:$0xff] }
0x3d0d   :  { %v12271_v23 = vpop.eup %12270 }
0x3d0e   :  { %v7662_v30 = vsel %vm53_vm0, %v12271_v23, 0.0  ;;  %v12273_v29 = vpop.eup %12272 }
0x3d0f   :  { %7663 = vadd.xlane.f32.xlu1 %v7662_v30  ;;  %v7659_v19 = vsel %vm53_vm0, %v12273_v29, 0.0 }
0x3d13   :  { %7660 = vadd.xlane.f32.xlu1 %v7659_v19 }
0x3d24   :  { %12029 = vrot.lane.b32.xlu1 %v13029_v59, %s12420_s15  ;;  %v6696_v59 = vld [vmem:[#allocation5 + $0x490] sm:$0xff] }
0x3d9c   :  { %v7664_v26 = vpop.xlane.xlu1 %7663 }
0x3da0   :  { %v7661_v61 = vpop.xlane.xlu1 %7660 }
0x3da1   :  { %12274 = vrcp.f32 %v7661_v61 }
0x3da2   :  { %12276 = vrcp.f32 %v7664_v26 }
0x3da4   :  { %v12030_v3 = vpop.permute.xlu1 %12029 }
0x3da5   :  { %v12032_v8 = vunpack.i.h.bf16 %v12030_v3  ;;  %v12031_v17 = vunpack.i.l.bf16 %v12030_v3 }
0x3da7   :  { %v11661_v28 = vpack.c.bf16 %v12032_v8, %v12031_v17  ;;  %v9945_v17 = vld [vmem:[#allocation5 + $0x4a8] ss:$0 sm:$0xff] }
0x3da9   :  { %11662 = vmatprep.subr.bf16.mxu0 %v11661_v28 }
0x3dab   :  { %v12275_v25 = vpop.eup %12274 }
0x3dac   :  { %v12277_v15 = vpop.eup %12276  ;;  %v7667_v37 = vmul.f32 %v12275_v25, %v12273_v29 }
0x3dad   :  { %v7668_v31 = vmul.f32 %v12277_v15, %v12271_v23 }
0x3dd9   :  { %v11070_v27 = vpop.f32.mrb[66].mxu0 }
0x3dda   :  { %v7460_v34 = vpop.f32.mrb[67].mxu0 }
0x3ddb   :  { %11073 = vmatprep.mubr.msk.f32.mxu0 %vm330_vm2, %v7460_v34 }
0x3ddc   :  { %11074 = vmatmul.mubr.msk.f32.vlgmr.msra.gmra.mrb[64].mxu0 %vm330_vm2, %v11070_v27 }
0x3ddd   :  { %11664 = vmatpush3.bf16.msra.mxu0 %v11661_v28  ;;  %11087 = vmatprep.mubr.msk.f32.mxu0 %vm53_vm0, %v7667_v37 }
0x3dde   :  { %11090 = vmatprep.subr.mxu0 %v6696_v59 }
0x3de0   :  { %11088 = vmatmul.mubr.msk.f32.vlgmr.msra.gmra.mrb[68].mxu0 %vm53_vm0, %v7668_v31 }
0x3de1   :  { %11091 = vmatpush3.msra.mxu0 %v6696_v59 }
0x3eb3   :  { %v11089_v32 = vpop.f32.mrb[68].mxu0 }
0x3eb4   :  { %v7747_v38 = vpop.f32.mrb[69].mxu0 }
0x3eb5   :  { %11092 = vmatprep.mubr.msk.f32.mxu0 %vm330_vm2, %v7747_v38 }
0x3eb6   :  { %11093 = vmatmul.mubr.msk.f32.vlgmr.msra.gmra.mrb[64].mxu0 %vm330_vm2, %v11089_v32 }
0x3eb7   :  { %11114 = vmatprep.mubr.msk.f32.mxu0 %vm148_vm1, %v12760_v47 }
0x3f89   :  { %v11094_v39 = vpop.f32.mrb[64].mxu0 }
0x3f8a   :  { %v7845_v41 = vadd.f32 %v11094_v39, %v9943_v13  ;;  %v7828_v42 = vpop.f32.mrb[65].mxu0 }
0x3f8b   :  { %v7844_v44 = vadd.f32 %v9943_v13, %v7828_v42 }
0x3f8c   :  { %v7847_v16 = vadd.f32 %v7845_v41, %v13017_v57 }
0x3f8d   :  { %v7846_v21 = vadd.f32 %v7844_v44, %v13013_v54 }
0x3f8e   :  { %v7851_v50 = vsel %vm148_vm1, %v7847_v16, 0.0 }
0x3f8f   :  { %7852 = vadd.xlane.f32.xlu1 %v7851_v50  ;;  %v7848_v46 = vsel %vm148_vm1, %v7846_v21, 0.0 }
0x3f90   :  { %7849 = vadd.xlane.f32.xlu0 %v7848_v46 }
0x3fa0   :  { %12039 = vrot.lane.b32.xlu1 %v12038_v33, %s12410_s1 }
0x401c   :  { %v7853_v47 = vpop.xlane.xlu1 %7852 }
0x401d   :  { %v7855_v45 = vmul.f32 0.03125, %v7853_v47  ;;  %v7850_v52 = vpop.xlane.xlu0 %7849 }
0x401e   :  { %v7854_v49 = vmul.f32 0.03125, %v7850_v52 }
0x401f   :  { %v7857_v51 = vsub.f32 %v7847_v16, %v7855_v45 }
0x4020   :  { %v7856_v35 = vsub.f32 %v7846_v21, %v7854_v49  ;;  %v12040_v2 = vpop.permute.xlu1 %12039 }
0x4021   :  { %v7859_v57 = vmul.f32 %v7857_v51, %v7857_v51  ;;  %v12042_v11 = vunpack.i.h.bf16 %v12040_v2  ;;  %v12041_v12 = vunpack.i.l.bf16 %v12040_v2 }
0x4022   :  { %v7858_v56 = vmul.f32 %v7856_v35, %v7856_v35 }
0x4023   :  { %v7863_v54 = vsel %vm148_vm1, %v7859_v57, 0.0  ;;  %v11677_v30 = vpack.c.bf16 %v12042_v11, %v12041_v12 }
0x4024   :  { %7864 = vadd.xlane.f32.xlu0 %v7863_v54  ;;  %v7860_v58 = vsel %vm148_vm1, %v7858_v56, 0.0 }
0x4028   :  { %7861 = vadd.xlane.f32.xlu0 %v7860_v58 }
0x403e   :  { %12034 = vrot.lane.b32.xlu0 %v12033_v0, %s12410_s1 }
0x4042   :  { %7995 = vrot.lane.b32.xlu0 %v9946_v10, %s12410_s1 }
0x40b1   :  { %v7865_v1 = vpop.xlane.xlu0 %7864 }
0x40b2   :  { %v7867_v5 = vmul.f32 0.03125, %v7865_v1 }
0x40b4   :  { %v7869_v4 = vadd.f32 1e-06, %v7867_v5 }
0x40b5   :  { %v7862_v63 = vpop.xlane.xlu0 %7861 }
0x40b6   :  { %12278 = vrsqrt.f32 %v7869_v4  ;;  %v7866_v7 = vmul.f32 0.03125, %v7862_v63 }
0x40b8   :  { %v7868_v43 = vadd.f32 1e-06, %v7866_v7 }
0x40b9   :  { %v12035_v14 = vpop.permute.xlu0 %12034 }
0x40ba   :  { %12280 = vrsqrt.f32 %v7868_v43  ;;  %v12037_v18 = vunpack.i.h.bf16 %v12035_v14  ;;  %v12036_v22 = vunpack.i.l.bf16 %v12035_v14 }
0x40bc   :  { %v11673_v23 = vpack.c.bf16 %v12037_v18, %v12036_v22 }
0x40bd   :  { %v7996_v27 = vpop.permute.xlu0 %7995 }
0x40be   :  { %11674 = vmatprep.subr.bf16.mxu0 %v11673_v23 }
0x40bf   :  { %11676 = vmatpush3.bf16.msra.mxu0 %v11673_v23 }
0x40c0   :  { %v12279_v29 = vpop.eup %12278  ;;  %11678 = vmatprep.subr.bf16.mxu0 %v11677_v30 }
0x40c1   :  { %v7873_v19 = vmul.f32 %v12279_v29, %v7857_v51 }
0x40c3   :  { %11680 = vmatpush3.bf16.msra.mxu0 %v11677_v30  ;;  %v7880_v3 = vmul.f32 %v9944_v24, %v7873_v19 }
0x40c4   :  { %v12281_v26 = vpop.eup %12280 }
0x40c5   :  { %v7872_v61 = vmul.f32 %v12281_v26, %v7856_v35  ;;  %v13148_v25 = vadd.f32 %v9945_v17, %v7880_v3 }
0x40c6   :  { %11115 = vmatmul.mubr.msk.f32.vlgmr.msra.gmra.mrb[70].mxu0 %vm148_vm1, %v12762_v48 }
0x40c7   :  { %v7879_v8 = vmul.f32 %v9944_v24, %v7872_v61 }
0x40c9   :  { %v13146_v28 = vadd.f32 %v9945_v17, %v7879_v8 }
0x40cb   :  { %11103 = vmatprep.mubr.msk.f32.mxu1 %vm148_vm1, %v13146_v28 }
0x40cc   :  { %11104 = vmatmul.mubr.msk.f32.vlgmr.msra.gmra.mrb[58].mxu1 %vm148_vm1, %v13148_v25 }
0x4199   :  { %v11116_v34 = vpop.f32.mrb[70].mxu0 }
0x419a   :  { %v8070_v15 = vadd.f32 %v11116_v34, %v7996_v27  ;;  %v8064_v37 = vpop.f32.mrb[71].mxu0 }
0x419b   :  { %v8065_v59 = vadd.f32 %v8064_v37, %v7996_v27 }
0x419d   :  { %v13154_v31 = vpack.i.bf16 %v8070_v15, %v8065_v59  ;;  %v11681_v48 = vpack.c.bf16 %v8070_v15, %v8065_v59 }
0x419f   :  { %v11105_v32 = vpop.f32.mrb[58].mxu1  ;;  %12044 = vrot.lane.b32.xlu0 %v13154_v31, %s12413_s8  ;;  %11683 = vmatprep.subr.msk.bf16.mxu1 %vm12494_vm3, %v11681_v48 }
0x41a0   :  { %v13160_v38 = vadd.f32 %v11105_v32, %v9946_v10  ;;  %v7969_v13 = vpop.f32.mrb[59].mxu1  ;;  %11686 = vmatpush3.bf16.xpose.msk.msra.mxu1 %vm12494_vm3, %v11681_v48 }
0x41a1   :  { %v13164_v39 = vadd.f32 %v9946_v10, %v7969_v13 }
0x41a3   :  { %8277 = vrot.lane.b32.xlu1 %v13164_v39, %s12413_s8  ;;  %11121 = vmatprep.mubr.msk.f32.mxu1 %vm330_vm2, %v13164_v39 }
0x41a4   :  { %8279 = vrot.lane.b32.xlu0 %v13160_v38, %s12413_s8 }
0x41a7   :  { %12049 = vrot.lane.b32.xlu1 %v13154_v31, %s12415_s10  ;;  %11122 = vmatmul.mubr.msk.f32.vlgmr.msra.gmra.mrb[60].mxu1 %vm330_vm2, %v13160_v38 }
0x41a8   :  { %8643 = vrot.lane.b32.xlu0 %v13164_v39, %s12415_s10 }
0x41ab   :  { %8645 = vrot.lane.b32.xlu1 %v13160_v38, %s12415_s10 }
0x4211   :  { %v12045_v41 = vpop.permute.xlu0 %12044 }
0x4212   :  { %v12047_v42 = vunpack.i.h.bf16 %v12045_v41  ;;  %v12046_v44 = vunpack.i.l.bf16 %v12045_v41 }
0x4214   :  { %v11691_v16 = vpack.c.bf16 %v12047_v42, %v12046_v44 }
0x4215   :  { %v8278_v21 = vpop.permute.xlu1 %8277 }
0x4216   :  { %11693 = vmatprep.subr.msk.bf16.mxu1 %vm12494_vm3, %v11691_v16  ;;  %11135 = vmatprep.mubr.msk.f32.mxu1 %vm330_vm2, %v8278_v21  ;;  %v8280_v50 = vpop.permute.xlu0 %8279 }
0x4217   :  { %11696 = vmatpush3.bf16.xpose.msk.msra.mxu1 %vm12494_vm3, %v11691_v16 }
0x4219   :  { %v12050_v46 = vpop.permute.xlu1 %12049 }
0x421a   :  { %v12052_v20 = vunpack.i.h.bf16 %v12050_v46  ;;  %v12051_v55 = vunpack.i.l.bf16 %v12050_v46  ;;  %v8644_v47 = vpop.permute.xlu0 %8643 }
0x421c   :  { %v11701_v33 = vpack.c.bf16 %v12052_v20, %v12051_v55 }
0x421d   :  { %v8646_v45 = vpop.permute.xlu1 %8645 }
0x421e   :  { %11136 = vmatmul.mubr.msk.f32.vlgmr.msra.gmra.mrb[62].mxu1 %vm330_vm2, %v8280_v50  ;;  %11703 = vmatprep.subr.msk.bf16.mxu1 %vm12494_vm3, %v11701_v33 }
0x421f   :  { %11706 = vmatpush3.bf16.xpose.msk.msra.mxu1 %vm12494_vm3, %v11701_v33  ;;  %11159 = vmatprep.mubr.msk.f32.mxu1 %vm330_vm2, %v8644_v47 }
0x4226   :  { %11160 = vmatmul.mubr.msk.f32.vlgmr.msra.gmra.mrb[64].mxu1 %vm330_vm2, %v8646_v45 }
0x427a   :  { %v11123_v52 = vpop.f32.mrb[60].mxu1 }
0x427b   :  { %v8165_v49 = vmul.f32 0.35355338, %v11123_v52  ;;  %v8155_v51 = vpop.f32.mrb[61].mxu1 }
0x427c   :  { %v8164_v35 = vmul.f32 0.35355338, %v8155_v51 }
0x427d   :  { %v8167_v57 = vadd.f32 %v13048_v9, %v8165_v49 }
0x427e   :  { %v8166_v54 = vadd.f32 %v13045_v6, %v8164_v35 }
0x427f   :  { %v8171_v56 = vsel %vm53_vm0, %v8167_v57, -inf }
0x4280   :  { %8172 = vmax.xlane.f32.xlu1 %v8171_v56  ;;  %v8168_v58 = vsel %vm53_vm0, %v8166_v54, -inf }
0x4281   :  { %8169 = vmax.xlane.f32.xlu0 %v8168_v58 }
0x42f1   :  { %v11137_v60 = vpop.f32.mrb[62].mxu1 }
0x42f2   :  { %v8359_v62 = vpop.f32.mrb[63].mxu1  ;;  %v8369_v0 = vmul.f32 0.35355338, %v11137_v60 }
0x42f3   :  { %v8368_v53 = vmul.f32 0.35355338, %v8359_v62 }
0x42f4   :  { %v8371_v10 = vadd.f32 %v13048_v9, %v8369_v0 }
0x42f5   :  { %v8370_v36 = vadd.f32 %v13045_v6, %v8368_v53 }
0x42f6   :  { %v8375_v63 = vsel %vm53_vm0, %v8371_v10, -inf }
0x42f7   :  { %v8372_v1 = vsel %vm53_vm0, %v8370_v36, -inf }
0x42f8   :  { %8373 = vmax.xlane.f32.xlu0 %v8372_v1 }
0x42f9   :  { %v11161_v5 = vpop.f32.mrb[64].mxu1 }
0x42fa   :  { %v8725_v4 = vpop.f32.mrb[65].mxu1  ;;  %v8735_v48 = vmul.f32 0.35355338, %v11161_v5 }
0x42fb   :  { %v8734_v32 = vmul.f32 0.35355338, %v8725_v4 }
0x42fc   :  { %8376 = vmax.xlane.f32.xlu0 %v8375_v63  ;;  %v8737_v13 = vadd.f32 %v13048_v9, %v8735_v48 }
0x42fd   :  { %v8736_v41 = vadd.f32 %v13045_v6, %v8734_v32 }
0x42ff   :  { %v8738_v42 = vsel %vm53_vm0, %v8736_v41, -inf }
0x430d   :  { %v8173_v2 = vpop.xlane.xlu1 %8172 }
0x430e   :  { %v8175_v7 = vsub.f32 %v8167_v57, %v8173_v2  ;;  %v8170_v43 = vpop.xlane.xlu0 %8169 }
0x430f   :  { %v8174_v11 = vsub.f32 %v8166_v54, %v8170_v43 }
0x4310   :  { %v8178_v12 = vmul.f32 1.442695, %v8175_v7 }
0x4311   :  { %v8176_v14 = vmul.f32 1.442695, %v8174_v11  ;;  %v8074_v11 = vld [vmem:[#allocation5 + $0x4e0] sm:$0xff] }
0x4312   :  { %12282 = vpow2.f32 %v8178_v12  ;;  %v8073_v12 = vld [vmem:[#allocation5 + $0x4d8] sm:$0xff] }
0x4313   :  { %12284 = vpow2.f32 %v8176_v14 }
0x431c   :  { %v12283_v18 = vpop.eup %12282 }
0x431d   :  { %v12285_v22 = vpop.eup %12284  ;;  %v8183_v23 = vsel %vm53_vm0, %v12283_v18, 0.0 }
0x431e   :  { %8184 = vadd.xlane.f32.xlu0 %v8183_v23  ;;  %v8180_v30 = vsel %vm53_vm0, %v12285_v22, 0.0 }
0x431f   :  { %8181 = vadd.xlane.f32.xlu1 %v8180_v30 }
0x4385   :  { %v8374_v29 = vpop.xlane.xlu0 %8373 }
0x4386   :  { %v8378_v19 = vsub.f32 %v8370_v36, %v8374_v29 }
0x4388   :  { %v8380_v24 = vmul.f32 1.442695, %v8378_v19 }
0x4389   :  { %v8377_v26 = vpop.xlane.xlu0 %8376 }
0x438a   :  { %12286 = vpow2.f32 %v8380_v24  ;;  %v8379_v61 = vsub.f32 %v8371_v10, %v8377_v26 }
0x438c   :  { %v8382_v3 = vmul.f32 1.442695, %v8379_v61 }
0x438e   :  { %12288 = vpow2.f32 %v8382_v3 }
0x4394   :  { %v12287_v8 = vpop.eup %12286 }
0x4395   :  { %v8384_v17 = vsel %vm53_vm0, %v12287_v8, 0.0 }
0x4396   :  { %8385 = vadd.xlane.f32.xlu1 %v8384_v17 }
0x4398   :  { %v12289_v27 = vpop.eup %12288 }
0x4399   :  { %v8387_v34 = vsel %vm53_vm0, %v12289_v27, 0.0 }
0x439a   :  { %8388 = vadd.xlane.f32.xlu0 %v8387_v34 }
0x43a7   :  { %12054 = vrot.lane.b32.xlu1 %v13154_v31, %s12410_s1 }
0x43ab   :  { %12064 = vrot.lane.b32.xlu1 %v13154_v31, %s12418_s13  ;;  %v8185_v44 = vpop.xlane.xlu0 %8184 }
0x43ac   :  { %v8182_v15 = vpop.xlane.xlu1 %8181 }
0x43ad   :  { %12290 = vrcp.f32 %v8182_v15 }
0x43ae   :  { %12292 = vrcp.f32 %v8185_v44 }
0x43af   :  { %8930 = vrot.lane.b32.xlu1 %v13164_v39, %s12418_s13  ;;  %v8741_v39 = vsel %vm53_vm0, %v8737_v13, -inf }
0x43b0   :  { %12059 = vrot.lane.b32.xlu0 %v13154_v31, %s12412_s7 }
0x43b4   :  { %8932 = vrot.lane.b32.xlu0 %v13160_v38, %s12418_s13 }
0x43b7   :  { %v12291_v37 = vpop.eup %12290 }
0x43b8   :  { %v8188_v59 = vmul.f32 %v12291_v37, %v12285_v22  ;;  %v12293_v55 = vpop.eup %12292 }
0x43b9   :  { %v8189_v57 = vmul.f32 %v12293_v55, %v12283_v18 }
0x43ba   :  { %11128 = vmatprep.mubr.msk.f32.mxu0 %vm53_vm0, %v8188_v59 }
0x43d3   :  { %8739 = vmax.xlane.f32.xlu1 %v8738_v42  ;;  %8742 = vmax.xlane.f32.xlu0 %v8741_v39  ;;  %v8075_v42 = vld [vmem:[#allocation5 + $0x4e8] sm:$0xff] }
0x4423   :  { %v8386_v16 = vpop.xlane.xlu1 %8385 }
0x4424   :  { %12294 = vrcp.f32 %v8386_v16 }
0x4427   :  { %v12055_v38 = vpop.permute.xlu1 %12054  ;;  %v8389_v21 = vpop.xlane.xlu0 %8388 }
0x4428   :  { %v12057_v50 = vunpack.i.h.bf16 %v12055_v38  ;;  %v12056_v46 = vunpack.i.l.bf16 %v12055_v38  ;;  %12296 = vrcp.f32 %v8389_v21 }
0x442a   :  { %v11687_v20 = vpack.c.bf16 %v12057_v50, %v12056_v46 }
0x442b   :  { %v12065_v33 = vpop.permute.xlu1 %12064  ;;  %v12060_v47 = vpop.permute.xlu0 %12059 }
0x442c   :  { %v12067_v45 = vunpack.i.h.bf16 %v12065_v33  ;;  %v12066_v52 = vunpack.i.l.bf16 %v12065_v33  ;;  %v12062_v49 = vunpack.i.h.bf16 %v12060_v47  ;;  %v12061_v51 = vunpack.i.l.bf16 %v12060_v47  ;;  %11688 = vmatprep.subr.bf16.mxu0 %v11687_v20 }
0x442d   :  { %11690 = vmatpush3.bf16.msra.mxu0 %v11687_v20 }
0x442e   :  { %v12295_v35 = vpop.eup %12294  ;;  %v11711_v54 = vpack.c.bf16 %v12067_v45, %v12066_v52  ;;  %v11697_v56 = vpack.c.bf16 %v12062_v49, %v12061_v51 }
0x442f   :  { %v8931_v58 = vpop.permute.xlu1 %8930  ;;  %v8392_v60 = vmul.f32 %v12295_v35, %v12287_v8  ;;  %v8933_v53 = vpop.permute.xlu0 %8932 }
0x4430   :  { %11129 = vmatmul.mubr.msk.f32.vlgmr.msra.gmra.mrb[72].mxu0 %vm53_vm0, %v8189_v57  ;;  %11698 = vmatprep.subr.bf16.mxu0 %v11697_v56  ;;  %v8076_v57 = vld [vmem:[#allocation5 + $0x4f0] sm:$0xff] }
0x4431   :  { %11713 = vmatprep.subr.msk.bf16.mxu1 %vm12494_vm3, %v11711_v54  ;;  %11178 = vmatprep.mubr.msk.f32.mxu1 %vm330_vm2, %v8931_v58 }
0x4432   :  { %v12297_v62 = vpop.eup %12296  ;;  %11700 = vmatpush3.bf16.msra.mxu0 %v11697_v56  ;;  %11142 = vmatprep.mubr.msk.f32.mxu0 %vm53_vm0, %v8392_v60 }
0x4433   :  { %v8393_v0 = vmul.f32 %v12297_v62, %v12289_v27  ;;  %11716 = vmatpush3.bf16.xpose.msk.msra.mxu1 %vm12494_vm3, %v11711_v54  ;;  %11145 = vmatprep.subr.mxu0 %v8074_v11 }
0x4435   :  { %11143 = vmatmul.mubr.msk.f32.vlgmr.msra.gmra.mrb[74].mxu0 %vm53_vm0, %v8393_v0  ;;  %v9983_v0 = vld [vmem:[#allocation5 + $0x4f8] ss:$0 sm:$0xff] }
0x4436   :  { %11146 = vmatpush3.msra.mxu0 %v8074_v11 }
0x4437   :  { %11150 = vmatprep.subr.mxu0 %v8073_v12 }
0x443a   :  { %11179 = vmatmul.mubr.msk.f32.vlgmr.msra.gmra.mrb[66].mxu1 %vm330_vm2, %v8933_v53 }
0x4460   :  { %v8740_v36 = vpop.xlane.xlu1 %8739  ;;  %v8743_v10 = vpop.xlane.xlu0 %8742 }
0x4461   :  { %v8744_v1 = vsub.f32 %v8736_v41, %v8740_v36  ;;  %v8745_v5 = vsub.f32 %v8737_v13, %v8743_v10 }
0x4463   :  { %v8746_v4 = vmul.f32 1.442695, %v8744_v1  ;;  %v8748_v63 = vmul.f32 1.442695, %v8745_v5 }
0x4465   :  { %12298 = vpow2.f32 %v8746_v4 }
0x4466   :  { %12300 = vpow2.f32 %v8748_v63 }
0x446f   :  { %v12299_v2 = vpop.eup %12298 }
0x4470   :  { %v12301_v7 = vpop.eup %12300  ;;  %v8750_v43 = vsel %vm53_vm0, %v12299_v2, 0.0 }
0x4471   :  { %8751 = vadd.xlane.f32.xlu0 %v8750_v43  ;;  %v8753_v40 = vsel %vm53_vm0, %v12301_v7, 0.0 }
0x4472   :  { %8754 = vadd.xlane.f32.xlu1 %v8753_v40 }
0x4487   :  { %12069 = vrot.lane.b32.xlu0 %v13154_v31, %s12414_s9 }
0x44fe   :  { %v8752_v14 = vpop.xlane.xlu0 %8751 }
0x44ff   :  { %v8755_v30 = vpop.xlane.xlu1 %8754  ;;  %12302 = vrcp.f32 %v8752_v14 }
0x4500   :  { %12304 = vrcp.f32 %v8755_v30  ;;  %v9267_v30 = vld [vmem:[#allocation5 + $0x518] sm:$0xff] }
0x4502   :  { %v12070_v22 = vpop.permute.xlu0 %12069 }
0x4503   :  { %v11130_v18 = vpop.f32.mrb[72].mxu0  ;;  %v12072_v29 = vunpack.i.h.bf16 %v12070_v22  ;;  %v12071_v19 = vunpack.i.l.bf16 %v12070_v22 }
0x4504   :  { %v8268_v23 = vpop.f32.mrb[73].mxu0 }
0x4505   :  { %v11707_v61 = vpack.c.bf16 %v12072_v29, %v12071_v19  ;;  %v9268_v19 = vld [vmem:[#allocation5 + $0x520] sm:$0xff] }
0x4508   :  { %v11144_v24 = vpop.f32.mrb[74].mxu0 }
0x4509   :  { %v8472_v26 = vpop.f32.mrb[75].mxu0  ;;  %v12303_v34 = vpop.eup %12302 }
0x450a   :  { %11147 = vmatprep.mubr.msk.f32.mxu0 %vm330_vm2, %v8472_v26  ;;  %v12305_v37 = vpop.eup %12304  ;;  %v8758_v32 = vmul.f32 %v12303_v34, %v12299_v2 }
0x450b   :  { %11148 = vmatmul.mubr.msk.f32.vlgmr.msra.gmra.mrb[76].mxu0 %vm330_vm2, %v11144_v24  ;;  %v8759_v13 = vmul.f32 %v12305_v37, %v12301_v7  ;;  %v9269_v24 = vld [vmem:[#allocation5 + $0x528] sm:$0xff] }
0x450c   :  { %11151 = vmatpush3.msra.mxu0 %v8073_v12  ;;  %11152 = vmatprep.mubr.msk.f32.mxu0 %vm330_vm2, %v8268_v23  ;;  %v11725_v26 = vpack.c.bf16 %v9269_v24, %v9268_v19 }
0x450d   :  { %v11180_v3 = vpop.f32.mrb[66].mxu1  ;;  %11708 = vmatprep.subr.bf16.mxu0 %v11707_v61 }
0x450e   :  { %v9012_v8 = vpop.f32.mrb[67].mxu1  ;;  %v9022_v17 = vmul.f32 0.35355338, %v11180_v3  ;;  %v9375_v3 = vld [vmem:[#allocation5 + $0x540] sm:$0xff] }
0x450f   :  { %v9021_v27 = vmul.f32 0.35355338, %v9012_v8 }
0x4510   :  { %v9024_v59 = vadd.f32 %v13048_v9, %v9022_v17 }
0x4511   :  { %v9023_v15 = vadd.f32 %v13045_v6, %v9021_v27 }
0x4512   :  { %v9028_v41 = vsel %vm53_vm0, %v9024_v59, -inf }
0x4513   :  { %v9025_v48 = vsel %vm53_vm0, %v9023_v15, -inf  ;;  %11153 = vmatmul.mubr.msk.f32.vlgmr.msra.gmra.mrb[76].mxu0 %vm330_vm2, %v11130_v18 }
0x4514   :  { %9026 = vmax.xlane.f32.xlu1 %v9025_v48  ;;  %11710 = vmatpush3.bf16.msra.mxu0 %v11707_v61  ;;  %v9374_v61 = vld [vmem:[#allocation5 + $0x538] sm:$0xff] }
0x4515   :  { %11166 = vmatprep.mubr.msk.f32.mxu0 %vm53_vm0, %v8758_v32  ;;  %11169 = vmatprep.subr.mxu0 %v8075_v42  ;;  %v11729_v8 = vpack.c.bf16 %v9375_v3, %v9374_v61  ;;  %v9984_v32 = vld [vmem:[#allocation5 + $0x500] ss:$0 sm:$0xff] }
0x4517   :  { %11167 = vmatmul.mubr.msk.f32.vlgmr.msra.gmra.mrb[78].mxu0 %vm53_vm0, %v8759_v13 }
0x4518   :  { %9029 = vmax.xlane.f32.xlu1 %v9028_v41  ;;  %11170 = vmatpush3.msra.mxu0 %v8075_v42  ;;  %v9985_v41 = vld [vmem:[#allocation5 + $0x508] ss:$0 sm:$0xff] }
0x45a1   :  { %v9027_v6 = vpop.xlane.xlu1 %9026 }
0x45a2   :  { %v9031_v9 = vsub.f32 %v9023_v15, %v9027_v6 }
0x45a4   :  { %v9033_v16 = vmul.f32 1.442695, %v9031_v9 }
0x45a5   :  { %v9030_v39 = vpop.xlane.xlu1 %9029 }
0x45a6   :  { %v9032_v44 = vsub.f32 %v9024_v59, %v9030_v39 }
0x45a8   :  { %v9035_v38 = vmul.f32 1.442695, %v9032_v44 }
0x45aa   :  { %12306 = vpow2.f32 %v9035_v38  ;;  %v9376_v38 = vld [vmem:[#allocation5 + $0x548] sm:$0xff] }
0x45ab   :  { %12308 = vpow2.f32 %v9033_v16 }
0x45b4   :  { %v12307_v21 = vpop.eup %12306 }
0x45b5   :  { %v9040_v50 = vsel %vm53_vm0, %v12307_v21, 0.0  ;;  %v12309_v46 = vpop.eup %12308 }
0x45b6   :  { %9041 = vadd.xlane.f32.xlu1 %v9040_v50  ;;  %v9037_v20 = vsel %vm53_vm0, %v12309_v46, 0.0 }
0x45ba   :  { %9038 = vadd.xlane.f32.xlu1 %v9037_v20  ;;  %v9379_v20 = vld [vmem:[#allocation5 + $0x560] sm:$0xff] }
0x45cb   :  { %12074 = vrot.lane.b32.xlu1 %v13154_v31, %s12417_s12 }
0x45ea   :  { %v11168_v55 = vpop.f32.mrb[78].mxu0 }
0x45eb   :  { %v8838_v33 = vpop.f32.mrb[79].mxu0 }
0x45ec   :  { %11171 = vmatprep.mubr.msk.f32.mxu0 %vm330_vm2, %v8838_v33  ;;  %v9380_v33 = vld [vmem:[#allocation5 + $0x568] sm:$0xff] }
0x45ed   :  { %11172 = vmatmul.mubr.msk.f32.vlgmr.msra.gmra.mrb[76].mxu0 %vm330_vm2, %v11168_v55 }
0x4643   :  { %v9042_v47 = vpop.xlane.xlu1 %9041 }
0x4644   :  { %12310 = vrcp.f32 %v9042_v47  ;;  %v9381_v47 = vld [vmem:[#allocation5 + $0x570] sm:$0xff] }
0x4647   :  { %v9039_v45 = vpop.xlane.xlu1 %9038 }
0x4648   :  { %12312 = vrcp.f32 %v9039_v45  ;;  %v11741_v45 = vpack.c.bf16 %v9381_v47, %v9380_v33 }
0x464b   :  { %v12075_v52 = vpop.permute.xlu1 %12074 }
0x464c   :  { %v12077_v49 = vunpack.i.h.bf16 %v12075_v52  ;;  %v12076_v51 = vunpack.i.l.bf16 %v12075_v52  ;;  %v9382_v52 = vld [vmem:[#allocation5 + $0x578] sm:$0xff] }
0x464e   :  { %v11717_v35 = vpack.c.bf16 %v12077_v49, %v12076_v51  ;;  %v12311_v54 = vpop.eup %12310  ;;  %v9383_v49 = vld [vmem:[#allocation5 + $0x580] sm:$0xff]  ;;  %v9384_v51 = vld [vmem:[#allocation5 + $0x588] sm:$0xff] }
0x464f   :  { %v9046_v58 = vmul.f32 %v12311_v54, %v12307_v21  ;;  %v9377_v21 = vld [vmem:[#allocation5 + $0x550] sm:$0xff] }
0x4650   :  { %11718 = vmatprep.subr.bf16.mxu0 %v11717_v35  ;;  %v11733_v50 = vpack.c.bf16 %v9377_v21, %v9376_v38  ;;  %v9513_v38 = vld [vmem:[#allocation5 + $0x5d8] sm:$0xff] }
0x4651   :  { %11720 = vmatpush3.bf16.msra.mxu0 %v11717_v35  ;;  %v11745_v35 = vpack.c.bf16 %v9383_v49, %v9382_v52 }
0x4652   :  { %v12313_v56 = vpop.eup %12312  ;;  %11188 = vmatprep.subr.mxu0 %v8076_v57 }
0x4653   :  { %v9045_v31 = vmul.f32 %v12313_v56, %v12309_v46  ;;  %v9378_v46 = vld [vmem:[#allocation5 + $0x558] sm:$0xff] }
0x4654   :  { %v11737_v55 = vpack.c.bf16 %v9379_v20, %v9378_v46  ;;  %v9386_v56 = vld [vmem:[#allocation5 + $0x598] sm:$0xff]  ;;  %v9515_v46 = vld [vmem:[#allocation5 + $0x5e8] sm:$0xff] }
0x4655   :  { %11185 = vmatprep.mubr.msk.f32.mxu0 %vm53_vm0, %v9045_v31  ;;  %v9387_v31 = vld [vmem:[#allocation5 + $0x5a0] sm:$0xff] }
0x4656   :  { %11186 = vmatmul.mubr.msk.f32.vlgmr.msra.gmra.mrb[80].mxu0 %vm53_vm0, %v9046_v58  ;;  %v11753_v58 = vpack.c.bf16 %v9387_v31, %v9386_v56 }
0x4657   :  { %11189 = vmatpush3.msra.mxu0 %v8076_v57  ;;  %v9385_v57 = vld [vmem:[#allocation5 + $0x590] sm:$0xff] }
0x4658   :  { %11730 = vmatprep.subr.bf16.mxu0 %v11729_v8  ;;  %v11749_v54 = vpack.c.bf16 %v9385_v57, %v9384_v51 }
0x4729   :  { %v11187_v60 = vpop.f32.mrb[80].mxu0 }
0x472a   :  { %v9125_v62 = vpop.f32.mrb[81].mxu0 }
0x472b   :  { %11190 = vmatprep.mubr.msk.f32.mxu0 %vm330_vm2, %v9125_v62  ;;  %v9389_v62 = vld [vmem:[#allocation5 + $0x5b0] sm:$0xff] }
0x472c   :  { %11191 = vmatmul.mubr.msk.f32.vlgmr.msra.gmra.mrb[76].mxu0 %vm330_vm2, %v11187_v60  ;;  %v9388_v60 = vld [vmem:[#allocation5 + $0x5a8] sm:$0xff] }
0x472d   :  { %11732 = vmatpush3.bf16.msra.mxu0 %v11729_v8 }
0x472e   :  { %11734 = vmatprep.subr.bf16.mxu0 %v11733_v50 }
0x4731   :  { %11736 = vmatpush3.bf16.msra.mxu0 %v11733_v50  ;;  %v9514_v50 = vld [vmem:[#allocation5 + $0x5e0] sm:$0xff] }
0x4732   :  { %11738 = vmatprep.subr.bf16.mxu0 %v11737_v55  ;;  %v11765_v20 = vpack.c.bf16 %v9515_v46, %v9514_v50 }
0x4735   :  { %11740 = vmatpush3.bf16.msra.mxu0 %v11737_v55 }
0x4736   :  { %11742 = vmatprep.subr.bf16.mxu0 %v11741_v45 }
0x4739   :  { %11744 = vmatpush3.bf16.msra.mxu0 %v11741_v45 }
0x473a   :  { %11746 = vmatprep.subr.bf16.mxu0 %v11745_v35 }
0x473d   :  { %11748 = vmatpush3.bf16.msra.mxu0 %v11745_v35  ;;  %v9990_v35 = vld [vmem:[#allocation5 + $0x5c0] ss:$0 sm:$0xff] }
0x473e   :  { %11750 = vmatprep.subr.bf16.mxu0 %v11749_v54 }
0x4741   :  { %11752 = vmatpush3.bf16.msra.mxu0 %v11749_v54  ;;  %v9991_v54 = vld [vmem:[#allocation5 + $0x5c8] ss:$0 sm:$0xff] }
0x4742   :  { %11754 = vmatprep.subr.bf16.mxu0 %v11753_v58 }
0x4745   :  { %11756 = vmatpush3.bf16.msra.mxu0 %v11753_v58 }
0x47ff   :  { %v11192_v53 = vpop.f32.mrb[76].mxu0 }
0x4800   :  { %v9223_v36 = vadd.f32 %v11192_v53, %v9983_v0  ;;  %v9206_v10 = vpop.f32.mrb[77].mxu0  ;;  %v9986_v53 = vld [vmem:[#allocation5 + $0x530] ss:$0 sm:$0xff] }
0x4801   :  { %v9222_v1 = vadd.f32 %v9983_v0, %v9206_v10  ;;  %v11757_v0 = vpack.c.bf16 %v9389_v62, %v9388_v60 }
0x4802   :  { %v9225_v5 = vadd.f32 %v9223_v36, %v13148_v25 }
0x4803   :  { %v9224_v4 = vadd.f32 %v9222_v1, %v13146_v28  ;;  %v9266_v28 = vld [vmem:[#allocation5 + $0x510] sm:$0xff]  ;;  %11758 = vmatprep.subr.bf16.mxu0 %v11757_v0 }
0x4804   :  { %v9229_v63 = vsel %vm148_vm1, %v9225_v5, 0.0  ;;  %v11721_v29 = vpack.c.bf16 %v9267_v30, %v9266_v28  ;;  %11760 = vmatpush3.bf16.msra.mxu0 %v11757_v0 }
0x4805   :  { %9230 = vadd.xlane.f32.xlu1 %v9229_v63  ;;  %v9226_v2 = vsel %vm148_vm1, %v9224_v4, 0.0 }
0x4806   :  { %9227 = vadd.xlane.f32.xlu0 %v9226_v2  ;;  %11722 = vmatprep.subr.bf16.mxu1 %v11721_v29 }
0x4807   :  { %11724 = vmatpush3.bf16.msra.mxu1 %v11721_v29 }
0x4808   :  { %11726 = vmatprep.subr.bf16.mxu1 %v11725_v26 }
0x480b   :  { %11728 = vmatpush3.bf16.msra.mxu1 %v11725_v26  ;;  %v9989_v26 = vld [vmem:[#allocation5 + $0x5b8] ss:$0 sm:$0xff] }
0x4892   :  { %v9231_v7 = vpop.xlane.xlu1 %9230 }
0x4893   :  { %v9233_v43 = vmul.f32 0.03125, %v9231_v7  ;;  %v9228_v40 = vpop.xlane.xlu0 %9227 }
0x4894   :  { %v9232_v11 = vmul.f32 0.03125, %v9228_v40 }
0x4895   :  { %v9235_v12 = vsub.f32 %v9225_v5, %v9233_v43 }
0x4896   :  { %v9234_v14 = vsub.f32 %v9224_v4, %v9232_v11 }
0x4897   :  { %v9237_v23 = vmul.f32 %v9235_v12, %v9235_v12 }
0x4898   :  { %v9236_v18 = vmul.f32 %v9234_v14, %v9234_v14 }
0x4899   :  { %v9241_v25 = vsel %vm148_vm1, %v9237_v23, 0.0 }
0x489a   :  { %v9238_v22 = vsel %vm148_vm1, %v9236_v18, 0.0 }
0x489b   :  { %9239 = vadd.xlane.f32.xlu0 %v9238_v22 }
0x489f   :  { %9242 = vadd.xlane.f32.xlu0 %v9241_v25 }
0x4928   :  { %v9240_v17 = vpop.xlane.xlu0 %9239 }
0x4929   :  { %v9244_v27 = vmul.f32 0.03125, %v9240_v17 }
0x492b   :  { %v9246_v34 = vadd.f32 1e-06, %v9244_v27 }
0x492c   :  { %v9243_v15 = vpop.xlane.xlu0 %9242 }
0x492d   :  { %12314 = vrsqrt.f32 %v9246_v34  ;;  %v9245_v37 = vmul.f32 0.03125, %v9243_v15 }
0x492f   :  { %v9247_v59 = vadd.f32 1e-06, %v9245_v37 }
0x4931   :  { %12316 = vrsqrt.f32 %v9247_v59 }
0x4937   :  { %v12315_v48 = vpop.eup %12314 }
0x4938   :  { %v9250_v13 = vmul.f32 %v12315_v48, %v9234_v14 }
0x493a   :  { %v9257_v42 = vmul.f32 %v9984_v32, %v9250_v13 }
0x493b   :  { %v12317_v6 = vpop.eup %12316 }
0x493c   :  { %v9251_v9 = vmul.f32 %v12317_v6, %v9235_v12  ;;  %v13258_v39 = vadd.f32 %v9985_v41, %v9257_v42 }
0x493e   :  { %v9258_v44 = vmul.f32 %v9984_v32, %v9251_v9  ;;  %11201 = vmatprep.mubr.msk.f32.mxu1 %vm148_vm1, %v13258_v39 }
0x4940   :  { %v13262_v16 = vadd.f32 %v9985_v41, %v9258_v44 }
0x4942   :  { %11202 = vmatmul.mubr.msk.f32.vlgmr.msra.gmra.mrb[68].mxu1 %vm148_vm1, %v13262_v16 }
0x4a15   :  { %v11203_v36 = vpop.f32.mrb[68].mxu1 }
0x4a16   :  { %v9353_v10 = vadd.f32 %v11203_v36, %v9986_v53  ;;  %v9347_v1 = vpop.f32.mrb[69].mxu1  ;;  %v9603_v36 = vld [vmem:[#allocation5 + $0x600] sm:$0xff] }
0x4a17   :  { %v9348_v5 = vadd.f32 %v9986_v53, %v9347_v1  ;;  %v9602_v53 = vld [vmem:[#allocation5 + $0x5f8] sm:$0xff]  ;;  %v9992_v1 = vld [vmem:[#allocation5 + $0x5f0] ss:$0 sm:$0xff] }
0x4a18   :  { %v9359_v4 = vmul.f32 0.044715, %v9353_v10  ;;  %v9357_v29 = vmul.f32 0.5, %v9353_v10 }
0x4a19   :  { %v9358_v63 = vmul.f32 0.044715, %v9348_v5  ;;  %v9356_v28 = vmul.f32 0.5, %v9348_v5 }
0x4a1a   :  { %v9361_v2 = vmul.f32 %v9359_v4, %v9353_v10 }
0x4a1b   :  { %v9360_v7 = vmul.f32 %v9358_v63, %v9348_v5 }
0x4a1c   :  { %v9363_v43 = vmul.f32 %v9361_v2, %v9353_v10 }
0x4a1d   :  { %v9362_v40 = vmul.f32 %v9360_v7, %v9348_v5  ;;  %v9995_v7 = vld [vmem:[#allocation5 + $0x608] ss:$0 sm:$0xff] }
0x4a1e   :  { %v9365_v11 = vadd.f32 %v9363_v43, %v9353_v10  ;;  %v11769_v10 = vpack.c.bf16 %v9603_v36, %v9602_v53 }
0x4a1f   :  { %v9364_v12 = vadd.f32 %v9362_v40, %v9348_v5 }
0x4a20   :  { %v9367_v14 = vmul.f32 0.7978846, %v9365_v11 }
0x4a21   :  { %v9366_v18 = vmul.f32 0.7978846, %v9364_v12 }
0x4a22   :  { %12318 = vtanh.f32 %v9367_v14 }
0x4a23   :  { %12320 = vtanh.f32 %v9366_v18 }
0x4a2c   :  { %v12319_v22 = vpop.eup %12318 }
0x4a2d   :  { %v12321_v23 = vpop.eup %12320  ;;  %v9371_v25 = vadd.f32 1.0, %v12319_v22 }
0x4a2e   :  { %v9370_v30 = vadd.f32 1.0, %v12321_v23 }
0x4a2f   :  { %v9373_v24 = vmul.f32 %v9371_v25, %v9357_v29 }
0x4a30   :  { %v9372_v19 = vmul.f32 %v9370_v30, %v9356_v28 }
0x4a32   :  { %11236 = vmatprep.mubr.f32.mxu0 %v9372_v19 }
0x4a33   :  { %11237 = vmatmul.mubr.f32.vlgmr.msra.gmra.mrb[82].mxu0 %v9373_v24 }
0x4b06   :  { %v11238_v61 = vpop.f32.mrb[82].mxu0 }
0x4b07   :  { %v9461_v3 = vpop.f32.mrb[83].mxu0  ;;  %v9467_v8 = vadd.f32 %v11238_v61, %v9989_v26 }
0x4b08   :  { %v9462_v17 = vadd.f32 %v9989_v26, %v9461_v3 }
0x4b09   :  { %v9471_v34 = vadd.f32 %v9467_v8, %v13262_v16  ;;  %v9512_v16 = vld [vmem:[#allocation5 + $0x5d0] sm:$0xff] }
0x4b0a   :  { %v9470_v27 = vadd.f32 %v9462_v17, %v13258_v39  ;;  %v11761_v21 = vpack.c.bf16 %v9513_v38, %v9512_v16 }
0x4b0b   :  { %v9475_v37 = vsel %vm148_vm1, %v9471_v34, 0.0 }
0x4b0c   :  { %v9472_v15 = vsel %vm148_vm1, %v9470_v27, 0.0  ;;  %11762 = vmatprep.subr.bf16.mxu1 %v11761_v21 }
0x4b0d   :  { %9473 = vadd.xlane.f32.xlu0 %v9472_v15  ;;  %11764 = vmatpush3.bf16.msra.mxu1 %v11761_v21 }
0x4b0e   :  { %11766 = vmatprep.subr.bf16.mxu1 %v11765_v20 }
0x4b11   :  { %9476 = vadd.xlane.f32.xlu0 %v9475_v37  ;;  %11768 = vmatpush3.bf16.msra.mxu1 %v11765_v20 }
0x4b12   :  { %11770 = vmatprep.subr.bf16.mxu1 %v11769_v10 }
0x4b9a   :  { %v9474_v59 = vpop.xlane.xlu0 %9473 }
0x4b9b   :  { %v9478_v48 = vmul.f32 0.03125, %v9474_v59 }
0x4b9d   :  { %v9480_v32 = vsub.f32 %v9470_v27, %v9478_v48 }
0x4b9e   :  { %v9477_v13 = vpop.xlane.xlu0 %9476 }
0x4b9f   :  { %v9479_v41 = vmul.f32 0.03125, %v9477_v13  ;;  %v9482_v42 = vmul.f32 %v9480_v32, %v9480_v32 }
0x4ba1   :  { %v9481_v6 = vsub.f32 %v9471_v34, %v9479_v41  ;;  %v9484_v9 = vsel %vm148_vm1, %v9482_v42, 0.0 }
0x4ba2   :  { %9485 = vadd.xlane.f32.xlu0 %v9484_v9 }
0x4ba3   :  { %v9483_v44 = vmul.f32 %v9481_v6, %v9481_v6 }
0x4ba5   :  { %v9487_v39 = vsel %vm148_vm1, %v9483_v44, 0.0 }
0x4ba6   :  { %9488 = vadd.xlane.f32.xlu1 %v9487_v39 }
0x4c2f   :  { %v9486_v55 = vpop.xlane.xlu0 %9485 }
0x4c30   :  { %v9490_v33 = vmul.f32 0.03125, %v9486_v55 }
0x4c32   :  { %v9492_v47 = vadd.f32 1e-06, %v9490_v33 }
0x4c33   :  { %v9489_v45 = vpop.xlane.xlu1 %9488 }
0x4c34   :  { %12322 = vrsqrt.f32 %v9492_v47  ;;  %v9491_v52 = vmul.f32 0.03125, %v9489_v45 }
0x4c36   :  { %v9493_v49 = vadd.f32 1e-06, %v9491_v52 }
0x4c38   :  { %12324 = vrsqrt.f32 %v9493_v49 }
0x4c3e   :  { %v12323_v51 = vpop.eup %12322 }
0x4c3f   :  { %v9496_v57 = vmul.f32 %v12323_v51, %v9480_v32 }
0x4c41   :  { %v9503_v56 = vmul.f32 %v9990_v35, %v9496_v57 }
0x4c42   :  { %v12325_v31 = vpop.eup %12324 }
0x4c43   :  { %v9497_v58 = vmul.f32 %v12325_v31, %v9481_v6  ;;  %v9510_v60 = vadd.f32 %v9991_v54, %v9503_v56 }
0x4c45   :  { %v9504_v62 = vmul.f32 %v9990_v35, %v9497_v58  ;;  %11247 = vmatprep.mubr.msk.f32.mxu1 %vm148_vm1, %v9510_v60 }
0x4c47   :  { %v9511_v0 = vadd.f32 %v9991_v54, %v9504_v62 }
0x4c49   :  { %11248 = vmatmul.mubr.msk.f32.vlgmr.msra.gmra.mrb[70].mxu1 %vm148_vm1, %v9511_v0 }
0x4c4a   :  { %11772 = vmatpush3.bf16.msra.mxu1 %v11769_v10 }
0x4d1c   :  { %v11249_v5 = vpop.f32.mrb[70].mxu1 }
0x4d1d   :  { %v9593_v4 = vpop.f32.mrb[71].mxu1  ;;  %v9599_v2 = vadd.f32 %v11249_v5, %v9992_v1 }
0x4d1e   :  { %v9594_v63 = vadd.f32 %v9992_v1, %v9593_v4 }
0x4d20   :  { %11254 = vmatprep.mubr.msk.f32.mxu1 %vm53_vm0, %v9594_v63 }
0x4d21   :  { %11255 = vmatmul.mubr.msk.f32.vlgmr.msra.gmra.mrb[72].mxu1 %vm53_vm0, %v9599_v2 }
0x4df4   :  { %v11256_v43 = vpop.f32.mrb[72].mxu1 }
0x4df5   :  { %v9687_v40 = vadd.f32 %v11256_v43, %v9995_v7  ;;  %v9681_v11 = vpop.f32.mrb[73].mxu1 }
0x4df6   :  { %v9682_v12 = vadd.f32 %v9995_v7, %v9681_v11 }
0x4df7   :  { %v9691_v14 = vmul.f32 0.5, %v9687_v40 }
0x4df8   :  { %v9690_v18 = vmul.f32 0.5, %v9682_v12 }
0x4df9   :  { %12326 = vtanh.f32 %v9691_v14 }
0x4dfa   :  { %12328 = vtanh.f32 %v9690_v18 }
0x4e03   :  { %v12327_v22 = vpop.eup %12326 }
0x4e04   :  { %v12329_v23 = vpop.eup %12328  ;;  %v9695_v25 = vadd.f32 1.0, %v12327_v22 }
0x4e05   :  { %v9694_v28 = vadd.f32 1.0, %v12329_v23 }
0x4e06   :  { %v9697_v30 = vmul.f32 0.5, %v9695_v25 }
0x4e07   :  { %v9696_v29 = vmul.f32 0.5, %v9694_v28 }
0x4e08   :  { %9699 = vst.msk [vmem:[#allocation7 + $0x8] sm:$0xff] %vm53_vm0, %v9697_v30 }
0x4e09   :  { %9698 = vst.msk [vmem:[#allocation7] sm:$0xff] %vm53_vm0, %v9696_v29 }
0x4e0a   :  { %12389 = shalt.err (!%p12386_p6)
}
0x4e0b   :  { %s12390_s23 = scalar_lea.hbm %s13295_s2, 256 }
0x4e0c   :  { %p12391_p7 = scmp.ne.s32.totalorder %s13295_s2, %s12390_s23  ;;  %p12394_p8 = scmp.lt.u32.totalorder %s12390_s23, %s13295_s2 }
0x4e0e   :  { %p12396_p9 = pnand %p12394_p8, %p12391_p7 }
0x4e10   :  { %12399 = shalt.err (!%p12396_p9)
}
0x4e11   :  { %9711 = dma.vmem_to_hbm [thread:$0]  %s9706_s17, 256, %s13295_s2, [#allocation4], %s12407_s19, %s12407_s19, %s12408_s20  }
0x4e12   :  { %12404 = dma.done.wait [#allocation4], 256  }
0x4e13   :  { %12405 = vsyncadd [#allocation4], 4294967040 }
0x4e14   :  { %9715 = vsyncpa [#allocation3], 1 }
0x4e15   :  { %9716 = vsyncpa [#allocation6], 1 }
0x4e16   :  { %9717 = vsyncpa [#allocation4], 1 }

</bundles_post_ra>
